<compile_context>
chip_gen: v7x
topology: tpu7x:2x2x1
jax: 0.10.0
libtpu: 0.0.40
codegen_flags: <defaults>
</compile_context>

<pallas_src>
import numpy as np
import jax
import jax.numpy as jnp
from jax import lax
from jax.experimental import pallas as pl
from jax.experimental.pallas import tpu as pltpu


# ----------------------------------------------------------------------------
# Fused kernel: LSTM stack + Bahdanau attention + fc (one batch-block).
# ----------------------------------------------------------------------------
def make_fused_kernel(num_layers, Bb, T, H, A, Opad):
    def kernel(*refs):
        x_ref = refs[0]                                    # [Bb, T, D] f32
        layer_refs = refs[1:1 + 3 * num_layers]            # (wih, whh, b) per layer
        (we_ref, be_ref, wd_ref, bd_ref, wv_ref,
         wfd_ref, wfx_ref, bfc_ref, out_ref) = refs[1 + 3 * num_layers:]

        # ------------- LSTM stack (gate column order i, f, o, g) -------------
        cur = x_ref[...].astype(jnp.float32)               # [Bb, T, Din]
        for l in range(num_layers):
            wih = layer_refs[3 * l][...]                   # [Din, 4H] bf16
            whh = layer_refs[3 * l + 1][...]               # [H,   4H] bf16
            b = layer_refs[3 * l + 2][...]                 # [1,   4H] f32 (b_ih+b_hh)
            din = cur.shape[-1]

            # Hoisted input projection + bias for every timestep at once (MXU).
            xg = (jnp.dot(cur.reshape(Bb * T, din).astype(jnp.bfloat16), wih,
                          preferred_element_type=jnp.float32)
                  + b).reshape(Bb, T, 4 * H)               # [Bb, T, 4H] f32

            h = jnp.zeros((Bb, H), jnp.float32)
            c = jnp.zeros((Bb, H), jnp.float32)
            hs = []
            for t in range(T):                             # static unroll
                gates = xg[:, t, :] + jnp.dot(
                    h.astype(jnp.bfloat16), whh,
                    preferred_element_type=jnp.float32)    # [Bb, 4H] f32
                # One sigmoid over the contiguous [i|f|o] block, one tanh for g.
                sig = jax.nn.sigmoid(gates[:, :3 * H])
                g_g = jnp.tanh(gates[:, 3 * H:])
                i_g = sig[:, 0 * H:1 * H]
                f_g = sig[:, 1 * H:2 * H]
                o_g = sig[:, 2 * H:3 * H]
                c = f_g * c + i_g * g_g
                h = o_g * jnp.tanh(c)
                hs.append(h)                               # keep as values
            cur = jnp.stack(hs, axis=1)                    # [Bb, T, H] f32
        lo = cur                                           # lstm_out
        lo2_bf = lo.reshape(Bb * T, H).astype(jnp.bfloat16)  # rows ordered (b, t)

        # -------- Bahdanau attention + fc, batched over all decoder steps ----
        we = we_ref[...]; be = be_ref[...]                 # bf16 / f32
        wd = wd_ref[...]; bd = bd_ref[...]
        wv = wv_ref[...].reshape(1, 1, 1, A)               # f32
        wfd = wfd_ref[...]; wfx = wfx_ref[...]; bfc = bfc_ref[...]

        enc = jnp.dot(lo2_bf, we, preferred_element_type=jnp.float32) + be  # [Bb*T, A]
        dec = jnp.dot(lo2_bf, wd, preferred_element_type=jnp.float32) + bd  # [Bb*T, A]

        # energy[b, d, e, :] = tanh(enc[b, e, :] + dec[b, d, :])   (rank-4, no copy)
        energy = jnp.tanh(enc.reshape(Bb, 1, T, A) + dec.reshape(Bb, T, 1, A))
        scores = jnp.sum(energy * wv, axis=-1)             # [Bb, T, T]; +bv dropped
        scores = scores - jnp.max(scores, axis=-1, keepdims=True)
        p = jnp.exp(scores)
        attn = p / jnp.sum(p, axis=-1, keepdims=True)      # [Bb, T, T] f32

        ctx = jnp.einsum("bde,beh->bdh",
                         attn.astype(jnp.bfloat16), lo.astype(jnp.bfloat16),
                         preferred_element_type=jnp.float32)   # [Bb, T, H]

        # Split-weight fc: dec_h @ Wfc[:H] + context @ Wfc[H:]  (no concat).
        logits = (jnp.dot(lo2_bf, wfd, preferred_element_type=jnp.float32)
                  + jnp.dot(ctx.reshape(Bb * T, H).astype(jnp.bfloat16), wfx,
                            preferred_element_type=jnp.float32)
                  + bfc)                                    # [Bb*T, Opad] f32
        out_ref[...] = logits.reshape(Bb, T, Opad).astype(out_ref.dtype)

    return kernel


def fused_forward_pallas(params, emb, *, o_pad=128):
    B, T, D = emb.shape
    layers = params["lstm_layers"]
    L = len(layers)
    H = layers[0]["whh"].shape[0]
    A = params["we"].shape[1]
    O = params["wfc"].shape[1]

    # ------------- host-side weight prep (outside the kernel) ----------------
    def permute_gates(w):          # column blocks [i|f|g|o] -> [i|f|o|g]
        i, f, g, o = jnp.split(w, 4, axis=-1)
        return jnp.concatenate([i, f, o, g], axis=-1)

    lstm_args = []
    for layer in layers:
        lstm_args += [permute_gates(layer["wih"]).astype(jnp.bfloat16),
                      permute_gates(layer["whh"]).astype(jnp.bfloat16),
                      permute_gates(layer["b"]).astype(jnp.float32)]

    # Split-weight fc, zero-padded to a lane-dense O_pad=128 output slab.
    wfc_dec = jnp.zeros((H, o_pad), jnp.float32).at[:, :O].set(params["wfc"][:H, :])
    wfc_ctx = jnp.zeros((H, o_pad), jnp.float32).at[:, :O].set(params["wfc"][H:, :])
    bfc_pad = jnp.zeros((1, o_pad), jnp.float32).at[:, :O].set(params["bfc"])

    args = ([emb.astype(jnp.float32)] + lstm_args + [
        params["we"].astype(jnp.bfloat16), params["be"].astype(jnp.float32),
        params["wd"].astype(jnp.bfloat16), params["bd"].astype(jnp.float32),
        params["wv"].astype(jnp.float32),
        wfc_dec.astype(jnp.bfloat16), wfc_ctx.astype(jnp.bfloat16), bfc_pad])

    # Batch grid: blocks of up to 8 sequences; "parallel" -> megacore on v7x.
    b_blk = 8 if B % 8 == 0 else (B if B <= 8 else 1)
    assert B % b_blk == 0
    grid = (B // b_blk,)

    def replicated_spec(shape):
        nd = len(shape)
        return pl.BlockSpec(shape, lambda i: (0,) * nd)

    in_specs = [pl.BlockSpec((b_blk, T, D), lambda i: (i, 0, 0))]
    in_specs += [replicated_spec(a.shape) for a in args[1:]]
    out_specs = pl.BlockSpec((b_blk, T, o_pad), lambda i: (i, 0, 0))

    # Rough cost hints for the XLA scheduler.
    flops = 0
    din = D
    for _ in range(L):
        flops += 2 * B * T * din * 4 * H + 2 * B * T * H * 4 * H + 12 * B * T * H
        din = H
    flops += 4 * B * T * H * A            # enc + dec projections
    flops += 3 * B * T * T * A            # energy build + score reduce
    flops += 2 * B * T * T * H            # context einsum
    flops += 4 * B * T * H * o_pad        # split fc
    transcendentals = 6 * B * T * H * L + B * T * T * (A + 1)
    bytes_accessed = int(sum(int(np.prod(a.shape)) * a.dtype.itemsize for a in args)
                         + B * T * o_pad * 4)

    kernel = make_fused_kernel(L, b_blk, T, H, A, o_pad)
    out = pl.pallas_call(
        kernel,
        grid=grid,
        in_specs=in_specs,
        out_specs=out_specs,
        out_shape=jax.ShapeDtypeStruct((B, T, o_pad), jnp.float32),
        compiler_params=pltpu.CompilerParams(
            dimension_semantics=("parallel",),
            vmem_limit_bytes=32 * 1024 * 1024),
        cost_estimate=pl.CostEstimate(flops=int(flops),
                                      transcendentals=int(transcendentals),
                                      bytes_accessed=int(bytes_accessed)),
    )(*args)
    return out[:, :, :O]                                   # drop zero-padded lanes


# ----------------------------------------------------------------------------
# Parameter init (deterministic, synthetic) and model forward.
# ----------------------------------------------------------------------------
def init_params(key, vocab_size, D, H, layer_dim, A, O, pad_idx=0):
    ks = list(jax.random.split(key, 3 * layer_dim + 12))
    kit = iter(ks)

    def unif(shape, scale):
        return jax.random.uniform(next(kit), shape, jnp.float32, -scale, scale)

    emb = jax.random.normal(next(kit), (vocab_size, D), jnp.float32) * 0.1
    emb = emb.at[pad_idx].set(0.0)  # nn.Embedding(padding_idx=pad_idx)

    layers = []
    in_dim = D
    s_lstm = 1.0 / np.sqrt(H)
    for _ in range(layer_dim):
        layers.append(dict(
            wih=unif((in_dim, 4 * H), s_lstm),
            whh=unif((H, 4 * H), s_lstm),
            b=unif((1, 4 * H), s_lstm),   # b_ih + b_hh folded together
        ))
        in_dim = H

    s_h = 1.0 / np.sqrt(H)
    s_a = 1.0 / np.sqrt(A)
    s_fc = 1.0 / np.sqrt(2 * H)
    params = dict(
        embedding=emb,
        lstm_layers=layers,
        we=unif((H, A), s_h), be=unif((1, A), s_h),
        wd=unif((H, A), s_h), bd=unif((1, A), s_h),
        wv=unif((1, A), s_a), bv=unif((1, 1), s_a),
        wfc=unif((2 * H, O), s_fc), bfc=unif((1, O), s_fc),
    )
    return params


def forward(params, input_ids):
    # Embedding gather done as XLA glue outside the kernel.
    emb = params["embedding"][input_ids].astype(jnp.float32)   # [B, T, D]
    # dropout -> identity (eval mode)
    return fused_forward_pallas(params, emb)                   # [B, T, O]


# Pure-JAX f32 reference for a correctness spot-check (PyTorch semantics).
def reference_forward(params, input_ids):
    x = params["embedding"][input_ids]
    for layer in params["lstm_layers"]:
        B, T, _ = x.shape
        H = layer["whh"].shape[0]

        def step(carry, x_t):
            h, c = carry
            gates = x_t @ layer["wih"] + h @ layer["whh"] + layer["b"]
            i = jax.nn.sigmoid(gates[:, :H])
            f = jax.nn.sigmoid(gates[:, H:2 * H])
            g = jnp.tanh(gates[:, 2 * H:3 * H])
            o = jax.nn.sigmoid(gates[:, 3 * H:])
            c = f * c + i * g
            h = o * jnp.tanh(c)
            return (h, c), h

        (_, _), hs = lax.scan(step,
                              (jnp.zeros((B, H)), jnp.zeros((B, H))),
                              jnp.transpose(x, (1, 0, 2)))
        x = jnp.transpose(hs, (1, 0, 2))
    lstm_out = x
    enc_feat = lstm_out @ params["we"] + params["be"]
    outs = []
    for t in range(lstm_out.shape[1]):
        dec_h = lstm_out[:, t, :]
        dec_feat = dec_h @ params["wd"] + params["bd"]
        energy = jnp.tanh(enc_feat + dec_feat[:, None, :])
        scores = jnp.sum(energy * params["wv"].reshape(1, 1, -1), axis=-1) + params["bv"]
        attn = jax.nn.softmax(scores, axis=-1)
        context = jnp.einsum("bt,bth->bh", attn, lstm_out)
        combined = jnp.concatenate([dec_h, context], axis=-1)
        outs.append(combined @ params["wfc"] + params["bfc"])
    return jnp.stack(outs, axis=1)


if __name__ == "__main__":
    # B=16 so the batch fills a full sublane group per block (8) and the grid
    # has 2 "parallel" steps (uses both v7x TensorCores).
    B, T = 16, 8
    vocab_size, D, H, layer_dim, O, A = 50, 16, 32, 1, 10, 128

    key = jax.random.PRNGKey(0)
    pkey, dkey = jax.random.split(key)
    params = init_params(pkey, vocab_size, D, H, layer_dim, A, O)
    input_ids = jax.random.randint(dkey, (B, T), 0, vocab_size, dtype=jnp.int32)

    logits = forward(params, input_ids)
    logits = jax.block_until_ready(logits)
    assert logits.shape == (B, T, O), logits.shape

    ref = jax.block_until_ready(reference_forward(params, input_ids))
    np.testing.assert_allclose(np.asarray(logits), np.asarray(ref),
                               rtol=5e-2, atol=5e-2)

    print("KERNEL_OK")
</pallas_src>

<mosaic_0001>
module attributes {stable_mosaic.version = 11 : i64} {
  func.func @kernel(%arg0: i32, %arg1: memref<8x8x16xf32, #tpu.memory_space<vmem>>, %arg2: memref<16x128xbf16, #tpu.memory_space<vmem>>, %arg3: memref<32x128xbf16, #tpu.memory_space<vmem>>, %arg4: memref<1x128xf32, #tpu.memory_space<vmem>>, %arg5: memref<32x128xbf16, #tpu.memory_space<vmem>>, %arg6: memref<1x128xf32, #tpu.memory_space<vmem>>, %arg7: memref<32x128xbf16, #tpu.memory_space<vmem>>, %arg8: memref<1x128xf32, #tpu.memory_space<vmem>>, %arg9: memref<1x128xf32, #tpu.memory_space<vmem>>, %arg10: memref<32x128xbf16, #tpu.memory_space<vmem>>, %arg11: memref<32x128xbf16, #tpu.memory_space<vmem>>, %arg12: memref<1x128xf32, #tpu.memory_space<vmem>>, %arg13: memref<8x8x128xf32, #tpu.memory_space<vmem>>) attributes {dimension_semantics = [#tpu.dimension_semantics<parallel>], iteration_bounds = array<i64: 2>, scalar_prefetch = 0 : i64, scratch_operands = 0 : i64, tpu.core_type = #tpu.core_type<tc>, window_params = [{transform_indices = @transform_0, window_bounds = array<i64: 8, 8, 16>}, {pipeline_mode = #tpu.pipeline_mode<synchronous>, transform_indices = @transform_1, window_bounds = array<i64: 16, 128>}, {pipeline_mode = #tpu.pipeline_mode<synchronous>, transform_indices = @transform_2, window_bounds = array<i64: 32, 128>}, {pipeline_mode = #tpu.pipeline_mode<synchronous>, transform_indices = @transform_3, window_bounds = array<i64: 1, 128>}, {pipeline_mode = #tpu.pipeline_mode<synchronous>, transform_indices = @transform_4, window_bounds = array<i64: 32, 128>}, {pipeline_mode = #tpu.pipeline_mode<synchronous>, transform_indices = @transform_5, window_bounds = array<i64: 1, 128>}, {pipeline_mode = #tpu.pipeline_mode<synchronous>, transform_indices = @transform_6, window_bounds = array<i64: 32, 128>}, {pipeline_mode = #tpu.pipeline_mode<synchronous>, transform_indices = @transform_7, window_bounds = array<i64: 1, 128>}, {pipeline_mode = #tpu.pipeline_mode<synchronous>, transform_indices = @transform_8, window_bounds = array<i64: 1, 128>}, {pipeline_mode = #tpu.pipeline_mode<synchronous>, transform_indices = @transform_9, window_bounds = array<i64: 32, 128>}, {pipeline_mode = #tpu.pipeline_mode<synchronous>, transform_indices = @transform_10, window_bounds = array<i64: 32, 128>}, {pipeline_mode = #tpu.pipeline_mode<synchronous>, transform_indices = @transform_11, window_bounds = array<i64: 1, 128>}, {transform_indices = @transform_12, window_bounds = array<i64: 8, 8, 128>}]} {
    %c0 = arith.constant 0 : index
    %c0_0 = arith.constant 0 : index
    %c0_1 = arith.constant 0 : index
    %0 = vector.load %arg1[%c0, %c0_0, %c0_1] : memref<8x8x16xf32, #tpu.memory_space<vmem>>, vector<8x8x16xf32>
    %c0_2 = arith.constant 0 : index
    %c0_3 = arith.constant 0 : index
    %1 = vector.load %arg2[%c0_2, %c0_3] : memref<16x128xbf16, #tpu.memory_space<vmem>>, vector<16x128xbf16>
    %c0_4 = arith.constant 0 : index
    %c0_5 = arith.constant 0 : index
    %2 = vector.load %arg3[%c0_4, %c0_5] : memref<32x128xbf16, #tpu.memory_space<vmem>>, vector<32x128xbf16>
    %c0_6 = arith.constant 0 : index
    %c0_7 = arith.constant 0 : index
    %3 = vector.load %arg4[%c0_6, %c0_7] : memref<1x128xf32, #tpu.memory_space<vmem>>, vector<1x128xf32>
    %4 = vector.shape_cast %0 : vector<8x8x16xf32> to vector<64x16xf32>
    %5 = arith.truncf %4 : vector<64x16xf32> to vector<64x16xbf16>
    %cst = arith.constant dense<0.000000e+00> : vector<64x128xf32>
    %6 = tpu.matmul %5, %1, %cst {dimension_numbers = #tpu.dot_dimension_numbers<[1], [0], [0], [1], [0, 0, 1, 1], [], []>} : vector<64x16xbf16>, vector<16x128xbf16>, vector<64x128xf32> -> vector<64x128xf32>
    %7 = vector.broadcast %3 : vector<1x128xf32> to vector<64x128xf32>
    %8 = arith.addf %6, %7 : vector<64x128xf32>
    %9 = vector.shape_cast %8 : vector<64x128xf32> to vector<8x8x128xf32>
    %cst_8 = arith.constant 0.000000e+00 : f32
    %10 = vector.broadcast %cst_8 : f32 to vector<8x32xf32>
    %cst_9 = arith.constant 0.000000e+00 : f32
    %11 = vector.broadcast %cst_9 : f32 to vector<8x32xf32>
    %12 = vector.extract_strided_slice %9 {offsets = [0, 0, 0], sizes = [8, 1, 128], strides = [1, 1, 1]} : vector<8x8x128xf32> to vector<8x1x128xf32>
    %13 = vector.shape_cast %12 : vector<8x1x128xf32> to vector<8x128xf32>
    %14 = arith.truncf %10 : vector<8x32xf32> to vector<8x32xbf16>
    %cst_10 = arith.constant dense<0.000000e+00> : vector<8x128xf32>
    %15 = tpu.matmul %14, %2, %cst_10 {dimension_numbers = #tpu.dot_dimension_numbers<[1], [0], [0], [1], [0, 0, 1, 1], [], []>} : vector<8x32xbf16>, vector<32x128xbf16>, vector<8x128xf32> -> vector<8x128xf32>
    %16 = arith.addf %13, %15 : vector<8x128xf32>
    %17 = vector.extract_strided_slice %16 {offsets = [0, 0], sizes = [8, 96], strides = [1, 1]} : vector<8x128xf32> to vector<8x96xf32>
    %18 = arith.negf %17 : vector<8x96xf32>
    %19 = math.exp %18 : vector<8x96xf32>
    %cst_11 = arith.constant 1.000000e+00 : f32
    %20 = vector.broadcast %cst_11 : f32 to vector<8x96xf32>
    %21 = arith.addf %20, %19 : vector<8x96xf32>
    %22 = arith.divf %20, %21 : vector<8x96xf32>
    %23 = vector.extract_strided_slice %16 {offsets = [0, 96], sizes = [8, 32], strides = [1, 1]} : vector<8x128xf32> to vector<8x32xf32>
    %24 = math.tanh %23 : vector<8x32xf32>
    %25 = vector.extract_strided_slice %22 {offsets = [0, 0], sizes = [8, 32], strides = [1, 1]} : vector<8x96xf32> to vector<8x32xf32>
    %26 = vector.extract_strided_slice %22 {offsets = [0, 32], sizes = [8, 32], strides = [1, 1]} : vector<8x96xf32> to vector<8x32xf32>
    %27 = vector.extract_strided_slice %22 {offsets = [0, 64], sizes = [8, 32], strides = [1, 1]} : vector<8x96xf32> to vector<8x32xf32>
    %28 = arith.mulf %26, %11 : vector<8x32xf32>
    %29 = arith.mulf %25, %24 : vector<8x32xf32>
    %30 = arith.addf %28, %29 : vector<8x32xf32>
    %31 = math.tanh %30 : vector<8x32xf32>
    %32 = arith.mulf %27, %31 : vector<8x32xf32>
    %33 = vector.extract_strided_slice %9 {offsets = [0, 1, 0], sizes = [8, 1, 128], strides = [1, 1, 1]} : vector<8x8x128xf32> to vector<8x1x128xf32>
    %34 = vector.shape_cast %33 : vector<8x1x128xf32> to vector<8x128xf32>
    %35 = arith.truncf %32 : vector<8x32xf32> to vector<8x32xbf16>
    %cst_12 = arith.constant dense<0.000000e+00> : vector<8x128xf32>
    %36 = tpu.matmul %35, %2, %cst_12 {dimension_numbers = #tpu.dot_dimension_numbers<[1], [0], [0], [1], [0, 0, 1, 1], [], []>} : vector<8x32xbf16>, vector<32x128xbf16>, vector<8x128xf32> -> vector<8x128xf32>
    %37 = arith.addf %34, %36 : vector<8x128xf32>
    %38 = vector.extract_strided_slice %37 {offsets = [0, 0], sizes = [8, 96], strides = [1, 1]} : vector<8x128xf32> to vector<8x96xf32>
    %39 = arith.negf %38 : vector<8x96xf32>
    %40 = math.exp %39 : vector<8x96xf32>
    %cst_13 = arith.constant 1.000000e+00 : f32
    %41 = vector.broadcast %cst_13 : f32 to vector<8x96xf32>
    %42 = arith.addf %41, %40 : vector<8x96xf32>
    %43 = arith.divf %41, %42 : vector<8x96xf32>
    %44 = vector.extract_strided_slice %37 {offsets = [0, 96], sizes = [8, 32], strides = [1, 1]} : vector<8x128xf32> to vector<8x32xf32>
    %45 = math.tanh %44 : vector<8x32xf32>
    %46 = vector.extract_strided_slice %43 {offsets = [0, 0], sizes = [8, 32], strides = [1, 1]} : vector<8x96xf32> to vector<8x32xf32>
    %47 = vector.extract_strided_slice %43 {offsets = [0, 32], sizes = [8, 32], strides = [1, 1]} : vector<8x96xf32> to vector<8x32xf32>
    %48 = vector.extract_strided_slice %43 {offsets = [0, 64], sizes = [8, 32], strides = [1, 1]} : vector<8x96xf32> to vector<8x32xf32>
    %49 = arith.mulf %47, %30 : vector<8x32xf32>
    %50 = arith.mulf %46, %45 : vector<8x32xf32>
    %51 = arith.addf %49, %50 : vector<8x32xf32>
    %52 = math.tanh %51 : vector<8x32xf32>
    %53 = arith.mulf %48, %52 : vector<8x32xf32>
    %54 = vector.extract_strided_slice %9 {offsets = [0, 2, 0], sizes = [8, 1, 128], strides = [1, 1, 1]} : vector<8x8x128xf32> to vector<8x1x128xf32>
    %55 = vector.shape_cast %54 : vector<8x1x128xf32> to vector<8x128xf32>
    %56 = arith.truncf %53 : vector<8x32xf32> to vector<8x32xbf16>
    %cst_14 = arith.constant dense<0.000000e+00> : vector<8x128xf32>
    %57 = tpu.matmul %56, %2, %cst_14 {dimension_numbers = #tpu.dot_dimension_numbers<[1], [0], [0], [1], [0, 0, 1, 1], [], []>} : vector<8x32xbf16>, vector<32x128xbf16>, vector<8x128xf32> -> vector<8x128xf32>
    %58 = arith.addf %55, %57 : vector<8x128xf32>
    %59 = vector.extract_strided_slice %58 {offsets = [0, 0], sizes = [8, 96], strides = [1, 1]} : vector<8x128xf32> to vector<8x96xf32>
    %60 = arith.negf %59 : vector<8x96xf32>
    %61 = math.exp %60 : vector<8x96xf32>
    %cst_15 = arith.constant 1.000000e+00 : f32
    %62 = vector.broadcast %cst_15 : f32 to vector<8x96xf32>
    %63 = arith.addf %62, %61 : vector<8x96xf32>
    %64 = arith.divf %62, %63 : vector<8x96xf32>
    %65 = vector.extract_strided_slice %58 {offsets = [0, 96], sizes = [8, 32], strides = [1, 1]} : vector<8x128xf32> to vector<8x32xf32>
    %66 = math.tanh %65 : vector<8x32xf32>
    %67 = vector.extract_strided_slice %64 {offsets = [0, 0], sizes = [8, 32], strides = [1, 1]} : vector<8x96xf32> to vector<8x32xf32>
    %68 = vector.extract_strided_slice %64 {offsets = [0, 32], sizes = [8, 32], strides = [1, 1]} : vector<8x96xf32> to vector<8x32xf32>
    %69 = vector.extract_strided_slice %64 {offsets = [0, 64], sizes = [8, 32], strides = [1, 1]} : vector<8x96xf32> to vector<8x32xf32>
    %70 = arith.mulf %68, %51 : vector<8x32xf32>
    %71 = arith.mulf %67, %66 : vector<8x32xf32>
    %72 = arith.addf %70, %71 : vector<8x32xf32>
    %73 = math.tanh %72 : vector<8x32xf32>
    %74 = arith.mulf %69, %73 : vector<8x32xf32>
    %75 = vector.extract_strided_slice %9 {offsets = [0, 3, 0], sizes = [8, 1, 128], strides = [1, 1, 1]} : vector<8x8x128xf32> to vector<8x1x128xf32>
    %76 = vector.shape_cast %75 : vector<8x1x128xf32> to vector<8x128xf32>
    %77 = arith.truncf %74 : vector<8x32xf32> to vector<8x32xbf16>
    %cst_16 = arith.constant dense<0.000000e+00> : vector<8x128xf32>
    %78 = tpu.matmul %77, %2, %cst_16 {dimension_numbers = #tpu.dot_dimension_numbers<[1], [0], [0], [1], [0, 0, 1, 1], [], []>} : vector<8x32xbf16>, vector<32x128xbf16>, vector<8x128xf32> -> vector<8x128xf32>
    %79 = arith.addf %76, %78 : vector<8x128xf32>
    %80 = vector.extract_strided_slice %79 {offsets = [0, 0], sizes = [8, 96], strides = [1, 1]} : vector<8x128xf32> to vector<8x96xf32>
    %81 = arith.negf %80 : vector<8x96xf32>
    %82 = math.exp %81 : vector<8x96xf32>
    %cst_17 = arith.constant 1.000000e+00 : f32
    %83 = vector.broadcast %cst_17 : f32 to vector<8x96xf32>
    %84 = arith.addf %83, %82 : vector<8x96xf32>
    %85 = arith.divf %83, %84 : vector<8x96xf32>
    %86 = vector.extract_strided_slice %79 {offsets = [0, 96], sizes = [8, 32], strides = [1, 1]} : vector<8x128xf32> to vector<8x32xf32>
    %87 = math.tanh %86 : vector<8x32xf32>
    %88 = vector.extract_strided_slice %85 {offsets = [0, 0], sizes = [8, 32], strides = [1, 1]} : vector<8x96xf32> to vector<8x32xf32>
    %89 = vector.extract_strided_slice %85 {offsets = [0, 32], sizes = [8, 32], strides = [1, 1]} : vector<8x96xf32> to vector<8x32xf32>
    %90 = vector.extract_strided_slice %85 {offsets = [0, 64], sizes = [8, 32], strides = [1, 1]} : vector<8x96xf32> to vector<8x32xf32>
    %91 = arith.mulf %89, %72 : vector<8x32xf32>
    %92 = arith.mulf %88, %87 : vector<8x32xf32>
    %93 = arith.addf %91, %92 : vector<8x32xf32>
    %94 = math.tanh %93 : vector<8x32xf32>
    %95 = arith.mulf %90, %94 : vector<8x32xf32>
    %96 = vector.extract_strided_slice %9 {offsets = [0, 4, 0], sizes = [8, 1, 128], strides = [1, 1, 1]} : vector<8x8x128xf32> to vector<8x1x128xf32>
    %97 = vector.shape_cast %96 : vector<8x1x128xf32> to vector<8x128xf32>
    %98 = arith.truncf %95 : vector<8x32xf32> to vector<8x32xbf16>
    %cst_18 = arith.constant dense<0.000000e+00> : vector<8x128xf32>
    %99 = tpu.matmul %98, %2, %cst_18 {dimension_numbers = #tpu.dot_dimension_numbers<[1], [0], [0], [1], [0, 0, 1, 1], [], []>} : vector<8x32xbf16>, vector<32x128xbf16>, vector<8x128xf32> -> vector<8x128xf32>
    %100 = arith.addf %97, %99 : vector<8x128xf32>
    %101 = vector.extract_strided_slice %100 {offsets = [0, 0], sizes = [8, 96], strides = [1, 1]} : vector<8x128xf32> to vector<8x96xf32>
    %102 = arith.negf %101 : vector<8x96xf32>
    %103 = math.exp %102 : vector<8x96xf32>
    %cst_19 = arith.constant 1.000000e+00 : f32
    %104 = vector.broadcast %cst_19 : f32 to vector<8x96xf32>
    %105 = arith.addf %104, %103 : vector<8x96xf32>
    %106 = arith.divf %104, %105 : vector<8x96xf32>
    %107 = vector.extract_strided_slice %100 {offsets = [0, 96], sizes = [8, 32], strides = [1, 1]} : vector<8x128xf32> to vector<8x32xf32>
    %108 = math.tanh %107 : vector<8x32xf32>
    %109 = vector.extract_strided_slice %106 {offsets = [0, 0], sizes = [8, 32], strides = [1, 1]} : vector<8x96xf32> to vector<8x32xf32>
    %110 = vector.extract_strided_slice %106 {offsets = [0, 32], sizes = [8, 32], strides = [1, 1]} : vector<8x96xf32> to vector<8x32xf32>
    %111 = vector.extract_strided_slice %106 {offsets = [0, 64], sizes = [8, 32], strides = [1, 1]} : vector<8x96xf32> to vector<8x32xf32>
    %112 = arith.mulf %110, %93 : vector<8x32xf32>
    %113 = arith.mulf %109, %108 : vector<8x32xf32>
    %114 = arith.addf %112, %113 : vector<8x32xf32>
    %115 = math.tanh %114 : vector<8x32xf32>
    %116 = arith.mulf %111, %115 : vector<8x32xf32>
    %117 = vector.extract_strided_slice %9 {offsets = [0, 5, 0], sizes = [8, 1, 128], strides = [1, 1, 1]} : vector<8x8x128xf32> to vector<8x1x128xf32>
    %118 = vector.shape_cast %117 : vector<8x1x128xf32> to vector<8x128xf32>
    %119 = arith.truncf %116 : vector<8x32xf32> to vector<8x32xbf16>
    %cst_20 = arith.constant dense<0.000000e+00> : vector<8x128xf32>
    %120 = tpu.matmul %119, %2, %cst_20 {dimension_numbers = #tpu.dot_dimension_numbers<[1], [0], [0], [1], [0, 0, 1, 1], [], []>} : vector<8x32xbf16>, vector<32x128xbf16>, vector<8x128xf32> -> vector<8x128xf32>
    %121 = arith.addf %118, %120 : vector<8x128xf32>
    %122 = vector.extract_strided_slice %121 {offsets = [0, 0], sizes = [8, 96], strides = [1, 1]} : vector<8x128xf32> to vector<8x96xf32>
    %123 = arith.negf %122 : vector<8x96xf32>
    %124 = math.exp %123 : vector<8x96xf32>
    %cst_21 = arith.constant 1.000000e+00 : f32
    %125 = vector.broadcast %cst_21 : f32 to vector<8x96xf32>
    %126 = arith.addf %125, %124 : vector<8x96xf32>
    %127 = arith.divf %125, %126 : vector<8x96xf32>
    %128 = vector.extract_strided_slice %121 {offsets = [0, 96], sizes = [8, 32], strides = [1, 1]} : vector<8x128xf32> to vector<8x32xf32>
    %129 = math.tanh %128 : vector<8x32xf32>
    %130 = vector.extract_strided_slice %127 {offsets = [0, 0], sizes = [8, 32], strides = [1, 1]} : vector<8x96xf32> to vector<8x32xf32>
    %131 = vector.extract_strided_slice %127 {offsets = [0, 32], sizes = [8, 32], strides = [1, 1]} : vector<8x96xf32> to vector<8x32xf32>
    %132 = vector.extract_strided_slice %127 {offsets = [0, 64], sizes = [8, 32], strides = [1, 1]} : vector<8x96xf32> to vector<8x32xf32>
    %133 = arith.mulf %131, %114 : vector<8x32xf32>
    %134 = arith.mulf %130, %129 : vector<8x32xf32>
    %135 = arith.addf %133, %134 : vector<8x32xf32>
    %136 = math.tanh %135 : vector<8x32xf32>
    %137 = arith.mulf %132, %136 : vector<8x32xf32>
    %138 = vector.extract_strided_slice %9 {offsets = [0, 6, 0], sizes = [8, 1, 128], strides = [1, 1, 1]} : vector<8x8x128xf32> to vector<8x1x128xf32>
    %139 = vector.shape_cast %138 : vector<8x1x128xf32> to vector<8x128xf32>
    %140 = arith.truncf %137 : vector<8x32xf32> to vector<8x32xbf16>
    %cst_22 = arith.constant dense<0.000000e+00> : vector<8x128xf32>
    %141 = tpu.matmul %140, %2, %cst_22 {dimension_numbers = #tpu.dot_dimension_numbers<[1], [0], [0], [1], [0, 0, 1, 1], [], []>} : vector<8x32xbf16>, vector<32x128xbf16>, vector<8x128xf32> -> vector<8x128xf32>
    %142 = arith.addf %139, %141 : vector<8x128xf32>
    %143 = vector.extract_strided_slice %142 {offsets = [0, 0], sizes = [8, 96], strides = [1, 1]} : vector<8x128xf32> to vector<8x96xf32>
    %144 = arith.negf %143 : vector<8x96xf32>
    %145 = math.exp %144 : vector<8x96xf32>
    %cst_23 = arith.constant 1.000000e+00 : f32
    %146 = vector.broadcast %cst_23 : f32 to vector<8x96xf32>
    %147 = arith.addf %146, %145 : vector<8x96xf32>
    %148 = arith.divf %146, %147 : vector<8x96xf32>
    %149 = vector.extract_strided_slice %142 {offsets = [0, 96], sizes = [8, 32], strides = [1, 1]} : vector<8x128xf32> to vector<8x32xf32>
    %150 = math.tanh %149 : vector<8x32xf32>
    %151 = vector.extract_strided_slice %148 {offsets = [0, 0], sizes = [8, 32], strides = [1, 1]} : vector<8x96xf32> to vector<8x32xf32>
    %152 = vector.extract_strided_slice %148 {offsets = [0, 32], sizes = [8, 32], strides = [1, 1]} : vector<8x96xf32> to vector<8x32xf32>
    %153 = vector.extract_strided_slice %148 {offsets = [0, 64], sizes = [8, 32], strides = [1, 1]} : vector<8x96xf32> to vector<8x32xf32>
    %154 = arith.mulf %152, %135 : vector<8x32xf32>
    %155 = arith.mulf %151, %150 : vector<8x32xf32>
    %156 = arith.addf %154, %155 : vector<8x32xf32>
    %157 = math.tanh %156 : vector<8x32xf32>
    %158 = arith.mulf %153, %157 : vector<8x32xf32>
    %159 = vector.extract_strided_slice %9 {offsets = [0, 7, 0], sizes = [8, 1, 128], strides = [1, 1, 1]} : vector<8x8x128xf32> to vector<8x1x128xf32>
    %160 = vector.shape_cast %159 : vector<8x1x128xf32> to vector<8x128xf32>
    %161 = arith.truncf %158 : vector<8x32xf32> to vector<8x32xbf16>
    %cst_24 = arith.constant dense<0.000000e+00> : vector<8x128xf32>
    %162 = tpu.matmul %161, %2, %cst_24 {dimension_numbers = #tpu.dot_dimension_numbers<[1], [0], [0], [1], [0, 0, 1, 1], [], []>} : vector<8x32xbf16>, vector<32x128xbf16>, vector<8x128xf32> -> vector<8x128xf32>
    %163 = arith.addf %160, %162 : vector<8x128xf32>
    %164 = vector.extract_strided_slice %163 {offsets = [0, 0], sizes = [8, 96], strides = [1, 1]} : vector<8x128xf32> to vector<8x96xf32>
    %165 = arith.negf %164 : vector<8x96xf32>
    %166 = math.exp %165 : vector<8x96xf32>
    %cst_25 = arith.constant 1.000000e+00 : f32
    %167 = vector.broadcast %cst_25 : f32 to vector<8x96xf32>
    %168 = arith.addf %167, %166 : vector<8x96xf32>
    %169 = arith.divf %167, %168 : vector<8x96xf32>
    %170 = vector.extract_strided_slice %163 {offsets = [0, 96], sizes = [8, 32], strides = [1, 1]} : vector<8x128xf32> to vector<8x32xf32>
    %171 = math.tanh %170 : vector<8x32xf32>
    %172 = vector.extract_strided_slice %169 {offsets = [0, 0], sizes = [8, 32], strides = [1, 1]} : vector<8x96xf32> to vector<8x32xf32>
    %173 = vector.extract_strided_slice %169 {offsets = [0, 32], sizes = [8, 32], strides = [1, 1]} : vector<8x96xf32> to vector<8x32xf32>
    %174 = vector.extract_strided_slice %169 {offsets = [0, 64], sizes = [8, 32], strides = [1, 1]} : vector<8x96xf32> to vector<8x32xf32>
    %175 = arith.mulf %173, %156 : vector<8x32xf32>
    %176 = arith.mulf %172, %171 : vector<8x32xf32>
    %177 = arith.addf %175, %176 : vector<8x32xf32>
    %178 = math.tanh %177 : vector<8x32xf32>
    %179 = arith.mulf %174, %178 : vector<8x32xf32>
    %180 = vector.shape_cast %32 : vector<8x32xf32> to vector<8x1x32xf32>
    %181 = vector.shape_cast %53 : vector<8x32xf32> to vector<8x1x32xf32>
    %182 = vector.shape_cast %74 : vector<8x32xf32> to vector<8x1x32xf32>
    %183 = vector.shape_cast %95 : vector<8x32xf32> to vector<8x1x32xf32>
    %184 = vector.shape_cast %116 : vector<8x32xf32> to vector<8x1x32xf32>
    %185 = vector.shape_cast %137 : vector<8x32xf32> to vector<8x1x32xf32>
    %186 = vector.shape_cast %158 : vector<8x32xf32> to vector<8x1x32xf32>
    %187 = vector.shape_cast %179 : vector<8x32xf32> to vector<8x1x32xf32>
    %188 = tpu.concatenate %180, %181, %182, %183, %184, %185, %186, %187 in 1 : vector<8x1x32xf32>, vector<8x1x32xf32>, vector<8x1x32xf32>, vector<8x1x32xf32>, vector<8x1x32xf32>, vector<8x1x32xf32>, vector<8x1x32xf32>, vector<8x1x32xf32> -> vector<8x8x32xf32>
    %189 = vector.shape_cast %188 : vector<8x8x32xf32> to vector<64x32xf32>
    %190 = arith.truncf %189 : vector<64x32xf32> to vector<64x32xbf16>
    %c0_26 = arith.constant 0 : index
    %c0_27 = arith.constant 0 : index
    %191 = vector.load %arg5[%c0_26, %c0_27] : memref<32x128xbf16, #tpu.memory_space<vmem>>, vector<32x128xbf16>
    %c0_28 = arith.constant 0 : index
    %c0_29 = arith.constant 0 : index
    %192 = vector.load %arg6[%c0_28, %c0_29] : memref<1x128xf32, #tpu.memory_space<vmem>>, vector<1x128xf32>
    %c0_30 = arith.constant 0 : index
    %c0_31 = arith.constant 0 : index
    %193 = vector.load %arg7[%c0_30, %c0_31] : memref<32x128xbf16, #tpu.memory_space<vmem>>, vector<32x128xbf16>
    %c0_32 = arith.constant 0 : index
    %c0_33 = arith.constant 0 : index
    %194 = vector.load %arg8[%c0_32, %c0_33] : memref<1x128xf32, #tpu.memory_space<vmem>>, vector<1x128xf32>
    %c0_34 = arith.constant 0 : index
    %c0_35 = arith.constant 0 : index
    %195 = vector.load %arg9[%c0_34, %c0_35] : memref<1x128xf32, #tpu.memory_space<vmem>>, vector<1x128xf32>
    %196 = vector.shape_cast %195 : vector<1x128xf32> to vector<1x1x1x128xf32>
    %c0_36 = arith.constant 0 : index
    %c0_37 = arith.constant 0 : index
    %197 = vector.load %arg10[%c0_36, %c0_37] : memref<32x128xbf16, #tpu.memory_space<vmem>>, vector<32x128xbf16>
    %c0_38 = arith.constant 0 : index
    %c0_39 = arith.constant 0 : index
    %198 = vector.load %arg11[%c0_38, %c0_39] : memref<32x128xbf16, #tpu.memory_space<vmem>>, vector<32x128xbf16>
    %c0_40 = arith.constant 0 : index
    %c0_41 = arith.constant 0 : index
    %199 = vector.load %arg12[%c0_40, %c0_41] : memref<1x128xf32, #tpu.memory_space<vmem>>, vector<1x128xf32>
    %cst_42 = arith.constant dense<0.000000e+00> : vector<64x128xf32>
    %200 = tpu.matmul %190, %191, %cst_42 {dimension_numbers = #tpu.dot_dimension_numbers<[1], [0], [0], [1], [0, 0, 1, 1], [], []>} : vector<64x32xbf16>, vector<32x128xbf16>, vector<64x128xf32> -> vector<64x128xf32>
    %201 = vector.broadcast %192 : vector<1x128xf32> to vector<64x128xf32>
    %202 = arith.addf %200, %201 : vector<64x128xf32>
    %cst_43 = arith.constant dense<0.000000e+00> : vector<64x128xf32>
    %203 = tpu.matmul %190, %193, %cst_43 {dimension_numbers = #tpu.dot_dimension_numbers<[1], [0], [0], [1], [0, 0, 1, 1], [], []>} : vector<64x32xbf16>, vector<32x128xbf16>, vector<64x128xf32> -> vector<64x128xf32>
    %204 = vector.broadcast %194 : vector<1x128xf32> to vector<64x128xf32>
    %205 = arith.addf %203, %204 : vector<64x128xf32>
    %206 = vector.shape_cast %202 : vector<64x128xf32> to vector<8x1x8x128xf32>
    %207 = vector.shape_cast %205 : vector<64x128xf32> to vector<8x8x1x128xf32>
    %208 = vector.broadcast %206 : vector<8x1x8x128xf32> to vector<8x8x8x128xf32>
    %209 = vector.broadcast %207 : vector<8x8x1x128xf32> to vector<8x8x8x128xf32>
    %210 = arith.addf %208, %209 : vector<8x8x8x128xf32>
    %211 = math.tanh %210 : vector<8x8x8x128xf32>
    %212 = vector.broadcast %196 : vector<1x1x1x128xf32> to vector<8x8x8x128xf32>
    %213 = arith.mulf %211, %212 : vector<8x8x8x128xf32>
    %cst_44 = arith.constant dense<0.000000e+00> : vector<8x8x8xf32>
    %214 = vector.multi_reduction <add>, %213, %cst_44 [3] : vector<8x8x8x128xf32> to vector<8x8x8xf32>
    %cst_45 = arith.constant dense<0xFF800000> : vector<8x8xf32>
    %215 = vector.multi_reduction <maximumf>, %214, %cst_45 [2] : vector<8x8x8xf32> to vector<8x8xf32>
    %216 = vector.shape_cast %215 : vector<8x8xf32> to vector<8x8x1xf32>
    %217 = vector.broadcast %216 : vector<8x8x1xf32> to vector<8x8x8xf32>
    %218 = arith.subf %214, %217 : vector<8x8x8xf32>
    %219 = math.exp %218 : vector<8x8x8xf32>
    %cst_46 = arith.constant dense<0.000000e+00> : vector<8x8xf32>
    %220 = vector.multi_reduction <add>, %219, %cst_46 [2] : vector<8x8x8xf32> to vector<8x8xf32>
    %221 = vector.shape_cast %220 : vector<8x8xf32> to vector<8x8x1xf32>
    %222 = vector.broadcast %221 : vector<8x8x1xf32> to vector<8x8x8xf32>
    %223 = arith.divf %219, %222 : vector<8x8x8xf32>
    %224 = arith.truncf %223 : vector<8x8x8xf32> to vector<8x8x8xbf16>
    %225 = arith.truncf %188 : vector<8x8x32xf32> to vector<8x8x32xbf16>
    "tpu.trace_start"() <{level = 10 : i32, message = "bde,beh->bdh"}> : () -> ()
    %cst_47 = arith.constant dense<0.000000e+00> : vector<8x8x32xf32>
    %226 = tpu.matmul %224, %225, %cst_47 {dimension_numbers = #tpu.dot_dimension_numbers<[2], [1], [1], [2], [0, 0, 0, 1, 1, 2], [0], [0]>} : vector<8x8x8xbf16>, vector<8x8x32xbf16>, vector<8x8x32xf32> -> vector<8x8x32xf32>
    "tpu.trace_stop"() : () -> ()
    %cst_48 = arith.constant dense<0.000000e+00> : vector<64x128xf32>
    %227 = tpu.matmul %190, %197, %cst_48 {dimension_numbers = #tpu.dot_dimension_numbers<[1], [0], [0], [1], [0, 0, 1, 1], [], []>} : vector<64x32xbf16>, vector<32x128xbf16>, vector<64x128xf32> -> vector<64x128xf32>
    %228 = vector.shape_cast %226 : vector<8x8x32xf32> to vector<64x32xf32>
    %229 = arith.truncf %228 : vector<64x32xf32> to vector<64x32xbf16>
    %cst_49 = arith.constant dense<0.000000e+00> : vector<64x128xf32>
    %230 = tpu.matmul %229, %198, %cst_49 {dimension_numbers = #tpu.dot_dimension_numbers<[1], [0], [0], [1], [0, 0, 1, 1], [], []>} : vector<64x32xbf16>, vector<32x128xbf16>, vector<64x128xf32> -> vector<64x128xf32>
    %231 = arith.addf %227, %230 : vector<64x128xf32>
    %232 = vector.broadcast %199 : vector<1x128xf32> to vector<64x128xf32>
    %233 = arith.addf %231, %232 : vector<64x128xf32>
    %234 = vector.shape_cast %233 : vector<64x128xf32> to vector<8x8x128xf32>
    %c0_50 = arith.constant 0 : index
    %c0_51 = arith.constant 0 : index
    %c0_52 = arith.constant 0 : index
    %235 = vector.load %arg13[%c0_50, %c0_51, %c0_52] : memref<8x8x128xf32, #tpu.memory_space<vmem>>, vector<8x8x128xf32>
    tpu.vector_store %arg13[%c0_50, %c0_51, %c0_52], %234 {strides = array<i32>} : memref<8x8x128xf32, #tpu.memory_space<vmem>>, vector<8x8x128xf32>,
    return
  }
  func.func @transform_0(%arg0: i32) -> (i32, i32, i32) {
    %c0_i32 = arith.constant 0 : i32
    %c0_i32_0 = arith.constant 0 : i32
    %c0_i32_1 = arith.constant 0 : i32
    return %arg0, %c0_i32, %c0_i32_0 : i32, i32, i32
  }
  func.func @transform_1(%arg0: i32) -> (i32, i32) {
    %c0_i32 = arith.constant 0 : i32
    %c0_i32_0 = arith.constant 0 : i32
    %c0_i32_1 = arith.constant 0 : i32
    return %c0_i32, %c0_i32_0 : i32, i32
  }
  func.func @transform_2(%arg0: i32) -> (i32, i32) {
    %c0_i32 = arith.constant 0 : i32
    %c0_i32_0 = arith.constant 0 : i32
    %c0_i32_1 = arith.constant 0 : i32
    return %c0_i32, %c0_i32_0 : i32, i32
  }
  func.func @transform_3(%arg0: i32) -> (i32, i32) {
    %c0_i32 = arith.constant 0 : i32
    %c0_i32_0 = arith.constant 0 : i32
    %c0_i32_1 = arith.constant 0 : i32
    return %c0_i32, %c0_i32_0 : i32, i32
  }
  func.func @transform_4(%arg0: i32) -> (i32, i32) {
    %c0_i32 = arith.constant 0 : i32
    %c0_i32_0 = arith.constant 0 : i32
    %c0_i32_1 = arith.constant 0 : i32
    return %c0_i32, %c0_i32_0 : i32, i32
  }
  func.func @transform_5(%arg0: i32) -> (i32, i32) {
    %c0_i32 = arith.constant 0 : i32
    %c0_i32_0 = arith.constant 0 : i32
    %c0_i32_1 = arith.constant 0 : i32
    return %c0_i32, %c0_i32_0 : i32, i32
  }
  func.func @transform_6(%arg0: i32) -> (i32, i32) {
    %c0_i32 = arith.constant 0 : i32
    %c0_i32_0 = arith.constant 0 : i32
    %c0_i32_1 = arith.constant 0 : i32
    return %c0_i32, %c0_i32_0 : i32, i32
  }
  func.func @transform_7(%arg0: i32) -> (i32, i32) {
    %c0_i32 = arith.constant 0 : i32
    %c0_i32_0 = arith.constant 0 : i32
    %c0_i32_1 = arith.constant 0 : i32
    return %c0_i32, %c0_i32_0 : i32, i32
  }
  func.func @transform_8(%arg0: i32) -> (i32, i32) {
    %c0_i32 = arith.constant 0 : i32
    %c0_i32_0 = arith.constant 0 : i32
    %c0_i32_1 = arith.constant 0 : i32
    return %c0_i32, %c0_i32_0 : i32, i32
  }
  func.func @transform_9(%arg0: i32) -> (i32, i32) {
    %c0_i32 = arith.constant 0 : i32
    %c0_i32_0 = arith.constant 0 : i32
    %c0_i32_1 = arith.constant 0 : i32
    return %c0_i32, %c0_i32_0 : i32, i32
  }
  func.func @transform_10(%arg0: i32) -> (i32, i32) {
    %c0_i32 = arith.constant 0 : i32
    %c0_i32_0 = arith.constant 0 : i32
    %c0_i32_1 = arith.constant 0 : i32
    return %c0_i32, %c0_i32_0 : i32, i32
  }
  func.func @transform_11(%arg0: i32) -> (i32, i32) {
    %c0_i32 = arith.constant 0 : i32
    %c0_i32_0 = arith.constant 0 : i32
    %c0_i32_1 = arith.constant 0 : i32
    return %c0_i32, %c0_i32_0 : i32, i32
  }
  func.func @transform_12(%arg0: i32) -> (i32, i32, i32) {
    %c0_i32 = arith.constant 0 : i32
    %c0_i32_0 = arith.constant 0 : i32
    %c0_i32_1 = arith.constant 0 : i32
    return %arg0, %c0_i32, %c0_i32_0 : i32, i32, i32
  }
}

</mosaic_0001>

<bundles_post_ra>
// kernel: tpu_custom_call.1
= control target key start
LH: loop header
LB: loop body
LE: loop exit
PB: predicated region body
PF: predicated region fallthrough
CT: control target
= control target key end

     0   :  { %s13169_s0 = inlined_call_operand.hbm [shape: f32[16,8,16], index: 0, kind: input, shape index: {}]   ;;  %s13170_s1 = inlined_call_operand.hbm [shape: bf16[16,128], index: 1, kind: input, shape index: {}]   ;;  %s13171_s2 = inlined_call_operand.hbm [shape: bf16[32,128], index: 2, kind: input, shape index: {}]   ;;  %s13172_s3 = inlined_call_operand.vmem [shape: f32[1,128], index: 3, kind: input, shape index: {}]   ;;  %s13173_s4 = inlined_call_operand.hbm [shape: bf16[32,128], index: 4, kind: input, shape index: {}]   ;;  %s13174_s5 = inlined_call_operand.vmem [shape: f32[1,128], index: 5, kind: input, shape index: {}]   ;;  %s13175_s6 = inlined_call_operand.vmem [shape: bf16[32,128], index: 6, kind: input, shape index: {}]   ;;  %s13176_s7 = inlined_call_operand.hbm [shape: f32[1,128], index: 7, kind: input, shape index: {}]   ;;  %s13177_s8 = inlined_call_operand.hbm [shape: f32[1,128], index: 8, kind: input, shape index: {}]   ;;  %s13178_s9 = inlined_call_operand.vmem [shape: bf16[32,128], index: 9, kind: input, shape index: {}]   ;;  %s13179_s10 = inlined_call_operand.hbm [shape: bf16[32,128], index: 10, kind: input, shape index: {}]   ;;  %s13180_s11 = inlined_call_operand.vmem [shape: f32[1,128], index: 11, kind: input, shape index: {}]   ;;  %s13181_s12 = inlined_call_operand.hbm [shape: f32[16,8,128], index: 12, kind: output, shape index: {}]  }
   0x1   :  { %13263 = sst [smem:[#allocation68_spill]] %s13174_s5 }
   0x2   :  { %13264 = sst [smem:[#allocation69_spill]] %s13178_s9 }
   0x3   :  { %13265 = sst [smem:[#allocation70_spill]] %s13180_s11 }
   0x4   :  { %13266 = sst [smem:[#allocation71_spill]] %s13181_s12 }
   0x5   :  { %17 = vsyncpa [#allocation3], 0 }
   0x6   :  { %19 = vsyncpa [#allocation3 + $0x1], 0 }
   0x7   :  { %20 = vsyncpa [#allocation6], 0 }
   0x8   :  { %21 = vsyncpa [#allocation9], 0 }
   0x9   :  { %22 = vsyncpa [#allocation12], 0 }
   0xa   :  { %23 = vsyncpa [#allocation4], 0 }
   0xb   :  { %25 = vsyncpa [#allocation4 + $0x1], 0  ;;  %s9708_s21 = smov 0   ;;  %s9710_s22 = smov 0  }
   0xc   :  { %s9712_s23 = smov 0   ;;  %s9714_s24 = smov 0  }
   0xd LB: > { %s9623_s25 = smov [#allocation5]   ;;  %s9729_s27 = sadd.s32 4294967295, %s9621_s24   ;;  %s9621_s24 = sphi %s9714_s24, %s13447_s24   ;;  %s9617_s23 = sphi %s9712_s23, %s13446_s23   ;;  %s9613_s22 = sphi %s9710_s22, %s13445_s22   ;;  %s9609_s21 = sphi %s9708_s21, %s13444_s21  }
   0xe   : > { %s331_s26 = sshll.u32 %s9623_s25, 4  ;;  %p7925_p0 = scmp.ge.s32.totalorder %s9621_s24, 1  ;;  %s9734_s26 = int_to_ptr.vmem [resolvable:$true] %s331_s26 }
   0xf   : > { %p13186_p1 = scmp.eq.s32.totalorder %s9729_s27, 0  ;;  %p319_p2 = scmp.lt.s32.totalorder %s9621_s24, 3 }
  0x10   : > { %s9624_s29 = smov [#allocation8]   ;;  %s9625_s14 = smov [#allocation11]  }
  0x11   : > { %p9736_p3 = pnand %p7925_p0, %p319_p2  ;;  %s360_s30 = sshll.u32 %s9624_s29, 4  ;;  %s9749_s30 = int_to_ptr.vmem [resolvable:$true] %s360_s30 }
  0x12   : > { %s391_s15 = sshll.u32 %s9625_s14, 4  ;;  %s9345_s18 = scalar_lea.hbm %s13170_s1, 128  ;;  %s9751_s15 = int_to_ptr.vmem [resolvable:$true] %s391_s15 }
  0x13   : > { %s13267_s28 = scalar_select %p9736_p3, 1, 0 }
  0x14   : > { %p8342_p5 = pneg %p9736_p3  ;;  %p9346_p7 = scmp.ne.s32.totalorder %s13170_s1, %s9345_s18 }
  0x15   : > { %p9352_p11 = scmp.lt.u32.totalorder %s9345_s18, %s13170_s1 }
  0x16   : > { %p9745_p6 = pnand %p8342_p5, %p13186_p1 }
  0x18   : > { %p9761_p8 = pneg %p9745_p6 }
  0x1a   : > { %p9348_p9 = pnand %p9761_p8, %p9346_p7 }
  0x1c   : > { %p9349_p10 = pneg %p9348_p9 }
  0x1e   : > { %p9354_p12 = pnand %p9352_p11, %p9349_p10 }
  0x20   : > { %9357 = shalt.err (!%p9354_p12)
}
  0x21   : > { %s9358_s16 = scalar_lea.vmem %s9734_s26, 128  ;;  %p9366_p5 = scmp.lt.s32.totalorder %s9734_s26, %s9734_s26 }
  0x22   : > { %p9359_p13 = scmp.ne.s32.totalorder %s9734_s26, %s9358_s16  ;;  %p9367_p4 = scmp.lt.s32.totalorder %s9358_s16, %s9358_s16 }
  0x24   : > { %p9361_p0 = pnand %p9359_p13, %p9761_p8  ;;  %p9368_p7 = por %p9367_p4, %p9366_p5 }
  0x26   : > { %p9362_p2 = pneg %p9361_p0 }
  0x28   : > { %p9369_p9 = pnand %p9368_p7, %p9362_p2 }
  0x2a   : > { %9372 = shalt.err (!%p9369_p9)
}
  0x2b   : > { %s13184_s17 = smov 64   ;;  %s9627_s18 = smov 4  }
  0x2c   : > { %8345 = dma.hbm_to_vmem [thread:$0]  (!%p9745_p6), %s13170_s1, 128, %s9734_s26, [#allocation6], %s13184_s17, %s13184_s17, %s9627_s18  }
  0x2d   : > { %s9373_s16 = scalar_lea.hbm %s13173_s4, 256 }
  0x2e   : > { %p9374_p4 = scmp.ne.s32.totalorder %s13173_s4, %s9373_s16  ;;  %p9380_p12 = scmp.lt.u32.totalorder %s9373_s16, %s13173_s4 }
  0x30   : > { %p9376_p10 = pnand %p9374_p4, %p9761_p8 }
  0x32   : > { %p9377_p11 = pneg %p9376_p10 }
  0x34   : > { %p9382_p13 = pnand %p9380_p12, %p9377_p11 }
  0x36   : > { %9385 = shalt.err (!%p9382_p13)
}
  0x37   : > { %s9386_s26 = scalar_lea.vmem %s9749_s30, 256  ;;  %p9394_p7 = scmp.lt.s32.totalorder %s9749_s30, %s9749_s30 }
  0x38   : > { %p9387_p0 = scmp.ne.s32.totalorder %s9749_s30, %s9386_s26  ;;  %p9395_p9 = scmp.lt.s32.totalorder %s9386_s26, %s9386_s26 }
  0x3a   : > { %p9389_p2 = pnand %p9387_p0, %p9761_p8  ;;  %p9396_p4 = por %p9395_p9, %p9394_p7 }
  0x3c   : > { %p9390_p5 = pneg %p9389_p2 }
  0x3e   : > { %p9397_p10 = pnand %p9396_p4, %p9390_p5 }
  0x40   : > { %9400 = shalt.err (!%p9397_p10)
}
  0x41   : > { %8351 = dma.hbm_to_vmem [thread:$0]  (!%p9745_p6), %s13173_s4, 256, %s9749_s30, [#allocation9], %s13184_s17, %s13184_s17, %s9627_s18  }
  0x42   : > { %s9401_s19 = scalar_lea.hbm %s13177_s8, 16 }
  0x43   : > { %p9402_p11 = scmp.ne.s32.totalorder %s13177_s8, %s9401_s19  ;;  %p9408_p0 = scmp.lt.u32.totalorder %s9401_s19, %s13177_s8 }
  0x45   : > { %p9404_p12 = pnand %p9402_p11, %p9761_p8 }
  0x47   : > { %p9405_p13 = pneg %p9404_p12 }
  0x49   : > { %p9410_p2 = pnand %p9408_p0, %p9405_p13 }
  0x4b   : > { %9413 = shalt.err (!%p9410_p2)
}
  0x4c   : > { %s9414_s30 = scalar_lea.vmem %s9751_s15, 16  ;;  %s9421_s26 = scalar_lea.vmem %s9751_s15, 32 }
  0x4d   : > { %p9415_p5 = scmp.ne.s32.totalorder %s9751_s15, %s9414_s30  ;;  %p9422_p4 = scmp.lt.s32.totalorder %s9751_s15, %s9751_s15 }
  0x4e   : > { %p9423_p10 = scmp.lt.s32.totalorder %s9421_s26, %s9414_s30 }
  0x4f   : > { %p9417_p7 = pnand %p9415_p5, %p9761_p8 }
  0x50   : > { %p9424_p11 = por %p9423_p10, %p9422_p4 }
  0x51   : > { %p9418_p9 = pneg %p9417_p7 }
  0x53   : > { %p9425_p12 = pnand %p9424_p11, %p9418_p9 }
  0x55   : > { %9428 = shalt.err (!%p9425_p12)
}
  0x56   : > { %8357 = dma.hbm_to_vmem [thread:$0]  (!%p9745_p6), %s13177_s8, 16, %s9751_s15, [#allocation12]  }
  0x57   : > { %s9628_s11 = smov [#allocation7]   ;;  %s9629_s19 = smov [#allocation10]  }
  0x58   : > { %s344_s12 = sshll.u32 %s9628_s11, 4  ;;  %s380_s20 = sshll.u32 %s9629_s19, 4  ;;  %s345_s12 = int_to_ptr.vmem [resolvable:$true] %s344_s12  ;;  %s381_s20 = int_to_ptr.vmem [resolvable:$true] %s380_s20 }
  0x59   : > { %s9429_s16 = scalar_lea.hbm %s13171_s2, 256 }
  0x5a   : > { %p9430_p13 = scmp.ne.s32.totalorder %s13171_s2, %s9429_s16  ;;  %p9436_p5 = scmp.lt.u32.totalorder %s9429_s16, %s13171_s2 }
  0x5c   : > { %p9432_p0 = pnand %p9430_p13, %p9761_p8 }
  0x5e   : > { %p9433_p2 = pneg %p9432_p0 }
  0x60   : > { %p9438_p7 = pnand %p9436_p5, %p9433_p2 }
  0x62   : > { %9441 = shalt.err (!%p9438_p7)
}
  0x63   : > { %s9442_s15 = scalar_lea.vmem %s345_s12, 256  ;;  %p9450_p11 = scmp.lt.s32.totalorder %s345_s12, %s345_s12 }
  0x64   : > { %p9443_p9 = scmp.ne.s32.totalorder %s345_s12, %s9442_s15  ;;  %p9451_p12 = scmp.lt.s32.totalorder %s9442_s15, %s9442_s15 }
  0x66   : > { %p9445_p4 = pnand %p9443_p9, %p9761_p8  ;;  %p9452_p1 = por %p9451_p12, %p9450_p11 }
  0x68   : > { %p9446_p10 = pneg %p9445_p4 }
  0x6a   : > { %p9453_p3 = pnand %p9452_p1, %p9446_p10 }
  0x6c   : > { %9456 = shalt.err (!%p9453_p3)
}
  0x6d   : > { %s13270_s9 = smov 64   ;;  %s9457_s14 = scalar_lea.hbm %s13176_s7, 16 }
  0x6e   : > { %8348 = dma.hbm_to_vmem [thread:$0]  (!%p9745_p6), %s13171_s2, 256, %s345_s12, [#allocation6], %s13270_s9, %s13270_s9, %s9627_s18  }
  0x6f   : > { %p9458_p1 = scmp.ne.s32.totalorder %s13176_s7, %s9457_s14  ;;  %p9464_p0 = scmp.lt.u32.totalorder %s9457_s14, %s13176_s7 }
  0x71   : > { %p9460_p3 = pnand %p9458_p1, %p9761_p8 }
  0x73   : > { %p9461_p13 = pneg %p9460_p3 }
  0x75   : > { %p9466_p2 = pnand %p9464_p0, %p9461_p13 }
  0x77   : > { %9469 = shalt.err (!%p9466_p2)
}
  0x78   : > { %s9470_s15 = scalar_lea.vmem %s381_s20, 16  ;;  %s9477_s12 = scalar_lea.vmem %s381_s20, 32 }
  0x79   : > { %p9471_p5 = scmp.ne.s32.totalorder %s381_s20, %s9470_s15  ;;  %p9478_p4 = scmp.lt.s32.totalorder %s381_s20, %s381_s20 }
  0x7a   : > { %p9479_p10 = scmp.lt.s32.totalorder %s9477_s12, %s9470_s15 }
  0x7b   : > { %p9473_p7 = pnand %p9471_p5, %p9761_p8 }
  0x7c   : > { %p9480_p11 = por %p9479_p10, %p9478_p4 }
  0x7d   : > { %p9474_p9 = pneg %p9473_p7 }
  0x7f   : > { %p9481_p12 = pnand %p9480_p11, %p9474_p9 }
  0x81   : > { %9484 = shalt.err (!%p9481_p12)
}
  0x82   : > { %8354 = dma.hbm_to_vmem [thread:$0]  (!%p9745_p6), %s13176_s7, 16, %s381_s20, [#allocation9]  }
  0x83   : > { %s9630_s19 = smov [#allocation13]   ;;  %s9485_s30 = scalar_lea.hbm %s13179_s10, 256 }
  0x84   : > { %s404_s29 = sshll.u32 %s9630_s19, 4  ;;  %p9486_p1 = scmp.ne.s32.totalorder %s13179_s10, %s9485_s30  ;;  %s405_s29 = int_to_ptr.vmem [resolvable:$true] %s404_s29 }
  0x85   : > { %p9492_p0 = scmp.lt.u32.totalorder %s9485_s30, %s13179_s10 }
  0x86   : > { %p9488_p3 = pnand %p9486_p1, %p9761_p8 }
  0x88   : > { %p9489_p13 = pneg %p9488_p3 }
  0x8a   : > { %p9494_p2 = pnand %p9492_p0, %p9489_p13 }
  0x8c   : > { %9497 = shalt.err (!%p9494_p2)
}
  0x8d   : > { %s9498_s20 = scalar_lea.vmem %s405_s29, 256  ;;  %p9506_p4 = scmp.lt.s32.totalorder %s405_s29, %s405_s29 }
  0x8e   : > { %p9499_p5 = scmp.ne.s32.totalorder %s405_s29, %s9498_s20  ;;  %p9507_p10 = scmp.lt.s32.totalorder %s9498_s20, %s9498_s20 }
  0x90   : > { %p9501_p7 = pnand %p9499_p5, %p9761_p8  ;;  %p9508_p11 = por %p9507_p10, %p9506_p4 }
  0x92   : > { %p9502_p9 = pneg %p9501_p7 }
  0x94   : > { %p9509_p12 = pnand %p9508_p11, %p9502_p9 }
  0x96   : > { %9512 = shalt.err (!%p9509_p12)
}
  0x97   : > { %8360 = dma.hbm_to_vmem [thread:$0]  (!%p9745_p6), %s13179_s10, 256, %s405_s29, [#allocation12], %s13270_s9, %s13270_s9, %s9627_s18  }
  0x98   : > { %s7924_s13 = sadd.s32 4294967294, %s9621_s24   ;;  %s9897_s25 = sadd.s32 1, %s9621_s24  }
  0x99   : > { %s35_s19 = ssub.s32 %s9621_s24, %s9897_s25  ;;  %s38_s14 = sadd.s32 1, %s9617_s23 }
  0x9a   : > { %p36_p8 = scmp.eq.s32.totalorder %s35_s19, 0  ;;  %p45_p1 = scmp.ne.s32.totalorder %s9617_s23, %s9613_s22 }
  0x9b   : > { %p46_p3 = scmp.eq.s32.totalorder %s9621_s24, 0  ;;  %p51_p13 = scmp.ne.s32.totalorder %s9613_s22, %s9609_s21 }
  0x9c   : > { %s9908_s16 = scalar_select %p36_p8, %s9617_s23, %s38_s14  }
  0x9d   : > { %p9910_p0 = por %p46_p3, %p45_p1  ;;  %p13272_p2 = scmp.eq.s32.totalorder %s9729_s27, 0 }
  0x9e   : > { %p306_p5 = scmp.eq.s32.totalorder %s9729_s27, 1  ;;  %p312_p7 = scmp.eq.s32.totalorder %s7924_s13, 1 }
  0x9f   : > { %p9916_p6 = por %p13272_p2, %p51_p13  ;;  %p8375_p9 = scmp.lt.s32.totalorder %s9621_s24, 2 }
  0xa0   : > { %s421_s9 = sand.u32 1, %s9617_s23   ;;  %p9923_p4 = por %p306_p5, %p45_p1 }
  0xa1   : > { %p9927_p10 = por %p312_p7, %p51_p13  ;;  %s7933_s5 = sshll.u32 %s421_s9, 6 }
  0xa2   : > { %s13274_s29 = scalar_select %p9923_p4, 1, 0 }
  0xa3   : > { %s13275_s26 = scalar_select %p9927_p10, 1, 0 }
  0xa4   : > { %s8065_s15 = sshll.u32 %s9621_s24, 10  ;;  %s425_s11 = scalar_lea.vmem [#allocation2], %s7933_s5 }
  0xa5   : > { %s9935_s17 = scalar_lea.hbm %s13169_s0, %s8065_s15  ;;  %s432_s13 = sshll.u32 %s425_s11, 4  ;;  %s9937_s13 = int_to_ptr.vmem [resolvable:$true] %s432_s13 }
  0xa6   : > { %p9941_p11 = pnand %p8375_p9, %p9910_p0  ;;  %s9945_s14 = scalar_lea.sflag [#allocation3], %s421_s9 }
  0xa7   : > { %s9513_s12 = scalar_lea.hbm %s9935_s17, 1024  ;;  %s9518_s30 = scalar_lea.hbm %s13169_s0, 2048 }
  0xa8   : > { %p9514_p12 = scmp.ne.s32.totalorder %s9935_s17, %s9513_s12  ;;  %p9515_p8 = pneg %p9941_p11 }
  0xa9   : > { %p9519_p13 = scmp.lt.u32.totalorder %s9935_s17, %s13169_s0  ;;  %p9520_p0 = scmp.lt.u32.totalorder %s9518_s30, %s9513_s12 }
  0xaa   : > { %p9516_p1 = pnand %p9515_p8, %p9514_p12  ;;  %p9522_p5 = scmp.lt.u32.totalorder %s9513_s12, %s9935_s17 }
  0xab   : > { %p9521_p2 = por %p9520_p0, %p9519_p13 }
  0xac   : > { %p9517_p3 = pneg %p9516_p1 }
  0xad   : > { %p9523_p7 = por %p9522_p5, %p9521_p2 }
  0xaf   : > { %p9524_p9 = pnand %p9523_p7, %p9517_p3 }
  0xb1   : > { %9527 = shalt.err (!%p9524_p9)
}
  0xb2   : > { %s9528_s9 = scalar_lea.vmem %s9937_s13, 1024  ;;  %s9631_s5 = smov [#allocation2]  }
  0xb3   : > { %p9529_p12 = scmp.ne.s32.totalorder %s9937_s13, %s9528_s9  ;;  %s9533_s15 = sshll.u32 %s9631_s5, 4  ;;  %s9534_s15 = int_to_ptr.vmem [resolvable:$false] %s9533_s15 }
  0xb4   : > { %s9535_s20 = scalar_lea.vmem %s9534_s15, 2048  ;;  %p9536_p4 = scmp.lt.s32.totalorder %s9937_s13, %s9534_s15 }
  0xb5   : > { %p9531_p1 = pnand %p9529_p12, %p9515_p8  ;;  %p9537_p13 = scmp.lt.s32.totalorder %s9535_s20, %s9528_s9 }
  0xb7   : > { %p9532_p10 = pneg %p9531_p1  ;;  %p9538_p0 = por %p9537_p13, %p9536_p4 }
  0xb9   : > { %p9539_p2 = pnand %p9538_p0, %p9532_p10 }
  0xbb   : > { %9542 = shalt.err (!%p9539_p2)
}
  0xbc   : > { %s9632_s12 = smov 128   ;;  %s9633_s30 = smov 8  }
  0xbd   : > { %8364 = dma.hbm_to_vmem [thread:$0]  (!%p9941_p11), %s9935_s17, 1024, %s9937_s13, %s9945_s14, %s9632_s12, %s9632_s12, %s9633_s30  }
  0xbe   : > { %p13277_p8 = scmp.ne.s32.totalorder %s13267_s28, 0 }
  0xc0   : > { %444 = sbr.rel (%p13277_p8) target bundleno = 7766 (0x1e56), region = 68 }
  0xc7   : > { %s9976_s11 = sand.u32 1, %s9613_s22  }
  0xc8   : > { %s7937_s9 = sshll.u32 %s9976_s11, 6  ;;  %s447_s5 = scalar_lea.sflag [#allocation3], %s9976_s11 }
  0xc9   : > { %s9982_s15 = scalar_lea.vmem [#allocation2], %s7937_s9 }
  0xca   : > { %9588 = dma.done.wait (%p9916_p6), %s447_s5, 1024  }
  0xcb   : > { %9590 = vsyncadd (%p9916_p6), %s447_s5, 4294966272  ;;  %p13278_p4 = scmp.eq.s32.totalorder %s9729_s27, 0 }
  0xcd   : > { %9592 = dma.done.wait (%p13278_p4), [#allocation6], 384   ;;  %p13279_p10 = pmov %p13278_p4 }
  0xce   : > { %p13280_p11 = pmov %p13278_p4 }
  0xcf   : > { %9594 = vsyncadd (%p13279_p10), [#allocation6], 4294966912 }
  0xd0   : > { %9596 = dma.done.wait (%p13280_p11), [#allocation9], 272   ;;  %p13281_p3 = pmov %p13278_p4 }
  0xd2   : > { %9598 = vsyncadd (%p13281_p3), [#allocation9], 4294967024  ;;  %p13282_p5 = pmov %p13281_p3 }
  0xd3   : > { %p13283_p7 = pmov %p13281_p3 }
  0xd4   : > { %9600 = dma.done.wait (%p13282_p5), [#allocation12], 272  }
  0xd5   : > { %9602 = vsyncadd (%p13283_p7), [#allocation12], 4294967024  ;;  %v13189_v0 = vmov 0.0   ;;  %vm9635_vm0 = vmmov 0   ;;  %v9636_v1 = vmov 0   ;;  %v8435_v2 = vld [vmem:[#allocation5] sm:$0xff]  }
  0xd6   : > { %8162 = vmatprep.subr.bf16.mxu0 %v13189_v0  ;;  %8166 = vmatprep.mubr.msk.bf16.mxu0 %vm9635_vm0, %v13189_v0  ;;  %v518_v3 = vld [vmem:[%s9982_s15] sm:$0xff]  ;;  %v519_v4 = vld [vmem:[%s9982_s15 + $0x8] sm:$0xff]  ;;  %vm549_vm1 = vcmask 130048   ;;  %v520_v5 = vld [vmem:[%s9982_s15 + $0x10] sm:$0xff]  ;;  %s9637_s17 = smov 32   ;;  %vm924_vm2 = vcmask 1041409  }
  0xd7   : > { %8434 = vset.pattern.permute.xlu0 %v9636_v1  ;;  %8433 = vset.pattern.permute.xlu1 %v9636_v1  ;;  %v533_v6 = vpack.c.bf16 %v519_v4, %v518_v3  ;;  %v521_v7 = vld [vmem:[%s9982_s15 + $0x18] sm:$0xff]  ;;  %v10007_v9 = vld [vmem:[#allocation7] sm:$0xff]   ;;  %v522_v10 = vld [vmem:[%s9982_s15 + $0x20] sm:$0xff]  ;;  %vm927_vm3 = vcmask 1042434   ;;  %vm930_vm4 = vcmask 1043459   ;;  %vm933_vm5 = vcmask 1044484  }
  0xd8   : > { %8136 = vmatprep.subr.bf16.mxu1 %v8435_v2  ;;  %v534_v8 = vpack.c.bf16 %v521_v7, %v520_v5  ;;  %v523_v11 = vld [vmem:[%s9982_s15 + $0x28] sm:$0xff]  ;;  %v524_v13 = vld [vmem:[%s9982_s15 + $0x30] sm:$0xff]  ;;  %v525_v14 = vld [vmem:[%s9982_s15 + $0x38] sm:$0xff]  ;;  %8163 = vmatpush3.bf16.msra.mxu0 %v10007_v9  ;;  %vm936_vm6 = vcmask 1045509   ;;  %vm939_vm7 = vcmask 1046534   ;;  %vm942_vm8 = vcmask 1047559  }
  0xd9   : > { %8137 = vmatpush3.bf16.msra.mxu1 %v8435_v2  ;;  %8138 = vmatprep.mubr.msk.bf16.mxu1 %vm549_vm1, %v533_v6  ;;  %v535_v12 = vpack.c.bf16 %v523_v11, %v522_v10  ;;  %v10015_v15 = vld [vmem:[#allocation7 + $0x8] sm:$0xff]   ;;  %v536_v16 = vpack.c.bf16 %v525_v14, %v524_v13  ;;  %v7945_v25 = vld [vmem:[%s13172_s3] ss:$0 sm:$0xff]  ;;  %s9638_s13 = smov 64   ;;  %vm639_vm9 = vcmask 261120   ;;  %vm3174_vm10 = vcmask 1040384  }
  0xda   : > { %8146 = vmatprep.subr.bf16.mxu1 %v13189_v0  ;;  %8164 = vmatprep.subr.bf16.mxu0 %v13189_v0  ;;  %vm3183_vm11 = vcmask 1041408   ;;  %vm3192_vm12 = vcmask 1042432   ;;  %vm3201_vm13 = vcmask 1043456   ;;  %vm3210_vm14 = vcmask 1044480   ;;  %s13293_s15 = sld [smem:[#allocation68_spill]]  ;;  %s13439_s12 = sld [smem:[#allocation70_spill]] }
  0xdb   : > { %vm3219_vm15 = vcmask 1045504   ;;  %s514_s30 = scalar_lea.vmem [#allocation14], %s7937_s9  ;;  %s13440_s18 = sld [smem:[#allocation71_spill]] }
  0xdc   : > { %8139 = vmatmul.mubr.msk.bf16.vlgmr.msra.gmra.mrb[0].mxu1 %vm549_vm1, %v534_v8  ;;  %8165 = vmatpush3.bf16.msra.mxu0 %v10015_v15  ;;  %s7794_s5 = sshll.u32 %s514_s30, 4  ;;  %p13441_p9 = scmp.ne.s32.totalorder %s13274_s29, 0  ;;  %s13120_s5 = int_to_ptr.vmem [resolvable:$true] %s7794_s5 }
  0xdd   : > { %8147 = vmatpush3.bf16.msra.mxu1 %v10007_v9  ;;  %8142 = vmatprep.mubr.msk.bf16.mxu1 %vm549_vm1, %v535_v12  ;;  %s9543_s19 = scalar_lea.vmem %s13120_s5, 1024  ;;  %s9640_s14 = smov [#allocation14]  }
  0xde   : > { %8148 = vmatprep.subr.bf16.mxu1 %v13189_v0  ;;  %8178 = vmatprep.subr.bf16.mxu0 %v13189_v0  ;;  %p9544_p6 = scmp.ne.s32.totalorder %s13120_s5, %s9543_s19  ;;  %s9547_s20 = sshll.u32 %s9640_s14, 4  ;;  %s9548_s20 = int_to_ptr.vmem [resolvable:$false] %s9547_s20 }
  0xdf   : > { %p9550_p13 = scmp.lt.s32.totalorder %s13120_s5, %s9548_s20 }
  0xe0   : > { %p9545_p12 = pnand %p9544_p6, %p13441_p9 }
  0xe1   : > { %8149 = vmatpush3.bf16.msra.mxu1 %v10015_v15 }
  0xe2   : > { %8154 = vmatprep.subr.bf16.mxu1 %v13189_v0  ;;  %p9546_p1 = pneg %p9545_p12 }
  0xe4   : > { %8143 = vmatmul.mubr.msk.bf16.gmra.mrb[4].mxu1 %vm549_vm1, %v536_v16  ;;  %vm3228_vm1 = vcmask 1046528  }
  0xe5   : > { %8150 = vmatprep.mubr.msk.bf16.mxu1 %vm9635_vm0, %v13189_v0 }
  0xec   : > { %8151 = vmatmul.mubr.bf16.vlgmr.msra.gmra.mrb[8].mxu1 %v9636_v1 }
  0xed   : > { %8155 = vmatpush3.bf16.msra.mxu1 %v10007_v9  ;;  %8158 = vmatprep.mubr.msk.bf16.mxu1 %vm9635_vm0, %v13189_v0 }
  0xee   : > { %8156 = vmatprep.subr.bf16.mxu1 %v13189_v0 }
  0xf1   : > { %8157 = vmatpush3.bf16.msra.mxu1 %v10015_v15 }
  0xf2   : > { %8170 = vmatprep.subr.bf16.mxu1 %v13189_v0 }
 0x1af   : > { %v8140_v17 = vpop.f32.mrb[0].mxu1 }
 0x1b0   : > { %v596_v18 = vpop.f32.mrb[1].mxu1  ;;  %v10055_v46 = vadd.f32 %v8140_v17, %v7945_v25 }
 0x1b1   : > { %v8141_v19 = vpop.f32.mrb[2].mxu1  ;;  %v10039_v26 = vadd.f32 %v7945_v25, %v596_v18 }
 0x1b2   : > { %v599_v20 = vpop.f32.mrb[3].mxu1  ;;  %v10041_v30 = vadd.f32 %v8141_v19, %v7945_v25 }
 0x1b3   : > { %v10050_v41 = vadd.f32 %v7945_v25, %v599_v20 }
 0x1b7   : > { %v8144_v21 = vpop.f32.mrb[4].mxu1 }
 0x1b8   : > { %v612_v22 = vpop.f32.mrb[5].mxu1  ;;  %v10062_v54 = vadd.f32 %v8144_v21, %v7945_v25 }
 0x1b9   : > { %v8145_v23 = vpop.f32.mrb[6].mxu1  ;;  %v10059_v50 = vadd.f32 %v7945_v25, %v612_v22 }
 0x1ba   : > { %v615_v24 = vpop.f32.mrb[7].mxu1  ;;  %v10048_v40 = vadd.f32 %v8145_v23, %v7945_v25 }
 0x1bb   : > { %v10045_v36 = vadd.f32 %v7945_v25, %v615_v24 }
 0x1bf   : > { %v677_v27 = vpop.f32.mrb[8].mxu1 }
 0x1c0   : > { %v686_v28 = vrot.slane %v677_v27, 3  ;;  %v8152_v29 = vpop.f32.mrb[9].mxu1  ;;  %v699_v32 = vadd.f32 %v677_v27, %v10039_v26  ;;  %v688_v35 = vrot.slane %v677_v27, 5  ;;  %v690_v37 = vrot.slane %v677_v27, 7 }
 0x1c1   : > { %v680_v31 = vpop.f32.mrb[10].mxu1  ;;  %v684_v39 = vrot.slane %v677_v27, 1  ;;  %v685_v44 = vrot.slane %v677_v27, 2  ;;  %v687_v48 = vrot.slane %v677_v27, 4  ;;  %v689_v51 = vrot.slane %v677_v27, 6 }
 0x1c2   : > { %v8153_v33 = vpop.f32.mrb[11].mxu1  ;;  %v702_v34 = vadd.f32 %v686_v28, %v10041_v30  ;;  %8446 = vtanh.f32 %v699_v32  ;;  %v704_v38 = vadd.f32 %v688_v35, %v10045_v36  ;;  %v706_v42 = vadd.f32 %v690_v37, %v10048_v40 }
 0x1c3   : > { %v700_v45 = vadd.f32 %v684_v39, %v10050_v41  ;;  %v701_v49 = vadd.f32 %v685_v44, %v10055_v46  ;;  %v703_v52 = vadd.f32 %v687_v48, %v10059_v50  ;;  %v705_v55 = vadd.f32 %v689_v51, %v10062_v54 }
 0x1c4   : > { %8448 = vtanh.f32 %v702_v34  ;;  %v7953_v61 = vmul.f32 -1.442695, %v699_v32  ;;  %v7956_v3 = vmul.f32 -1.442695, %v702_v34  ;;  %v7958_v5 = vmul.f32 -1.442695, %v704_v38 }
 0x1c5   : > { %8450 = vtanh.f32 %v704_v38  ;;  %v7954_v63 = vmul.f32 -1.442695, %v700_v45  ;;  %v7955_v2 = vmul.f32 -1.442695, %v701_v49  ;;  %v7957_v4 = vmul.f32 -1.442695, %v703_v52 }
 0x1c6   : > { %8452 = vtanh.f32 %v706_v42  ;;  %v7959_v6 = vmul.f32 -1.442695, %v705_v55  ;;  %v7960_v8 = vmul.f32 -1.442695, %v706_v42 }
 0x1c7   : > { %8454 = vtanh.f32 %v700_v45 }
 0x1c8   : > { %8456 = vtanh.f32 %v701_v49 }
 0x1c9   : > { %8458 = vtanh.f32 %v703_v52 }
 0x1ca   : > { %8460 = vtanh.f32 %v705_v55 }
 0x1cb   : > { %8462 = vpow2.f32 %v7953_v61 }
 0x1cc   : > { %v8447_v43 = vpop.eup %8446  ;;  %8464 = vpow2.f32 %v7954_v63 }
 0x1cd   : > { %779 = vrot.lane.b32.xlu1 %v8447_v43, %s9637_s17 }
 0x1ce   : > { %v8449_v47 = vpop.eup %8448 }
 0x1cf   : > { %v8451_v53 = vpop.eup %8450 }
 0x1d0   : > { %v8453_v56 = vpop.eup %8452 }
 0x1d1   : > { %785 = vrot.lane.b32.xlu1 %v8449_v47, %s9637_s17  ;;  %v8455_v57 = vpop.eup %8454 }
 0x1d2   : > { %781 = vrot.lane.b32.xlu0 %v8455_v57, %s9637_s17  ;;  %v8457_v58 = vpop.eup %8456 }
 0x1d3   : > { %v8459_v59 = vpop.eup %8458 }
 0x1d4   : > { %v8461_v60 = vpop.eup %8460 }
 0x1d5   : > { %789 = vrot.lane.b32.xlu1 %v8451_v53, %s9637_s17  ;;  %v8463_v62 = vpop.eup %8462 }
 0x1d6   : > { %783 = vrot.lane.b32.xlu0 %v8457_v58, %s9637_s17  ;;  %v731_v1 = vadd.f32 1.0, %v8463_v62  ;;  %v8465_v7 = vpop.eup %8464 }
 0x1d7   : > { %v732_v11 = vadd.f32 1.0, %v8465_v7 }
 0x1d8   : > { %8466 = vrcp.f32 %v731_v1 }
 0x1d9   : > { %793 = vrot.lane.b32.xlu1 %v8453_v56, %s9637_s17  ;;  %8468 = vpow2.f32 %v7955_v2 }
 0x1da   : > { %787 = vrot.lane.b32.xlu0 %v8459_v59, %s9637_s17  ;;  %8470 = vpow2.f32 %v7956_v3 }
 0x1db   : > { %8472 = vpow2.f32 %v7957_v4 }
 0x1dc   : > { %8474 = vpow2.f32 %v7958_v5 }
 0x1dd   : > { %8476 = vpow2.f32 %v7959_v6 }
 0x1de   : > { %791 = vrot.lane.b32.xlu0 %v8461_v60, %s9637_s17  ;;  %8478 = vpow2.f32 %v7960_v8 }
 0x1df   : > { %8480 = vrcp.f32 %v732_v11 }
 0x1e2   : > { %v10071_v10 = vpop.eup %8466 }
 0x1e3   : > { %v8469_v13 = vpop.eup %8468  ;;  %v763_v56 = vmul.f32 0.0, %v10071_v10 }
 0x1e4   : > { %v8471_v16 = vpop.eup %8470  ;;  %v733_v17 = vadd.f32 1.0, %v8469_v13 }
 0x1e5   : > { %v8473_v18 = vpop.eup %8472  ;;  %v734_v19 = vadd.f32 1.0, %v8471_v16 }
 0x1e6   : > { %v8475_v20 = vpop.eup %8474  ;;  %8482 = vrcp.f32 %v733_v17  ;;  %v735_v21 = vadd.f32 1.0, %v8473_v18 }
 0x1e7   : > { %v8477_v22 = vpop.eup %8476  ;;  %8484 = vrcp.f32 %v734_v19  ;;  %v736_v23 = vadd.f32 1.0, %v8475_v20 }
 0x1e8   : > { %8486 = vrcp.f32 %v735_v21  ;;  %v737_v24 = vadd.f32 1.0, %v8477_v22  ;;  %v8479_v25 = vpop.eup %8478 }
 0x1e9   : > { %v10075_v27 = vpop.eup %8480  ;;  %8488 = vrcp.f32 %v736_v23  ;;  %v738_v32 = vadd.f32 1.0, %v8479_v25 }
 0x1ea   : > { %8490 = vrcp.f32 %v737_v24  ;;  %v764_v60 = vmul.f32 0.0, %v10075_v27 }
 0x1eb   : > { %8492 = vrcp.f32 %v738_v32 }
 0x1f0   : > { %v10079_v33 = vpop.eup %8482 }
 0x1f1   : > { %v10082_v37 = vpop.eup %8484  ;;  %v765_v63 = vmul.f32 0.0, %v10079_v33 }
 0x1f2   : > { %v10085_v38 = vpop.eup %8486  ;;  %v766_v3 = vmul.f32 0.0, %v10082_v37 }
 0x1f3   : > { %v10089_v45 = vpop.eup %8488  ;;  %v767_v4 = vmul.f32 0.0, %v10085_v38 }
 0x1f4   : > { %v10093_v47 = vpop.eup %8490  ;;  %v768_v11 = vmul.f32 0.0, %v10089_v45 }
 0x1f5   : > { %v10099_v53 = vpop.eup %8492 }
 0x1f6   : > { %v770_v19 = vmul.f32 0.0, %v10099_v53 }
 0x23f   : > { %v780_v12 = vpop.permute.xlu1 %779 }
 0x240   : > { %v803_v14 = vmul.f32 %v10071_v10, %v780_v12  ;;  %v769_v12 = vmul.f32 0.0, %v10093_v47 }
 0x242   : > { %819 = vrot.lane.b32.xlu0 %v803_v14, %s9637_s17 }
 0x243   : > { %v786_v31 = vpop.permute.xlu1 %785 }
 0x244   : > { %v782_v28 = vpop.permute.xlu0 %781  ;;  %v806_v43 = vmul.f32 %v10082_v37, %v786_v31 }
 0x245   : > { %v804_v29 = vmul.f32 %v10075_v27, %v782_v28 }
 0x247   : > { %821 = vrot.lane.b32.xlu0 %v804_v29, %s9637_s17  ;;  %v790_v39 = vpop.permute.xlu1 %789 }
 0x248   : > { %v784_v34 = vpop.permute.xlu0 %783  ;;  %v808_v49 = vmul.f32 %v10089_v45, %v790_v39 }
 0x249   : > { %v805_v35 = vmul.f32 %v10079_v33, %v784_v34 }
 0x24b   : > { %823 = vrot.lane.b32.xlu1 %v805_v35, %s9637_s17  ;;  %v794_v52 = vpop.permute.xlu1 %793 }
 0x24c   : > { %v788_v42 = vpop.permute.xlu0 %787  ;;  %v810_v55 = vmul.f32 %v10099_v53, %v794_v52 }
 0x24d   : > { %v807_v44 = vmul.f32 %v10085_v38, %v788_v42 }
 0x24f   : > { %825 = vrot.lane.b32.xlu1 %v806_v43, %s9637_s17  ;;  %827 = vrot.lane.b32.xlu0 %v807_v44, %s9637_s17 }
 0x250   : > { %v792_v48 = vpop.permute.xlu0 %791 }
 0x251   : > { %v809_v51 = vmul.f32 %v10093_v47, %v792_v48 }
 0x253   : > { %829 = vrot.lane.b32.xlu1 %v808_v49, %s9637_s17  ;;  %831 = vrot.lane.b32.xlu0 %v809_v51, %s9637_s17 }
 0x257   : > { %833 = vrot.lane.b32.xlu1 %v810_v55, %s9637_s17 }
 0x2b4   : > { %v820_v57 = vpop.permute.xlu0 %819 }
 0x2b5   : > { %v10104_v58 = vadd.f32 %v820_v57, %v763_v56 }
 0x2b7   : > { %8494 = vtanh.f32 %v10104_v58 }
 0x2b9   : > { %v822_v61 = vpop.permute.xlu0 %821 }
 0x2ba   : > { %v10109_v62 = vadd.f32 %v822_v61, %v764_v60 }
 0x2bc   : > { %8496 = vtanh.f32 %v10109_v62 }
 0x2bd   : > { %v824_v1 = vpop.permute.xlu1 %823 }
 0x2be   : > { %v10113_v2 = vadd.f32 %v824_v1, %v765_v63 }
 0x2c0   : > { %8498 = vtanh.f32 %v10113_v2 }
 0x2c1   : > { %v8495_v59 = vpop.eup %8494  ;;  %v826_v5 = vpop.permute.xlu1 %825 }
 0x2c2   : > { %867 = vrot.lane.b32.xlu0 %v8495_v59, %s9637_s17  ;;  %v828_v6 = vpop.permute.xlu0 %827  ;;  %v10118_v7 = vadd.f32 %v826_v5, %v766_v3 }
 0x2c3   : > { %v10120_v8 = vadd.f32 %v828_v6, %v767_v4 }
 0x2c4   : > { %8500 = vtanh.f32 %v10118_v7 }
 0x2c5   : > { %8502 = vtanh.f32 %v10120_v8  ;;  %v830_v13 = vpop.permute.xlu1 %829 }
 0x2c6   : > { %v832_v14 = vpop.permute.xlu0 %831  ;;  %v8497_v16 = vpop.eup %8496  ;;  %v10126_v17 = vadd.f32 %v830_v13, %v768_v11 }
 0x2c7   : > { %v10128_v18 = vadd.f32 %v832_v14, %v769_v12  ;;  %869 = vrot.lane.b32.xlu0 %v8497_v16, %s9637_s17 }
 0x2c8   : > { %8504 = vtanh.f32 %v10126_v17 }
 0x2c9   : > { %8506 = vtanh.f32 %v10128_v18  ;;  %v834_v20 = vpop.permute.xlu1 %833 }
 0x2ca   : > { %v8499_v21 = vpop.eup %8498  ;;  %v10134_v22 = vadd.f32 %v834_v20, %v770_v19 }
 0x2cb   : > { %871 = vrot.lane.b32.xlu1 %v8499_v21, %s9637_s17 }
 0x2cc   : > { %8508 = vtanh.f32 %v10134_v22 }
 0x2ce   : > { %v8501_v23 = vpop.eup %8500 }
 0x2cf   : > { %v8503_v24 = vpop.eup %8502  ;;  %873 = vrot.lane.b32.xlu1 %v8501_v23, %s9637_s17 }
 0x2d0   : > { %875 = vrot.lane.b32.xlu0 %v8503_v24, %s9637_s17 }
 0x2d2   : > { %v8505_v25 = vpop.eup %8504 }
 0x2d3   : > { %v8507_v28 = vpop.eup %8506  ;;  %877 = vrot.lane.b32.xlu1 %v8505_v25, %s9637_s17 }
 0x2d4   : > { %879 = vrot.lane.b32.xlu0 %v8507_v28, %s9637_s17 }
 0x2d6   : > { %v8509_v29 = vpop.eup %8508 }
 0x2d7   : > { %881 = vrot.lane.b32.xlu1 %v8509_v29, %s9637_s17 }
 0x334   : > { %v868_v31 = vpop.permute.xlu0 %867 }
 0x335   : > { %v10147_v35 = vmul.f32 %v10071_v10, %v868_v31 }
 0x337   : > { %v899_v48 = vpack.c.bf16 %v10147_v35, %v10147_v35 }
 0x339   : > { %v870_v32 = vpop.permute.xlu0 %869  ;;  %v915_v57 = vunpack.c.l.b16 %v899_v48 }
 0x33a   : > { %v10144_v34 = vmul.f32 %v10075_v27, %v870_v32 }
 0x33c   : > { %v900_v39 = vpack.c.bf16 %v10144_v34, %v10144_v34 }
 0x33d   : > { %v872_v42 = vpop.permute.xlu1 %871 }
 0x33e   : > { %v916_v43 = vunpack.c.l.b16 %v900_v39  ;;  %v10152_v44 = vmul.f32 %v10079_v33, %v872_v42 }
 0x340   : > { %v901_v49 = vpack.c.bf16 %v10152_v44, %v10152_v44  ;;  %v923_v27 = vrot.slane %v916_v43, 7 }
 0x341   : > { %v874_v51 = vpop.permute.xlu1 %873 }
 0x342   : > { %v917_v52 = vunpack.c.l.b16 %v901_v49  ;;  %v10159_v10 = vmul.f32 %v10082_v37, %v874_v51  ;;  %v876_v55 = vpop.permute.xlu0 %875  ;;  %v925_v63 = vsel %vm924_vm2, %v923_v27, %v915_v57 }
 0x343   : > { %v10162_v56 = vmul.f32 %v10085_v38, %v876_v55 }
 0x344   : > { %v902_v33 = vpack.c.bf16 %v10159_v10, %v10159_v10  ;;  %v926_v59 = vrot.slane %v917_v52, 6 }
 0x345   : > { %v903_v60 = vpack.c.bf16 %v10162_v56, %v10162_v56  ;;  %v878_v61 = vpop.permute.xlu1 %877 }
 0x346   : > { %v918_v1 = vunpack.c.l.b16 %v902_v33  ;;  %v10170_v37 = vmul.f32 %v10089_v45, %v878_v61  ;;  %v880_v3 = vpop.permute.xlu0 %879  ;;  %v928_v11 = vsel %vm927_vm3, %v926_v59, %v925_v63 }
 0x347   : > { %v919_v38 = vunpack.c.l.b16 %v903_v60  ;;  %v10173_v4 = vmul.f32 %v10093_v47, %v880_v3 }
 0x348   : > { %v929_v5 = vrot.slane %v918_v1, 5  ;;  %v904_v6 = vpack.c.bf16 %v10170_v37, %v10170_v37 }
 0x349   : > { %v932_v12 = vrot.slane %v919_v38, 4  ;;  %v905_v13 = vpack.c.bf16 %v10173_v4, %v10173_v4  ;;  %v882_v14 = vpop.permute.xlu1 %881 }
 0x34a   : > { %v931_v45 = vsel %vm930_vm4, %v929_v5, %v928_v11  ;;  %v920_v16 = vunpack.c.l.b16 %v904_v6  ;;  %v10182_v19 = vmul.f32 %v10099_v53, %v882_v14 }
 0x34b   : > { %v921_v47 = vunpack.c.l.b16 %v905_v13  ;;  %v934_v23 = vsel %vm933_vm5, %v932_v12, %v931_v45 }
 0x34c   : > { %v935_v20 = vrot.slane %v920_v16, 3  ;;  %v906_v21 = vpack.c.bf16 %v10182_v19, %v10182_v19 }
 0x34d   : > { %v938_v24 = vrot.slane %v921_v47, 2 }
 0x34e   : > { %v922_v25 = vunpack.c.l.b16 %v906_v21  ;;  %v937_v28 = vsel %vm936_vm6, %v935_v20, %v934_v23 }
 0x34f   : > { %v940_v31 = vsel %vm939_vm7, %v938_v24, %v937_v28 }
 0x350   : > { %v941_v29 = vrot.slane %v922_v25, 1 }
 0x352   : > { %v943_v53 = vsel %vm942_vm8, %v941_v29, %v940_v31 }
 0x353   : > { %v944_v32 = vpack.c.b16 %v943_v53, %v943_v53 }
 0x355   : > { %945 = vrot.lane.b32.xlu0 %v944_v32, %s9638_s13 }
 0x3c7   : > { %v946_v39 = vpop.permute.xlu0 %945 }
 0x3c8   : > { %8159 = vmatmul.mubr.msk.bf16.vlgmr.msra.gmra.mrb[12].mxu1 %vm639_vm9, %v946_v39 }
 0x3c9   : > { %8171 = vmatpush3.bf16.msra.mxu1 %v10007_v9  ;;  %8174 = vmatprep.mubr.msk.bf16.mxu1 %vm9635_vm0, %v13189_v0 }
 0x3ca   : > { %8172 = vmatprep.subr.bf16.mxu1 %v13189_v0 }
 0x3cd   : > { %8173 = vmatpush3.bf16.msra.mxu1 %v10015_v15 }
 0x3ce   : > { %8186 = vmatprep.subr.bf16.mxu1 %v13189_v0 }
 0x49b   : > { %v984_v42 = vpop.f32.mrb[12].mxu1 }
 0x49c   : > { %v8160_v43 = vpop.f32.mrb[13].mxu1  ;;  %v992_v51 = vrot.slane %v984_v42, 1  ;;  %v991_v27 = vrot.slane %v984_v42, 7  ;;  %v1007_v52 = vadd.f32 %v984_v42, %v10050_v41  ;;  %v993_v55 = vrot.slane %v984_v42, 2 }
 0x49d   : > { %v987_v48 = vpop.f32.mrb[14].mxu1  ;;  %v994_v57 = vrot.slane %v984_v42, 3  ;;  %v995_v59 = vrot.slane %v984_v42, 4  ;;  %v996_v61 = vrot.slane %v984_v42, 5  ;;  %v997_v1 = vrot.slane %v984_v42, 6 }
 0x49e   : > { %v8161_v49 = vpop.f32.mrb[15].mxu1  ;;  %v1008_v9 = vadd.f32 %v992_v51, %v10055_v46  ;;  %v1006_v33 = vadd.f32 %v991_v27, %v10039_v26  ;;  %8510 = vtanh.f32 %v1007_v52  ;;  %v1009_v60 = vadd.f32 %v993_v55, %v10041_v30 }
 0x49f   : > { %v1010_v63 = vadd.f32 %v994_v57, %v10059_v50  ;;  %v1011_v3 = vadd.f32 %v995_v59, %v10045_v36  ;;  %v1012_v38 = vadd.f32 %v996_v61, %v10062_v54  ;;  %v1013_v5 = vadd.f32 %v997_v1, %v10048_v40 }
 0x4a0   : > { %8512 = vtanh.f32 %v1008_v9  ;;  %v7963_v20 = vmul.f32 -1.442695, %v1007_v52  ;;  %v7964_v21 = vmul.f32 -1.442695, %v1008_v9  ;;  %v7962_v23 = vmul.f32 -1.442695, %v1006_v33 }
 0x4a1   : > { %8514 = vtanh.f32 %v1006_v33  ;;  %v7965_v24 = vmul.f32 -1.442695, %v1009_v60  ;;  %v7966_v25 = vmul.f32 -1.442695, %v1010_v63  ;;  %v7967_v28 = vmul.f32 -1.442695, %v1011_v3 }
 0x4a2   : > { %8516 = vtanh.f32 %v1009_v60  ;;  %v7968_v29 = vmul.f32 -1.442695, %v1012_v38  ;;  %v7969_v31 = vmul.f32 -1.442695, %v1013_v5 }
 0x4a3   : > { %8518 = vtanh.f32 %v1010_v63 }
 0x4a4   : > { %8520 = vtanh.f32 %v1011_v3 }
 0x4a5   : > { %8522 = vtanh.f32 %v1012_v38 }
 0x4a6   : > { %8524 = vtanh.f32 %v1013_v5 }
 0x4a7   : > { %8526 = vpow2.f32 %v7963_v20 }
 0x4a8   : > { %v8511_v6 = vpop.eup %8510  ;;  %8528 = vpow2.f32 %v7964_v21 }
 0x4a9   : > { %1112 = vrot.lane.b32.xlu1 %v8511_v6, %s9637_s17  ;;  %8530 = vpow2.f32 %v7962_v23 }
 0x4aa   : > { %v8513_v11 = vpop.eup %8512  ;;  %8532 = vpow2.f32 %v7965_v24 }
 0x4ab   : > { %1114 = vrot.lane.b32.xlu0 %v8513_v11, %s9637_s17  ;;  %v8515_v12 = vpop.eup %8514  ;;  %8534 = vpow2.f32 %v7966_v25 }
 0x4ac   : > { %v8517_v13 = vpop.eup %8516  ;;  %8536 = vpow2.f32 %v7967_v28 }
 0x4ad   : > { %1110 = vrot.lane.b32.xlu1 %v8515_v12, %s9637_s17  ;;  %v8519_v14 = vpop.eup %8518  ;;  %8538 = vpow2.f32 %v7968_v29 }
 0x4ae   : > { %v8521_v45 = vpop.eup %8520  ;;  %8540 = vpow2.f32 %v7969_v31 }
 0x4af   : > { %1116 = vrot.lane.b32.xlu0 %v8517_v13, %s9637_s17  ;;  %v8523_v16 = vpop.eup %8522 }
 0x4b0   : > { %v8525_v47 = vpop.eup %8524 }
 0x4b1   : > { %1118 = vrot.lane.b32.xlu1 %v8519_v14, %s9637_s17  ;;  %v8527_v53 = vpop.eup %8526 }
 0x4b2   : > { %v8529_v32 = vpop.eup %8528  ;;  %v1039_v39 = vadd.f32 1.0, %v8527_v53 }
 0x4b3   : > { %1120 = vrot.lane.b32.xlu0 %v8521_v45, %s9637_s17  ;;  %v8531_v42 = vpop.eup %8530  ;;  %v1040_v43 = vadd.f32 1.0, %v8529_v32 }
 0x4b4   : > { %v8533_v48 = vpop.eup %8532  ;;  %8542 = vrcp.f32 %v1039_v39  ;;  %v1038_v49 = vadd.f32 1.0, %v8531_v42  ;;  %v1079_v39 = vrot.slane %v10109_v62, 7  ;;  %v1080_v42 = vrot.slane %v10113_v2, 7 }
 0x4b5   : > { %1122 = vrot.lane.b32.xlu1 %v8523_v16, %s9637_s17  ;;  %v8535_v51 = vpop.eup %8534  ;;  %8544 = vrcp.f32 %v1040_v43  ;;  %v1041_v27 = vadd.f32 1.0, %v8533_v48 }
 0x4b6   : > { %v8537_v52 = vpop.eup %8536  ;;  %8546 = vrcp.f32 %v1038_v49  ;;  %v1042_v55 = vadd.f32 1.0, %v8535_v51  ;;  %v1078_v51 = vrot.slane %v10104_v58, 7 }
 0x4b7   : > { %1124 = vrot.lane.b32.xlu0 %v8525_v47, %s9637_s17  ;;  %v8539_v9 = vpop.eup %8538  ;;  %8548 = vrcp.f32 %v1041_v27  ;;  %v1043_v57 = vadd.f32 1.0, %v8537_v52 }
 0x4b8   : > { %v8541_v33 = vpop.eup %8540  ;;  %8550 = vrcp.f32 %v1042_v55  ;;  %v1044_v59 = vadd.f32 1.0, %v8539_v9  ;;  %v1081_v55 = vrot.slane %v10118_v7, 7 }
 0x4b9   : > { %8552 = vrcp.f32 %v1043_v57  ;;  %v1045_v60 = vadd.f32 1.0, %v8541_v33  ;;  %v1082_v33 = vrot.slane %v10120_v8, 7 }
 0x4ba   : > { %8554 = vrcp.f32 %v1044_v59 }
 0x4bb   : > { %8556 = vrcp.f32 %v1045_v60  ;;  %v1083_v60 = vrot.slane %v10126_v17, 7 }
 0x4be   : > { %v10214_v61 = vpop.eup %8542 }
 0x4bf   : > { %v10216_v1 = vpop.eup %8544  ;;  %v1095_v43 = vmul.f32 %v10214_v61, %v1079_v39 }
 0x4c0   : > { %v10221_v6 = vpop.eup %8546  ;;  %v1096_v49 = vmul.f32 %v10216_v1, %v1080_v42 }
 0x4c1   : > { %v10224_v12 = vpop.eup %8548  ;;  %v1094_v62 = vmul.f32 %v10221_v6, %v1078_v51 }
 0x4c2   : > { %v10229_v16 = vpop.eup %8550  ;;  %v1097_v57 = vmul.f32 %v10224_v12, %v1081_v55 }
 0x4c3   : > { %v10232_v20 = vpop.eup %8552  ;;  %v1098_v7 = vmul.f32 %v10229_v16, %v1082_v33 }
 0x4c4   : > { %v10237_v25 = vpop.eup %8554 }
 0x4c5   : > { %v10240_v29 = vpop.eup %8556 }
 0x51b   : > { %v1113_v63 = vpop.permute.xlu1 %1112 }
 0x51c   : > { %v1135_v3 = vmul.f32 %v10214_v61, %v1113_v63 }
 0x51d   : > { %v1115_v38 = vpop.permute.xlu0 %1114 }
 0x51e   : > { %v1136_v5 = vmul.f32 %v10216_v1, %v1115_v38  ;;  %1152 = vrot.lane.b32.xlu1 %v1135_v3, %s9637_s17  ;;  %v1099_v38 = vmul.f32 %v10232_v20, %v1083_v60 }
 0x51f   : > { %v1111_v11 = vpop.permute.xlu1 %1110 }
 0x520   : > { %1154 = vrot.lane.b32.xlu0 %v1136_v5, %s9637_s17  ;;  %v1134_v13 = vmul.f32 %v10221_v6, %v1111_v11  ;;  %v1084_v5 = vrot.slane %v10128_v18, 7 }
 0x521   : > { %v1117_v14 = vpop.permute.xlu0 %1116 }
 0x522   : > { %v1137_v45 = vmul.f32 %v10224_v12, %v1117_v14  ;;  %1150 = vrot.lane.b32.xlu1 %v1134_v13, %s9637_s17  ;;  %v1085_v13 = vrot.slane %v10134_v22, 7  ;;  %v1100_v17 = vmul.f32 %v10237_v25, %v1084_v5 }
 0x523   : > { %v1119_v47 = vpop.permute.xlu1 %1118 }
 0x524   : > { %1156 = vrot.lane.b32.xlu0 %v1137_v45, %s9637_s17  ;;  %v1138_v21 = vmul.f32 %v10229_v16, %v1119_v47  ;;  %v1101_v47 = vmul.f32 %v10240_v29, %v1085_v13 }
 0x525   : > { %v1121_v23 = vpop.permute.xlu0 %1120 }
 0x526   : > { %v1139_v24 = vmul.f32 %v10232_v20, %v1121_v23  ;;  %1158 = vrot.lane.b32.xlu1 %v1138_v21, %s9637_s17 }
 0x527   : > { %v1123_v28 = vpop.permute.xlu1 %1122 }
 0x528   : > { %1160 = vrot.lane.b32.xlu0 %v1139_v24, %s9637_s17  ;;  %v1140_v31 = vmul.f32 %v10237_v25, %v1123_v28 }
 0x529   : > { %v1125_v53 = vpop.permute.xlu0 %1124 }
 0x52a   : > { %v1141_v32 = vmul.f32 %v10240_v29, %v1125_v53  ;;  %1162 = vrot.lane.b32.xlu1 %v1140_v31, %s9637_s17 }
 0x52c   : > { %1164 = vrot.lane.b32.xlu0 %v1141_v32, %s9637_s17 }
 0x590   : > { %v1153_v48 = vpop.permute.xlu1 %1152 }
 0x591   : > { %v10251_v27 = vadd.f32 %v1153_v48, %v1095_v43 }
 0x592   : > { %v1155_v52 = vpop.permute.xlu0 %1154 }
 0x593   : > { %v10254_v9 = vadd.f32 %v1155_v52, %v1096_v49  ;;  %8558 = vtanh.f32 %v10251_v27 }
 0x594   : > { %v1151_v2 = vpop.permute.xlu1 %1150 }
 0x595   : > { %8560 = vtanh.f32 %v10254_v9  ;;  %v10261_v59 = vadd.f32 %v1151_v2, %v1094_v62 }
 0x596   : > { %v1157_v58 = vpop.permute.xlu0 %1156 }
 0x597   : > { %v10264_v63 = vadd.f32 %v1157_v58, %v1097_v57  ;;  %8562 = vtanh.f32 %v10261_v59 }
 0x598   : > { %v1159_v3 = vpop.permute.xlu1 %1158 }
 0x599   : > { %8564 = vtanh.f32 %v10264_v63  ;;  %v10271_v11 = vadd.f32 %v1159_v3, %v1098_v7 }
 0x59a   : > { %v1161_v8 = vpop.permute.xlu0 %1160 }
 0x59b   : > { %v10274_v14 = vadd.f32 %v1161_v8, %v1099_v38  ;;  %8566 = vtanh.f32 %v10271_v11 }
 0x59c   : > { %v1163_v45 = vpop.permute.xlu1 %1162 }
 0x59d   : > { %8568 = vtanh.f32 %v10274_v14  ;;  %v8559_v21 = vpop.eup %8558  ;;  %v10280_v23 = vadd.f32 %v1163_v45, %v1100_v17 }
 0x59e   : > { %v1165_v18 = vpop.permute.xlu0 %1164  ;;  %1200 = vrot.lane.b32.xlu1 %v8559_v21, %s9637_s17 }
 0x59f   : > { %v8561_v24 = vpop.eup %8560  ;;  %v10282_v28 = vadd.f32 %v1165_v18, %v1101_v47  ;;  %8570 = vtanh.f32 %v10280_v23 }
 0x5a0   : > { %1202 = vrot.lane.b32.xlu0 %v8561_v24, %s9637_s17 }
 0x5a1   : > { %8572 = vtanh.f32 %v10282_v28  ;;  %v8563_v22 = vpop.eup %8562 }
 0x5a2   : > { %1198 = vrot.lane.b32.xlu1 %v8563_v22, %s9637_s17 }
 0x5a3   : > { %v8565_v31 = vpop.eup %8564 }
 0x5a4   : > { %1204 = vrot.lane.b32.xlu0 %v8565_v31, %s9637_s17 }
 0x5a5   : > { %v8567_v53 = vpop.eup %8566 }
 0x5a6   : > { %1206 = vrot.lane.b32.xlu1 %v8567_v53, %s9637_s17 }
 0x5a7   : > { %v8569_v32 = vpop.eup %8568 }
 0x5a8   : > { %1208 = vrot.lane.b32.xlu0 %v8569_v32, %s9637_s17 }
 0x5a9   : > { %v8571_v39 = vpop.eup %8570 }
 0x5aa   : > { %1210 = vrot.lane.b32.xlu1 %v8571_v39, %s9637_s17 }
 0x5ab   : > { %v8573_v42 = vpop.eup %8572 }
 0x5ac   : > { %1212 = vrot.lane.b32.xlu0 %v8573_v42, %s9637_s17 }
 0x610   : > { %v1201_v43 = vpop.permute.xlu1 %1200 }
 0x611   : > { %v10298_v51 = vmul.f32 %v10214_v61, %v1201_v43 }
 0x612   : > { %v1203_v48 = vpop.permute.xlu0 %1202 }
 0x613   : > { %v10295_v49 = vmul.f32 %v10216_v1, %v1203_v48  ;;  %v1231_v33 = vpack.c.bf16 %v10298_v51, %v10298_v51 }
 0x614   : > { %v1199_v55 = vpop.permute.xlu1 %1198 }
 0x615   : > { %v1232_v52 = vpack.c.bf16 %v10295_v49, %v10295_v49  ;;  %v10303_v62 = vmul.f32 %v10221_v6, %v1199_v55  ;;  %v1247_v5 = vunpack.c.l.b16 %v1231_v33 }
 0x616   : > { %v1205_v2 = vpop.permute.xlu0 %1204 }
 0x617   : > { %v10306_v57 = vmul.f32 %v10224_v12, %v1205_v2  ;;  %v1230_v1 = vpack.c.bf16 %v10303_v62, %v10303_v62  ;;  %v1248_v58 = vunpack.c.l.b16 %v1232_v52 }
 0x618   : > { %v1207_v60 = vpop.permute.xlu1 %1206 }
 0x619   : > { %v1233_v61 = vpack.c.bf16 %v10306_v57, %v10306_v57  ;;  %v1246_v7 = vunpack.c.l.b16 %v1230_v1  ;;  %v10315_v3 = vmul.f32 %v10229_v16, %v1207_v60  ;;  %v1256_v17 = vrot.slane %v1248_v58, 7 }
 0x61a   : > { %v1209_v6 = vpop.permute.xlu0 %1208 }
 0x61b   : > { %v1249_v38 = vunpack.c.l.b16 %v1233_v61  ;;  %v10318_v12 = vmul.f32 %v10232_v20, %v1209_v6  ;;  %v1254_v8 = vrot.slane %v1246_v7, 1  ;;  %v1234_v13 = vpack.c.bf16 %v10315_v3, %v10315_v3  ;;  %v10343_v7 = vld [vmem:[#allocation7] sm:$0xff]  }
 0x61c   : > { %v1211_v21 = vpop.permute.xlu1 %1210 }
 0x61d   : > { %v1258_v45 = vrot.slane %v1249_v38, 6  ;;  %v1235_v47 = vpack.c.bf16 %v10318_v12, %v10318_v12  ;;  %v1255_v18 = vsel %vm924_vm2, %v1247_v5, %v1254_v8  ;;  %v1250_v16 = vunpack.c.l.b16 %v1234_v13 }
 0x61e   : > { %v10326_v24 = vmul.f32 %v10237_v25, %v1211_v21  ;;  %v1213_v22 = vpop.permute.xlu0 %1212  ;;  %v1257_v20 = vsel %vm927_vm3, %v1256_v17, %v1255_v18 }
 0x61f   : > { %v1251_v31 = vunpack.c.l.b16 %v1235_v47  ;;  %v10330_v53 = vmul.f32 %v10240_v29, %v1213_v22  ;;  %v1259_v32 = vsel %vm930_vm4, %v1258_v45, %v1257_v20  ;;  %v1260_v39 = vrot.slane %v1250_v16, 5 }
 0x620   : > { %v1236_v42 = vpack.c.bf16 %v10326_v24, %v10326_v24 }
 0x621   : > { %v1262_v43 = vrot.slane %v1251_v31, 4  ;;  %v1237_v48 = vpack.c.bf16 %v10330_v53, %v10330_v53  ;;  %v1261_v25 = vsel %vm933_vm5, %v1260_v39, %v1259_v32 }
 0x622   : > { %v1252_v52 = vunpack.c.l.b16 %v1236_v42 }
 0x623   : > { %v1253_v55 = vunpack.c.l.b16 %v1237_v48  ;;  %v1263_v2 = vsel %vm936_vm6, %v1262_v43, %v1261_v25 }
 0x624   : > { %v1264_v33 = vrot.slane %v1252_v52, 3 }
 0x625   : > { %v1266_v1 = vrot.slane %v1253_v55, 2 }
 0x626   : > { %v1265_v29 = vsel %vm939_vm7, %v1264_v33, %v1263_v2 }
 0x627   : > { %v1267_v58 = vsel %vm942_vm8, %v1266_v1, %v1265_v29 }
 0x628   : > { %v1268_v61 = vpack.c.b16 %v1267_v58, %v1267_v58 }
 0x62a   : > { %1269 = vrot.lane.b32.xlu1 %v1268_v61, %s9638_s13 }
 0x69c   : > { %v1270_v60 = vpop.permute.xlu1 %1269 }
 0x69d   : > { %8167 = vmatmul.mubr.msk.bf16.vlgmr.msra.gmra.mrb[0].mxu0 %vm639_vm9, %v1270_v60 }
 0x69e   : > { %8179 = vmatpush3.bf16.msra.mxu0 %v10343_v7  ;;  %8182 = vmatprep.mubr.msk.bf16.mxu0 %vm9635_vm0, %v13189_v0 }
 0x69f   : > { %8180 = vmatprep.subr.bf16.mxu0 %v13189_v0 }
 0x6a2   : > { %8181 = vmatpush3.bf16.msra.mxu0 %v10015_v15 }
 0x6a3   : > { %8194 = vmatprep.subr.bf16.mxu0 %v13189_v0 }
 0x770   : > { %v1308_v6 = vpop.f32.mrb[0].mxu0 }
 0x771   : > { %v1315_v38 = vrot.slane %v1308_v6, 6  ;;  %v8168_v5 = vpop.f32.mrb[1].mxu0  ;;  %v1317_v45 = vrot.slane %v1308_v6, 1  ;;  %v1316_v47 = vrot.slane %v1308_v6, 7  ;;  %v1332_v21 = vadd.f32 %v1308_v6, %v10055_v46 }
 0x772   : > { %v1311_v8 = vpop.f32.mrb[2].mxu0  ;;  %v1318_v18 = vrot.slane %v1308_v6, 2  ;;  %v1319_v20 = vrot.slane %v1308_v6, 3  ;;  %v1320_v31 = vrot.slane %v1308_v6, 4  ;;  %v1321_v39 = vrot.slane %v1308_v6, 5 }
 0x773   : > { %v1330_v13 = vadd.f32 %v1315_v38, %v10039_v26  ;;  %v8169_v17 = vpop.f32.mrb[3].mxu0  ;;  %v1333_v16 = vadd.f32 %v1317_v45, %v10041_v30  ;;  %v1331_v15 = vadd.f32 %v1316_v47, %v10050_v41  ;;  %v7973_v61 = vmul.f32 -1.442695, %v1332_v21 }
 0x774   : > { %v1334_v32 = vadd.f32 %v1318_v18, %v10059_v50  ;;  %v1335_v42 = vadd.f32 %v1319_v20, %v10045_v36  ;;  %v1336_v43 = vadd.f32 %v1320_v31, %v10062_v54  ;;  %v1337_v48 = vadd.f32 %v1321_v39, %v10048_v40 }
 0x775   : > { %8574 = vtanh.f32 %v1330_v13  ;;  %v7971_v58 = vmul.f32 -1.442695, %v1330_v13  ;;  %v7974_v60 = vmul.f32 -1.442695, %v1333_v16  ;;  %v7972_v38 = vmul.f32 -1.442695, %v1331_v15 }
 0x776   : > { %8576 = vtanh.f32 %v1332_v21  ;;  %v7975_v5 = vmul.f32 -1.442695, %v1334_v32  ;;  %v7976_v17 = vmul.f32 -1.442695, %v1335_v42  ;;  %v7977_v45 = vmul.f32 -1.442695, %v1336_v43 }
 0x777   : > { %8578 = vtanh.f32 %v1333_v16  ;;  %v7978_v47 = vmul.f32 -1.442695, %v1337_v48 }
 0x778   : > { %8580 = vtanh.f32 %v1331_v15 }
 0x779   : > { %8582 = vtanh.f32 %v1334_v32 }
 0x77a   : > { %8584 = vtanh.f32 %v1335_v42 }
 0x77b   : > { %8586 = vtanh.f32 %v1336_v43 }
 0x77c   : > { %8588 = vtanh.f32 %v1337_v48 }
 0x77d   : > { %8590 = vpow2.f32 %v7971_v58 }
 0x77e   : > { %8592 = vpow2.f32 %v7973_v61 }
 0x77f   : > { %v8575_v22 = vpop.eup %8574  ;;  %8594 = vpow2.f32 %v7974_v60 }
 0x780   : > { %1434 = vrot.lane.b32.xlu0 %v8575_v22, %s9637_s17  ;;  %v8577_v25 = vpop.eup %8576  ;;  %8596 = vpow2.f32 %v7972_v38 }
 0x781   : > { %v8579_v52 = vpop.eup %8578  ;;  %1438 = vrot.lane.b32.xlu1 %v8577_v25, %s9637_s17  ;;  %8598 = vpow2.f32 %v7975_v5 }
 0x782   : > { %v8581_v55 = vpop.eup %8580 }
 0x783   : > { %v8583_v2 = vpop.eup %8582 }
 0x784   : > { %1440 = vrot.lane.b32.xlu0 %v8579_v52, %s9637_s17  ;;  %v8585_v33 = vpop.eup %8584 }
 0x785   : > { %1436 = vrot.lane.b32.xlu1 %v8581_v55, %s9637_s17  ;;  %v8587_v1 = vpop.eup %8586 }
 0x786   : > { %v8589_v29 = vpop.eup %8588 }
 0x787   : > { %v8591_v6 = vpop.eup %8590 }
 0x788   : > { %1442 = vrot.lane.b32.xlu0 %v8583_v2, %s9637_s17  ;;  %v1362_v8 = vadd.f32 1.0, %v8591_v6  ;;  %v8593_v18 = vpop.eup %8592 }
 0x789   : > { %1444 = vrot.lane.b32.xlu1 %v8585_v33, %s9637_s17  ;;  %v8595_v22 = vpop.eup %8594  ;;  %v1364_v13 = vadd.f32 1.0, %v8593_v18 }
 0x78a   : > { %8600 = vrcp.f32 %v1362_v8  ;;  %v8597_v21 = vpop.eup %8596  ;;  %v1365_v16 = vadd.f32 1.0, %v8595_v22 }
 0x78b   : > { %8602 = vpow2.f32 %v7976_v17  ;;  %v8599_v20 = vpop.eup %8598  ;;  %v1363_v32 = vadd.f32 1.0, %v8597_v21 }
 0x78c   : > { %1446 = vrot.lane.b32.xlu0 %v8587_v1, %s9637_s17  ;;  %8604 = vpow2.f32 %v7977_v45  ;;  %v1366_v43 = vadd.f32 1.0, %v8599_v20 }
 0x78d   : > { %1448 = vrot.lane.b32.xlu1 %v8589_v29, %s9637_s17  ;;  %8606 = vpow2.f32 %v7978_v47 }
 0x78e   : > { %8608 = vrcp.f32 %v1364_v13 }
 0x78f   : > { %8610 = vrcp.f32 %v1365_v16 }
 0x790   : > { %8612 = vrcp.f32 %v1363_v32 }
 0x791   : > { %8614 = vrcp.f32 %v1366_v43 }
 0x794   : > { %v10367_v15 = vpop.eup %8600 }
 0x795   : > { %v8603_v39 = vpop.eup %8602 }
 0x796   : > { %v8605_v25 = vpop.eup %8604  ;;  %v1367_v48 = vadd.f32 1.0, %v8603_v39  ;;  %v1402_v39 = vrot.slane %v10261_v59, 7 }
 0x797   : > { %v8607_v52 = vpop.eup %8606  ;;  %v1368_v55 = vadd.f32 1.0, %v8605_v25 }
 0x798   : > { %8616 = vrcp.f32 %v1367_v48  ;;  %v1369_v2 = vadd.f32 1.0, %v8607_v52  ;;  %v10371_v33 = vpop.eup %8608  ;;  %v1404_v48 = vrot.slane %v10254_v9, 7  ;;  %v1405_v52 = vrot.slane %v10264_v63, 7 }
 0x799   : > { %8618 = vrcp.f32 %v1368_v55  ;;  %v10373_v29 = vpop.eup %8610 }
 0x79a   : > { %8620 = vrcp.f32 %v1369_v2  ;;  %v10378_v6 = vpop.eup %8612  ;;  %v1420_v55 = vmul.f32 %v10371_v33, %v1404_v48 }
 0x79b   : > { %v10381_v5 = vpop.eup %8614 }
 0x7a2   : > { %v10386_v47 = vpop.eup %8616 }
 0x7a3   : > { %v10389_v22 = vpop.eup %8618 }
 0x7a4   : > { %v10394_v20 = vpop.eup %8620 }
 0x7f2   : > { %v1435_v31 = vpop.permute.xlu0 %1434 }
 0x7f3   : > { %v1458_v42 = vmul.f32 %v10367_v15, %v1435_v31  ;;  %v1439_v1 = vpop.permute.xlu1 %1438 }
 0x7f4   : > { %v1460_v58 = vmul.f32 %v10371_v33, %v1439_v1  ;;  %v1421_v1 = vmul.f32 %v10373_v29, %v1405_v52 }
 0x7f5   : > { %1474 = vrot.lane.b32.xlu0 %v1458_v42, %s9637_s17  ;;  %v1418_v42 = vmul.f32 %v10367_v15, %v1402_v39 }
 0x7f6   : > { %v1441_v61 = vpop.permute.xlu0 %1440  ;;  %1478 = vrot.lane.b32.xlu1 %v1460_v58, %s9637_s17  ;;  %v1403_v58 = vrot.slane %v10251_v27, 7  ;;  %v1407_v27 = vrot.slane %v10274_v14, 7 }
 0x7f7   : > { %v1461_v60 = vmul.f32 %v10373_v29, %v1441_v61  ;;  %v1437_v38 = vpop.permute.xlu1 %1436 }
 0x7f8   : > { %v1459_v8 = vmul.f32 %v10378_v6, %v1437_v38  ;;  %v1419_v9 = vmul.f32 %v10378_v6, %v1403_v58 }
 0x7f9   : > { %1480 = vrot.lane.b32.xlu0 %v1461_v60, %s9637_s17  ;;  %v1406_v60 = vrot.slane %v10271_v11, 7  ;;  %v1408_v11 = vrot.slane %v10280_v23, 7 }
 0x7fa   : > { %v1443_v17 = vpop.permute.xlu0 %1442  ;;  %1476 = vrot.lane.b32.xlu1 %v1459_v8, %s9637_s17 }
 0x7fb   : > { %v1462_v45 = vmul.f32 %v10381_v5, %v1443_v17  ;;  %v1445_v18 = vpop.permute.xlu1 %1444  ;;  %v1422_v17 = vmul.f32 %v10381_v5, %v1406_v60 }
 0x7fc   : > { %v1463_v13 = vmul.f32 %v10386_v47, %v1445_v18 }
 0x7fd   : > { %1482 = vrot.lane.b32.xlu0 %v1462_v45, %s9637_s17 }
 0x7fe   : > { %v1447_v21 = vpop.permute.xlu0 %1446  ;;  %1484 = vrot.lane.b32.xlu1 %v1463_v13, %s9637_s17 }
 0x7ff   : > { %v1464_v16 = vmul.f32 %v10389_v22, %v1447_v21  ;;  %v1449_v31 = vpop.permute.xlu1 %1448  ;;  %v1423_v21 = vmul.f32 %v10386_v47, %v1407_v27 }
 0x800   : > { %v1465_v32 = vmul.f32 %v10394_v20, %v1449_v31  ;;  %v1424_v31 = vmul.f32 %v10389_v22, %v1408_v11  ;;  %v3177_v11 = vsel %vm3174_vm10, %v10152_v44, %v10295_v49  ;;  %v3176_v44 = vsel %vm3174_vm10, %v10144_v34, %v10298_v51 }
 0x801   : > { %1486 = vrot.lane.b32.xlu0 %v1464_v16, %s9637_s17  ;;  %v3180_v34 = vsel %vm3174_vm10, %v10170_v37, %v10318_v12 }
 0x802   : > { %1488 = vrot.lane.b32.xlu1 %v1465_v32, %s9637_s17  ;;  %v1409_v32 = vrot.slane %v10282_v28, 7 }
 0x804   : > { %v1425_v23 = vmul.f32 %v10394_v20, %v1409_v32 }
 0x867   : > { %v1475_v43 = vpop.permute.xlu0 %1474 }
 0x868   : > { %v10401_v25 = vadd.f32 %v1475_v43, %v1418_v42  ;;  %v1479_v2 = vpop.permute.xlu1 %1478 }
 0x869   : > { %v10409_v61 = vadd.f32 %v1479_v2, %v1420_v55 }
 0x86a   : > { %8622 = vtanh.f32 %v10401_v25 }
 0x86b   : > { %v1481_v59 = vpop.permute.xlu0 %1480  ;;  %8624 = vtanh.f32 %v10409_v61 }
 0x86c   : > { %v10412_v38 = vadd.f32 %v1481_v59, %v1421_v1  ;;  %v1477_v63 = vpop.permute.xlu1 %1476 }
 0x86d   : > { %v10420_v45 = vadd.f32 %v1477_v63, %v1419_v9  ;;  %v3175_v9 = vsel %vm3174_vm10, %v10147_v35, %v10303_v62 }
 0x86e   : > { %8626 = vtanh.f32 %v10412_v38 }
 0x86f   : > { %v1483_v18 = vpop.permute.xlu0 %1482  ;;  %8628 = vtanh.f32 %v10420_v45 }
 0x870   : > { %v10423_v13 = vadd.f32 %v1483_v18, %v1422_v17  ;;  %v1485_v16 = vpop.permute.xlu1 %1484 }
 0x871   : > { %v10430_v39 = vadd.f32 %v1485_v16, %v1423_v21 }
 0x872   : > { %8630 = vtanh.f32 %v10423_v13 }
 0x873   : > { %v1487_v14 = vpop.permute.xlu0 %1486  ;;  %8632 = vtanh.f32 %v10430_v39 }
 0x874   : > { %v8623_v8 = vpop.eup %8622  ;;  %v10432_v42 = vadd.f32 %v1487_v14, %v1424_v31  ;;  %v1489_v43 = vpop.permute.xlu1 %1488 }
 0x875   : > { %1522 = vrot.lane.b32.xlu0 %v8623_v8, %s9637_s17  ;;  %v8625_v48 = vpop.eup %8624  ;;  %v10437_v52 = vadd.f32 %v1489_v43, %v1425_v23 }
 0x876   : > { %8634 = vtanh.f32 %v10432_v42  ;;  %1526 = vrot.lane.b32.xlu1 %v8625_v48, %s9637_s17 }
 0x877   : > { %8636 = vtanh.f32 %v10437_v52 }
 0x878   : > { %v8627_v55 = vpop.eup %8626 }
 0x879   : > { %1528 = vrot.lane.b32.xlu0 %v8627_v55, %s9637_s17  ;;  %v8629_v28 = vpop.eup %8628 }
 0x87a   : > { %1524 = vrot.lane.b32.xlu1 %v8629_v28, %s9637_s17 }
 0x87c   : > { %v8631_v2 = vpop.eup %8630 }
 0x87d   : > { %1530 = vrot.lane.b32.xlu0 %v8631_v2, %s9637_s17  ;;  %v8633_v1 = vpop.eup %8632 }
 0x87e   : > { %1532 = vrot.lane.b32.xlu1 %v8633_v1, %s9637_s17 }
 0x880   : > { %v8635_v58 = vpop.eup %8634 }
 0x881   : > { %1534 = vrot.lane.b32.xlu0 %v8635_v58, %s9637_s17  ;;  %v8637_v59 = vpop.eup %8636 }
 0x882   : > { %1536 = vrot.lane.b32.xlu1 %v8637_v59, %s9637_s17 }
 0x8e7   : > { %v1523_v60 = vpop.permute.xlu0 %1522 }
 0x8e8   : > { %v1546_v8 = vmul.f32 %v10367_v15, %v1523_v60  ;;  %v1527_v17 = vpop.permute.xlu1 %1526  ;;  %v3178_v15 = vsel %vm3174_vm10, %v10159_v10, %v10306_v57  ;;  %v3179_v10 = vsel %vm3174_vm10, %v10162_v56, %v10315_v3  ;;  %v3181_v56 = vsel %vm3174_vm10, %v10173_v4, %v10326_v24 }
 0x8e9   : > { %v1548_v27 = vmul.f32 %v10371_v33, %v1527_v17 }
 0x8ea   : > { %v10452_v63 = vsel %vm3183_vm11, %v3175_v9, %v1546_v8  ;;  %v1554_v21 = vpack.c.bf16 %v1546_v8, %v1546_v8 }
 0x8eb   : > { %v1529_v18 = vpop.permute.xlu0 %1528  ;;  %v10463_v35 = vsel %vm3183_vm11, %v3177_v11, %v1548_v27  ;;  %v1556_v48 = vpack.c.bf16 %v1548_v27, %v1548_v27 }
 0x8ec   : > { %v1549_v16 = vmul.f32 %v10373_v29, %v1529_v18  ;;  %v1525_v62 = vpop.permute.xlu1 %1524  ;;  %v1570_v49 = vunpack.c.l.b16 %v1554_v21 }
 0x8ed   : > { %v1547_v33 = vmul.f32 %v10378_v6, %v1525_v62  ;;  %v1572_v17 = vunpack.c.l.b16 %v1556_v48 }
 0x8ee   : > { %v1557_v31 = vpack.c.bf16 %v1549_v16, %v1549_v16  ;;  %v10466_v32 = vsel %vm3183_vm11, %v3178_v15, %v1549_v16  ;;  %v1578_v3 = vrot.slane %v1570_v49, 2 }
 0x8ef   : > { %v1531_v14 = vpop.permute.xlu0 %1530  ;;  %v1555_v57 = vpack.c.bf16 %v1547_v33, %v1547_v33  ;;  %v10477_v23 = vsel %vm3183_vm11, %v3176_v44, %v1547_v33 }
 0x8f0   : > { %v1550_v29 = vmul.f32 %v10381_v5, %v1531_v14  ;;  %v1573_v43 = vunpack.c.l.b16 %v1557_v31  ;;  %v1533_v55 = vpop.permute.xlu1 %1532 }
 0x8f1   : > { %v1571_v51 = vunpack.c.l.b16 %v1555_v57  ;;  %v1551_v5 = vmul.f32 %v10386_v47, %v1533_v55  ;;  %v10516_v57 = vld [vmem:[#allocation7 + $0x8] sm:$0xff]  }
 0x8f2   : > { %v1558_v6 = vpack.c.bf16 %v1550_v29, %v1550_v29  ;;  %v10480_v28 = vsel %vm3183_vm11, %v3179_v10, %v1550_v29  ;;  %v1582_v60 = vrot.slane %v1573_v43, 7 }
 0x8f3   : > { %v1535_v2 = vpop.permute.xlu0 %1534  ;;  %v1579_v59 = vrot.slane %v1571_v51, 1  ;;  %v1559_v8 = vpack.c.bf16 %v1551_v5, %v1551_v5  ;;  %v10491_v9 = vsel %vm3183_vm11, %v3180_v34, %v1551_v5 }
 0x8f4   : > { %v1574_v1 = vunpack.c.l.b16 %v1558_v6  ;;  %v1552_v58 = vmul.f32 %v10389_v22, %v1535_v2  ;;  %v1537_v12 = vpop.permute.xlu1 %1536  ;;  %v3182_v22 = vsel %vm3174_vm10, %v10182_v19, %v10330_v53  ;;  %vm4883_vm10 = vcmask 64512  }
 0x8f5   : > { %v1580_v18 = vsel %vm924_vm2, %v1579_v59, %v1578_v3  ;;  %v1575_v4 = vunpack.c.l.b16 %v1559_v8  ;;  %v1553_v24 = vmul.f32 %v10394_v20, %v1537_v12 }
 0x8f6   : > { %v1584_v37 = vrot.slane %v1574_v1, 6  ;;  %v1560_v27 = vpack.c.bf16 %v1552_v58, %v1552_v58  ;;  %v10494_v47 = vsel %vm3183_vm11, %v3181_v56, %v1552_v58  ;;  %v1581_v11 = vsel %vm927_vm3, %v1572_v17, %v1580_v18 }
 0x8f7   : > { %v1583_v16 = vsel %vm930_vm4, %v1582_v60, %v1581_v11  ;;  %v1586_v15 = vrot.slane %v1575_v4, 5  ;;  %v1561_v62 = vpack.c.bf16 %v1553_v24, %v1553_v24  ;;  %v10504_v31 = vsel %vm3183_vm11, %v3182_v22, %v1553_v24 }
 0x8f8   : > { %v1576_v21 = vunpack.c.l.b16 %v1560_v27  ;;  %v1585_v33 = vsel %vm933_vm5, %v1584_v37, %v1583_v16 }
 0x8f9   : > { %v1577_v44 = vunpack.c.l.b16 %v1561_v62  ;;  %v1587_v20 = vsel %vm936_vm6, %v1586_v15, %v1585_v33 }
 0x8fa   : > { %v1588_v14 = vrot.slane %v1576_v21, 4 }
 0x8fb   : > { %v1590_v29 = vrot.slane %v1577_v44, 3 }
 0x8fc   : > { %v1589_v49 = vsel %vm939_vm7, %v1588_v14, %v1587_v20 }
 0x8fd   : > { %v1591_v19 = vsel %vm942_vm8, %v1590_v29, %v1589_v49 }
 0x8fe   : > { %v1592_v53 = vpack.c.b16 %v1591_v19, %v1591_v19 }
 0x900   : > { %1593 = vrot.lane.b32.xlu0 %v1592_v53, %s9638_s13 }
 0x972   : > { %v1594_v10 = vpop.permute.xlu0 %1593 }
 0x973   : > { %8175 = vmatmul.mubr.msk.bf16.vlgmr.msra.gmra.mrb[16].mxu1 %vm639_vm9, %v1594_v10 }
 0x974   : > { %8187 = vmatpush3.bf16.msra.mxu1 %v10343_v7  ;;  %8190 = vmatprep.mubr.msk.bf16.mxu1 %vm9635_vm0, %v13189_v0 }
 0x975   : > { %8188 = vmatprep.subr.bf16.mxu1 %v13189_v0 }
 0x978   : > { %8189 = vmatpush3.bf16.msra.mxu1 %v10516_v57 }
 0x979   : > { %8202 = vmatprep.subr.bf16.mxu1 %v13189_v0 }
 0xa46   : > { %v1632_v43 = vpop.f32.mrb[16].mxu1 }
 0xa47   : > { %v8176_v48 = vpop.f32.mrb[17].mxu1  ;;  %v1640_v34 = vrot.slane %v1632_v43, 6  ;;  %v1642_v51 = vrot.slane %v1632_v43, 1  ;;  %v1639_v2 = vrot.slane %v1632_v43, 5  ;;  %v1657_v56 = vadd.f32 %v1632_v43, %v10041_v30 }
 0xa48   : > { %v1635_v55 = vpop.f32.mrb[18].mxu1  ;;  %v1643_v3 = vrot.slane %v1632_v43, 2  ;;  %v1641_v58 = vrot.slane %v1632_v43, 7  ;;  %v1645_v60 = vrot.slane %v1632_v43, 4  ;;  %v1644_v17 = vrot.slane %v1632_v43, 3 }
 0xa49   : > { %v8177_v6 = vpop.f32.mrb[19].mxu1  ;;  %v1655_v5 = vadd.f32 %v1640_v34, %v10050_v41  ;;  %v1658_v1 = vadd.f32 %v1642_v51, %v10059_v50  ;;  %v1654_v59 = vadd.f32 %v1639_v2, %v10039_v26  ;;  %v7983_v33 = vmul.f32 -1.442695, %v1657_v56 }
 0xa4a   : > { %v1659_v8 = vadd.f32 %v1643_v3, %v10045_v36  ;;  %v1656_v37 = vadd.f32 %v1641_v58, %v10055_v46  ;;  %v1661_v12 = vadd.f32 %v1645_v60, %v10048_v40  ;;  %v1660_v18 = vadd.f32 %v1644_v17, %v10062_v54 }
 0xa4b   : > { %8638 = vtanh.f32 %v1655_v5  ;;  %v7981_v62 = vmul.f32 -1.442695, %v1655_v5  ;;  %v7984_v14 = vmul.f32 -1.442695, %v1658_v1  ;;  %v7980_v44 = vmul.f32 -1.442695, %v1654_v59 }
 0xa4c   : > { %8640 = vtanh.f32 %v1657_v56  ;;  %v7985_v20 = vmul.f32 -1.442695, %v1659_v8  ;;  %v7982_v49 = vmul.f32 -1.442695, %v1656_v37  ;;  %v7987_v29 = vmul.f32 -1.442695, %v1661_v12 }
 0xa4d   : > { %8642 = vtanh.f32 %v1658_v1  ;;  %v7986_v53 = vmul.f32 -1.442695, %v1660_v18 }
 0xa4e   : > { %8644 = vtanh.f32 %v1654_v59 }
 0xa4f   : > { %8646 = vtanh.f32 %v1659_v8 }
 0xa50   : > { %8648 = vtanh.f32 %v1656_v37 }
 0xa51   : > { %8650 = vtanh.f32 %v1661_v12 }
 0xa52   : > { %8652 = vtanh.f32 %v1660_v18 }
 0xa53   : > { %8654 = vpow2.f32 %v7981_v62 }
 0xa54   : > { %8656 = vpow2.f32 %v7983_v33 }
 0xa55   : > { %v8639_v27 = vpop.eup %8638  ;;  %8658 = vpow2.f32 %v7984_v14 }
 0xa56   : > { %1760 = vrot.lane.b32.xlu0 %v8639_v27, %s9637_s17  ;;  %v8641_v4 = vpop.eup %8640  ;;  %8660 = vpow2.f32 %v7980_v44 }
 0xa57   : > { %1764 = vrot.lane.b32.xlu1 %v8641_v4, %s9637_s17  ;;  %v8643_v24 = vpop.eup %8642  ;;  %8662 = vpow2.f32 %v7985_v20 }
 0xa58   : > { %v8645_v22 = vpop.eup %8644  ;;  %8664 = vpow2.f32 %v7982_v49 }
 0xa59   : > { %v8647_v11 = vpop.eup %8646  ;;  %8666 = vpow2.f32 %v7987_v29 }
 0xa5a   : > { %1766 = vrot.lane.b32.xlu0 %v8643_v24, %s9637_s17  ;;  %v8649_v21 = vpop.eup %8648  ;;  %8668 = vpow2.f32 %v7986_v53 }
 0xa5b   : > { %1758 = vrot.lane.b32.xlu1 %v8645_v22, %s9637_s17  ;;  %v8651_v16 = vpop.eup %8650 }
 0xa5c   : > { %v8653_v15 = vpop.eup %8652 }
 0xa5d   : > { %v8655_v19 = vpop.eup %8654 }
 0xa5e   : > { %1768 = vrot.lane.b32.xlu0 %v8647_v11, %s9637_s17  ;;  %v8657_v10 = vpop.eup %8656  ;;  %v1687_v43 = vadd.f32 1.0, %v8655_v19 }
 0xa5f   : > { %1762 = vrot.lane.b32.xlu1 %v8649_v21, %s9637_s17  ;;  %v8659_v48 = vpop.eup %8658  ;;  %v1689_v55 = vadd.f32 1.0, %v8657_v10 }
 0xa60   : > { %v8661_v6 = vpop.eup %8660  ;;  %8670 = vrcp.f32 %v1687_v43  ;;  %v1690_v34 = vadd.f32 1.0, %v8659_v48  ;;  %v1727_v48 = vrot.slane %v10420_v45, 7 }
 0xa61   : > { %v8663_v51 = vpop.eup %8662  ;;  %8672 = vrcp.f32 %v1689_v55  ;;  %v1686_v5 = vadd.f32 1.0, %v8661_v6  ;;  %v1729_v55 = vrot.slane %v10412_v38, 7  ;;  %v1731_v38 = vrot.slane %v10430_v39, 7 }
 0xa62   : > { %1772 = vrot.lane.b32.xlu0 %v8651_v16, %s9637_s17  ;;  %v8665_v2 = vpop.eup %8664  ;;  %8674 = vrcp.f32 %v1690_v34  ;;  %v1691_v56 = vadd.f32 1.0, %v8663_v51  ;;  %v1730_v51 = vrot.slane %v10423_v13, 7 }
 0xa63   : > { %1770 = vrot.lane.b32.xlu1 %v8653_v15, %s9637_s17  ;;  %v8667_v3 = vpop.eup %8666  ;;  %8676 = vrcp.f32 %v1686_v5  ;;  %v1688_v1 = vadd.f32 1.0, %v8665_v2 }
 0xa64   : > { %v8669_v58 = vpop.eup %8668  ;;  %8678 = vrcp.f32 %v1691_v56  ;;  %v1693_v59 = vadd.f32 1.0, %v8667_v3  ;;  %v1726_v3 = vrot.slane %v10401_v25, 7 }
 0xa65   : > { %8680 = vrcp.f32 %v1688_v1  ;;  %v1692_v17 = vadd.f32 1.0, %v8669_v58 }
 0xa66   : > { %8682 = vrcp.f32 %v1693_v59 }
 0xa67   : > { %8684 = vrcp.f32 %v1692_v17  ;;  %v1728_v17 = vrot.slane %v10409_v61, 7 }
 0xa6a   : > { %v10536_v60 = vpop.eup %8670 }
 0xa6b   : > { %v10539_v12 = vpop.eup %8672  ;;  %v1743_v6 = vmul.f32 %v10536_v60, %v1727_v48 }
 0xa6c   : > { %v10543_v4 = vpop.eup %8674  ;;  %v1745_v5 = vmul.f32 %v10539_v12, %v1729_v55 }
 0xa6d   : > { %v10547_v11 = vpop.eup %8676  ;;  %v1746_v45 = vmul.f32 %v10543_v4, %v1730_v51 }
 0xa6e   : > { %v10551_v15 = vpop.eup %8678  ;;  %v1742_v13 = vmul.f32 %v10547_v11, %v1726_v3 }
 0xa6f   : > { %v10555_v14 = vpop.eup %8680  ;;  %v1747_v25 = vmul.f32 %v10551_v15, %v1731_v38 }
 0xa70   : > { %v10559_v49 = vpop.eup %8682  ;;  %v1744_v39 = vmul.f32 %v10555_v14, %v1728_v17 }
 0xa71   : > { %v10563_v53 = vpop.eup %8684 }
 0xac8   : > { %v1761_v8 = vpop.permute.xlu0 %1760 }
 0xac9   : > { %v1783_v37 = vmul.f32 %v10536_v60, %v1761_v8  ;;  %v1765_v27 = vpop.permute.xlu1 %1764 }
 0xaca   : > { %v1785_v18 = vmul.f32 %v10539_v12, %v1765_v27 }
 0xacb   : > { %1800 = vrot.lane.b32.xlu0 %v1783_v37, %s9637_s17 }
 0xacc   : > { %v1767_v24 = vpop.permute.xlu0 %1766  ;;  %1804 = vrot.lane.b32.xlu1 %v1785_v18, %s9637_s17  ;;  %v1733_v18 = vrot.slane %v10437_v52, 7 }
 0xacd   : > { %v1786_v22 = vmul.f32 %v10543_v4, %v1767_v24  ;;  %v1759_v21 = vpop.permute.xlu1 %1758 }
 0xace   : > { %v1782_v16 = vmul.f32 %v10547_v11, %v1759_v21  ;;  %v1732_v21 = vrot.slane %v10432_v42, 7  ;;  %v1749_v61 = vmul.f32 %v10559_v49, %v1733_v18 }
 0xacf   : > { %1806 = vrot.lane.b32.xlu0 %v1786_v22, %s9637_s17 }
 0xad0   : > { %v1769_v62 = vpop.permute.xlu0 %1768  ;;  %1798 = vrot.lane.b32.xlu1 %v1782_v16, %s9637_s17  ;;  %v1748_v52 = vmul.f32 %v10563_v53, %v1732_v21 }
 0xad1   : > { %v1787_v33 = vmul.f32 %v10551_v15, %v1769_v62  ;;  %v1763_v44 = vpop.permute.xlu1 %1762 }
 0xad2   : > { %v1784_v20 = vmul.f32 %v10555_v14, %v1763_v44 }
 0xad3   : > { %1808 = vrot.lane.b32.xlu0 %v1787_v33, %s9637_s17 }
 0xad4   : > { %v1773_v29 = vpop.permute.xlu0 %1772  ;;  %1802 = vrot.lane.b32.xlu1 %v1784_v20, %s9637_s17 }
 0xad5   : > { %v1789_v19 = vmul.f32 %v10559_v49, %v1773_v29  ;;  %v1771_v10 = vpop.permute.xlu1 %1770 }
 0xad6   : > { %v1788_v43 = vmul.f32 %v10563_v53, %v1771_v10 }
 0xad7   : > { %1812 = vrot.lane.b32.xlu0 %v1789_v19, %s9637_s17 }
 0xad8   : > { %1810 = vrot.lane.b32.xlu1 %v1788_v43, %s9637_s17 }
 0xb3d   : > { %v1801_v34 = vpop.permute.xlu0 %1800 }
 0xb3e   : > { %v10573_v2 = vadd.f32 %v1801_v34, %v1743_v6  ;;  %v1805_v56 = vpop.permute.xlu1 %1804 }
 0xb3f   : > { %v10576_v1 = vadd.f32 %v1805_v56, %v1745_v5 }
 0xb40   : > { %8686 = vtanh.f32 %v10573_v2 }
 0xb41   : > { %v1807_v58 = vpop.permute.xlu0 %1806  ;;  %8688 = vtanh.f32 %v10576_v1 }
 0xb42   : > { %v10583_v59 = vadd.f32 %v1807_v58, %v1746_v45  ;;  %v1799_v8 = vpop.permute.xlu1 %1798 }
 0xb43   : > { %v10586_v37 = vadd.f32 %v1799_v8, %v1742_v13 }
 0xb44   : > { %8690 = vtanh.f32 %v10583_v59 }
 0xb45   : > { %v1809_v27 = vpop.permute.xlu0 %1808  ;;  %8692 = vtanh.f32 %v10586_v37 }
 0xb46   : > { %v10593_v24 = vadd.f32 %v1809_v27, %v1747_v25  ;;  %v1803_v22 = vpop.permute.xlu1 %1802 }
 0xb47   : > { %v10596_v16 = vadd.f32 %v1803_v22, %v1744_v39 }
 0xb48   : > { %8694 = vtanh.f32 %v10593_v24 }
 0xb49   : > { %v1813_v62 = vpop.permute.xlu0 %1812  ;;  %8696 = vtanh.f32 %v10596_v16 }
 0xb4a   : > { %v8687_v33 = vpop.eup %8686  ;;  %v10602_v44 = vadd.f32 %v1813_v62, %v1749_v61  ;;  %v1811_v20 = vpop.permute.xlu1 %1810 }
 0xb4b   : > { %1848 = vrot.lane.b32.xlu0 %v8687_v33, %s9637_s17  ;;  %v8689_v29 = vpop.eup %8688  ;;  %v10605_v19 = vadd.f32 %v1811_v20, %v1748_v52 }
 0xb4c   : > { %8698 = vtanh.f32 %v10602_v44  ;;  %1852 = vrot.lane.b32.xlu1 %v8689_v29, %s9637_s17 }
 0xb4d   : > { %8700 = vtanh.f32 %v10605_v19 }
 0xb4e   : > { %v8691_v42 = vpop.eup %8690 }
 0xb4f   : > { %1854 = vrot.lane.b32.xlu0 %v8691_v42, %s9637_s17  ;;  %v8693_v10 = vpop.eup %8692 }
 0xb50   : > { %1846 = vrot.lane.b32.xlu1 %v8693_v10, %s9637_s17 }
 0xb52   : > { %v8695_v43 = vpop.eup %8694 }
 0xb53   : > { %1856 = vrot.lane.b32.xlu0 %v8695_v43, %s9637_s17  ;;  %v8697_v48 = vpop.eup %8696 }
 0xb54   : > { %1850 = vrot.lane.b32.xlu1 %v8697_v48, %s9637_s17 }
 0xb56   : > { %v8699_v55 = vpop.eup %8698 }
 0xb57   : > { %1860 = vrot.lane.b32.xlu0 %v8699_v55, %s9637_s17  ;;  %v8701_v6 = vpop.eup %8700 }
 0xb58   : > { %1858 = vrot.lane.b32.xlu1 %v8701_v6, %s9637_s17 }
 0xbbd   : > { %v1849_v34 = vpop.permute.xlu0 %1848 }
 0xbbe   : > { %v1871_v51 = vmul.f32 %v10536_v60, %v1849_v34  ;;  %v1853_v5 = vpop.permute.xlu1 %1852 }
 0xbbf   : > { %v1873_v56 = vmul.f32 %v10539_v12, %v1853_v5 }
 0xbc0   : > { %v10620_v3 = vsel %vm3192_vm12, %v10477_v23, %v1871_v51  ;;  %v1879_v17 = vpack.c.bf16 %v1871_v51, %v1871_v51 }
 0xbc1   : > { %v1855_v45 = vpop.permute.xlu0 %1854  ;;  %v10624_v58 = vsel %vm3192_vm12, %v10466_v32, %v1873_v56 }
 0xbc2   : > { %v1874_v38 = vmul.f32 %v10543_v4, %v1855_v45  ;;  %v1847_v13 = vpop.permute.xlu1 %1846 }
 0xbc3   : > { %v1870_v8 = vmul.f32 %v10547_v11, %v1847_v13  ;;  %v1895_v11 = vunpack.c.l.b16 %v1879_v17 }
 0xbc4   : > { %v10630_v60 = vsel %vm3192_vm12, %v10480_v28, %v1874_v38  ;;  %v1882_v39 = vpack.c.bf16 %v1874_v38, %v1874_v38 }
 0xbc5   : > { %v1857_v12 = vpop.permute.xlu0 %1856  ;;  %v1878_v25 = vpack.c.bf16 %v1870_v8, %v1870_v8  ;;  %v10634_v23 = vsel %vm3192_vm12, %v10452_v63, %v1870_v8  ;;  %v1881_v63 = vpack.c.bf16 %v1873_v56, %v1873_v56  ;;  %v1903_v10 = vrot.slane %v1895_v11, 2 }
 0xbc6   : > { %v1875_v27 = vmul.f32 %v10551_v15, %v1857_v12  ;;  %v1851_v32 = vpop.permute.xlu1 %1850  ;;  %v1898_v29 = vunpack.c.l.b16 %v1882_v39 }
 0xbc7   : > { %v1894_v18 = vunpack.c.l.b16 %v1878_v25  ;;  %v1872_v4 = vmul.f32 %v10555_v14, %v1851_v32  ;;  %v1897_v6 = vunpack.c.l.b16 %v1881_v63 }
 0xbc8   : > { %v1883_v22 = vpack.c.bf16 %v1875_v27, %v1875_v27  ;;  %v10640_v21 = vsel %vm3192_vm12, %v10491_v9, %v1875_v27  ;;  %v1908_v5 = vrot.slane %v1898_v29, 7 }
 0xbc9   : > { %v1861_v28 = vpop.permute.xlu0 %1860  ;;  %v1880_v61 = vpack.c.bf16 %v1872_v4, %v1872_v4  ;;  %v10644_v62 = vsel %vm3192_vm12, %v10463_v35, %v1872_v4  ;;  %v1902_v33 = vrot.slane %v1894_v18, 3 }
 0xbca   : > { %v1899_v15 = vunpack.c.l.b16 %v1883_v22  ;;  %v1859_v52 = vpop.permute.xlu1 %1858  ;;  %v1877_v20 = vmul.f32 %v10559_v49, %v1861_v28 }
 0xbcb   : > { %v1896_v14 = vunpack.c.l.b16 %v1880_v61  ;;  %v1876_v42 = vmul.f32 %v10563_v53, %v1859_v52  ;;  %v1904_v34 = vsel %vm924_vm2, %v1903_v10, %v1902_v33 }
 0xbcc   : > { %v1885_v43 = vpack.c.bf16 %v1877_v20, %v1877_v20  ;;  %v10650_v9 = vsel %vm3192_vm12, %v10504_v31, %v1877_v20  ;;  %v1910_v49 = vrot.slane %v1899_v15, 6 }
 0xbcd   : > { %v1905_v48 = vrot.slane %v1896_v14, 1  ;;  %v1884_v55 = vpack.c.bf16 %v1876_v42, %v1876_v42  ;;  %v10654_v35 = vsel %vm3192_vm12, %v10494_v47, %v1876_v42 }
 0xbce   : > { %v1901_v51 = vunpack.c.l.b16 %v1885_v43 }
 0xbcf   : > { %v1906_v53 = vsel %vm927_vm3, %v1905_v48, %v1904_v34  ;;  %v1900_v56 = vunpack.c.l.b16 %v1884_v55 }
 0xbd0   : > { %v1907_v45 = vsel %vm930_vm4, %v1897_v6, %v1906_v53  ;;  %v1914_v38 = vrot.slane %v1901_v51, 4 }
 0xbd1   : > { %v1909_v31 = vsel %vm933_vm5, %v1908_v5, %v1907_v45  ;;  %v1912_v13 = vrot.slane %v1900_v56, 5 }
 0xbd2   : > { %v1911_v8 = vsel %vm936_vm6, %v1910_v49, %v1909_v31 }
 0xbd3   : > { %v1913_v47 = vsel %vm939_vm7, %v1912_v13, %v1911_v8 }
 0xbd4   : > { %v1915_v17 = vsel %vm942_vm8, %v1914_v38, %v1913_v47 }
 0xbd5   : > { %v1916_v12 = vpack.c.b16 %v1915_v17, %v1915_v17 }
 0xbd7   : > { %1917 = vrot.lane.b32.xlu1 %v1916_v12, %s9638_s13 }
 0xc49   : > { %v1918_v25 = vpop.permute.xlu1 %1917 }
 0xc4a   : > { %8183 = vmatmul.mubr.msk.bf16.vlgmr.msra.gmra.mrb[4].mxu0 %vm639_vm9, %v1918_v25 }
 0xc4b   : > { %8195 = vmatpush3.bf16.msra.mxu0 %v10343_v7  ;;  %8198 = vmatprep.mubr.msk.bf16.mxu0 %vm9635_vm0, %v13189_v0 }
 0xc4c   : > { %8196 = vmatprep.subr.bf16.mxu0 %v13189_v0 }
 0xc4f   : > { %8197 = vmatpush3.bf16.msra.mxu0 %v10516_v57 }
 0xd1d   : > { %v1956_v27 = vpop.f32.mrb[4].mxu0 }
 0xd1e   : > { %v1963_v32 = vrot.slane %v1956_v27, 4  ;;  %v8184_v18 = vpop.f32.mrb[5].mxu0  ;;  %v1965_v11 = vrot.slane %v1956_v27, 6  ;;  %v1967_v28 = vrot.slane %v1956_v27, 1  ;;  %v1964_v7 = vrot.slane %v1956_v27, 5 }
 0xd1f   : > { %v1959_v39 = vpop.f32.mrb[6].mxu0  ;;  %v1982_v63 = vadd.f32 %v1956_v27, %v10059_v50  ;;  %v1968_v15 = vrot.slane %v1956_v27, 2  ;;  %v1966_v20 = vrot.slane %v1956_v27, 7  ;;  %v1969_v42 = vrot.slane %v1956_v27, 3 }
 0xd20   : > { %v1978_v4 = vadd.f32 %v1963_v32, %v10039_v26  ;;  %v8185_v22 = vpop.f32.mrb[7].mxu0  ;;  %v1980_v61 = vadd.f32 %v1965_v11, %v10055_v46  ;;  %v1983_v52 = vadd.f32 %v1967_v28, %v10045_v36  ;;  %v1979_v29 = vadd.f32 %v1964_v7, %v10050_v41 }
 0xd21   : > { %v1984_v14 = vadd.f32 %v1968_v15, %v10062_v54  ;;  %v1981_v10 = vadd.f32 %v1966_v20, %v10041_v30  ;;  %v1985_v48 = vadd.f32 %v1969_v42, %v10048_v40  ;;  %v7993_v45 = vmul.f32 -1.442695, %v1982_v63 }
 0xd22   : > { %8702 = vtanh.f32 %v1978_v4  ;;  %v7989_v53 = vmul.f32 -1.442695, %v1978_v4  ;;  %v7991_v56 = vmul.f32 -1.442695, %v1980_v61  ;;  %v7994_v31 = vmul.f32 -1.442695, %v1983_v52 }
 0xd23   : > { %8704 = vtanh.f32 %v1980_v61  ;;  %v7990_v13 = vmul.f32 -1.442695, %v1979_v29  ;;  %v7995_v47 = vmul.f32 -1.442695, %v1984_v14  ;;  %v7992_v17 = vmul.f32 -1.442695, %v1981_v10 }
 0xd24   : > { %8706 = vtanh.f32 %v1982_v63  ;;  %v7996_v25 = vmul.f32 -1.442695, %v1985_v48 }
 0xd25   : > { %8708 = vtanh.f32 %v1983_v52 }
 0xd26   : > { %8710 = vtanh.f32 %v1979_v29 }
 0xd27   : > { %8712 = vtanh.f32 %v1984_v14 }
 0xd28   : > { %8714 = vtanh.f32 %v1981_v10 }
 0xd29   : > { %8716 = vtanh.f32 %v1985_v48 }
 0xd2a   : > { %8718 = vpow2.f32 %v7989_v53 }
 0xd2b   : > { %8720 = vpow2.f32 %v7991_v56 }
 0xd2c   : > { %v8703_v33 = vpop.eup %8702  ;;  %8722 = vpow2.f32 %v7993_v45 }
 0xd2d   : > { %2082 = vrot.lane.b32.xlu0 %v8703_v33, %s9637_s17  ;;  %v8705_v43 = vpop.eup %8704  ;;  %8724 = vpow2.f32 %v7994_v31 }
 0xd2e   : > { %v8707_v55 = vpop.eup %8706  ;;  %8726 = vpow2.f32 %v7990_v13 }
 0xd2f   : > { %2090 = vrot.lane.b32.xlu1 %v8707_v55, %s9637_s17  ;;  %v8709_v6 = vpop.eup %8708 }
 0xd30   : > { %v8711_v34 = vpop.eup %8710 }
 0xd31   : > { %2086 = vrot.lane.b32.xlu0 %v8705_v43, %s9637_s17  ;;  %v8713_v49 = vpop.eup %8712 }
 0xd32   : > { %v8715_v51 = vpop.eup %8714 }
 0xd33   : > { %2084 = vrot.lane.b32.xlu1 %v8711_v34, %s9637_s17  ;;  %v8717_v5 = vpop.eup %8716 }
 0xd34   : > { %v8719_v38 = vpop.eup %8718 }
 0xd35   : > { %2092 = vrot.lane.b32.xlu0 %v8709_v6, %s9637_s17  ;;  %v2010_v8 = vadd.f32 1.0, %v8719_v38  ;;  %v8721_v12 = vpop.eup %8720 }
 0xd36   : > { %v8723_v27 = vpop.eup %8722  ;;  %v2012_v32 = vadd.f32 1.0, %v8721_v12 }
 0xd37   : > { %2088 = vrot.lane.b32.xlu1 %v8715_v51, %s9637_s17  ;;  %8728 = vrcp.f32 %v2010_v8  ;;  %v8725_v18 = vpop.eup %8724  ;;  %v2014_v39 = vadd.f32 1.0, %v8723_v27 }
 0xd38   : > { %8730 = vpow2.f32 %v7995_v47  ;;  %v8727_v4 = vpop.eup %8726  ;;  %v2015_v28 = vadd.f32 1.0, %v8725_v18 }
 0xd39   : > { %2094 = vrot.lane.b32.xlu0 %v8713_v49, %s9637_s17  ;;  %8732 = vpow2.f32 %v7992_v17  ;;  %v2011_v63 = vadd.f32 1.0, %v8727_v4  ;;  %v2054_v4 = vrot.slane %v10583_v59, 7 }
 0xd3a   : > { %8734 = vpow2.f32 %v7996_v25  ;;  %v2050_v25 = vrot.slane %v10586_v37, 7 }
 0xd3b   : > { %2096 = vrot.lane.b32.xlu1 %v8717_v5, %s9637_s17  ;;  %8736 = vrcp.f32 %v2012_v32 }
 0xd3c   : > { %8738 = vrcp.f32 %v2014_v39  ;;  %v2052_v39 = vrot.slane %v10596_v16, 7 }
 0xd3d   : > { %8740 = vrcp.f32 %v2015_v28 }
 0xd3e   : > { %8742 = vrcp.f32 %v2011_v63 }
 0xd41   : > { %v10686_v22 = vpop.eup %8728 }
 0xd42   : > { %v8731_v61 = vpop.eup %8730  ;;  %v2066_v27 = vmul.f32 %v10686_v22, %v2050_v25 }
 0xd43   : > { %v8733_v33 = vpop.eup %8732  ;;  %v2016_v15 = vadd.f32 1.0, %v8731_v61  ;;  %v2055_v61 = vrot.slane %v10593_v24, 7 }
 0xd44   : > { %v2013_v52 = vadd.f32 1.0, %v8733_v33  ;;  %v8735_v20 = vpop.eup %8734 }
 0xd45   : > { %8744 = vrcp.f32 %v2016_v15  ;;  %v10690_v29 = vpop.eup %8736  ;;  %v2017_v42 = vadd.f32 1.0, %v8735_v20  ;;  %v2051_v15 = vrot.slane %v10573_v2, 7  ;;  %v2056_v20 = vrot.slane %v10605_v19, 7 }
 0xd46   : > { %8746 = vrcp.f32 %v2013_v52  ;;  %v10693_v43 = vpop.eup %8738  ;;  %v2053_v2 = vrot.slane %v10576_v1, 7 }
 0xd47   : > { %v10697_v6 = vpop.eup %8740  ;;  %8748 = vrcp.f32 %v2017_v42 }
 0xd48   : > { %v10701_v51 = vpop.eup %8742  ;;  %v2071_v16 = vmul.f32 %v10697_v6, %v2055_v61 }
 0xd49   : > { %v2067_v24 = vmul.f32 %v10701_v51, %v2051_v15 }
 0xd4f   : > { %v10705_v56 = vpop.eup %8744 }
 0xd50   : > { %v10709_v31 = vpop.eup %8746 }
 0xd51   : > { %v10714_v47 = vpop.eup %8748  ;;  %v2069_v19 = vmul.f32 %v10709_v31, %v2053_v2 }
 0xd9f   : > { %v2083_v11 = vpop.permute.xlu0 %2082 }
 0xda0   : > { %v2106_v7 = vmul.f32 %v10686_v22, %v2083_v11  ;;  %v2068_v11 = vmul.f32 %v10690_v29, %v2052_v39 }
 0xda1   : > { %v2091_v48 = vpop.permute.xlu1 %2090 }
 0xda2   : > { %2122 = vrot.lane.b32.xlu0 %v2106_v7, %s9637_s17  ;;  %v2110_v55 = vmul.f32 %v10693_v43, %v2091_v48  ;;  %v2070_v7 = vmul.f32 %v10693_v43, %v2054_v4  ;;  %v2072_v48 = vmul.f32 %v10705_v56, %v2056_v20 }
 0xda3   : > { %v2087_v14 = vpop.permute.xlu0 %2086 }
 0xda4   : > { %v2108_v10 = vmul.f32 %v10690_v29, %v2087_v14  ;;  %2130 = vrot.lane.b32.xlu1 %v2110_v55, %s9637_s17 }
 0xda5   : > { %v2085_v5 = vpop.permute.xlu1 %2084 }
 0xda6   : > { %2126 = vrot.lane.b32.xlu0 %v2108_v10, %s9637_s17  ;;  %v2107_v53 = vmul.f32 %v10701_v51, %v2085_v5  ;;  %v2057_v5 = vrot.slane %v10602_v44, 7 }
 0xda7   : > { %v2093_v34 = vpop.permute.xlu0 %2092 }
 0xda8   : > { %v2111_v49 = vmul.f32 %v10697_v6, %v2093_v34  ;;  %2124 = vrot.lane.b32.xlu1 %v2107_v53, %s9637_s17 }
 0xda9   : > { %v2089_v13 = vpop.permute.xlu1 %2088 }
 0xdaa   : > { %2132 = vrot.lane.b32.xlu0 %v2111_v49, %s9637_s17  ;;  %v2109_v8 = vmul.f32 %v10709_v31, %v2089_v13 }
 0xdab   : > { %v2095_v45 = vpop.permute.xlu0 %2094 }
 0xdac   : > { %v2112_v38 = vmul.f32 %v10705_v56, %v2095_v45  ;;  %2128 = vrot.lane.b32.xlu1 %v2109_v8, %s9637_s17  ;;  %v2073_v45 = vmul.f32 %v10714_v47, %v2057_v5 }
 0xdad   : > { %v2097_v17 = vpop.permute.xlu1 %2096 }
 0xdae   : > { %2134 = vrot.lane.b32.xlu0 %v2112_v38, %s9637_s17  ;;  %v2113_v12 = vmul.f32 %v10714_v47, %v2097_v17 }
 0xdb0   : > { %2136 = vrot.lane.b32.xlu1 %v2113_v12, %s9637_s17 }
 0xe14   : > { %v2123_v32 = vpop.permute.xlu0 %2122 }
 0xe15   : > { %v10720_v18 = vadd.f32 %v2123_v32, %v2066_v27 }
 0xe16   : > { %v2131_v37 = vpop.permute.xlu1 %2130 }
 0xe17   : > { %8750 = vtanh.f32 %v10720_v18  ;;  %v10731_v52 = vadd.f32 %v2131_v37, %v2070_v7 }
 0xe18   : > { %v2127_v28 = vpop.permute.xlu0 %2126 }
 0xe19   : > { %v10728_v63 = vadd.f32 %v2127_v28, %v2068_v11 }
 0xe1a   : > { %v2125_v42 = vpop.permute.xlu1 %2124 }
 0xe1b   : > { %8752 = vtanh.f32 %v10728_v63  ;;  %v10742_v10 = vadd.f32 %v2125_v42, %v2067_v24 }
 0xe1c   : > { %v2133_v59 = vpop.permute.xlu0 %2132  ;;  %8754 = vtanh.f32 %v10731_v52 }
 0xe1d   : > { %v10739_v14 = vadd.f32 %v2133_v59, %v2071_v16 }
 0xe1e   : > { %v2129_v49 = vpop.permute.xlu1 %2128 }
 0xe1f   : > { %8756 = vtanh.f32 %v10739_v14  ;;  %v10751_v53 = vadd.f32 %v2129_v49, %v2069_v19 }
 0xe20   : > { %v2135_v55 = vpop.permute.xlu0 %2134  ;;  %8758 = vtanh.f32 %v10742_v10 }
 0xe21   : > { %v8751_v33 = vpop.eup %8750  ;;  %v10748_v34 = vadd.f32 %v2135_v55, %v2072_v48 }
 0xe22   : > { %2170 = vrot.lane.b32.xlu0 %v8751_v33, %s9637_s17  ;;  %v2137_v38 = vpop.permute.xlu1 %2136 }
 0xe23   : > { %8760 = vtanh.f32 %v10748_v34  ;;  %v10757_v8 = vadd.f32 %v2137_v38, %v2073_v45 }
 0xe24   : > { %8762 = vtanh.f32 %v10751_v53 }
 0xe25   : > { %v8753_v1 = vpop.eup %8752  ;;  %8764 = vtanh.f32 %v10757_v8 }
 0xe26   : > { %2174 = vrot.lane.b32.xlu0 %v8753_v1, %s9637_s17  ;;  %v8755_v13 = vpop.eup %8754 }
 0xe27   : > { %2178 = vrot.lane.b32.xlu1 %v8755_v13, %s9637_s17 }
 0xe29   : > { %v8757_v17 = vpop.eup %8756 }
 0xe2a   : > { %2180 = vrot.lane.b32.xlu0 %v8757_v17, %s9637_s17  ;;  %v8759_v44 = vpop.eup %8758 }
 0xe2b   : > { %2172 = vrot.lane.b32.xlu1 %v8759_v44, %s9637_s17 }
 0xe2d   : > { %v8761_v12 = vpop.eup %8760 }
 0xe2e   : > { %2182 = vrot.lane.b32.xlu0 %v8761_v12, %s9637_s17  ;;  %v8763_v25 = vpop.eup %8762 }
 0xe2f   : > { %2176 = vrot.lane.b32.xlu1 %v8763_v25, %s9637_s17  ;;  %v8765_v27 = vpop.eup %8764 }
 0xe33   : > { %2184 = vrot.lane.b32.xlu1 %v8765_v27, %s9637_s17 }
 0xe94   : > { %v2171_v32 = vpop.permute.xlu0 %2170 }
 0xe95   : > { %v2194_v39 = vmul.f32 %v10686_v22, %v2171_v32 }
 0xe97   : > { %v10769_v4 = vsel %vm3201_vm13, %v10634_v23, %v2194_v39  ;;  %v2202_v33 = vpack.c.bf16 %v2194_v39, %v2194_v39 }
 0xe98   : > { %v2175_v11 = vpop.permute.xlu0 %2174 }
 0xe99   : > { %v2196_v28 = vmul.f32 %v10690_v29, %v2175_v11  ;;  %v2179_v61 = vpop.permute.xlu1 %2178  ;;  %v2218_v29 = vunpack.c.l.b16 %v2202_v33 }
 0xe9a   : > { %v2198_v7 = vmul.f32 %v10693_v43, %v2179_v61 }
 0xe9b   : > { %v10775_v37 = vsel %vm3201_vm13, %v10644_v62, %v2196_v28  ;;  %v2204_v15 = vpack.c.bf16 %v2196_v28, %v2196_v28  ;;  %v2226_v49 = vrot.slane %v2218_v29, 4 }
 0xe9c   : > { %v2181_v16 = vpop.permute.xlu0 %2180  ;;  %v10779_v22 = vsel %vm3201_vm13, %v10630_v60, %v2198_v7  ;;  %v2206_v13 = vpack.c.bf16 %v2198_v7, %v2198_v7 }
 0xe9d   : > { %v2199_v23 = vmul.f32 %v10697_v6, %v2181_v16  ;;  %v2173_v59 = vpop.permute.xlu1 %2172  ;;  %v2220_v24 = vunpack.c.l.b16 %v2204_v15 }
 0xe9e   : > { %v2195_v20 = vmul.f32 %v10701_v51, %v2173_v59 }
 0xe9f   : > { %v10785_v43 = vsel %vm3201_vm13, %v10640_v21, %v2199_v23  ;;  %v2207_v48 = vpack.c.bf16 %v2199_v23, %v2199_v23  ;;  %v2229_v5 = vrot.slane %v2220_v24, 2 }
 0xea0   : > { %v2183_v62 = vpop.permute.xlu0 %2182  ;;  %v2203_v42 = vpack.c.bf16 %v2195_v20, %v2195_v20  ;;  %v10789_v2 = vsel %vm3201_vm13, %v10620_v3, %v2195_v20 }
 0xea1   : > { %v2200_v60 = vmul.f32 %v10705_v56, %v2183_v62  ;;  %v2177_v55 = vpop.permute.xlu1 %2176  ;;  %v2223_v38 = vunpack.c.l.b16 %v2207_v48 }
 0xea2   : > { %v2219_v6 = vunpack.c.l.b16 %v2203_v42  ;;  %v2197_v19 = vmul.f32 %v10709_v31, %v2177_v55 }
 0xea3   : > { %v2208_v51 = vpack.c.bf16 %v2200_v60, %v2200_v60  ;;  %v10795_v21 = vsel %vm3201_vm13, %v10654_v35, %v2200_v60  ;;  %v2234_v35 = vrot.slane %v2223_v38, 7 }
 0xea4   : > { %v2227_v1 = vrot.slane %v2219_v6, 3  ;;  %v2205_v45 = vpack.c.bf16 %v2197_v19, %v2197_v19  ;;  %v10799_v3 = vsel %vm3201_vm13, %v10624_v58, %v2197_v19  ;;  %v2222_v58 = vunpack.c.l.b16 %v2206_v13 }
 0xea5   : > { %v2185_v56 = vpop.permute.xlu1 %2184  ;;  %v2224_v17 = vunpack.c.l.b16 %v2208_v51 }
 0xea6   : > { %v2228_v44 = vsel %vm924_vm2, %v2227_v1, %v2226_v49  ;;  %v2221_v31 = vunpack.c.l.b16 %v2205_v45  ;;  %v2201_v12 = vmul.f32 %v10714_v47, %v2185_v56 }
 0xea7   : > { %v2230_v25 = vsel %vm927_vm3, %v2229_v5, %v2228_v44  ;;  %v2236_v11 = vrot.slane %v2224_v17, 6 }
 0xea8   : > { %v2231_v27 = vrot.slane %v2221_v31, 1  ;;  %v2209_v32 = vpack.c.bf16 %v2201_v12, %v2201_v12  ;;  %v10806_v39 = vsel %vm3201_vm13, %v10650_v9, %v2201_v12  ;;  %v9344_v9 = vld [vmem:[#allocation7] sm:$0xff]  }
 0xeaa   : > { %v2232_v28 = vsel %vm930_vm4, %v2231_v27, %v2230_v25  ;;  %v2225_v61 = vunpack.c.l.b16 %v2209_v32 }
 0xeab   : > { %v2233_v7 = vsel %vm933_vm5, %v2222_v58, %v2232_v28 }
 0xeac   : > { %v2235_v33 = vsel %vm936_vm6, %v2234_v35, %v2233_v7  ;;  %v2238_v15 = vrot.slane %v2225_v61, 5 }
 0xead   : > { %v2237_v47 = vsel %vm939_vm7, %v2236_v11, %v2235_v33 }
 0xeae   : > { %v2239_v16 = vsel %vm942_vm8, %v2238_v15, %v2237_v47 }
 0xeaf   : > { %v2240_v23 = vpack.c.b16 %v2239_v16, %v2239_v16 }
 0xeb1   : > { %2241 = vrot.lane.b32.xlu0 %v2240_v23, %s9638_s13 }
 0xf23   : > { %v2242_v59 = vpop.permute.xlu0 %2241 }
 0xf24   : > { %8191 = vmatmul.mubr.msk.bf16.vlgmr.msra.gmra.mrb[20].mxu1 %vm639_vm9, %v2242_v59 }
 0xf25   : > { %8203 = vmatpush3.bf16.msra.mxu1 %v9344_v9  ;;  %8206 = vmatprep.mubr.msk.bf16.mxu1 %vm9635_vm0, %v13189_v0 }
 0xf26   : > { %8204 = vmatprep.subr.bf16.mxu1 %v13189_v0 }
 0xf29   : > { %8205 = vmatpush3.bf16.msra.mxu1 %v10516_v57 }
 0xff7   : > { %v2280_v20 = vpop.f32.mrb[20].mxu1 }
 0xff8   : > { %v2287_v29 = vrot.slane %v2280_v20, 3  ;;  %v8192_v24 = vpop.f32.mrb[21].mxu1  ;;  %v2288_v60 = vrot.slane %v2280_v20, 4  ;;  %v2289_v55 = vrot.slane %v2280_v20, 5  ;;  %v2290_v6 = vrot.slane %v2280_v20, 6 }
 0xff9   : > { %v2283_v62 = vpop.f32.mrb[22].mxu1  ;;  %v2291_v51 = vrot.slane %v2280_v20, 7  ;;  %v2292_v5 = vrot.slane %v2280_v20, 1  ;;  %v2293_v38 = vrot.slane %v2280_v20, 2  ;;  %v2307_v56 = vadd.f32 %v2280_v20, %v10045_v36 }
 0xffa   : > { %v2302_v42 = vadd.f32 %v2287_v29, %v10039_v26  ;;  %v8193_v48 = vpop.f32.mrb[23].mxu1  ;;  %v2303_v19 = vadd.f32 %v2288_v60, %v10050_v41  ;;  %v2304_v49 = vadd.f32 %v2289_v55, %v10055_v46  ;;  %v2305_v1 = vadd.f32 %v2290_v6, %v10041_v30 }
 0xffb   : > { %v2306_v45 = vadd.f32 %v2291_v51, %v10059_v50  ;;  %v2308_v13 = vadd.f32 %v2292_v5, %v10062_v54  ;;  %v2309_v17 = vadd.f32 %v2293_v38, %v10048_v40  ;;  %v8003_v16 = vmul.f32 -1.442695, %v2307_v56 }
 0xffc   : > { %8766 = vtanh.f32 %v2302_v42  ;;  %v7998_v58 = vmul.f32 -1.442695, %v2302_v42  ;;  %v7999_v11 = vmul.f32 -1.442695, %v2303_v19  ;;  %v8000_v28 = vmul.f32 -1.442695, %v2304_v49 }
 0xffd   : > { %8768 = vtanh.f32 %v2303_v19  ;;  %v8001_v61 = vmul.f32 -1.442695, %v2305_v1  ;;  %v8002_v33 = vmul.f32 -1.442695, %v2306_v45  ;;  %v8004_v15 = vmul.f32 -1.442695, %v2308_v13 }
 0xffe   : > { %8770 = vtanh.f32 %v2304_v49  ;;  %v8005_v23 = vmul.f32 -1.442695, %v2309_v17 }
 0xfff   : > { %8772 = vtanh.f32 %v2305_v1 }
0x1000   : > { %8774 = vtanh.f32 %v2306_v45 }
0x1001   : > { %8776 = vtanh.f32 %v2308_v13 }
0x1002   : > { %8778 = vtanh.f32 %v2307_v56 }
0x1003   : > { %8780 = vtanh.f32 %v2309_v17 }
0x1004   : > { %8782 = vpow2.f32 %v7998_v58 }
0x1005   : > { %8784 = vpow2.f32 %v7999_v11 }
0x1006   : > { %v8767_v57 = vpop.eup %8766  ;;  %8786 = vpow2.f32 %v8000_v28 }
0x1007   : > { %2406 = vrot.lane.b32.xlu1 %v8767_v57, %s9637_s17  ;;  %v8769_v44 = vpop.eup %8768  ;;  %8788 = vpow2.f32 %v8001_v61 }
0x1008   : > { %v8771_v31 = vpop.eup %8770  ;;  %2408 = vrot.lane.b32.xlu0 %v8769_v44, %s9637_s17  ;;  %8790 = vpow2.f32 %v8002_v33 }
0x1009   : > { %v8773_v12 = vpop.eup %8772  ;;  %8792 = vpow2.f32 %v8004_v15 }
0x100a   : > { %v8775_v25 = vpop.eup %8774 }
0x100b   : > { %2410 = vrot.lane.b32.xlu1 %v8771_v31, %s9637_s17  ;;  %v8777_v27 = vpop.eup %8776 }
0x100c   : > { %2412 = vrot.lane.b32.xlu0 %v8773_v12, %s9637_s17  ;;  %v8779_v35 = vpop.eup %8778 }
0x100d   : > { %v8781_v32 = vpop.eup %8780 }
0x100e   : > { %v8783_v7 = vpop.eup %8782 }
0x100f   : > { %2414 = vrot.lane.b32.xlu1 %v8775_v25, %s9637_s17  ;;  %v2334_v47 = vadd.f32 1.0, %v8783_v7  ;;  %v8785_v59 = vpop.eup %8784 }
0x1010   : > { %2418 = vrot.lane.b32.xlu0 %v8777_v27, %s9637_s17  ;;  %v8787_v9 = vpop.eup %8786  ;;  %v2335_v20 = vadd.f32 1.0, %v8785_v59 }
0x1011   : > { %8794 = vrcp.f32 %v2334_v47  ;;  %v8789_v29 = vpop.eup %8788  ;;  %v2336_v24 = vadd.f32 1.0, %v8787_v9 }
0x1012   : > { %8796 = vpow2.f32 %v8003_v16  ;;  %v8791_v62 = vpop.eup %8790  ;;  %v2337_v48 = vadd.f32 1.0, %v8789_v29  ;;  %v2375_v29 = vrot.slane %v10742_v10, 7 }
0x1013   : > { %2416 = vrot.lane.b32.xlu1 %v8779_v35, %s9637_s17  ;;  %8798 = vpow2.f32 %v8005_v23  ;;  %v8793_v42 = vpop.eup %8792  ;;  %v2338_v6 = vadd.f32 1.0, %v8791_v62  ;;  %v2374_v23 = vrot.slane %v10720_v18, 7 }
0x1014   : > { %2420 = vrot.lane.b32.xlu0 %v8781_v32, %s9637_s17  ;;  %8800 = vrcp.f32 %v2335_v20  ;;  %v2340_v49 = vadd.f32 1.0, %v8793_v42 }
0x1015   : > { %8802 = vrcp.f32 %v2336_v24  ;;  %v2376_v24 = vrot.slane %v10728_v63, 7 }
0x1016   : > { %8804 = vrcp.f32 %v2337_v48 }
0x1017   : > { %8806 = vrcp.f32 %v2338_v6 }
0x1018   : > { %8808 = vrcp.f32 %v2340_v49 }
0x101b   : > { %v10835_v60 = vpop.eup %8794 }
0x101c   : > { %v8797_v19 = vpop.eup %8796  ;;  %v2390_v59 = vmul.f32 %v10835_v60, %v2374_v23 }
0x101d   : > { %v8799_v5 = vpop.eup %8798  ;;  %v2339_v1 = vadd.f32 1.0, %v8797_v19  ;;  %v2378_v19 = vrot.slane %v10731_v52, 7  ;;  %v2379_v52 = vrot.slane %v10739_v14, 7 }
0x101e   : > { %v2341_v57 = vadd.f32 1.0, %v8799_v5  ;;  %v10839_v45 = vpop.eup %8800 }
0x101f   : > { %8810 = vrcp.f32 %v2339_v1  ;;  %v10841_v13 = vpop.eup %8802  ;;  %v2391_v62 = vmul.f32 %v10839_v45, %v2375_v29  ;;  %v2380_v1 = vrot.slane %v10748_v34, 7  ;;  %v2381_v34 = vrot.slane %v10757_v8, 7 }
0x1020   : > { %8812 = vrcp.f32 %v2341_v57  ;;  %v10846_v31 = vpop.eup %8804  ;;  %v2392_v48 = vmul.f32 %v10841_v13, %v2376_v24 }
0x1021   : > { %v10849_v25 = vpop.eup %8806 }
0x1022   : > { %v10854_v58 = vpop.eup %8808  ;;  %v2394_v5 = vmul.f32 %v10849_v25, %v2378_v19 }
0x1029   : > { %v10857_v28 = vpop.eup %8810 }
0x102a   : > { %v10862_v15 = vpop.eup %8812 }
0x102b   : > { %v2397_v14 = vmul.f32 %v10862_v15, %v2381_v34 }
0x1079   : > { %v2407_v55 = vpop.permute.xlu1 %2406 }
0x107a   : > { %v2430_v51 = vmul.f32 %v10835_v60, %v2407_v55  ;;  %v2409_v38 = vpop.permute.xlu0 %2408  ;;  %v2377_v55 = vrot.slane %v10751_v53, 7 }
0x107b   : > { %v2431_v56 = vmul.f32 %v10839_v45, %v2409_v38 }
0x107c   : > { %2446 = vrot.lane.b32.xlu1 %v2430_v51, %s9637_s17  ;;  %v2393_v10 = vmul.f32 %v10846_v31, %v2377_v55 }
0x107d   : > { %v2411_v17 = vpop.permute.xlu1 %2410  ;;  %2448 = vrot.lane.b32.xlu0 %v2431_v56, %s9637_s17  ;;  %v2396_v56 = vmul.f32 %v10854_v58, %v2380_v1 }
0x107e   : > { %v2432_v44 = vmul.f32 %v10841_v13, %v2411_v17  ;;  %v2413_v12 = vpop.permute.xlu0 %2412 }
0x107f   : > { %v2433_v27 = vmul.f32 %v10846_v31, %v2413_v12 }
0x1080   : > { %2450 = vrot.lane.b32.xlu1 %v2432_v44, %s9637_s17  ;;  %v2395_v44 = vmul.f32 %v10857_v28, %v2379_v52 }
0x1081   : > { %v2415_v35 = vpop.permute.xlu1 %2414  ;;  %2452 = vrot.lane.b32.xlu0 %v2433_v27, %s9637_s17 }
0x1082   : > { %v2434_v32 = vmul.f32 %v10849_v25, %v2415_v35  ;;  %v2419_v11 = vpop.permute.xlu0 %2418 }
0x1083   : > { %v2436_v61 = vmul.f32 %v10854_v58, %v2419_v11 }
0x1084   : > { %2454 = vrot.lane.b32.xlu1 %v2434_v32, %s9637_s17 }
0x1085   : > { %v2417_v7 = vpop.permute.xlu1 %2416  ;;  %2458 = vrot.lane.b32.xlu0 %v2436_v61, %s9637_s17 }
0x1086   : > { %v2435_v33 = vmul.f32 %v10857_v28, %v2417_v7  ;;  %v2421_v47 = vpop.permute.xlu0 %2420 }
0x1087   : > { %v2437_v16 = vmul.f32 %v10862_v15, %v2421_v47 }
0x1088   : > { %2456 = vrot.lane.b32.xlu1 %v2435_v33, %s9637_s17 }
0x1089   : > { %2460 = vrot.lane.b32.xlu0 %v2437_v16, %s9637_s17 }
0x10ee   : > { %v2447_v9 = vpop.permute.xlu1 %2446 }
0x10ef   : > { %v10869_v20 = vadd.f32 %v2447_v9, %v2390_v59  ;;  %v2449_v42 = vpop.permute.xlu0 %2448 }
0x10f0   : > { %v10877_v6 = vadd.f32 %v2449_v42, %v2391_v62 }
0x10f1   : > { %8814 = vtanh.f32 %v10869_v20 }
0x10f2   : > { %v2451_v18 = vpop.permute.xlu1 %2450  ;;  %8816 = vtanh.f32 %v10877_v6 }
0x10f3   : > { %v10880_v51 = vadd.f32 %v2451_v18, %v2392_v48  ;;  %v2453_v63 = vpop.permute.xlu0 %2452 }
0x10f4   : > { %v10887_v53 = vadd.f32 %v2453_v63, %v2393_v10 }
0x10f5   : > { %8818 = vtanh.f32 %v10880_v51 }
0x10f6   : > { %v2455_v57 = vpop.permute.xlu1 %2454  ;;  %8820 = vtanh.f32 %v10887_v53 }
0x10f7   : > { %v10891_v38 = vadd.f32 %v2455_v57, %v2394_v5  ;;  %v2459_v17 = vpop.permute.xlu0 %2458 }
0x10f8   : > { %v10898_v12 = vadd.f32 %v2459_v17, %v2396_v56 }
0x10f9   : > { %8822 = vtanh.f32 %v10891_v38 }
0x10fa   : > { %v2457_v27 = vpop.permute.xlu1 %2456  ;;  %8824 = vtanh.f32 %v10898_v12 }
0x10fb   : > { %v8815_v49 = vpop.eup %8814  ;;  %v10900_v35 = vadd.f32 %v2457_v27, %v2395_v44  ;;  %v2461_v32 = vpop.permute.xlu0 %2460 }
0x10fc   : > { %2494 = vrot.lane.b32.xlu1 %v8815_v49, %s9637_s17  ;;  %v8817_v11 = vpop.eup %8816  ;;  %v10905_v61 = vadd.f32 %v2461_v32, %v2397_v14 }
0x10fd   : > { %8826 = vtanh.f32 %v10900_v35  ;;  %2496 = vrot.lane.b32.xlu0 %v8817_v11, %s9637_s17 }
0x10fe   : > { %8828 = vtanh.f32 %v10905_v61 }
0x10ff   : > { %v8819_v7 = vpop.eup %8818 }
0x1100   : > { %2498 = vrot.lane.b32.xlu1 %v8819_v7, %s9637_s17  ;;  %v8821_v8 = vpop.eup %8820 }
0x1101   : > { %2500 = vrot.lane.b32.xlu0 %v8821_v8, %s9637_s17 }
0x1103   : > { %v8823_v33 = vpop.eup %8822 }
0x1104   : > { %2502 = vrot.lane.b32.xlu1 %v8823_v33, %s9637_s17  ;;  %v8825_v47 = vpop.eup %8824 }
0x1105   : > { %2506 = vrot.lane.b32.xlu0 %v8825_v47, %s9637_s17 }
0x1107   : > { %v8827_v16 = vpop.eup %8826 }
0x1108   : > { %2504 = vrot.lane.b32.xlu1 %v8827_v16, %s9637_s17  ;;  %v8829_v23 = vpop.eup %8828 }
0x1109   : > { %2508 = vrot.lane.b32.xlu0 %v8829_v23, %s9637_s17 }
0x116e   : > { %v2495_v59 = vpop.permute.xlu1 %2494 }
0x116f   : > { %v2518_v9 = vmul.f32 %v10835_v60, %v2495_v59  ;;  %v2497_v62 = vpop.permute.xlu0 %2496 }
0x1170   : > { %v2519_v42 = vmul.f32 %v10839_v45, %v2497_v62 }
0x1171   : > { %v10918_v29 = vsel %vm3210_vm14, %v10769_v4, %v2518_v9  ;;  %v2526_v24 = vpack.c.bf16 %v2518_v9, %v2518_v9 }
0x1172   : > { %v2499_v55 = vpop.permute.xlu1 %2498  ;;  %v2527_v19 = vpack.c.bf16 %v2519_v42, %v2519_v42  ;;  %v10924_v10 = vsel %vm3210_vm14, %v10789_v2, %v2519_v42 }
0x1173   : > { %v2542_v48 = vunpack.c.l.b16 %v2526_v24  ;;  %v2520_v18 = vmul.f32 %v10841_v13, %v2499_v55  ;;  %v2501_v49 = vpop.permute.xlu0 %2500 }
0x1174   : > { %v2543_v4 = vunpack.c.l.b16 %v2527_v19  ;;  %v2521_v1 = vmul.f32 %v10846_v31, %v2501_v49 }
0x1175   : > { %v2528_v63 = vpack.c.bf16 %v2520_v18, %v2520_v18  ;;  %v10928_v60 = vsel %vm3210_vm14, %v10775_v37, %v2520_v18  ;;  %v2550_v5 = vrot.slane %v2542_v48, 5 }
0x1176   : > { %v2503_v45 = vpop.permute.xlu1 %2502  ;;  %v2551_v13 = vrot.slane %v2543_v4, 4  ;;  %v2529_v56 = vpack.c.bf16 %v2521_v1, %v2521_v1  ;;  %v10934_v2 = vsel %vm3210_vm14, %v10799_v3, %v2521_v1 }
0x1177   : > { %v2544_v57 = vunpack.c.l.b16 %v2528_v63  ;;  %v2522_v52 = vmul.f32 %v10849_v25, %v2503_v45  ;;  %v2507_v44 = vpop.permute.xlu0 %2506 }
0x1178   : > { %v2552_v27 = vsel %vm924_vm2, %v2551_v13, %v2550_v5  ;;  %v2545_v31 = vunpack.c.l.b16 %v2529_v56  ;;  %v2524_v14 = vmul.f32 %v10854_v58, %v2507_v44 }
0x1179   : > { %v2553_v17 = vrot.slane %v2544_v57, 3  ;;  %v2530_v34 = vpack.c.bf16 %v2522_v52, %v2522_v52  ;;  %v10938_v37 = vsel %vm3210_vm14, %v10779_v22, %v2522_v52 }
0x117a   : > { %v2505_v32 = vpop.permute.xlu1 %2504  ;;  %v2555_v3 = vrot.slane %v2545_v31, 2  ;;  %v2532_v8 = vpack.c.bf16 %v2524_v14, %v2524_v14  ;;  %v10946_v33 = vsel %vm3210_vm14, %v10795_v21, %v2524_v14 }
0x117b   : > { %v2554_v25 = vsel %vm927_vm3, %v2553_v17, %v2552_v27  ;;  %v2546_v11 = vunpack.c.l.b16 %v2530_v34  ;;  %v2523_v7 = vmul.f32 %v10857_v28, %v2505_v32  ;;  %v2509_v22 = vpop.permute.xlu0 %2508 }
0x117c   : > { %v2548_v58 = vunpack.c.l.b16 %v2532_v8  ;;  %v2556_v59 = vsel %vm930_vm4, %v2555_v3, %v2554_v25  ;;  %v2525_v9 = vmul.f32 %v10862_v15, %v2509_v22 }
0x117d   : > { %v2557_v47 = vrot.slane %v2546_v11, 1  ;;  %v2531_v16 = vpack.c.bf16 %v2523_v7, %v2523_v7  ;;  %v10950_v23 = vsel %vm3210_vm14, %v10785_v43, %v2523_v7 }
0x117e   : > { %v2533_v62 = vpack.c.bf16 %v2525_v9, %v2525_v9  ;;  %v10957_v21 = vsel %vm3210_vm14, %v10806_v39, %v2525_v9  ;;  %v2560_v42 = vrot.slane %v2548_v58, 7 }
0x117f   : > { %v2558_v28 = vsel %vm933_vm5, %v2557_v47, %v2556_v59  ;;  %v2547_v24 = vunpack.c.l.b16 %v2531_v16 }
0x1180   : > { %v2549_v55 = vunpack.c.l.b16 %v2533_v62 }
0x1181   : > { %v2559_v48 = vsel %vm936_vm6, %v2547_v24, %v2558_v28 }
0x1182   : > { %v2561_v43 = vsel %vm939_vm7, %v2560_v42, %v2559_v48  ;;  %v2562_v18 = vrot.slane %v2549_v55, 6 }
0x1184   : > { %v2563_v19 = vsel %vm942_vm8, %v2562_v18, %v2561_v43 }
0x1185   : > { %v2564_v49 = vpack.c.b16 %v2563_v19, %v2563_v19 }
0x1187   : > { %2565 = vrot.lane.b32.xlu1 %v2564_v49, %s9638_s13 }
0x11f9   : > { %v2566_v15 = vpop.permute.xlu1 %2565 }
0x11fa   : > { %8199 = vmatmul.mubr.msk.bf16.vlgmr.msra.gmra.mrb[8].mxu0 %vm639_vm9, %v2566_v15 }
0x12cd   : > { %v2604_v63 = vpop.f32.mrb[8].mxu0 }
0x12ce   : > { %v2611_v4 = vrot.slane %v2604_v63, 2  ;;  %v8200_v5 = vpop.f32.mrb[9].mxu0  ;;  %v2612_v57 = vrot.slane %v2604_v63, 3  ;;  %v2613_v52 = vrot.slane %v2604_v63, 4  ;;  %v2614_v13 = vrot.slane %v2604_v63, 5 }
0x12cf   : > { %v2607_v39 = vpop.f32.mrb[10].mxu0  ;;  %v2615_v17 = vrot.slane %v2604_v63, 6  ;;  %v2616_v34 = vrot.slane %v2604_v63, 7  ;;  %v2617_v14 = vrot.slane %v2604_v63, 1  ;;  %v2632_v7 = vadd.f32 %v2604_v63, %v10062_v54 }
0x12d0   : > { %v2626_v1 = vadd.f32 %v2611_v4, %v10039_v26  ;;  %v8201_v45 = vpop.f32.mrb[11].mxu0  ;;  %v2627_v56 = vadd.f32 %v2612_v57, %v10050_v41  ;;  %v2628_v44 = vadd.f32 %v2613_v52, %v10055_v46  ;;  %v2629_v27 = vadd.f32 %v2614_v13, %v10041_v30 }
0x12d1   : > { %v2630_v32 = vadd.f32 %v2615_v17, %v10059_v50  ;;  %v2631_v25 = vadd.f32 %v2616_v34, %v10045_v36  ;;  %v2633_v11 = vadd.f32 %v2617_v14, %v10048_v40  ;;  %v8013_v19 = vmul.f32 -1.442695, %v2632_v7 }
0x12d2   : > { %8830 = vtanh.f32 %v2626_v1  ;;  %v8007_v9 = vmul.f32 -1.442695, %v2626_v1  ;;  %v8008_v28 = vmul.f32 -1.442695, %v2627_v56  ;;  %v8009_v24 = vmul.f32 -1.442695, %v2628_v44 }
0x12d3   : > { %8832 = vtanh.f32 %v2627_v56  ;;  %v8010_v62 = vmul.f32 -1.442695, %v2629_v27  ;;  %v8011_v48 = vmul.f32 -1.442695, %v2630_v32  ;;  %v8012_v55 = vmul.f32 -1.442695, %v2631_v25 }
0x12d4   : > { %8834 = vtanh.f32 %v2628_v44  ;;  %v8014_v18 = vmul.f32 -1.442695, %v2633_v11 }
0x12d5   : > { %8836 = vtanh.f32 %v2629_v27 }
0x12d6   : > { %8838 = vtanh.f32 %v2630_v32 }
0x12d7   : > { %8840 = vtanh.f32 %v2631_v25 }
0x12d8   : > { %8842 = vtanh.f32 %v2633_v11 }
0x12d9   : > { %8844 = vtanh.f32 %v2632_v7 }
0x12da   : > { %8846 = vpow2.f32 %v8007_v9 }
0x12db   : > { %8848 = vpow2.f32 %v8008_v28 }
0x12dc   : > { %v8831_v31 = vpop.eup %8830  ;;  %8850 = vpow2.f32 %v8009_v24 }
0x12dd   : > { %2730 = vrot.lane.b32.xlu0 %v8831_v31, %s9637_s17  ;;  %v8833_v3 = vpop.eup %8832  ;;  %8852 = vpow2.f32 %v8010_v62 }
0x12de   : > { %v8835_v8 = vpop.eup %8834  ;;  %2732 = vrot.lane.b32.xlu1 %v8833_v3, %s9637_s17  ;;  %8854 = vpow2.f32 %v8011_v48 }
0x12df   : > { %v8837_v47 = vpop.eup %8836  ;;  %8856 = vpow2.f32 %v8012_v55 }
0x12e0   : > { %v8839_v22 = vpop.eup %8838 }
0x12e1   : > { %2734 = vrot.lane.b32.xlu0 %v8835_v8, %s9637_s17  ;;  %v8841_v16 = vpop.eup %8840 }
0x12e2   : > { %2736 = vrot.lane.b32.xlu1 %v8837_v47, %s9637_s17  ;;  %v8843_v58 = vpop.eup %8842 }
0x12e3   : > { %v8845_v59 = vpop.eup %8844 }
0x12e4   : > { %v8847_v42 = vpop.eup %8846 }
0x12e5   : > { %2738 = vrot.lane.b32.xlu0 %v8839_v22, %s9637_s17  ;;  %v2658_v43 = vadd.f32 1.0, %v8847_v42  ;;  %v8849_v49 = vpop.eup %8848 }
0x12e6   : > { %2740 = vrot.lane.b32.xlu1 %v8841_v16, %s9637_s17  ;;  %v8851_v15 = vpop.eup %8850  ;;  %v2659_v63 = vadd.f32 1.0, %v8849_v49 }
0x12e7   : > { %8858 = vrcp.f32 %v2658_v43  ;;  %v8853_v4 = vpop.eup %8852  ;;  %v2660_v5 = vadd.f32 1.0, %v8851_v15 }
0x12e8   : > { %8860 = vpow2.f32 %v8014_v18  ;;  %v8855_v39 = vpop.eup %8854  ;;  %v2661_v45 = vadd.f32 1.0, %v8853_v4  ;;  %v2699_v4 = vrot.slane %v10877_v6, 7 }
0x12e9   : > { %2744 = vrot.lane.b32.xlu0 %v8843_v58, %s9637_s17  ;;  %8862 = vpow2.f32 %v8013_v19  ;;  %v8857_v1 = vpop.eup %8856  ;;  %v2662_v13 = vadd.f32 1.0, %v8855_v39  ;;  %v2698_v19 = vrot.slane %v10869_v20, 7 }
0x12ea   : > { %2742 = vrot.lane.b32.xlu1 %v8845_v59, %s9637_s17  ;;  %8864 = vrcp.f32 %v2659_v63  ;;  %v2663_v44 = vadd.f32 1.0, %v8857_v1 }
0x12eb   : > { %8866 = vrcp.f32 %v2660_v5  ;;  %v2700_v5 = vrot.slane %v10880_v51, 7 }
0x12ec   : > { %8868 = vrcp.f32 %v2661_v45 }
0x12ed   : > { %8870 = vrcp.f32 %v2662_v13 }
0x12ee   : > { %8872 = vrcp.f32 %v2663_v44 }
0x12f1   : > { %v10980_v57 = vpop.eup %8858 }
0x12f2   : > { %v8861_v56 = vpop.eup %8860  ;;  %v2714_v49 = vmul.f32 %v10980_v57, %v2698_v19 }
0x12f3   : > { %v8863_v34 = vpop.eup %8862  ;;  %v2665_v27 = vadd.f32 1.0, %v8861_v56  ;;  %v2702_v56 = vrot.slane %v10891_v38, 7  ;;  %v2705_v38 = vrot.slane %v10905_v61, 7 }
0x12f4   : > { %v2664_v31 = vadd.f32 1.0, %v8863_v34  ;;  %v10984_v14 = vpop.eup %8864 }
0x12f5   : > { %8874 = vrcp.f32 %v2665_v27  ;;  %v10986_v25 = vpop.eup %8866  ;;  %v2715_v39 = vmul.f32 %v10984_v14, %v2699_v4  ;;  %v2703_v27 = vrot.slane %v10900_v35, 7  ;;  %v2704_v35 = vrot.slane %v10898_v12, 7 }
0x12f6   : > { %8876 = vrcp.f32 %v2664_v31  ;;  %v10991_v8 = vpop.eup %8868  ;;  %v2716_v45 = vmul.f32 %v10986_v25, %v2700_v5 }
0x12f7   : > { %v10994_v22 = vpop.eup %8870 }
0x12f8   : > { %v10999_v9 = vpop.eup %8872  ;;  %v2718_v34 = vmul.f32 %v10994_v22, %v2702_v56 }
0x12ff   : > { %v11002_v24 = vpop.eup %8874 }
0x1300   : > { %v11007_v55 = vpop.eup %8876 }
0x1301   : > { %v2720_v61 = vmul.f32 %v11007_v55, %v2704_v35 }
0x134f   : > { %v2731_v52 = vpop.permute.xlu0 %2730 }
0x1350   : > { %v2754_v17 = vmul.f32 %v10980_v57, %v2731_v52  ;;  %v2733_v32 = vpop.permute.xlu1 %2732  ;;  %v2701_v52 = vrot.slane %v10887_v53, 7 }
0x1351   : > { %v2755_v11 = vmul.f32 %v10984_v14, %v2733_v32 }
0x1352   : > { %2770 = vrot.lane.b32.xlu0 %v2754_v17, %s9637_s17  ;;  %v2717_v6 = vmul.f32 %v10991_v8, %v2701_v52 }
0x1353   : > { %v2735_v7 = vpop.permute.xlu0 %2734  ;;  %2772 = vrot.lane.b32.xlu1 %v2755_v11, %s9637_s17  ;;  %v2719_v11 = vmul.f32 %v10999_v9, %v2703_v27 }
0x1354   : > { %v2756_v3 = vmul.f32 %v10986_v25, %v2735_v7  ;;  %v2737_v47 = vpop.permute.xlu1 %2736 }
0x1355   : > { %v2757_v16 = vmul.f32 %v10991_v8, %v2737_v47 }
0x1356   : > { %2774 = vrot.lane.b32.xlu0 %v2756_v3, %s9637_s17  ;;  %v2721_v3 = vmul.f32 %v11002_v24, %v2705_v38 }
0x1357   : > { %v2739_v58 = vpop.permute.xlu0 %2738  ;;  %2776 = vrot.lane.b32.xlu1 %v2757_v16, %s9637_s17 }
0x1358   : > { %v2758_v59 = vmul.f32 %v10994_v22, %v2739_v58  ;;  %v2741_v28 = vpop.permute.xlu1 %2740 }
0x1359   : > { %v2759_v62 = vmul.f32 %v10999_v9, %v2741_v28 }
0x135a   : > { %2778 = vrot.lane.b32.xlu0 %v2758_v59, %s9637_s17 }
0x135b   : > { %v2745_v42 = vpop.permute.xlu0 %2744  ;;  %2780 = vrot.lane.b32.xlu1 %v2759_v62, %s9637_s17 }
0x135c   : > { %v2761_v48 = vmul.f32 %v11002_v24, %v2745_v42  ;;  %v2743_v43 = vpop.permute.xlu1 %2742 }
0x135d   : > { %v2760_v18 = vmul.f32 %v11007_v55, %v2743_v43 }
0x135e   : > { %2784 = vrot.lane.b32.xlu0 %v2761_v48, %s9637_s17 }
0x135f   : > { %2782 = vrot.lane.b32.xlu1 %v2760_v18, %s9637_s17 }
0x13c4   : > { %v2771_v15 = vpop.permute.xlu0 %2770 }
0x13c5   : > { %v11014_v63 = vadd.f32 %v2771_v15, %v2714_v49  ;;  %v2773_v1 = vpop.permute.xlu1 %2772 }
0x13c6   : > { %v11022_v13 = vadd.f32 %v2773_v1, %v2715_v39 }
0x13c7   : > { %8878 = vtanh.f32 %v11014_v63 }
0x13c8   : > { %v2775_v20 = vpop.permute.xlu0 %2774  ;;  %8880 = vtanh.f32 %v11022_v13 }
0x13c9   : > { %v11025_v17 = vadd.f32 %v2775_v20, %v2716_v45  ;;  %v2777_v51 = vpop.permute.xlu1 %2776 }
0x13ca   : > { %v11032_v53 = vadd.f32 %v2777_v51, %v2717_v6 }
0x13cb   : > { %8882 = vtanh.f32 %v11025_v17 }
0x13cc   : > { %v2779_v31 = vpop.permute.xlu0 %2778  ;;  %8884 = vtanh.f32 %v11032_v53 }
0x13cd   : > { %v11036_v32 = vadd.f32 %v2779_v31, %v2718_v34  ;;  %v2781_v7 = vpop.permute.xlu1 %2780 }
0x13ce   : > { %v11043_v47 = vadd.f32 %v2781_v7, %v2719_v11 }
0x13cf   : > { %8886 = vtanh.f32 %v11036_v32 }
0x13d0   : > { %v2785_v16 = vpop.permute.xlu0 %2784  ;;  %8888 = vtanh.f32 %v11043_v47 }
0x13d1   : > { %v8879_v44 = vpop.eup %8878  ;;  %v11045_v58 = vadd.f32 %v2785_v16, %v2721_v3  ;;  %v2783_v59 = vpop.permute.xlu1 %2782 }
0x13d2   : > { %2818 = vrot.lane.b32.xlu0 %v8879_v44, %s9637_s17  ;;  %v8881_v28 = vpop.eup %8880  ;;  %v11050_v62 = vadd.f32 %v2783_v59, %v2720_v61 }
0x13d3   : > { %8890 = vtanh.f32 %v11045_v58  ;;  %2820 = vrot.lane.b32.xlu1 %v8881_v28, %s9637_s17 }
0x13d4   : > { %8892 = vtanh.f32 %v11050_v62 }
0x13d5   : > { %v8883_v42 = vpop.eup %8882 }
0x13d6   : > { %2822 = vrot.lane.b32.xlu0 %v8883_v42, %s9637_s17  ;;  %v8885_v12 = vpop.eup %8884 }
0x13d7   : > { %2824 = vrot.lane.b32.xlu1 %v8885_v12, %s9637_s17 }
0x13d9   : > { %v8887_v48 = vpop.eup %8886 }
0x13da   : > { %2826 = vrot.lane.b32.xlu0 %v8887_v48, %s9637_s17  ;;  %v8889_v43 = vpop.eup %8888 }
0x13db   : > { %2828 = vrot.lane.b32.xlu1 %v8889_v43, %s9637_s17 }
0x13dd   : > { %v8891_v18 = vpop.eup %8890 }
0x13de   : > { %2832 = vrot.lane.b32.xlu0 %v8891_v18, %s9637_s17  ;;  %v8893_v19 = vpop.eup %8892 }
0x13df   : > { %2830 = vrot.lane.b32.xlu1 %v8893_v19, %s9637_s17 }
0x1444   : > { %v2819_v49 = vpop.permute.xlu0 %2818 }
0x1445   : > { %v2842_v15 = vmul.f32 %v10980_v57, %v2819_v49  ;;  %v2821_v39 = vpop.permute.xlu1 %2820 }
0x1446   : > { %v2843_v1 = vmul.f32 %v10984_v14, %v2821_v39 }
0x1447   : > { %v11063_v4 = vsel %vm3219_vm15, %v10918_v29, %v2842_v15  ;;  %v2850_v5 = vpack.c.bf16 %v2842_v15, %v2842_v15 }
0x1448   : > { %v2823_v52 = vpop.permute.xlu0 %2822  ;;  %v2851_v56 = vpack.c.bf16 %v2843_v1, %v2843_v1  ;;  %v11069_v6 = vsel %vm3219_vm15, %v10924_v10, %v2843_v1 }
0x1449   : > { %v2866_v45 = vunpack.c.l.b16 %v2850_v5  ;;  %v2844_v20 = vmul.f32 %v10986_v25, %v2823_v52  ;;  %v2825_v44 = vpop.permute.xlu1 %2824 }
0x144a   : > { %v2867_v29 = vunpack.c.l.b16 %v2851_v56  ;;  %v2845_v27 = vmul.f32 %v10991_v8, %v2825_v44 }
0x144b   : > { %v2852_v51 = vpack.c.bf16 %v2844_v20, %v2844_v20  ;;  %v11073_v57 = vsel %vm3219_vm15, %v10928_v60, %v2844_v20  ;;  %v2874_v34 = vrot.slane %v2866_v45, 6 }
0x144c   : > { %v2827_v14 = vpop.permute.xlu0 %2826  ;;  %v2875_v25 = vrot.slane %v2867_v29, 5  ;;  %v2853_v11 = vpack.c.bf16 %v2845_v27, %v2845_v27  ;;  %v11079_v10 = vsel %vm3219_vm15, %v10934_v2, %v2845_v27 }
0x144d   : > { %v2868_v31 = vunpack.c.l.b16 %v2852_v51  ;;  %v2846_v38 = vmul.f32 %v10994_v22, %v2827_v14  ;;  %v2829_v3 = vpop.permute.xlu1 %2828 }
0x144e   : > { %v2876_v16 = vsel %vm924_vm2, %v2875_v25, %v2874_v34  ;;  %v2869_v8 = vunpack.c.l.b16 %v2853_v11  ;;  %v2847_v61 = vmul.f32 %v10999_v9, %v2829_v3 }
0x144f   : > { %v2877_v7 = vrot.slane %v2868_v31, 4  ;;  %v2854_v35 = vpack.c.bf16 %v2846_v38, %v2846_v38  ;;  %v11083_v60 = vsel %vm3219_vm15, %v10938_v37, %v2846_v38 }
0x1450   : > { %v2833_v59 = vpop.permute.xlu0 %2832  ;;  %v2879_v2 = vrot.slane %v2869_v8, 3  ;;  %v2855_v12 = vpack.c.bf16 %v2847_v61, %v2847_v61  ;;  %v11091_v48 = vsel %vm3219_vm15, %v10950_v23, %v2847_v61 }
0x1451   : > { %v2878_v22 = vsel %vm927_vm3, %v2877_v7, %v2876_v16  ;;  %v2870_v28 = vunpack.c.l.b16 %v2854_v35  ;;  %v2849_v42 = vmul.f32 %v11002_v24, %v2833_v59  ;;  %v2831_v37 = vpop.permute.xlu1 %2830 }
0x1452   : > { %v2871_v9 = vunpack.c.l.b16 %v2855_v12  ;;  %v2880_v49 = vsel %vm930_vm4, %v2879_v2, %v2878_v22  ;;  %v2848_v15 = vmul.f32 %v11007_v55, %v2831_v37 }
0x1453   : > { %v2881_v43 = vrot.slane %v2870_v28, 2  ;;  %v2857_v18 = vpack.c.bf16 %v2849_v42, %v2849_v42  ;;  %v11095_v19 = vsel %vm3219_vm15, %v10957_v21, %v2849_v42 }
0x1454   : > { %v2883_v39 = vrot.slane %v2871_v9, 1  ;;  %v2856_v1 = vpack.c.bf16 %v2848_v15, %v2848_v15  ;;  %v11102_v23 = vsel %vm3219_vm15, %v10946_v33, %v2848_v15 }
0x1455   : > { %v2882_v24 = vsel %vm933_vm5, %v2881_v43, %v2880_v49  ;;  %v2873_v5 = vunpack.c.l.b16 %v2857_v18 }
0x1456   : > { %v2872_v52 = vunpack.c.l.b16 %v2856_v1  ;;  %v2884_v20 = vsel %vm936_vm6, %v2883_v39, %v2882_v24 }
0x1457   : > { %v2886_v45 = vrot.slane %v2873_v5, 7 }
0x1458   : > { %v2885_v21 = vsel %vm939_vm7, %v2872_v52, %v2884_v20 }
0x1459   : > { %v2887_v56 = vsel %vm942_vm8, %v2886_v45, %v2885_v21 }
0x145a   : > { %v2888_v44 = vpack.c.b16 %v2887_v56, %v2887_v56 }
0x145c   : > { %2889 = vrot.lane.b32.xlu0 %v2888_v44, %s9638_s13 }
0x14ce   : > { %v2890_v55 = vpop.permute.xlu0 %2889 }
0x14cf   : > { %8207 = vmatmul.mubr.msk.bf16.vlgmr.msra.gmra.mrb[24].mxu1 %vm639_vm9, %v2890_v55 }
0x15a2   : > { %v2928_v51 = vpop.f32.mrb[24].mxu1 }
0x15a3   : > { %v2935_v29 = vrot.slane %v2928_v51, 1  ;;  %v8208_v34 = vpop.f32.mrb[25].mxu1  ;;  %v2936_v31 = vrot.slane %v2928_v51, 2  ;;  %v2937_v38 = vrot.slane %v2928_v51, 3  ;;  %v2938_v25 = vrot.slane %v2928_v51, 4 }
0x15a4   : > { %v2931_v27 = vpop.f32.mrb[26].mxu1  ;;  %v2939_v7 = vrot.slane %v2928_v51, 5  ;;  %v2940_v35 = vrot.slane %v2928_v51, 6  ;;  %v2941_v61 = vrot.slane %v2928_v51, 7 }
0x15a5   : > { %v2950_v33 = vadd.f32 %v2935_v29, %v10039_v26  ;;  %v8209_v14 = vpop.f32.mrb[27].mxu1  ;;  %v2951_v11 = vadd.f32 %v2936_v31, %v10050_v41  ;;  %v2952_v3 = vadd.f32 %v2937_v38, %v10055_v46  ;;  %v2953_v16 = vadd.f32 %v2938_v25, %v10041_v30 }
0x15a6   : > { %v2954_v59 = vadd.f32 %v2939_v7, %v10059_v50  ;;  %v2955_v26 = vadd.f32 %v2940_v35, %v10045_v36  ;;  %v2956_v22 = vadd.f32 %v2941_v61, %v10062_v54  ;;  %v2957_v41 = vadd.f32 %v2928_v51, %v10048_v40 }
0x15a7   : > { %8894 = vtanh.f32 %v2950_v33  ;;  %v8016_v42 = vmul.f32 -1.442695, %v2950_v33  ;;  %v8017_v2 = vmul.f32 -1.442695, %v2951_v11  ;;  %v8018_v12 = vmul.f32 -1.442695, %v2952_v3 }
0x15a8   : > { %8896 = vtanh.f32 %v2951_v11  ;;  %v8019_v43 = vmul.f32 -1.442695, %v2953_v16  ;;  %v8020_v18 = vmul.f32 -1.442695, %v2954_v59  ;;  %v8021_v9 = vmul.f32 -1.442695, %v2955_v26 }
0x15a9   : > { %8898 = vtanh.f32 %v2952_v3  ;;  %v8022_v15 = vmul.f32 -1.442695, %v2956_v22  ;;  %v8023_v24 = vmul.f32 -1.442695, %v2957_v41 }
0x15aa   : > { %8900 = vtanh.f32 %v2953_v16 }
0x15ab   : > { %8902 = vtanh.f32 %v2954_v59 }
0x15ac   : > { %8904 = vtanh.f32 %v2955_v26 }
0x15ad   : > { %8906 = vtanh.f32 %v2956_v22 }
0x15ae   : > { %8908 = vtanh.f32 %v2957_v41 }
0x15af   : > { %8910 = vpow2.f32 %v8016_v42 }
0x15b0   : > { %8912 = vpow2.f32 %v8017_v2  ;;  %v3022_v2 = vrot.slane %v11014_v63, 7  ;;  %v3026_v63 = vrot.slane %v11036_v32, 7 }
0x15b1   : > { %v8895_v8 = vpop.eup %8894  ;;  %8914 = vpow2.f32 %v8018_v12 }
0x15b2   : > { %3054 = vrot.lane.b32.xlu1 %v8895_v8, %s9637_s17  ;;  %v8897_v46 = vpop.eup %8896  ;;  %8916 = vpow2.f32 %v8019_v43 }
0x15b3   : > { %v8899_v30 = vpop.eup %8898  ;;  %3056 = vrot.lane.b32.xlu0 %v8897_v46, %s9637_s17  ;;  %8918 = vpow2.f32 %v8020_v18  ;;  %v3023_v18 = vrot.slane %v11022_v13, 7 }
0x15b4   : > { %v8901_v50 = vpop.eup %8900  ;;  %8920 = vpow2.f32 %v8021_v9  ;;  %v3024_v9 = vrot.slane %v11025_v17, 7  ;;  %v3027_v17 = vrot.slane %v11043_v47, 7 }
0x15b5   : > { %v8903_v28 = vpop.eup %8902 }
0x15b6   : > { %3058 = vrot.lane.b32.xlu1 %v8899_v30, %s9637_s17  ;;  %v8905_v36 = vpop.eup %8904 }
0x15b7   : > { %3060 = vrot.lane.b32.xlu0 %v8901_v50, %s9637_s17  ;;  %v8907_v54 = vpop.eup %8906 }
0x15b8   : > { %v8909_v40 = vpop.eup %8908 }
0x15b9   : > { %v8911_v37 = vpop.eup %8910 }
0x15ba   : > { %3062 = vrot.lane.b32.xlu1 %v8903_v28, %s9637_s17  ;;  %v2982_v49 = vadd.f32 1.0, %v8911_v37  ;;  %v8913_v5 = vpop.eup %8912 }
0x15bb   : > { %3064 = vrot.lane.b32.xlu0 %v8905_v36, %s9637_s17  ;;  %v8915_v39 = vpop.eup %8914  ;;  %v2983_v1 = vadd.f32 1.0, %v8913_v5  ;;  %v3025_v5 = vrot.slane %v11032_v53, 7  ;;  %v3028_v53 = vrot.slane %v11050_v62, 7 }
0x15bc   : > { %8922 = vrcp.f32 %v2982_v49  ;;  %v8917_v45 = vpop.eup %8916  ;;  %v2984_v52 = vadd.f32 1.0, %v8915_v39 }
0x15bd   : > { %8924 = vpow2.f32 %v8022_v15  ;;  %v8919_v20 = vpop.eup %8918  ;;  %v2985_v56 = vadd.f32 1.0, %v8917_v45 }
0x15be   : > { %3066 = vrot.lane.b32.xlu1 %v8907_v54, %s9637_s17  ;;  %8926 = vpow2.f32 %v8023_v24  ;;  %v8921_v21 = vpop.eup %8920  ;;  %v2986_v51 = vadd.f32 1.0, %v8919_v20 }
0x15bf   : > { %3068 = vrot.lane.b32.xlu0 %v8909_v40, %s9637_s17  ;;  %8928 = vrcp.f32 %v2983_v1  ;;  %v2987_v27 = vadd.f32 1.0, %v8921_v21 }
0x15c0   : > { %8930 = vrcp.f32 %v2984_v52 }
0x15c1   : > { %8932 = vrcp.f32 %v2985_v56 }
0x15c2   : > { %8934 = vrcp.f32 %v2986_v51 }
0x15c3   : > { %8936 = vrcp.f32 %v2987_v27  ;;  %v3029_v27 = vrot.slane %v11045_v58, 7 }
0x15c6   : > { %v11125_v44 = vpop.eup %8922 }
0x15c7   : > { %v8925_v29 = vpop.eup %8924  ;;  %v3038_v12 = vmul.f32 %v11125_v44, %v3022_v2 }
0x15c8   : > { %v8927_v33 = vpop.eup %8926  ;;  %v2988_v14 = vadd.f32 1.0, %v8925_v29 }
0x15c9   : > { %v2989_v31 = vadd.f32 1.0, %v8927_v33  ;;  %v11129_v38 = vpop.eup %8928 }
0x15ca   : > { %8938 = vrcp.f32 %v2988_v14  ;;  %v11131_v11 = vpop.eup %8930  ;;  %v3039_v49 = vmul.f32 %v11129_v38, %v3023_v18 }
0x15cb   : > { %8940 = vrcp.f32 %v2989_v31  ;;  %v11136_v16 = vpop.eup %8932  ;;  %v3040_v24 = vmul.f32 %v11131_v11, %v3024_v9 }
0x15cc   : > { %v11139_v61 = vpop.eup %8934  ;;  %v3041_v52 = vmul.f32 %v11136_v16, %v3025_v5 }
0x15cd   : > { %v11144_v41 = vpop.eup %8936  ;;  %v3042_v13 = vmul.f32 %v11139_v61, %v3026_v63 }
0x15ce   : > { %v3043_v32 = vmul.f32 %v11144_v41, %v3027_v17 }
0x15d4   : > { %v11147_v30 = vpop.eup %8938 }
0x15d5   : > { %v11152_v54 = vpop.eup %8940 }
0x15d6   : > { %v3045_v47 = vmul.f32 %v11152_v54, %v3029_v27  ;;  %v11268_v27 = vld [vmem:[#allocation10] ss:$0 sm:$0xff] }
0x1624   : > { %v3055_v55 = vpop.permute.xlu1 %3054 }
0x1625   : > { %v3078_v34 = vmul.f32 %v11125_v44, %v3055_v55  ;;  %v3057_v25 = vpop.permute.xlu0 %3056 }
0x1626   : > { %v3079_v7 = vmul.f32 %v11129_v38, %v3057_v25 }
0x1627   : > { %3094 = vrot.lane.b32.xlu1 %v3078_v34, %s9637_s17  ;;  %v3044_v34 = vmul.f32 %v11147_v30, %v3028_v53  ;;  %v9639_v53 = vmov 1966171168  }
0x1628   : > { %v3059_v3 = vpop.permute.xlu1 %3058  ;;  %3096 = vrot.lane.b32.xlu0 %v3079_v7, %s9637_s17 }
0x1629   : > { %v3080_v35 = vmul.f32 %v11131_v11, %v3059_v3  ;;  %v3061_v8 = vpop.permute.xlu0 %3060 }
0x162a   : > { %v3081_v59 = vmul.f32 %v11136_v16, %v3061_v8 }
0x162b   : > { %3098 = vrot.lane.b32.xlu1 %v3080_v35, %s9637_s17 }
0x162c   : > { %v3063_v26 = vpop.permute.xlu1 %3062  ;;  %3100 = vrot.lane.b32.xlu0 %v3081_v59, %s9637_s17 }
0x162d   : > { %v3082_v22 = vmul.f32 %v11139_v61, %v3063_v26  ;;  %v3065_v46 = vpop.permute.xlu0 %3064 }
0x162e   : > { %v3083_v50 = vmul.f32 %v11144_v41, %v3065_v46  ;;  %v8439_v46 = vld [vmem:[%s13175_s6] sm:$0xff]  }
0x162f   : > { %3102 = vrot.lane.b32.xlu1 %v3082_v22, %s9637_s17  ;;  %v8438_v22 = vld [vmem:[#allocation8] sm:$0xff]   ;;  %8222 = vmatprep.subr.bf16.mxu1 %v8439_v46 }
0x1630   : > { %v3067_v28 = vpop.permute.xlu1 %3066  ;;  %3104 = vrot.lane.b32.xlu0 %v3083_v50, %s9637_s17  ;;  %8210 = vmatprep.subr.bf16.mxu0 %v8438_v22  ;;  %v8440_v50 = vld [vmem:[#allocation8 + $0x8] sm:$0xff]  }
0x1631   : > { %v3084_v36 = vmul.f32 %v11147_v30, %v3067_v28  ;;  %v3069_v40 = vpop.permute.xlu0 %3068  ;;  %8211 = vmatpush3.bf16.msra.mxu0 %v8438_v22  ;;  %8223 = vmatpush3.bf16.msra.mxu1 %v8439_v46  ;;  %v8441_v28 = vld [vmem:[%s13175_s6 + $0x8] sm:$0xff]  }
0x1632   : > { %v3085_v42 = vmul.f32 %v11152_v54, %v3069_v40  ;;  %8212 = vmatprep.subr.bf16.mxu0 %v8440_v50  ;;  %8224 = vmatprep.subr.bf16.mxu1 %v8441_v28 }
0x1633   : > { %3106 = vrot.lane.b32.xlu1 %v3084_v36, %s9637_s17 }
0x1634   : > { %3108 = vrot.lane.b32.xlu0 %v3085_v42, %s9637_s17 }
0x1635   : > { %8213 = vmatpush3.bf16.msra.mxu0 %v8440_v50  ;;  %8225 = vmatpush3.bf16.msra.mxu1 %v8441_v28 }
0x1636   : > { %8234 = vmatprep.subr.bf16.mxu0 %v13189_v0  ;;  %8240 = vmatprep.subr.bf16.mxu1 %v13189_v0 }
0x1699   : > { %v3095_v43 = vpop.permute.xlu1 %3094 }
0x169a   : > { %v3118_v37 = vadd.f32 %v3095_v43, %v3038_v12  ;;  %v3097_v15 = vpop.permute.xlu0 %3096 }
0x169b   : > { %v3119_v39 = vadd.f32 %v3097_v15, %v3039_v49 }
0x169c   : > { %8942 = vtanh.f32 %v3118_v37 }
0x169d   : > { %v3099_v1 = vpop.permute.xlu1 %3098  ;;  %8944 = vtanh.f32 %v3119_v39 }
0x169e   : > { %v3120_v45 = vadd.f32 %v3099_v1, %v3040_v24  ;;  %v3101_v21 = vpop.permute.xlu0 %3100 }
0x169f   : > { %v3121_v56 = vadd.f32 %v3101_v21, %v3041_v52 }
0x16a0   : > { %8946 = vtanh.f32 %v3120_v45 }
0x16a1   : > { %v3103_v55 = vpop.permute.xlu1 %3102  ;;  %8948 = vtanh.f32 %v3121_v56 }
0x16a2   : > { %v3122_v51 = vadd.f32 %v3103_v55, %v3042_v13  ;;  %v3105_v29 = vpop.permute.xlu0 %3104 }
0x16a3   : > { %v3123_v33 = vadd.f32 %v3105_v29, %v3043_v32  ;;  %v13191_v32 = vlaneseq }
0x16a4   : > { %8950 = vtanh.f32 %v3122_v51  ;;  %v3461_v51 = vunpack.c.l.s4 %v9639_v53 }
0x16a5   : > { %v3107_v14 = vpop.permute.xlu1 %3106  ;;  %8952 = vtanh.f32 %v3123_v33 }
0x16a6   : > { %v8943_v20 = vpop.eup %8942  ;;  %v3124_v31 = vadd.f32 %v3107_v14, %v3044_v34  ;;  %v3109_v25 = vpop.permute.xlu0 %3108  ;;  %v3462_v29 = vunpack.c.0.s8 %v3461_v51  ;;  %v11266_v34 = vshrl.u32 %v13191_v32, 7 }
0x16a7   : > { %3142 = vrot.lane.b32.xlu1 %v8943_v20, %s9637_s17  ;;  %v8945_v7 = vpop.eup %8944  ;;  %v3125_v62 = vadd.f32 %v3109_v25, %v3045_v47 }
0x16a8   : > { %8954 = vtanh.f32 %v3124_v31  ;;  %3144 = vrot.lane.b32.xlu0 %v8945_v7, %s9637_s17  ;;  %13292 = vst [vmem:[#allocation28_spill] sm:$0xff] %v11266_v34  ;;  %v11271_v33 = vsub.s32 %v3462_v29, %v11266_v34  ;;  %v11288_v46 = vsub.s32 0, %v11266_v34  ;;  %v11544_v34 = vld [vmem:[#allocation11] ss:$0 sm:$0xff] }
0x16a9   : > { %8956 = vtanh.f32 %v3125_v62 }
0x16aa   : > { %v8947_v3 = vpop.eup %8946 }
0x16ab   : > { %3146 = vrot.lane.b32.xlu1 %v8947_v3, %s9637_s17  ;;  %v8949_v35 = vpop.eup %8948 }
0x16ac   : > { %3148 = vrot.lane.b32.xlu0 %v8949_v35, %s9637_s17 }
0x16ae   : > { %v8951_v8 = vpop.eup %8950 }
0x16af   : > { %3150 = vrot.lane.b32.xlu1 %v8951_v8, %s9637_s17  ;;  %v8953_v58 = vpop.eup %8952  ;;  %v11280_v8 = vld [vmem:[%s13293_s15] ss:$0 sm:$0xff]  ;;  %s8066_s15 = sshll.u32 %s9729_s27, 10  ;;  %s7781_s27 = scalar_lea.sflag [#allocation4], %s9976_s11 }
0x16b0   : > { %3152 = vrot.lane.b32.xlu0 %v8953_v58, %s9637_s17 }
0x16b2   : > { %v8955_v59 = vpop.eup %8954 }
0x16b3   : > { %3154 = vrot.lane.b32.xlu1 %v8955_v59, %s9637_s17  ;;  %v8957_v26 = vpop.eup %8956 }
0x16b4   : > { %3156 = vrot.lane.b32.xlu0 %v8957_v26, %s9637_s17  ;;  %s13434_s17 = sld [smem:[#allocation69_spill]] }
0x1719   : > { %v3143_v36 = vpop.permute.xlu1 %3142 }
0x171a   : > { %v3166_v40 = vmul.f32 %v11125_v44, %v3143_v36  ;;  %v3145_v42 = vpop.permute.xlu0 %3144 }
0x171b   : > { %v3167_v2 = vmul.f32 %v11129_v38, %v3145_v42 }
0x171c   : > { %v3229_v12 = vsel %vm3228_vm1, %v11063_v4, %v3166_v40 }
0x171d   : > { %v3147_v43 = vpop.permute.xlu1 %3146  ;;  %v3230_v18 = vsel %vm3228_vm1, %v11069_v6, %v3167_v2 }
0x171e   : > { %v3168_v37 = vmul.f32 %v11131_v11, %v3147_v43  ;;  %v3237_v9 = vpack.c.bf16 %v3230_v18, %v3229_v12  ;;  %v3149_v49 = vpop.permute.xlu0 %3148  ;;  %v6549_v45 = vpack.c.bf16 %v3230_v18, %v3230_v18 }
0x171f   : > { %v3169_v15 = vmul.f32 %v11136_v16, %v3149_v49 }
0x1720   : > { %v3231_v44 = vsel %vm3228_vm1, %v11073_v57, %v3168_v37  ;;  %3271 = vrot.lane.b32.xlu1 %v3237_v9, %s9638_s13 }
0x1721   : > { %v3151_v24 = vpop.permute.xlu1 %3150  ;;  %v3232_v4 = vsel %vm3228_vm1, %v11079_v10, %v3169_v15 }
0x1722   : > { %v3170_v38 = vmul.f32 %v11139_v61, %v3151_v24  ;;  %v3238_v5 = vpack.c.bf16 %v3232_v4, %v3231_v44  ;;  %v3153_v11 = vpop.permute.xlu0 %3152 }
0x1723   : > { %v3171_v39 = vmul.f32 %v11144_v41, %v3153_v11 }
0x1724   : > { %v11206_v6 = vsel %vm3228_vm1, %v11083_v60, %v3170_v38  ;;  %3273 = vrot.lane.b32.xlu0 %v3238_v5, %s9638_s13 }
0x1725   : > { %13284 = vst [vmem:[#allocation20_spill] sm:$0xff] %v11206_v6  ;;  %v3155_v16 = vpop.permute.xlu1 %3154  ;;  %v11212_v1 = vsel %vm3228_vm1, %v11091_v48, %v3171_v39 }
0x1726   : > { %v3172_v57 = vmul.f32 %v11147_v30, %v3155_v16  ;;  %13285 = vst [vmem:[#allocation21_spill] sm:$0xff] %v11212_v1  ;;  %v3239_v10 = vpack.c.bf16 %v11212_v1, %v11206_v6  ;;  %v3157_v61 = vpop.permute.xlu0 %3156  ;;  %v6548_v30 = vpack.c.bf16 %v3229_v12, %v3229_v12 }
0x1727   : > { %v3173_v63 = vmul.f32 %v11152_v54, %v3157_v61  ;;  %v6550_v54 = vpack.c.bf16 %v3231_v44, %v3231_v44 }
0x1728   : > { %v11219_v41 = vsel %vm3228_vm1, %v11102_v23, %v3172_v57  ;;  %3275 = vrot.lane.b32.xlu1 %v3239_v10, %s9638_s13  ;;  %v6551_v23 = vpack.c.bf16 %v3232_v4, %v3232_v4 }
0x1729   : > { %13286 = vst [vmem:[#allocation22_spill] sm:$0xff] %v11219_v41  ;;  %v11224_v60 = vsel %vm3228_vm1, %v11095_v19, %v3173_v63 }
0x172a   : > { %13287 = vst [vmem:[#allocation23_spill] sm:$0xff] %v11224_v60  ;;  %v3240_v48 = vpack.c.bf16 %v11224_v60, %v11219_v41 }
0x172c   : > { %6637 = vrot.lane.b32.xlu1 %v6548_v30, %s9638_s13  ;;  %3277 = vrot.lane.b32.xlu0 %v3240_v48, %s9638_s13 }
0x1730   : > { %6895 = vrot.lane.b32.xlu1 %v6550_v54, %s9638_s13  ;;  %6766 = vrot.lane.b32.xlu0 %v6549_v45, %s9638_s13 }
0x1734   : > { %7024 = vrot.lane.b32.xlu0 %v6551_v23, %s9638_s13 }
0x1792   : > { %v11233_v52 = vpop.permute.xlu1 %3271 }
0x1793   : > { %13288 = vst [vmem:[#allocation24_spill] sm:$0xff] %v11233_v52  ;;  %8214 = vmatprep.mubr.msk.bf16.mxu0 %vm639_vm9, %v11233_v52  ;;  %8226 = vmatprep.mubr.msk.bf16.mxu1 %vm639_vm9, %v11233_v52 }
0x1796   : > { %v11239_v19 = vpop.permute.xlu0 %3273 }
0x1797   : > { %13289 = vst [vmem:[#allocation25_spill] sm:$0xff] %v11239_v19  ;;  %8215 = vmatmul.mubr.msk.bf16.vlgmr.msra.gmra.mrb[12].mxu0 %vm639_vm9, %v11239_v19  ;;  %8227 = vmatmul.mubr.msk.bf16.vlgmr.msra.gmra.mrb[28].mxu1 %vm639_vm9, %v11239_v19 }
0x179a   : > { %v11245_v20 = vpop.permute.xlu1 %3275 }
0x179b   : > { %13290 = vst [vmem:[#allocation26_spill] sm:$0xff] %v11245_v20  ;;  %8218 = vmatprep.mubr.msk.bf16.mxu0 %vm639_vm9, %v11245_v20  ;;  %8230 = vmatprep.mubr.msk.bf16.mxu1 %vm639_vm9, %v11245_v20 }
0x179e   : > { %v11251_v21 = vpop.permute.xlu0 %3277  ;;  %v6638_v13 = vpop.permute.xlu1 %6637 }
0x179f   : > { %13291 = vst [vmem:[#allocation27_spill] sm:$0xff] %v11251_v21  ;;  %v6643_v17 = vsel %vm3201_vm13, %v6638_v13, 0  ;;  %8219 = vmatmul.mubr.msk.bf16.gmra.mrb[16].mxu0 %vm639_vm9, %v11251_v21  ;;  %8231 = vmatmul.mubr.msk.bf16.gmra.mrb[32].mxu1 %vm639_vm9, %v11251_v21 }
0x17a0   : > { %8235 = vmatpush3.bf16.msra.mxu0 %v6643_v17  ;;  %8236 = vmatprep.mubr.msk.bf16.mxu0 %vm9635_vm0, %v13189_v0 }
0x17a1   : > { %8246 = vmatprep.subr.bf16.mxu0 %v13189_v0  ;;  %8242 = vmatprep.mubr.msk.bf16.mxu1 %vm9635_vm0, %v13189_v0 }
0x17a2   : > { %v6767_v56 = vpop.permute.xlu0 %6766 }
0x17a3   : > { %v6772_v55 = vsel %vm3201_vm13, %v6767_v56, 0 }
0x17a4   : > { %8241 = vmatpush3.bf16.msra.mxu1 %v6772_v55 }
0x17a5   : > { %8252 = vmatprep.subr.bf16.mxu1 %v13189_v0 }
0x186a   : > { %v8216_v14 = vpop.f32.mrb[12].mxu0  ;;  %v8228_v31 = vpop.f32.mrb[28].mxu1 }
0x186b   : > { %v3429_v47 = vadd.f32 %v8228_v31, %v11268_v27  ;;  %v3337_v25 = vpop.f32.mrb[13].mxu0  ;;  %v3420_v7 = vpop.f32.mrb[29].mxu1  ;;  %v3346_v2 = vadd.f32 %v8216_v14, %v11280_v8 }
0x186c   : > { %v3421_v62 = vadd.f32 %v11268_v27, %v3420_v7  ;;  %v11275_v3 = vpop.f32.mrb[14].mxu0  ;;  %v8229_v35 = vpop.f32.mrb[30].mxu1 }
0x186d   : > { %v3557_v58 = vcombine.high %v3429_v47, %v3429_v47  ;;  %v3564_v59 = vrot.slane %v3429_v47, %v11271_v33  ;;  %v11283_v26 = vpop.f32.mrb[15].mxu0  ;;  %v11285_v22 = vpop.f32.mrb[31].mxu1  ;;  %v3432_v7 = vadd.f32 %v8229_v35, %v11268_v27 }
0x186e   : > { %v3459_v50 = vcombine.high %v3421_v62, %v3421_v62  ;;  %v3466_v28 = vrot.slane %v3421_v62, %v11271_v33 }
0x186f   : > { %v3571_v36 = vrot.slane %v3557_v58, %v11271_v33  ;;  %v3572_v40 = vcombine.high %v3564_v59, %v3564_v59  ;;  %v3580_v42 = vrot.slane %v3564_v59, %v11271_v33 }
0x1870   : > { %v3473_v12 = vrot.slane %v3459_v50, %v11271_v33  ;;  %v3474_v43 = vcombine.high %v3466_v28, %v3466_v28  ;;  %v3482_v37 = vrot.slane %v3466_v28, %v11271_v33 }
0x1871   : > { %v3573_v18 = vcombine.high %v3571_v36, %v3571_v36  ;;  %v3587_v9 = vrot.slane %v3571_v36, %v11271_v33  ;;  %v3594_v49 = vrot.slane %v3572_v40, %v11271_v33  ;;  %v3602_v15 = vcombine.high %v3580_v42, %v3580_v42 }
0x1872   : > { %v3918_v44 = vrot.slane %v3580_v42, %v11288_v46  ;;  %v3475_v24 = vcombine.high %v3473_v12, %v3473_v12  ;;  %v3489_v38 = vrot.slane %v3473_v12, %v11271_v33  ;;  %v3496_v4 = vrot.slane %v3474_v43, %v11271_v33  ;;  %v8220_v5 = vpop.f32.mrb[16].mxu0  ;;  %v11301_v11 = vpop.f32.mrb[32].mxu1 }
0x1873   : > { %v3601_v39 = vrot.slane %v3573_v18, %v11271_v33  ;;  %v3603_v16 = vcombine.high %v3587_v9, %v3587_v9  ;;  %v3604_v57 = vcombine.high %v3594_v49, %v3594_v49  ;;  %v3922_v10 = vrot.slane %v3594_v49, %v11288_v46  ;;  %v11305_v61 = vpop.f32.mrb[17].mxu0  ;;  %v11307_v63 = vpop.f32.mrb[33].mxu1 }
0x1874   : > { %v3926_v30 = vrot.slane %v3602_v15, %v11288_v46  ;;  %v3934_v48 = vrot.slane %v3587_v9, %v11288_v46  ;;  %v4187_v45 = vadd.f32 %v3918_v44, %v3346_v2  ;;  %v3503_v54 = vrot.slane %v3475_v24, %v11271_v33  ;;  %v11312_v23 = vpop.f32.mrb[18].mxu0  ;;  %v11314_v13 = vpop.f32.mrb[34].mxu1 }
0x1875   : > { %v3605_v17 = vcombine.high %v3601_v39, %v3601_v39  ;;  %v3930_v56 = vrot.slane %v3604_v57, %v11288_v46  ;;  %v3938_v55 = vrot.slane %v3601_v39, %v11288_v46  ;;  %v3942_v53 = vrot.slane %v3603_v16, %v11288_v46  ;;  %v11319_v51 = vpop.f32.mrb[19].mxu0  ;;  %v11321_v29 = vpop.f32.mrb[35].mxu1 }
0x1876   : > { %v4188_v14 = vadd.f32 %v3922_v10, %v3346_v2  ;;  %v4189_v31 = vadd.f32 %v3926_v30, %v3346_v2  ;;  %v4191_v47 = vadd.f32 %v3934_v48, %v3346_v2  ;;  %v3504_v28 = vcombine.high %v3482_v37, %v3482_v37 }
0x1877   : > { %v3946_v62 = vrot.slane %v3605_v17, %v11288_v46  ;;  %v4190_v58 = vadd.f32 %v3930_v56, %v3346_v2  ;;  %v11325_v59 = vadd.f32 %v3938_v55, %v3346_v2  ;;  %v11327_v50 = vadd.f32 %v3942_v53, %v3346_v2 }
0x1878   : > { %v3505_v36 = vcombine.high %v3489_v38, %v3489_v38  ;;  %v3506_v40 = vcombine.high %v3496_v4, %v3496_v4  ;;  %v3338_v12 = vadd.f32 %v11280_v8, %v3337_v25  ;;  %v3507_v43 = vcombine.high %v3503_v54, %v3503_v54 }
0x1879   : > { %v11329_v42 = vadd.f32 %v3946_v62, %v3346_v2  ;;  %v3854_v18 = vrot.slane %v3482_v37, %v11288_v46  ;;  %v3858_v9 = vrot.slane %v3496_v4, %v11288_v46  ;;  %v3862_v35 = vrot.slane %v3504_v28, %v11288_v46 }
0x187a   : > { %v3866_v49 = vrot.slane %v3506_v40, %v11288_v46  ;;  %v3606_v15 = vcombine.high %v3432_v7, %v3432_v7  ;;  %v3870_v44 = vrot.slane %v3489_v38, %v11288_v46  ;;  %v3874_v24 = vrot.slane %v3503_v54, %v11288_v46 }
0x187b   : > { %v3878_v39 = vrot.slane %v3505_v36, %v11288_v46  ;;  %v3613_v2 = vrot.slane %v3432_v7, %v11271_v33  ;;  %v3882_v25 = vrot.slane %v3507_v43, %v11288_v46  ;;  %v4171_v16 = vadd.f32 %v3854_v18, %v3338_v12 }
0x187c   : > { %v4172_v57 = vadd.f32 %v3858_v9, %v3338_v12  ;;  %v3424_v37 = vadd.f32 %v11268_v27, %v11285_v22  ;;  %v4173_v4 = vadd.f32 %v3862_v35, %v3338_v12  ;;  %v11343_v10 = vadd.f32 %v3866_v49, %v3338_v12 }
0x187d   : > { %v4175_v30 = vadd.f32 %v3870_v44, %v3338_v12  ;;  %8958 = vtanh.f32 %v4187_v45  ;;  %v11345_v48 = vadd.f32 %v3874_v24, %v3338_v12  ;;  %v11347_v38 = vadd.f32 %v3878_v39, %v3338_v12 }
0x187e   : > { %v11349_v54 = vadd.f32 %v3882_v25, %v3338_v12  ;;  %8960 = vtanh.f32 %v4188_v14  ;;  %v3620_v17 = vrot.slane %v3606_v15, %v11271_v33  ;;  %v3621_v56 = vcombine.high %v3613_v2, %v3613_v2 }
0x187f   : > { %v3629_v55 = vrot.slane %v3613_v2, %v11271_v33  ;;  %8962 = vtanh.f32 %v4189_v31  ;;  %v3349_v22 = vadd.f32 %v11275_v3, %v11280_v8  ;;  %v3508_v53 = vcombine.high %v3424_v37, %v3424_v37 }
0x1880   : > { %13294 = vst [vmem:[#allocation29_spill] sm:$0xff] %v11349_v54  ;;  %v11356_v7 = vadd.f32 %v8220_v5, %v11280_v8  ;;  %8964 = vtanh.f32 %v4190_v58  ;;  %v3622_v45 = vcombine.high %v3620_v17, %v3620_v17  ;;  %v3636_v62 = vrot.slane %v3620_v17, %v11271_v33 }
0x1881   : > { %v3643_v28 = vrot.slane %v3621_v56, %v11271_v33  ;;  %8966 = vtanh.f32 %v4191_v47  ;;  %v3651_v14 = vcombine.high %v3629_v55, %v3629_v55  ;;  %v3950_v36 = vrot.slane %v3629_v55, %v11288_v46 }
0x1882   : > { %v3341_v31 = vadd.f32 %v11280_v8, %v11283_v26  ;;  %v3650_v40 = vrot.slane %v3622_v45, %v11271_v33  ;;  %v3652_v3 = vcombine.high %v3636_v62, %v3636_v62  ;;  %v3515_v5 = vrot.slane %v3424_v37, %v11271_v33 }
0x1883   : > { %v3653_v12 = vcombine.high %v3643_v28, %v3643_v28  ;;  %v3954_v58 = vrot.slane %v3643_v28, %v11288_v46  ;;  %v3958_v43 = vrot.slane %v3651_v14, %v11288_v46  ;;  %v3966_v18 = vrot.slane %v3636_v62, %v11288_v46 }
0x1884   : > { %v3522_v47 = vrot.slane %v3508_v53, %v11271_v33  ;;  %v3654_v9 = vcombine.high %v3650_v40, %v3650_v40  ;;  %v3970_v49 = vrot.slane %v3650_v40, %v11288_v46  ;;  %v3974_v26 = vrot.slane %v3652_v3, %v11288_v46 }
0x1885   : > { %v3962_v35 = vrot.slane %v3653_v12, %v11288_v46  ;;  %v4195_v15 = vadd.f32 %v3950_v36, %v3349_v22  ;;  %v4196_v44 = vadd.f32 %v3954_v58, %v3349_v22  ;;  %v4197_v24 = vadd.f32 %v3958_v43, %v3349_v22 }
0x1886   : > { %v4199_v39 = vadd.f32 %v3966_v18, %v3349_v22  ;;  %v3978_v2 = vrot.slane %v3654_v9, %v11288_v46  ;;  %v11373_v37 = vadd.f32 %v3970_v49, %v3349_v22  ;;  %v11375_v17 = vadd.f32 %v3974_v26, %v3349_v22 }
0x1887   : > { %v4198_v25 = vadd.f32 %v3962_v35, %v3349_v22  ;;  %v11377_v56 = vpop.eup %8958  ;;  %8968 = vtanh.f32 %v11325_v59  ;;  %v3523_v55 = vcombine.high %v3515_v5, %v3515_v5  ;;  %v3524_v53 = vcombine.high %v3522_v47, %v3522_v47 }
0x1888   : > { %v3531_v45 = vrot.slane %v3515_v5, %v11271_v33  ;;  %v11381_v62 = vpop.eup %8960  ;;  %8970 = vtanh.f32 %v4171_v16  ;;  %v11383_v28 = vadd.f32 %v3978_v2, %v3349_v22  ;;  %v3538_v14 = vrot.slane %v3522_v47, %v11271_v33 }
0x1889   : > { %v3445_v36 = vadd.f32 %v11301_v11, %v11268_v27  ;;  %v11388_v40 = vpop.eup %8962  ;;  %8972 = vtanh.f32 %v4172_v57  ;;  %v3545_v3 = vrot.slane %v3523_v55, %v11271_v33  ;;  %v3552_v59 = vrot.slane %v3524_v53, %v11271_v33 }
0x188a   : > { %13295 = vst [vmem:[#allocation30_spill] sm:$0xff] %v11383_v28  ;;  %v3553_v12 = vcombine.high %v3531_v45, %v3531_v45  ;;  %v11392_v58 = vpop.eup %8964  ;;  %8974 = vtanh.f32 %v4173_v4  ;;  %v3554_v5 = vcombine.high %v3538_v14, %v3538_v14  ;;  %v3886_v16 = vrot.slane %v3531_v45, %v11288_v46 }
0x188b   : > { %v3902_v22 = vrot.slane %v3538_v14, %v11288_v46  ;;  %v11396_v43 = vpop.eup %8966  ;;  %8976 = vtanh.f32 %v4175_v30  ;;  %v3555_v11 = vcombine.high %v3545_v3, %v3545_v3  ;;  %v3556_v18 = vcombine.high %v3552_v59, %v3552_v59 }
0x188c   : > { %v3890_v57 = vrot.slane %v3545_v3, %v11288_v46  ;;  %8978 = vtanh.f32 %v4195_v15  ;;  %v3894_v47 = vrot.slane %v3553_v12, %v11288_v46  ;;  %v3906_v9 = vrot.slane %v3552_v59, %v11288_v46 }
0x188d   : > { %v3910_v35 = vrot.slane %v3554_v5, %v11288_v46  ;;  %8980 = vtanh.f32 %v4196_v44  ;;  %v3898_v4 = vrot.slane %v3555_v11, %v11288_v46  ;;  %v3914_v49 = vrot.slane %v3556_v18, %v11288_v46 }
0x188e   : > { %v4179_v26 = vadd.f32 %v3886_v16, %v3341_v31  ;;  %v4180_v2 = vadd.f32 %v3890_v57, %v3341_v31  ;;  %v4181_v55 = vadd.f32 %v3894_v47, %v3341_v31  ;;  %v11404_v30 = vadd.f32 %v3902_v22, %v3341_v31 }
0x188f   : > { %v11406_v53 = vadd.f32 %v3906_v9, %v3341_v31  ;;  %8982 = vtanh.f32 %v4197_v24  ;;  %v11408_v15 = vadd.f32 %v3898_v4, %v3341_v31  ;;  %v11410_v45 = vadd.f32 %v3910_v35, %v3341_v31 }
0x1890   : > { %v11412_v14 = vadd.f32 %v3914_v49, %v3341_v31  ;;  %8984 = vtanh.f32 %v4198_v25  ;;  %v3753_v44 = vcombine.high %v3445_v36, %v3445_v36  ;;  %v3760_v3 = vrot.slane %v3445_v36, %v11271_v33 }
0x1891   : > { %v11417_v59 = vadd.f32 %v11280_v8, %v11305_v61  ;;  %v11419_v12 = vpop.eup %8968  ;;  %8986 = vtanh.f32 %v4199_v39  ;;  %v3437_v24 = vadd.f32 %v11268_v27, %v11307_v63  ;;  %v11425_v5 = vadd.f32 %v11312_v23, %v11280_v8 }
0x1892   : > { %13296 = vst [vmem:[#allocation31_spill] sm:$0xff] %v11412_v14  ;;  %v11429_v31 = vadd.f32 %v11314_v13, %v11268_v27  ;;  %v11431_v25 = vpop.eup %8970  ;;  %8988 = vtanh.f32 %v4179_v26  ;;  %v3767_v61 = vrot.slane %v3753_v44, %v11271_v33  ;;  %v3768_v36 = vcombine.high %v3760_v3, %v3760_v3 }
0x1893   : > { %v3776_v16 = vrot.slane %v3760_v3, %v11271_v33  ;;  %v11435_v39 = vpop.eup %8972  ;;  %8990 = vtanh.f32 %v4180_v2  ;;  %v3655_v63 = vcombine.high %v3437_v24, %v3437_v24  ;;  %v3662_v22 = vrot.slane %v3437_v24, %v11271_v33 }
0x1894   : > { %v11438_v23 = vpop.eup %8974  ;;  %8992 = vtanh.f32 %v4181_v55  ;;  %v3769_v11 = vcombine.high %v3767_v61, %v3767_v61  ;;  %v3783_v13 = vrot.slane %v3767_v61, %v11271_v33  ;;  %v3790_v18 = vrot.slane %v3768_v36, %v11271_v33 }
0x1895   : > { %v11442_v57 = vpop.eup %8976  ;;  %v3798_v47 = vcombine.high %v3776_v16, %v3776_v16  ;;  %v4046_v9 = vrot.slane %v3776_v16, %v11288_v46  ;;  %v3669_v35 = vrot.slane %v3655_v63, %v11271_v33  ;;  %v3670_v16 = vcombine.high %v3662_v22, %v3662_v22 }
0x1896   : > { %v11448_v49 = vpop.eup %8978  ;;  %v3797_v26 = vrot.slane %v3769_v11, %v11271_v33  ;;  %v3799_v2 = vcombine.high %v3783_v13, %v3783_v13  ;;  %v3800_v55 = vcombine.high %v3790_v18, %v3790_v18  ;;  %v4050_v44 = vrot.slane %v3790_v18, %v11288_v46 }
0x1897   : > { %v11452_v3 = vpop.eup %8980  ;;  %v4054_v24 = vrot.slane %v3798_v47, %v11288_v46  ;;  %v4062_v61 = vrot.slane %v3783_v13, %v11288_v46  ;;  %v4219_v36 = vadd.f32 %v4046_v9, %v11356_v7  ;;  %v3671_v19 = vcombine.high %v3669_v35, %v3669_v35 }
0x1898   : > { %v3801_v63 = vcombine.high %v3797_v26, %v3797_v26  ;;  %v4058_v0 = vrot.slane %v3800_v55, %v11288_v46  ;;  %v4066_v32 = vrot.slane %v3797_v26, %v11288_v46  ;;  %v4070_v11 = vrot.slane %v3799_v2, %v11288_v46 }
0x1899   : > { %v11460_v4 = vpop.eup %8982  ;;  %v4220_v18 = vadd.f32 %v4050_v44, %v11356_v7  ;;  %v4221_v21 = vadd.f32 %v4054_v24, %v11356_v7  ;;  %v4223_v47 = vadd.f32 %v4062_v61, %v11356_v7  ;;  %8994 = vtanh.f32 %v4219_v36 }
0x189a   : > { %v11465_v13 = vpop.eup %8984  ;;  %v4074_v9 = vrot.slane %v3801_v63, %v11288_v46  ;;  %v4222_v20 = vadd.f32 %v4058_v0, %v11356_v7  ;;  %v4224_v55 = vadd.f32 %v4066_v32, %v11356_v7  ;;  %v4225_v26 = vadd.f32 %v4070_v11, %v11356_v7 }
0x189b   : > { %v11471_v2 = vpop.eup %8986  ;;  %8996 = vtanh.f32 %v4220_v18  ;;  %v3678_v44 = vrot.slane %v3662_v22, %v11271_v33  ;;  %v3685_v24 = vrot.slane %v3669_v35, %v11271_v33  ;;  %v3692_v0 = vrot.slane %v3670_v16, %v11271_v33 }
0x189c   : > { %v11475_v61 = vpop.eup %8988  ;;  %v11478_v36 = vadd.f32 %v4074_v9, %v11356_v7  ;;  %8998 = vtanh.f32 %v4221_v21  ;;  %v3809_v32 = vrot.slane %v11429_v31, %v11271_v33  ;;  %v3699_v11 = vrot.slane %v3671_v19, %v11271_v33 }
0x189d   : > { %v11483_v63 = vpop.eup %8990  ;;  %9000 = vtanh.f32 %v4222_v20  ;;  %v3700_v18 = vcombine.high %v3678_v44, %v3678_v44  ;;  %v3701_v22 = vcombine.high %v3685_v24, %v3685_v24  ;;  %v3702_v35 = vcombine.high %v3692_v0, %v3692_v0 }
0x189e   : > { %v11486_v52 = vpop.eup %8992  ;;  %9002 = vtanh.f32 %v4223_v47  ;;  %v3982_v7 = vrot.slane %v3678_v44, %v11288_v46  ;;  %v3986_v21 = vrot.slane %v3692_v0, %v11288_v46  ;;  %v3703_v16 = vcombine.high %v3699_v11, %v3699_v11 }
0x189f   : > { %9004 = vtanh.f32 %v4224_v55  ;;  %v3990_v9 = vrot.slane %v3700_v18, %v11288_v46  ;;  %v3998_v60 = vrot.slane %v3685_v24, %v11288_v46  ;;  %v3994_v20 = vrot.slane %v3702_v35, %v11288_v46 }
0x18a0   : > { %9006 = vtanh.f32 %v4225_v26  ;;  %v4002_v19 = vrot.slane %v3699_v11, %v11288_v46  ;;  %v4006_v1 = vrot.slane %v3701_v22, %v11288_v46  ;;  %v4010_v47 = vrot.slane %v3703_v16, %v11288_v46 }
0x18a1   : > { %v4203_v41 = vadd.f32 %v3982_v7, %v11417_v59  ;;  %v4204_v44 = vadd.f32 %v3986_v21, %v11417_v59  ;;  %v4205_v55 = vadd.f32 %v3990_v9, %v11417_v59  ;;  %v4206_v0 = vadd.f32 %v3994_v20, %v11417_v59 }
0x18a2   : > { %v4207_v18 = vadd.f32 %v3998_v60, %v11417_v59  ;;  %v4208_v26 = vadd.f32 %v4002_v19, %v11417_v59  ;;  %v4209_v24 = vadd.f32 %v4006_v1, %v11417_v59  ;;  %v11506_v11 = vadd.f32 %v4010_v47, %v11417_v59 }
0x18a3   : > { %v11503_v35 = vpop.eup %8994  ;;  %9008 = vtanh.f32 %v4203_v41  ;;  %v13297_v22 = vcombine.high %v11429_v31, %v11429_v31  ;;  %v3817_v21 = vcombine.high %v3809_v32, %v3809_v32  ;;  %v3825_v16 = vrot.slane %v3809_v32, %v11271_v33 }
0x18a4   : > { %9010 = vtanh.f32 %v4204_v44  ;;  %v11515_v60 = vadd.f32 %v11280_v8, %v11319_v51  ;;  %v3440_v1 = vadd.f32 %v11268_v27, %v11321_v29 }
0x18a5   : > { %v3816_v7 = vrot.slane %v13297_v22, %v11271_v33  ;;  %v11519_v9 = vpop.eup %8996  ;;  %9012 = vtanh.f32 %v4205_v55  ;;  %v3839_v31 = vrot.slane %v3817_v21, %v11271_v33  ;;  %v3847_v19 = vcombine.high %v3825_v16, %v3825_v16 }
0x18a6   : > { %v11523_v20 = vpop.eup %8998  ;;  %9014 = vtanh.f32 %v4206_v0  ;;  %v4078_v32 = vrot.slane %v3825_v16, %v11288_v46  ;;  %v3704_v47 = vcombine.high %v3440_v1, %v3440_v1 }
0x18a7   : > { %v3818_v41 = vcombine.high %v3816_v7, %v3816_v7  ;;  %v3832_v59 = vrot.slane %v3816_v7, %v11271_v33  ;;  %v11526_v8 = vpop.eup %9000  ;;  %9016 = vtanh.f32 %v4207_v18  ;;  %v3849_v29 = vcombine.high %v3839_v31, %v3839_v31 }
0x18a8   : > { %v11529_v44 = vpop.eup %9002  ;;  %9018 = vtanh.f32 %v4208_v26  ;;  %v4082_v55 = vrot.slane %v3839_v31, %v11288_v46  ;;  %v4086_v22 = vrot.slane %v3847_v19, %v11288_v46  ;;  %v4227_v26 = vadd.f32 %v4078_v32, %v11425_v5 }
0x18a9   : > { %v3846_v27 = vrot.slane %v3818_v41, %v11271_v33  ;;  %v3848_v51 = vcombine.high %v3832_v59, %v3832_v59  ;;  %v4094_v0 = vrot.slane %v3832_v59, %v11288_v46  ;;  %v11534_v7 = vpop.eup %9004  ;;  %9020 = vtanh.f32 %v4209_v24 }
0x18aa   : > { %v4090_v16 = vrot.slane %v3849_v29, %v11288_v46  ;;  %v11538_v41 = vpop.eup %9006  ;;  %v4228_v31 = vadd.f32 %v4082_v55, %v11425_v5  ;;  %v4229_v19 = vadd.f32 %v4086_v22, %v11425_v5  ;;  %9022 = vtanh.f32 %v4227_v26 }
0x18ab   : > { %v3850_v21 = vcombine.high %v3846_v27, %v3846_v27  ;;  %v4098_v18 = vrot.slane %v3846_v27, %v11288_v46  ;;  %v4102_v6 = vrot.slane %v3848_v51, %v11288_v46  ;;  %v4231_v29 = vadd.f32 %v4094_v0, %v11425_v5 }
0x18ac   : > { %v4230_v24 = vadd.f32 %v4090_v16, %v11425_v5  ;;  %v3711_v51 = vrot.slane %v3440_v1, %v11271_v33  ;;  %v3718_v32 = vrot.slane %v3704_v47, %v11271_v33  ;;  %9024 = vtanh.f32 %v4228_v31 }
0x18ad   : > { %v4106_v59 = vrot.slane %v3850_v21, %v11288_v46  ;;  %v4232_v27 = vadd.f32 %v4098_v18, %v11425_v5  ;;  %v4233_v14 = vadd.f32 %v4102_v6, %v11425_v5  ;;  %v11553_v55 = vpop.eup %9008  ;;  %v4321_v21 = vmul.f32 %v11377_v56, %v11544_v34 }
0x18ae   : > { %v4305_v0 = vmul.f32 %v11431_v25, %v11544_v34  ;;  %v11562_v16 = vpop.eup %9010  ;;  %9026 = vtanh.f32 %v4229_v19  ;;  %v3719_v6 = vcombine.high %v3711_v51, %v3711_v51  ;;  %v3720_v18 = vcombine.high %v3718_v32, %v3718_v32 }
0x18af   : > { %v11556_v22 = vadd.f32 %v4106_v59, %v11425_v5  ;;  %v3727_v1 = vrot.slane %v3711_v51, %v11271_v33  ;;  %v11565_v47 = vpop.eup %9012  ;;  %9028 = vtanh.f32 %v4230_v24  ;;  %v3734_v5 = vrot.slane %v3718_v32, %v11271_v33  ;;  %4401 = vadd.xlane.f32.xlu0 %v4321_v21 }
0x18b0   : > { %4369 = vadd.xlane.f32.xlu1 %v4305_v0  ;;  %v4329_v56 = vmul.f32 %v11448_v49, %v11544_v34  ;;  %v4322_v25 = vmul.f32 %v11381_v62, %v11544_v34  ;;  %v11572_v26 = vpop.eup %9014  ;;  %9030 = vtanh.f32 %v4231_v29  ;;  %v3741_v31 = vrot.slane %v3719_v6, %v11271_v33 }
0x18b1   : > { %v3748_v19 = vrot.slane %v3720_v18, %v11271_v33  ;;  %v3749_v59 = vcombine.high %v3727_v1, %v3727_v1  ;;  %v11576_v51 = vpop.eup %9016  ;;  %9032 = vtanh.f32 %v4232_v27  ;;  %v3750_v24 = vcombine.high %v3734_v5, %v3734_v5 }
0x18b2   : > { %v4014_v32 = vrot.slane %v3727_v1, %v11288_v46  ;;  %v4030_v21 = vrot.slane %v3734_v5, %v11288_v46  ;;  %v11580_v49 = vpop.eup %9018  ;;  %9034 = vtanh.f32 %v4233_v14  ;;  %v3751_v62 = vcombine.high %v3741_v31, %v3741_v31 }
0x18b3   : > { %v3752_v0 = vcombine.high %v3748_v19, %v3748_v19  ;;  %v4018_v29 = vrot.slane %v3741_v31, %v11288_v46  ;;  %v11583_v54 = vpop.eup %9020  ;;  %v4022_v33 = vrot.slane %v3749_v59, %v11288_v46  ;;  %v4034_v6 = vrot.slane %v3748_v19, %v11288_v46  ;;  %4417 = vadd.xlane.f32.xlu0 %v4329_v56 }
0x18b4   : > { %v4038_v27 = vrot.slane %v3750_v24, %v11288_v46  ;;  %v4211_v18 = vadd.f32 %v4014_v32, %v11515_v60  ;;  %v4026_v1 = vrot.slane %v3751_v62, %v11288_v46  ;;  %v4215_v28 = vadd.f32 %v4030_v21, %v11515_v60  ;;  %4403 = vadd.xlane.f32.xlu1 %v4322_v25  ;;  %v9023_v24 = vpop.eup %9022 }
0x18b5   : > { %v4042_v5 = vrot.slane %v3752_v0, %v11288_v46  ;;  %v4212_v14 = vadd.f32 %v4018_v29, %v11515_v60  ;;  %v4213_v31 = vadd.f32 %v4022_v33, %v11515_v60  ;;  %v4216_v59 = vadd.f32 %v4034_v6, %v11515_v60 }
0x18b6   : > { %v4217_v19 = vadd.f32 %v4038_v27, %v11515_v60  ;;  %9036 = vtanh.f32 %v4211_v18  ;;  %v4214_v32 = vadd.f32 %v4026_v1, %v11515_v60  ;;  %v4323_v62 = vmul.f32 %v11388_v40, %v11544_v34  ;;  %v9025_v0 = vpop.eup %9024 }
0x18b7   : > { %v11598_v56 = vadd.f32 %v4042_v5, %v11515_v60  ;;  %9038 = vtanh.f32 %v4212_v14  ;;  %v4330_v25 = vmul.f32 %v11452_v3, %v11544_v34  ;;  %v4325_v60 = vmul.f32 %v11396_v43, %v11544_v34 }
0x18b8   : > { %9040 = vtanh.f32 %v4213_v31  ;;  %v9027_v21 = vpop.eup %9026  ;;  %4405 = vadd.xlane.f32.xlu0 %v4323_v62  ;;  %v4331_v40 = vmul.f32 %v11460_v4, %v11544_v34  ;;  %v11614_v3 = vmul.f32 %v11503_v35, %v11544_v34  ;;  %v11618_v43 = vmul.f32 %v11519_v9, %v11544_v34 }
0x18b9   : > { %9042 = vtanh.f32 %v4214_v32  ;;  %v9029_v29 = vpop.eup %9028  ;;  %4419 = vadd.xlane.f32.xlu1 %v4330_v25  ;;  %v11622_v4 = vmul.f32 %v11553_v55, %v11544_v34  ;;  %v11628_v18 = vmul.f32 %v11562_v16, %v11544_v34  ;;  %v11634_v35 = vmul.f32 %v9025_v0, %v11544_v34 }
0x18ba   : > { %9044 = vtanh.f32 %v4215_v28  ;;  %v9031_v33 = vpop.eup %9030  ;;  %v4306_v28 = vmul.f32 %v11435_v39, %v11544_v34  ;;  %v11631_v39 = vmul.f32 %v9023_v24, %v11544_v34  ;;  %v4313_v55 = vmul.f32 %v11475_v61, %v11544_v34 }
0x18bb   : > { %9046 = vtanh.f32 %v4216_v59  ;;  %v9033_v6 = vpop.eup %9032  ;;  %v11640_v1 = vmul.f32 %v11523_v20, %v11544_v34  ;;  %v11647_v16 = vmul.f32 %v11529_v44, %v11544_v34  ;;  %v4314_v14 = vmul.f32 %v11483_v63, %v11544_v34 }
0x18bc   : > { %9048 = vtanh.f32 %v4217_v19  ;;  %v9035_v27 = vpop.eup %9034  ;;  %4409 = vadd.xlane.f32.xlu0 %v4325_v60  ;;  %v11652_v31 = vmul.f32 %v9031_v33, %v11544_v34  ;;  %v11662_v19 = vmul.f32 %v11565_v47, %v11544_v34  ;;  %v11669_v63 = vmul.f32 %v11576_v51, %v11544_v34 }
0x18bd   : > { %9050 = vtanh.f32 %v11373_v37  ;;  %4421 = vadd.xlane.f32.xlu1 %v4331_v40  ;;  %v11673_v24 = vmul.f32 %v11526_v8, %v11544_v34  ;;  %v11676_v62 = vmul.f32 %v9029_v29, %v11544_v34  ;;  %v11680_v0 = vmul.f32 %v11534_v7, %v11544_v34 }
0x18be   : > { %9052 = vtanh.f32 %v11404_v30  ;;  %v4333_v30 = vmul.f32 %v11471_v2, %v11544_v34  ;;  %v11643_v2 = vmul.f32 %v9027_v21, %v11544_v34  ;;  %v11683_v47 = vmul.f32 %v9033_v6, %v11544_v34 }
0x18bf   : > { %v11687_v25 = vmul.f32 %v11538_v41, %v11544_v34  ;;  %v11693_v21 = vmul.f32 %v9035_v27, %v11544_v34  ;;  %v11697_v29 = vmul.f32 %v11572_v26, %v11544_v34  ;;  %v11704_v41 = vmul.f32 %v11580_v49, %v11544_v34 }
0x18c0   : > { %v9037_v37 = vpop.eup %9036  ;;  %4371 = vadd.xlane.f32.xlu0 %v4306_v28  ;;  %v11711_v6 = vmul.f32 %v11583_v54, %v11544_v34  ;;  %9054 = vtanh.f32 %v11478_v36  ;;  %v4307_v40 = vmul.f32 %v11438_v23, %v11544_v34  ;;  %v4315_v28 = vmul.f32 %v11486_v52, %v11544_v34 }
0x18c1   : > { %v9039_v9 = vpop.eup %9038  ;;  %4425 = vadd.xlane.f32.xlu1 %v4333_v30  ;;  %v11655_v61 = vmul.f32 %v9037_v37, %v11544_v34  ;;  %9056 = vtanh.f32 %v11556_v22  ;;  %v4309_v54 = vmul.f32 %v11442_v57, %v11544_v34  ;;  %v4324_v52 = vmul.f32 %v11392_v58, %v11544_v34 }
0x18c2   : > { %v9041_v5 = vpop.eup %9040  ;;  %v11658_v20 = vmul.f32 %v9039_v9, %v11544_v34  ;;  %9058 = vtanh.f32 %v11506_v11  ;;  %v4326_v58 = vmul.f32 %v11419_v12, %v11544_v34 }
0x18c3   : > { %v9043_v59 = vpop.eup %9042  ;;  %v11665_v44 = vmul.f32 %v9041_v5, %v11544_v34  ;;  %9060 = vtanh.f32 %v11598_v56  ;;  %v13298_v5 = vld [vmem:[#allocation30_spill] sm:$0xff] }
0x18c4   : > { %v9045_v32 = vpop.eup %9044  ;;  %4385 = vadd.xlane.f32.xlu0 %v4313_v55  ;;  %v11700_v7 = vmul.f32 %v9043_v59, %v11544_v34  ;;  %9062 = vtanh.f32 %v11327_v50  ;;  %v4332_v50 = vmul.f32 %v11465_v13, %v11544_v34 }
0x18c5   : > { %v9047_v51 = vpop.eup %9046  ;;  %v11690_v8 = vmul.f32 %v9045_v32, %v11544_v34  ;;  %4387 = vadd.xlane.f32.xlu1 %v4314_v14  ;;  %9064 = vtanh.f32 %v11375_v17 }
0x18c6   : > { %v9049_v33 = vpop.eup %9048  ;;  %v11707_v60 = vmul.f32 %v9047_v51, %v11544_v34  ;;  %9066 = vtanh.f32 %v11343_v10  ;;  %v13300_v51 = vld [vmem:[#allocation31_spill] sm:$0xff] }
0x18c7   : > { %v9051_v26 = vpop.eup %9050  ;;  %v11717_v27 = vmul.f32 %v9049_v33, %v11544_v34  ;;  %9068 = vtanh.f32 %v11408_v15 }
0x18c8   : > { %v9053_v49 = vpop.eup %9052  ;;  %4373 = vadd.xlane.f32.xlu0 %v4307_v40  ;;  %9070 = vtanh.f32 %v11345_v48  ;;  %v4334_v56 = vmul.f32 %v9051_v26, %v11544_v34 }
0x18c9   : > { %4389 = vadd.xlane.f32.xlu1 %v4315_v28  ;;  %v4317_v23 = vmul.f32 %v9053_v49, %v11544_v34  ;;  %9072 = vtanh.f32 %v11406_v53 }
0x18ca   : > { %v9055_v36 = vpop.eup %9054  ;;  %9074 = vtanh.f32 %v11347_v38 }
0x18cb   : > { %v9057_v11 = vpop.eup %9056  ;;  %v11736_v17 = vmul.f32 %v9055_v36, %v11544_v34  ;;  %9076 = vtanh.f32 %v11410_v45  ;;  %v13299_v45 = vld [vmem:[#allocation29_spill] sm:$0xff] }
0x18cc   : > { %4377 = vadd.xlane.f32.xlu0 %v4309_v54  ;;  %v9059_v57 = vpop.eup %9058  ;;  %v11740_v10 = vmul.f32 %v9057_v11, %v11544_v34  ;;  %9078 = vtanh.f32 %v11329_v42 }
0x18cd   : > { %4393 = vadd.xlane.f32.xlu1 %v4317_v23  ;;  %v9061_v15 = vpop.eup %9060  ;;  %v11746_v13 = vmul.f32 %v9059_v57, %v11544_v34  ;;  %9080 = vtanh.f32 %v13298_v5 }
0x18ce   : > { %v9063_v22 = vpop.eup %9062  ;;  %v11750_v37 = vmul.f32 %v9061_v15, %v11544_v34  ;;  %9082 = vtanh.f32 %v13299_v45 }
0x18cf   : > { %v9065_v48 = vpop.eup %9064  ;;  %v4327_v53 = vmul.f32 %v9063_v22, %v11544_v34  ;;  %9084 = vtanh.f32 %v13300_v51 }
0x18d0   : > { %4407 = vadd.xlane.f32.xlu0 %v4324_v52  ;;  %v9067_v30 = vpop.eup %9066  ;;  %v4335_v12 = vmul.f32 %v9065_v48, %v11544_v34 }
0x18d1   : > { %4423 = vadd.xlane.f32.xlu1 %v4332_v50  ;;  %v9069_v9 = vpop.eup %9068  ;;  %v4308_v55 = vmul.f32 %v9067_v30, %v11544_v34 }
0x18d2   : > { %v9071_v14 = vpop.eup %9070  ;;  %v4316_v38 = vmul.f32 %v9069_v9, %v11544_v34 }
0x18d3   : > { %v9073_v59 = vpop.eup %9072  ;;  %v4310_v32 = vmul.f32 %v9071_v14, %v11544_v34 }
0x18d4   : > { %4411 = vadd.xlane.f32.xlu0 %v4326_v58  ;;  %v9075_v33 = vpop.eup %9074  ;;  %v4318_v26 = vmul.f32 %v9073_v59, %v11544_v34 }
0x18d5   : > { %4427 = vadd.xlane.f32.xlu1 %v4334_v56  ;;  %v9077_v42 = vpop.eup %9076  ;;  %v4311_v40 = vmul.f32 %v9075_v33, %v11544_v34 }
0x18d6   : > { %v9079_v49 = vpop.eup %9078  ;;  %v4319_v28 = vmul.f32 %v9077_v42, %v11544_v34 }
0x18d7   : > { %v9081_v54 = vpop.eup %9080  ;;  %v4328_v23 = vmul.f32 %v9079_v49, %v11544_v34 }
0x18d8   : > { %4413 = vadd.xlane.f32.xlu0 %v4327_v53  ;;  %v9083_v52 = vpop.eup %9082  ;;  %v4336_v36 = vmul.f32 %v9081_v54, %v11544_v34 }
0x18d9   : > { %4429 = vadd.xlane.f32.xlu1 %v4335_v12  ;;  %v9085_v50 = vpop.eup %9084  ;;  %v4312_v11 = vmul.f32 %v9083_v52, %v11544_v34 }
0x18da   : > { %v4320_v57 = vmul.f32 %v9085_v50, %v11544_v34  ;;  %v11802_v34 = vpop.permute.xlu1 %6895 }
0x18db   : > { %13301 = vst [vmem:[#allocation30_spill] sm:$0xff] %v11802_v34 }
0x18dc   : > { %4375 = vadd.xlane.f32.xlu0 %v4308_v55 }
0x18dd   : > { %4391 = vadd.xlane.f32.xlu1 %v4316_v38 }
0x18e0   : > { %4379 = vadd.xlane.f32.xlu0 %v4310_v32 }
0x18e1   : > { %4395 = vadd.xlane.f32.xlu1 %v4318_v26 }
0x18e4   : > { %4381 = vadd.xlane.f32.xlu0 %v4311_v40 }
0x18e5   : > { %4397 = vadd.xlane.f32.xlu1 %v4319_v28 }
0x18e8   : > { %4415 = vadd.xlane.f32.xlu0 %v4328_v23 }
0x18e9   : > { %4431 = vadd.xlane.f32.xlu1 %v4336_v36 }
0x18ec   : > { %4383 = vadd.xlane.f32.xlu0 %v4312_v11 }
0x18ed   : > { %4399 = vadd.xlane.f32.xlu1 %v4320_v57 }
0x18f0   : > { %4465 = vadd.xlane.f32.xlu0 %v11614_v3  ;;  %v11804_v3 = vpop.permute.xlu0 %7024 }
0x18f1   : > { %4467 = vadd.xlane.f32.xlu1 %v11618_v43  ;;  %13302 = vst [vmem:[#allocation29_spill] sm:$0xff] %v11804_v3 }
0x18f4   : > { %4433 = vadd.xlane.f32.xlu0 %v11622_v4 }
0x18f5   : > { %4435 = vadd.xlane.f32.xlu1 %v11628_v18 }
0x18f8   : > { %4481 = vadd.xlane.f32.xlu0 %v11631_v39 }
0x18f9   : > { %4483 = vadd.xlane.f32.xlu1 %v11634_v35 }
0x18fc   : > { %4469 = vadd.xlane.f32.xlu0 %v11640_v1 }
0x18fd   : > { %4485 = vadd.xlane.f32.xlu1 %v11643_v2 }
0x1900   : > { %4473 = vadd.xlane.f32.xlu0 %v11647_v16 }
0x1901   : > { %4489 = vadd.xlane.f32.xlu1 %v11652_v31 }
0x1904   : > { %4449 = vadd.xlane.f32.xlu0 %v11655_v61 }
0x1905   : > { %4451 = vadd.xlane.f32.xlu1 %v11658_v20 }
0x1908   : > { %4437 = vadd.xlane.f32.xlu0 %v11662_v19 }
0x1909   : > { %4453 = vadd.xlane.f32.xlu1 %v11665_v44 }
0x190c   : > { %4441 = vadd.xlane.f32.xlu0 %v11669_v63 }
0x190d   : > { %4457 = vadd.xlane.f32.xlu1 %v11690_v8 }
0x1910   : > { %4471 = vadd.xlane.f32.xlu0 %v11673_v24 }
0x1911   : > { %4487 = vadd.xlane.f32.xlu1 %v11676_v62 }
0x1914   : > { %4475 = vadd.xlane.f32.xlu0 %v11680_v0 }
0x1915   : > { %4491 = vadd.xlane.f32.xlu1 %v11683_v47 }
0x1918   : > { %4477 = vadd.xlane.f32.xlu0 %v11687_v25 }
0x1919   : > { %4493 = vadd.xlane.f32.xlu1 %v11693_v21  ;;  %v13306_v21 = vlaneseq }
0x191c   : > { %4439 = vadd.xlane.f32.xlu0 %v11697_v29  ;;  %v4562_v29 = vand.u32 127, %v13306_v21 }
0x191d   : > { %4455 = vadd.xlane.f32.xlu1 %v11700_v7 }
0x1920   : > { %4443 = vadd.xlane.f32.xlu0 %v11704_v41 }
0x1921   : > { %4459 = vadd.xlane.f32.xlu1 %v11707_v60  ;;  %v13307_v60 = vld [vmem:[#allocation28_spill] sm:$0xff] }
0x1924   : > { %4445 = vadd.xlane.f32.xlu0 %v11711_v6  ;;  %v11852_v6 = vsub.s32 %v4562_v29, %v13307_v60 }
0x1925   : > { %4461 = vadd.xlane.f32.xlu1 %v11717_v27 }
0x1928   : > { %4479 = vadd.xlane.f32.xlu0 %v11736_v17 }
0x1929   : > { %4495 = vadd.xlane.f32.xlu1 %v11740_v10 }
0x192c   : > { %4447 = vadd.xlane.f32.xlu0 %v11746_v13 }
0x192d   : > { %4463 = vadd.xlane.f32.xlu1 %v11750_v37 }
0x193c   : > { %v11806_v43 = vpop.xlane.xlu0 %4401 }
0x193d   : > { %v11808_v4 = vpop.xlane.xlu1 %4369  ;;  %v4630_v58 = vrot.slane %v11806_v43, %v11852_v6 }
0x193e   : > { %v4566_v30 = vrot.slane %v11808_v4, %v11852_v6 }
0x1940   : > { %v11810_v18 = vpop.xlane.xlu0 %4417 }
0x1941   : > { %v11812_v39 = vpop.xlane.xlu1 %4403  ;;  %v4662_v56 = vrot.slane %v11810_v18, %v11852_v6 }
0x1942   : > { %v4634_v17 = vrot.slane %v11812_v39, %v11852_v6 }
0x1944   : > { %v4833_v12 = vsel %vm924_vm2, %v4634_v17, %v4630_v58 }
0x1945   : > { %v11814_v35 = vpop.xlane.xlu0 %4405 }
0x1946   : > { %v11816_v1 = vpop.xlane.xlu1 %4419  ;;  %v4638_v13 = vrot.slane %v11814_v35, %v11852_v6 }
0x1947   : > { %v4666_v15 = vrot.slane %v11816_v1, %v11852_v6 }
0x1948   : > { %v4834_v59 = vsel %vm927_vm3, %v4638_v13, %v4833_v12 }
0x1949   : > { %v11818_v2 = vpop.xlane.xlu0 %4409  ;;  %v4840_v55 = vsel %vm924_vm2, %v4666_v15, %v4662_v56 }
0x194a   : > { %v11820_v16 = vpop.xlane.xlu1 %4421  ;;  %v4646_v28 = vrot.slane %v11818_v2, %v11852_v6 }
0x194b   : > { %v4670_v22 = vrot.slane %v11820_v16, %v11852_v6 }
0x194d   : > { %v11822_v31 = vpop.xlane.xlu0 %4371  ;;  %v4841_v45 = vsel %vm927_vm3, %v4670_v22, %v4840_v55 }
0x194e   : > { %v11824_v61 = vpop.xlane.xlu1 %4425  ;;  %v4570_v5 = vrot.slane %v11822_v31, %v11852_v6 }
0x194f   : > { %v4678_v54 = vrot.slane %v11824_v61, %v11852_v6 }
0x1950   : > { %v4819_v50 = vsel %vm924_vm2, %v4570_v5, %v4566_v30 }
0x1951   : > { %v11826_v20 = vpop.xlane.xlu0 %4385 }
0x1952   : > { %13303 = vst [vmem:[#allocation31_spill] sm:$0xff] %v11826_v20  ;;  %v11828_v19 = vpop.xlane.xlu1 %4387  ;;  %v4598_v14 = vrot.slane %v11826_v20, %v11852_v6 }
0x1953   : > { %13304 = vst [vmem:[#allocation32_spill] sm:$0xff] %v11828_v19  ;;  %v4602_v38 = vrot.slane %v11828_v19, %v11852_v6 }
0x1955   : > { %v11830_v44 = vpop.xlane.xlu0 %4373  ;;  %v4826_v11 = vsel %vm924_vm2, %v4602_v38, %v4598_v14 }
0x1956   : > { %v11832_v63 = vpop.xlane.xlu1 %4389  ;;  %v4574_v32 = vrot.slane %v11830_v44, %v11852_v6 }
0x1957   : > { %13305 = vst [vmem:[#allocation33_spill] sm:$0xff] %v11832_v63  ;;  %v4606_v51 = vrot.slane %v11832_v63, %v11852_v6 }
0x1958   : > { %v4820_v21 = vsel %vm927_vm3, %v4574_v32, %v4819_v50 }
0x1959   : > { %v11834_v24 = vpop.xlane.xlu0 %4377  ;;  %v4827_v58 = vsel %vm927_vm3, %v4606_v51, %v4826_v11 }
0x195a   : > { %v11836_v62 = vpop.xlane.xlu1 %4393  ;;  %v4582_v13 = vrot.slane %v11834_v24, %v11852_v6 }
0x195b   : > { %v4614_v32 = vrot.slane %v11836_v62, %v11852_v6 }
0x195d   : > { %v11838_v0 = vpop.xlane.xlu0 %4407 }
0x195e   : > { %v11840_v47 = vpop.xlane.xlu1 %4423  ;;  %v4642_v37 = vrot.slane %v11838_v0, %v11852_v6 }
0x195f   : > { %v4674_v48 = vrot.slane %v11840_v47, %v11852_v6 }
0x1960   : > { %v4835_v33 = vsel %vm930_vm4, %v4642_v37, %v4834_v59 }
0x1961   : > { %v11842_v25 = vpop.xlane.xlu0 %4411  ;;  %v4842_v26 = vsel %vm930_vm4, %v4674_v48, %v4841_v45  ;;  %v4836_v17 = vsel %vm933_vm5, %v4646_v28, %v4835_v33 }
0x1962   : > { %v11844_v8 = vpop.xlane.xlu1 %4427  ;;  %v4650_v42 = vrot.slane %v11842_v25, %v11852_v6  ;;  %v4843_v15 = vsel %vm933_vm5, %v4678_v54, %v4842_v26 }
0x1963   : > { %v4682_v40 = vrot.slane %v11844_v8, %v11852_v6 }
0x1964   : > { %v4837_v56 = vsel %vm936_vm6, %v4650_v42, %v4836_v17 }
0x1965   : > { %v11847_v7 = vpop.xlane.xlu0 %4413  ;;  %v4844_v37 = vsel %vm936_vm6, %v4682_v40, %v4843_v15 }
0x1966   : > { %v11849_v41 = vpop.xlane.xlu1 %4429  ;;  %v4654_v23 = vrot.slane %v11847_v7, %v11852_v6 }
0x1967   : > { %v4686_v29 = vrot.slane %v11849_v41, %v11852_v6 }
0x1968   : > { %v4838_v5 = vsel %vm939_vm7, %v4654_v23, %v4837_v56 }
0x1969   : > { %v11854_v27 = vpop.xlane.xlu0 %4375  ;;  %v4845_v26 = vsel %vm939_vm7, %v4686_v29, %v4844_v37 }
0x196a   : > { %v11858_v10 = vpop.xlane.xlu1 %4391  ;;  %v4578_v52 = vrot.slane %v11854_v27, %v11852_v6 }
0x196b   : > { %13308 = vst [vmem:[#allocation28_spill] sm:$0xff] %v11858_v10  ;;  %v4610_v57 = vrot.slane %v11858_v10, %v11852_v6 }
0x196c   : > { %v4821_v48 = vsel %vm930_vm4, %v4578_v52, %v4820_v21 }
0x196d   : > { %v11874_v53 = vpop.xlane.xlu0 %4379  ;;  %v4828_v14 = vsel %vm930_vm4, %v4610_v57, %v4827_v58  ;;  %v4822_v54 = vsel %vm933_vm5, %v4582_v13, %v4821_v48 }
0x196e   : > { %v11879_v9 = vpop.xlane.xlu1 %4395  ;;  %v4586_v30 = vrot.slane %v11874_v53, %v11852_v6  ;;  %v4829_v57 = vsel %vm933_vm5, %v4614_v32, %v4828_v14 }
0x196f   : > { %v4618_v38 = vrot.slane %v11879_v9, %v11852_v6 }
0x1970   : > { %v4823_v11 = vsel %vm936_vm6, %v4586_v30, %v4822_v54 }
0x1971   : > { %v11900_v49 = vpop.xlane.xlu0 %4381  ;;  %v4830_v17 = vsel %vm936_vm6, %v4618_v38, %v4829_v57 }
0x1972   : > { %v11910_v36 = vpop.xlane.xlu1 %4397  ;;  %v4590_v59 = vrot.slane %v11900_v49, %v11852_v6 }
0x1973   : > { %v4622_v51 = vrot.slane %v11910_v36, %v11852_v6 }
0x1974   : > { %v4824_v29 = vsel %vm939_vm7, %v4590_v59, %v4823_v11 }
0x1975   : > { %v11924_v22 = vpop.xlane.xlu0 %4415  ;;  %v4831_v58 = vsel %vm939_vm7, %v4622_v51, %v4830_v17 }
0x1976   : > { %v4658_v12 = vrot.slane %v11924_v22, %v11852_v6  ;;  %v11933_v55 = vpop.xlane.xlu1 %4431 }
0x1977   : > { %v4690_v45 = vrot.slane %v11933_v55, %v11852_v6 }
0x1978   : > { %v4839_v33 = vsel %vm942_vm8, %v4658_v12, %v4838_v5 }
0x1979   : > { %v11949_v42 = vpop.xlane.xlu0 %4383  ;;  %v4890_v40 = vsel %vm4883_vm10, %v4839_v33, -inf  ;;  %v4846_v28 = vsel %vm942_vm8, %v4690_v45, %v4845_v26 }
0x197a   : > { %v4594_v23 = vrot.slane %v11949_v42, %v11852_v6  ;;  %v11956_v52 = vpop.xlane.xlu1 %4399  ;;  %4891 = vmax.xlane.f32.xlu0 %v4890_v40  ;;  %v4893_v50 = vsel %vm4883_vm10, %v4846_v28, -inf }
0x197b   : > { %v4626_v21 = vrot.slane %v11956_v52, %v11852_v6  ;;  %4894 = vmax.xlane.f32.xlu1 %v4893_v50 }
0x197c   : > { %v4825_v15 = vsel %vm942_vm8, %v4594_v23, %v4824_v29 }
0x197d   : > { %v11967_v13 = vpop.xlane.xlu0 %4465  ;;  %v4884_v56 = vsel %vm4883_vm10, %v4825_v15, -inf  ;;  %v4832_v37 = vsel %vm942_vm8, %v4626_v21, %v4831_v58 }
0x197e   : > { %13309 = vst [vmem:[#allocation34_spill] sm:$0xff] %v11967_v13  ;;  %v11971_v48 = vpop.xlane.xlu1 %4467  ;;  %4885 = vmax.xlane.f32.xlu0 %v4884_v56  ;;  %v4887_v30 = vsel %vm4883_vm10, %v4832_v37, -inf  ;;  %v4758_v58 = vrot.slane %v11967_v13, %v11852_v6 }
0x197f   : > { %13310 = vst [vmem:[#allocation35_spill] sm:$0xff] %v11971_v48  ;;  %4888 = vmax.xlane.f32.xlu1 %v4887_v30  ;;  %v4762_v56 = vrot.slane %v11971_v48, %v11852_v6 }
0x1981   : > { %v11974_v12 = vpop.xlane.xlu0 %4433  ;;  %v4861_v19 = vsel %vm924_vm2, %v4762_v56, %v4758_v58 }
0x1982   : > { %13311 = vst [vmem:[#allocation36_spill] sm:$0xff] %v11974_v12  ;;  %v11976_v5 = vpop.xlane.xlu1 %4435 }
0x1983   : > { %13312 = vst [vmem:[#allocation37_spill] sm:$0xff] %v11976_v5 }
0x1985   : > { %v11978_v14 = vpop.xlane.xlu0 %4481 }
0x1986   : > { %13313 = vst [vmem:[#allocation38_spill] sm:$0xff] %v11978_v14  ;;  %v11980_v38 = vpop.xlane.xlu1 %4483  ;;  %v4790_v30 = vrot.slane %v11978_v14, %v11852_v6  ;;  %v4694_v14 = vrot.slane %v11974_v12, %v11852_v6 }
0x1987   : > { %13314 = vst [vmem:[#allocation39_spill] sm:$0xff] %v11980_v38  ;;  %v4794_v3 = vrot.slane %v11980_v38, %v11852_v6 }
0x1989   : > { %v11982_v59 = vpop.xlane.xlu0 %4469 }
0x198a   : > { %13315 = vst [vmem:[#allocation40_spill] sm:$0xff] %v11982_v59  ;;  %v11984_v45 = vpop.xlane.xlu1 %4485  ;;  %v4766_v34 = vrot.slane %v11982_v59, %v11852_v6  ;;  %v4698_v59 = vrot.slane %v11976_v5, %v11852_v6 }
0x198b   : > { %13316 = vst [vmem:[#allocation41_spill] sm:$0xff] %v11984_v45  ;;  %v4798_v10 = vrot.slane %v11984_v45, %v11852_v6  ;;  %v4868_v45 = vsel %vm924_vm2, %v4794_v3, %v4790_v30 }
0x198c   : > { %v4862_v20 = vsel %vm927_vm3, %v4766_v34, %v4861_v19 }
0x198d   : > { %v11986_v32 = vpop.xlane.xlu0 %4473  ;;  %v4869_v58 = vsel %vm927_vm3, %v4798_v10, %v4868_v45 }
0x198e   : > { %v11988_v51 = vpop.xlane.xlu1 %4489  ;;  %v4774_v34 = vrot.slane %v11986_v32, %v11852_v6 }
0x198f   : > { %13317 = vst [vmem:[#allocation42_spill] sm:$0xff] %v11988_v51  ;;  %v4806_v19 = vrot.slane %v11988_v51, %v11852_v6 }
0x1991   : > { %v11990_v33 = vpop.xlane.xlu0 %4449 }
0x1992   : > { %13318 = vst [vmem:[#allocation43_spill] sm:$0xff] %v11990_v33  ;;  %v11992_v26 = vpop.xlane.xlu1 %4451 }
0x1993   : > { %13319 = vst [vmem:[#allocation44_spill] sm:$0xff] %v11992_v26 }
0x1995   : > { %v11994_v40 = vpop.xlane.xlu0 %4437 }
0x1996   : > { %13320 = vst [vmem:[#allocation45_spill] sm:$0xff] %v11994_v40  ;;  %v11996_v28 = vpop.xlane.xlu1 %4453  ;;  %v4702_v56 = vrot.slane %v11994_v40, %v11852_v6 }
0x1997   : > { %13321 = vst [vmem:[#allocation46_spill] sm:$0xff] %v11996_v28  ;;  %v4734_v12 = vrot.slane %v11996_v28, %v11852_v6 }
0x1999   : > { %v11998_v54 = vpop.xlane.xlu0 %4441 }
0x199a   : > { %v12000_v23 = vpop.xlane.xlu1 %4457 }
0x199d   : > { %v12002_v50 = vpop.xlane.xlu0 %4471 }
0x199e   : > { %13322 = vst [vmem:[#allocation47_spill] sm:$0xff] %v12002_v50  ;;  %v12004_v11 = vpop.xlane.xlu1 %4487  ;;  %v4770_v13 = vrot.slane %v12002_v50, %v11852_v6  ;;  %v4726_v50 = vrot.slane %v11990_v33, %v11852_v6 }
0x199f   : > { %13323 = vst [vmem:[#allocation48_spill] sm:$0xff] %v12004_v11  ;;  %v4802_v63 = vrot.slane %v12004_v11, %v11852_v6  ;;  %v4730_v11 = vrot.slane %v11992_v26, %v11852_v6 }
0x19a0   : > { %v4863_v5 = vsel %vm930_vm4, %v4770_v13, %v4862_v20  ;;  %v4847_v13 = vsel %vm924_vm2, %v4698_v59, %v4694_v14 }
0x19a1   : > { %v12006_v57 = vpop.xlane.xlu0 %4475  ;;  %v4870_v3 = vsel %vm930_vm4, %v4802_v63, %v4869_v58  ;;  %v4854_v45 = vsel %vm924_vm2, %v4730_v11, %v4726_v50  ;;  %v4848_v28 = vsel %vm927_vm3, %v4702_v56, %v4847_v13 }
0x19a2   : > { %v12008_v21 = vpop.xlane.xlu1 %4491  ;;  %v4778_v30 = vrot.slane %v12006_v57, %v11852_v6  ;;  %v4871_v51 = vsel %vm933_vm5, %v4806_v19, %v4870_v3 }
0x19a3   : > { %13324 = vst [vmem:[#allocation49_spill] sm:$0xff] %v12008_v21  ;;  %v4810_v33 = vrot.slane %v12008_v21, %v11852_v6  ;;  %v4864_v21 = vsel %vm933_vm5, %v4774_v34, %v4863_v5 }
0x19a4   : > { %v4865_v59 = vsel %vm936_vm6, %v4778_v30, %v4864_v21 }
0x19a5   : > { %v12010_v29 = vpop.xlane.xlu0 %4477  ;;  %v4872_v50 = vsel %vm936_vm6, %v4810_v33, %v4871_v51 }
0x19a6   : > { %13325 = vst [vmem:[#allocation50_spill] sm:$0xff] %v12010_v29  ;;  %v12012_v17 = vpop.xlane.xlu1 %4493  ;;  %v4782_v10 = vrot.slane %v12010_v29, %v11852_v6  ;;  %v4710_v29 = vrot.slane %v11998_v54, %v11852_v6 }
0x19a7   : > { %v4814_v40 = vrot.slane %v12012_v17, %v11852_v6 }
0x19a9   : > { %v12014_v15 = vpop.xlane.xlu0 %4439 }
0x19aa   : > { %13326 = vst [vmem:[#allocation51_spill] sm:$0xff] %v12014_v15  ;;  %v12020_v37 = vpop.xlane.xlu1 %4455  ;;  %v4706_v20 = vrot.slane %v12014_v15, %v11852_v6  ;;  %v4855_v15 = vsel %vm927_vm3, %v4734_v12, %v4854_v45  ;;  %v4866_v12 = vsel %vm939_vm7, %v4782_v10, %v4865_v59  ;;  %v4873_v10 = vsel %vm939_vm7, %v4814_v40, %v4872_v50 }
0x19ab   : > { %v4738_v58 = vrot.slane %v12020_v37, %v11852_v6 }
0x19ac   : > { %v4849_v11 = vsel %vm930_vm4, %v4706_v20, %v4848_v28  ;;  %v4742_v28 = vrot.slane %v12000_v23, %v11852_v6 }
0x19ad   : > { %v12034_v48 = vpop.xlane.xlu0 %4443  ;;  %v4856_v34 = vsel %vm930_vm4, %v4738_v58, %v4855_v15  ;;  %v4850_v45 = vsel %vm933_vm5, %v4710_v29, %v4849_v11 }
0x19ae   : > { %v12039_v38 = vpop.xlane.xlu1 %4459  ;;  %v4714_v56 = vrot.slane %v12034_v48, %v11852_v6  ;;  %v4857_v40 = vsel %vm933_vm5, %v4742_v28, %v4856_v34  ;;  %v12131_v34 = vsub.s32 1, %v13307_v60 }
0x19af   : > { %v4746_v19 = vrot.slane %v12039_v38, %v11852_v6 }
0x19b1   : > { %v12060_v26 = vpop.xlane.xlu0 %4445  ;;  %v4858_v29 = vsel %vm936_vm6, %v4746_v19, %v4857_v40  ;;  %v12137_v19 = vsub.s32 3, %v13307_v60 }
0x19b2   : > { %v12070_v63 = vpop.xlane.xlu1 %4461  ;;  %v4718_v51 = vrot.slane %v12060_v26, %v11852_v6 }
0x19b3   : > { %13327 = vst [vmem:[#allocation52_spill] sm:$0xff] %v12070_v63  ;;  %v4750_v21 = vrot.slane %v12070_v63, %v11852_v6 }
0x19b5   : > { %v12084_v14 = vpop.xlane.xlu0 %4479 }
0x19b6   : > { %v4786_v5 = vrot.slane %v12084_v14, %v11852_v6  ;;  %v12093_v3 = vpop.xlane.xlu1 %4495 }
0x19b7   : > { %v4818_v33 = vrot.slane %v12093_v3, %v11852_v6 }
0x19b8   : > { %v4867_v30 = vsel %vm942_vm8, %v4786_v5, %v4866_v12  ;;  %v4851_v5 = vsel %vm936_vm6, %v4714_v56, %v4850_v45 }
0x19b9   : > { %v12109_v15 = vpop.xlane.xlu0 %4447  ;;  %v4902_v20 = vsel %vm4883_vm10, %v4867_v30, -inf  ;;  %v4874_v13 = vsel %vm942_vm8, %v4818_v33, %v4873_v10  ;;  %v4852_v12 = vsel %vm939_vm7, %v4718_v51, %v4851_v5  ;;  %v4859_v33 = vsel %vm939_vm7, %v4750_v21, %v4858_v29 }
0x19ba   : > { %v4722_v58 = vrot.slane %v12109_v15, %v11852_v6  ;;  %v12116_v59 = vpop.xlane.xlu1 %4463  ;;  %4903 = vmax.xlane.f32.xlu0 %v4902_v20  ;;  %v4905_v63 = vsel %vm4883_vm10, %v4874_v13, -inf  ;;  %v12143_v13 = vsub.s32 4, %v13307_v60  ;;  %v12150_v29 = vsub.s32 5, %v13307_v60 }
0x19bb   : > { %v4754_v50 = vrot.slane %v12116_v59, %v11852_v6  ;;  %4906 = vmax.xlane.f32.xlu1 %v4905_v63  ;;  %v12134_v63 = vsub.s32 2, %v13307_v60 }
0x19bc   : > { %v4853_v11 = vsel %vm942_vm8, %v4722_v58, %v4852_v12 }
0x19bd   : > { %v4896_v30 = vsel %vm4883_vm10, %v4853_v11, -inf  ;;  %v4860_v10 = vsel %vm942_vm8, %v4754_v50, %v4859_v33 }
0x19be   : > { %4897 = vmax.xlane.f32.xlu0 %v4896_v30  ;;  %v4899_v56 = vsel %vm4883_vm10, %v4860_v10, -inf  ;;  %v12155_v10 = vsub.s32 6, %v13307_v60 }
0x19bf   : > { %4900 = vmax.xlane.f32.xlu1 %v4899_v56 }
0x1a07   : > { %v4892_v51 = vpop.xlane.xlu0 %4891 }
0x1a08   : > { %v4983_v28 = vrot.slane %v4892_v51, %v11288_v46  ;;  %v4987_v21 = vrot.slane %v4892_v51, %v12131_v34  ;;  %v4991_v20 = vrot.slane %v4892_v51, %v12134_v63  ;;  %v4995_v45 = vrot.slane %v4892_v51, %v12137_v19  ;;  %v12159_v56 = vpop.xlane.xlu1 %4894 }
0x1a09   : > { %v4999_v11 = vrot.slane %v4892_v51, %v12143_v13 }
0x1a0a   : > { %v5252_v58 = vsub.f32 %v11806_v43, %v4983_v28  ;;  %v5253_v5 = vsub.f32 %v11812_v39, %v4987_v21  ;;  %v5254_v40 = vsub.f32 %v11814_v35, %v4991_v20  ;;  %v5255_v33 = vsub.f32 %v11838_v0, %v4995_v45 }
0x1a0b   : > { %v5003_v43 = vrot.slane %v4892_v51, %v12150_v29  ;;  %v5256_v39 = vsub.f32 %v11818_v2, %v4999_v11  ;;  %v12161_v28 = vpop.xlane.xlu0 %4885  ;;  %v12164_v21 = vsub.s32 7, %v13307_v60  ;;  %v5007_v0 = vrot.slane %v4892_v51, %v12155_v10 }
0x1a0c   : > { %v5332_v50 = vmul.f32 1.442695, %v5252_v58  ;;  %v5334_v12 = vmul.f32 1.442695, %v5253_v5  ;;  %v5336_v30 = vmul.f32 1.442695, %v5254_v40  ;;  %v5019_v58 = vrot.slane %v12159_v56, %v12131_v34 }
0x1a0d   : > { %v5338_v35 = vmul.f32 1.442695, %v5255_v33  ;;  %v5257_v20 = vsub.f32 %v11842_v25, %v5003_v43  ;;  %v5340_v45 = vmul.f32 1.442695, %v5256_v39  ;;  %v4919_v2 = vrot.slane %v12161_v28, %v11288_v46 }
0x1a0e   : > { %9086 = vpow2.f32 %v5332_v50  ;;  %v5011_v60 = vrot.slane %v4892_v51, %v12164_v21  ;;  %v5023_v25 = vrot.slane %v12159_v56, %v12134_v63  ;;  %v5261_v33 = vsub.f32 %v11816_v1, %v5019_v58 }
0x1a0f   : > { %9088 = vpow2.f32 %v5334_v12  ;;  %v5236_v40 = vsub.f32 %v11808_v4, %v4919_v2  ;;  %v5258_v12 = vsub.f32 %v11847_v7, %v5007_v0  ;;  %v5342_v11 = vmul.f32 1.442695, %v5257_v20 }
0x1a10   : > { %9090 = vpow2.f32 %v5336_v30  ;;  %v5259_v4 = vsub.f32 %v11924_v22, %v5011_v60  ;;  %v5027_v7 = vrot.slane %v12159_v56, %v12137_v19  ;;  %v5262_v39 = vsub.f32 %v11820_v16, %v5023_v25 }
0x1a11   : > { %9092 = vpow2.f32 %v5338_v35  ;;  %v5300_v30 = vmul.f32 1.442695, %v5236_v40  ;;  %v5344_v51 = vmul.f32 1.442695, %v5258_v12  ;;  %v5350_v35 = vmul.f32 1.442695, %v5261_v33 }
0x1a12   : > { %9094 = vpow2.f32 %v5340_v45  ;;  %v4923_v1 = vrot.slane %v12161_v28, %v12131_v34  ;;  %v5346_v20 = vmul.f32 1.442695, %v5259_v4  ;;  %v5031_v22 = vrot.slane %v12159_v56, %v12143_v13 }
0x1a13   : > { %9096 = vpow2.f32 %v5342_v11  ;;  %v5263_v45 = vsub.f32 %v11840_v47, %v5027_v7  ;;  %v5352_v58 = vmul.f32 1.442695, %v5262_v39  ;;  %v4927_v16 = vrot.slane %v12161_v28, %v12134_v63 }
0x1a14   : > { %9098 = vpow2.f32 %v5300_v30  ;;  %v5237_v2 = vsub.f32 %v11822_v31, %v4923_v1  ;;  %v5035_v60 = vrot.slane %v12159_v56, %v12150_v29  ;;  %v5264_v12 = vsub.f32 %v11824_v61, %v5031_v22 }
0x1a15   : > { %9100 = vpow2.f32 %v5344_v51  ;;  %v5354_v11 = vmul.f32 1.442695, %v5263_v45  ;;  %v4931_v47 = vrot.slane %v12161_v28, %v12137_v19  ;;  %v5238_v25 = vsub.f32 %v11830_v44, %v4927_v16 }
0x1a16   : > { %9102 = vpow2.f32 %v5350_v35  ;;  %v5302_v33 = vmul.f32 1.442695, %v5237_v2  ;;  %v5039_v4 = vrot.slane %v12159_v56, %v12155_v10  ;;  %v5265_v51 = vsub.f32 %v11844_v8, %v5035_v60  ;;  %v12237_v2 = vpop.xlane.xlu1 %4888 }
0x1a17   : > { %9104 = vpow2.f32 %v5346_v20  ;;  %v5356_v61 = vmul.f32 1.442695, %v5264_v12  ;;  %v4935_v7 = vrot.slane %v12161_v28, %v12143_v13  ;;  %v5239_v44 = vsub.f32 %v11854_v27, %v4931_v47 }
0x1a18   : > { %v12172_v5 = vpop.eup %9086  ;;  %9106 = vpow2.f32 %v5352_v58  ;;  %v5304_v39 = vmul.f32 1.442695, %v5238_v25  ;;  %v5043_v8 = vrot.slane %v12159_v56, %v12164_v21  ;;  %v5266_v20 = vsub.f32 %v11849_v41, %v5039_v4 }
0x1a19   : > { %v12175_v50 = vpop.eup %9088  ;;  %5541 = vperm.xlu1 %8433, %v12172_v5   ;;  %9108 = vpow2.f32 %v5354_v11  ;;  %v5358_v22 = vmul.f32 1.442695, %v5265_v51  ;;  %v4939_v27 = vrot.slane %v12161_v28, %v12150_v29  ;;  %v5240_v45 = vsub.f32 %v11834_v24, %v4935_v7 }
0x1a1a   : > { %5544 = vperm.xlu0 %8434, %v12175_v50   ;;  %v12184_v43 = vpop.eup %9090  ;;  %9110 = vpow2.f32 %v5302_v33  ;;  %v5306_v58 = vmul.f32 1.442695, %v5239_v44  ;;  %v5267_v41 = vsub.f32 %v11933_v55, %v5043_v8  ;;  %v5360_v12 = vmul.f32 1.442695, %v5266_v20 }
0x1a1b   : > { %v12193_v0 = vpop.eup %9092  ;;  %9112 = vpow2.f32 %v5356_v61  ;;  %v5241_v11 = vsub.f32 %v11874_v53, %v4939_v27  ;;  %v5308_v24 = vmul.f32 1.442695, %v5240_v45  ;;  %v4967_v47 = vrot.slane %v12237_v2, %v12143_v13 }
0x1a1c   : > { %v12202_v40 = vpop.eup %9094  ;;  %9114 = vpow2.f32 %v5304_v39  ;;  %v4943_v33 = vrot.slane %v12161_v28, %v12155_v10  ;;  %v5362_v55 = vmul.f32 1.442695, %v5267_v41  ;;  %v4971_v51 = vrot.slane %v12237_v2, %v12150_v29 }
0x1a1d   : > { %5547 = vperm.xlu1 %8433, %v12184_v43   ;;  %v12211_v30 = vpop.eup %9096  ;;  %9116 = vpow2.f32 %v5358_v22  ;;  %v5310_v53 = vmul.f32 1.442695, %v5241_v11  ;;  %v5248_v61 = vsub.f32 %v11836_v62, %v4967_v47  ;;  %v4947_v44 = vrot.slane %v12161_v28, %v12164_v21 }
0x1a1e   : > { %v12213_v31 = vpop.eup %9098  ;;  %9118 = vpow2.f32 %v5306_v58  ;;  %v5242_v39 = vsub.f32 %v11900_v49, %v4943_v33  ;;  %v4975_v20 = vrot.slane %v12237_v2, %v12155_v10  ;;  %v5249_v62 = vsub.f32 %v11879_v9, %v4971_v51  ;;  %v13329_v51 = vld [vmem:[#allocation31_spill] sm:$0xff] }
0x1a1f   : > { %5493 = vperm.xlu0 %8434, %v12213_v31   ;;  %v12223_v35 = vpop.eup %9100  ;;  %9120 = vpow2.f32 %v5360_v12  ;;  %v5324_v22 = vmul.f32 1.442695, %v5248_v61  ;;  %v5015_v28 = vrot.slane %v12159_v56, %v11288_v46  ;;  %v5243_v49 = vsub.f32 %v11949_v42, %v4947_v44 }
0x1a20   : > { %v12225_v1 = vpop.eup %9102  ;;  %9122 = vpow2.f32 %v5308_v24  ;;  %v5312_v45 = vmul.f32 1.442695, %v5242_v39  ;;  %v4979_v41 = vrot.slane %v12237_v2, %v12164_v21  ;;  %v5250_v9 = vsub.f32 %v11910_v36, %v4975_v20  ;;  %v13330_v39 = vld [vmem:[#allocation32_spill] sm:$0xff] }
0x1a21   : > { %5550 = vperm.xlu1 %8433, %v12193_v0   ;;  %v12235_v16 = vpop.eup %9104  ;;  %9124 = vpow2.f32 %v5362_v55  ;;  %v5326_v12 = vmul.f32 1.442695, %v5249_v62  ;;  %v5260_v56 = vsub.f32 %v11810_v18, %v5015_v28  ;;  %v5314_v42 = vmul.f32 1.442695, %v5243_v49 }
0x1a22   : > { %v12239_v60 = vpop.eup %9106  ;;  %9126 = vpow2.f32 %v5310_v53  ;;  %v4951_v24 = vrot.slane %v12237_v2, %v11288_v46  ;;  %v4955_v36 = vrot.slane %v12237_v2, %v12131_v34  ;;  %v5251_v33 = vsub.f32 %v11956_v52, %v4979_v41 }
0x1a23   : > { %5568 = vperm.xlu0 %8434, %v12225_v1   ;;  %v12247_v25 = vpop.eup %9108  ;;  %9128 = vpow2.f32 %v5324_v22  ;;  %v5328_v55 = vmul.f32 1.442695, %v5250_v9  ;;  %v5348_v18 = vmul.f32 1.442695, %v5260_v56  ;;  %v4959_v52 = vrot.slane %v12237_v2, %v12134_v63 }
0x1a24   : > { %v12251_v4 = vpop.eup %9110  ;;  %9130 = vpow2.f32 %v5312_v45  ;;  %v5244_v61 = vsub.f32 %v13329_v51, %v4951_v24  ;;  %v5245_v20 = vsub.f32 %v13330_v39, %v4955_v36  ;;  %v5330_v62 = vmul.f32 1.442695, %v5251_v33  ;;  %v13333_v24 = vld [vmem:[#allocation33_spill] sm:$0xff]  ;;  %v13336_v51 = vld [vmem:[#allocation28_spill] sm:$0xff] }
0x1a25   : > { %5553 = vperm.xlu1 %8433, %v12202_v40   ;;  %v12258_v7 = vpop.eup %9112  ;;  %9132 = vpow2.f32 %v5326_v12  ;;  %v13332_v12 = vld [vmem:[#allocation35_spill] sm:$0xff]  ;;  %v5246_v36 = vsub.f32 %v13333_v24, %v4959_v52 }
0x1a26   : > { %v12263_v8 = vpop.eup %9114  ;;  %9134 = vpow2.f32 %v5314_v42  ;;  %v5316_v22 = vmul.f32 1.442695, %v5244_v61  ;;  %v5318_v9 = vmul.f32 1.442695, %v5245_v20  ;;  %v4963_v42 = vrot.slane %v12237_v2, %v12137_v19 }
0x1a27   : > { %5571 = vperm.xlu0 %8434, %v12239_v60   ;;  %v12270_v27 = vpop.eup %9116  ;;  %9136 = vpow2.f32 %v5328_v55  ;;  %v5320_v39 = vmul.f32 1.442695, %v5246_v36 }
0x1a28   : > { %v12275_v58 = vpop.eup %9118  ;;  %9138 = vpow2.f32 %v5348_v18  ;;  %v5247_v61 = vsub.f32 %v13336_v51, %v4963_v42 }
0x1a29   : > { %5556 = vperm.xlu1 %8433, %v12211_v30   ;;  %v12282_v11 = vpop.eup %9120  ;;  %9140 = vpow2.f32 %v5330_v62 }
0x1a2a   : > { %v12287_v47 = vpop.eup %9122  ;;  %9142 = vpow2.f32 %v5316_v22  ;;  %v5322_v22 = vmul.f32 1.442695, %v5247_v61 }
0x1a2b   : > { %5574 = vperm.xlu0 %8434, %v12247_v25   ;;  %v12294_v53 = vpop.eup %9124  ;;  %9144 = vpow2.f32 %v5318_v9 }
0x1a2c   : > { %13328 = vst [vmem:[#allocation53_spill] sm:$0xff] %v12294_v53  ;;  %v12297_v44 = vpop.eup %9126 }
0x1a2d   : > { %5559 = vperm.xlu1 %8433, %v12223_v35   ;;  %v12306_v49 = vpop.eup %9128 }
0x1a2e   : > { %13331 = vst [vmem:[#allocation31_spill] sm:$0xff] %v12306_v49  ;;  %v12310_v41 = vpop.eup %9130 }
0x1a2f   : > { %5577 = vperm.xlu0 %8434, %v12258_v7   ;;  %v12318_v33 = vpop.eup %9132 }
0x1a30   : > { %13334 = vst [vmem:[#allocation32_spill] sm:$0xff] %v12318_v33  ;;  %v12320_v18 = vpop.eup %9134 }
0x1a31   : > { %5562 = vperm.xlu1 %8433, %v12235_v16   ;;  %13335 = vst [vmem:[#allocation35_spill] sm:$0xff] %v12320_v18  ;;  %v12327_v2 = vpop.eup %9136 }
0x1a32   : > { %13337 = vst [vmem:[#allocation33_spill] sm:$0xff] %v12327_v2  ;;  %v12329_v62 = vpop.eup %9138 }
0x1a33   : > { %5580 = vperm.xlu0 %8434, %v12270_v27   ;;  %13338 = vst [vmem:[#allocation28_spill] sm:$0xff] %v12329_v62 }
0x1a35   : > { %5496 = vperm.xlu1 %8433, %v12251_v4  }
0x1a37   : > { %5583 = vperm.xlu0 %8434, %v12282_v11  }
0x1a39   : > { %5499 = vperm.xlu1 %8433, %v12263_v8  }
0x1a3b   : > { %5586 = vperm.xlu0 %8434, %v12294_v53  }
0x1a3d   : > { %5502 = vperm.xlu1 %8433, %v12275_v58  }
0x1a3f   : > { %5529 = vperm.xlu0 %8434, %v12306_v49  }
0x1a41   : > { %5505 = vperm.xlu1 %8433, %v12287_v47  }
0x1a43   : > { %5532 = vperm.xlu0 %8434, %v12318_v33  }
0x1a45   : > { %5508 = vperm.xlu1 %8433, %v12297_v44  }
0x1a47   : > { %v12304_v28 = vpop.xlane.xlu0 %4903  ;;  %5535 = vperm.xlu0 %8434, %v12327_v2  }
0x1a48   : > { %v5115_v45 = vrot.slane %v12304_v28, %v12131_v34  ;;  %v5111_v20 = vrot.slane %v12304_v28, %v11288_v46  ;;  %v5119_v52 = vrot.slane %v12304_v28, %v12134_v63  ;;  %v12340_v42 = vpop.xlane.xlu1 %4906  ;;  %v5123_v36 = vrot.slane %v12304_v28, %v12137_v19 }
0x1a49   : > { %5511 = vperm.xlu1 %8433, %v12310_v41   ;;  %v5127_v49 = vrot.slane %v12304_v28, %v12143_v13 }
0x1a4a   : > { %v5285_v56 = vsub.f32 %v13332_v12, %v5115_v45  ;;  %v13339_v45 = vld [vmem:[#allocation34_spill] sm:$0xff] }
0x1a4b   : > { %v5284_v9 = vsub.f32 %v13339_v45, %v5111_v20  ;;  %v12336_v12 = vpop.xlane.xlu0 %4897  ;;  %v5147_v20 = vrot.slane %v12340_v42, %v12131_v34 }
0x1a4c   : > { %v5398_v55 = vmul.f32 1.442695, %v5285_v56  ;;  %v12338_v56 = vpop.eup %9140  ;;  %v5051_v61 = vrot.slane %v12336_v12, %v12131_v34 }
0x1a4d   : > { %5514 = vperm.xlu1 %8433, %v12320_v18   ;;  %13340 = vst [vmem:[#allocation34_spill] sm:$0xff] %v12338_v56  ;;  %v12342_v24 = vpop.eup %9142  ;;  %5538 = vperm.xlu0 %8434, %v12338_v56   ;;  %v13344_v56 = vld [vmem:[#allocation37_spill] sm:$0xff] }
0x1a4e   : > { %9146 = vpow2.f32 %v5398_v55  ;;  %13341 = vst [vmem:[#allocation54_spill] sm:$0xff] %v12342_v24  ;;  %v13342_v55 = vld [vmem:[#allocation40_spill] sm:$0xff]  ;;  %v12353_v45 = vpop.eup %9144  ;;  %v5269_v33 = vsub.f32 %v13344_v56, %v5051_v61  ;;  %v5131_v56 = vrot.slane %v12304_v28, %v12150_v29  ;;  %v5288_v61 = vsub.f32 %v11986_v32, %v5127_v49 }
0x1a4f   : > { %9148 = vpow2.f32 %v5320_v39  ;;  %v5286_v51 = vsub.f32 %v13342_v55, %v5119_v52  ;;  %v5396_v39 = vmul.f32 1.442695, %v5284_v9  ;;  %v13345_v52 = vld [vmem:[#allocation47_spill] sm:$0xff]  ;;  %v5159_v49 = vrot.slane %v12340_v42, %v12143_v13 }
0x1a50   : > { %9150 = vpow2.f32 %v5322_v22  ;;  %v5287_v55 = vsub.f32 %v13345_v52, %v5123_v36  ;;  %v5151_v22 = vrot.slane %v12340_v42, %v12134_v63  ;;  %v13346_v9 = vld [vmem:[#allocation39_spill] sm:$0xff]  ;;  %v5366_v18 = vmul.f32 1.442695, %v5269_v33 }
0x1a51   : > { %5565 = vperm.xlu1 %8433, %v12329_v62   ;;  %v5400_v62 = vmul.f32 1.442695, %v5286_v51  ;;  %9152 = vpow2.f32 %v5396_v39  ;;  %v5155_v51 = vrot.slane %v12340_v42, %v12137_v19  ;;  %v13348_v39 = vld [vmem:[#allocation41_spill] sm:$0xff]  ;;  %v5135_v33 = vrot.slane %v12304_v28, %v12155_v10 }
0x1a52   : > { %v5402_v36 = vmul.f32 1.442695, %v5287_v55  ;;  %v5294_v52 = vsub.f32 %v13348_v39, %v5151_v22  ;;  %v5404_v32 = vmul.f32 1.442695, %v5288_v61  ;;  %v13350_v39 = vld [vmem:[#allocation50_spill] sm:$0xff] }
0x1a53   : > { %9154 = vpow2.f32 %v5400_v62  ;;  %v13349_v62 = vld [vmem:[#allocation48_spill] sm:$0xff]  ;;  %v13351_v61 = vld [vmem:[#allocation42_spill] sm:$0xff] }
0x1a54   : > { %9156 = vpow2.f32 %v5366_v18  ;;  %v5295_v55 = vsub.f32 %v13349_v62, %v5155_v51  ;;  %v5416_v22 = vmul.f32 1.442695, %v5294_v52  ;;  %v5139_v18 = vrot.slane %v12304_v28, %v12164_v21 }
0x1a55   : > { %5517 = vperm.xlu1 %8433, %v12342_v24   ;;  %v5293_v24 = vsub.f32 %v13346_v9, %v5147_v20  ;;  %v5289_v9 = vsub.f32 %v12006_v57, %v5131_v56  ;;  %9158 = vpow2.f32 %v5402_v36  ;;  %v5163_v56 = vrot.slane %v12340_v42, %v12150_v29 }
0x1a56   : > { %v5296_v36 = vsub.f32 %v13351_v61, %v5159_v49  ;;  %v5418_v51 = vmul.f32 1.442695, %v5295_v55  ;;  %v5291_v62 = vsub.f32 %v12084_v14, %v5139_v18  ;;  %v5047_v55 = vrot.slane %v12336_v12, %v11288_v46  ;;  %v13355_v61 = vld [vmem:[#allocation36_spill] sm:$0xff] }
0x1a57   : > { %v5406_v57 = vmul.f32 1.442695, %v5289_v9  ;;  %v13353_v9 = vld [vmem:[#allocation49_spill] sm:$0xff] }
0x1a58   : > { %v12355_v2 = vpop.eup %9146  ;;  %v5420_v49 = vmul.f32 1.442695, %v5296_v36  ;;  %v5410_v14 = vmul.f32 1.442695, %v5291_v62  ;;  %v5268_v36 = vsub.f32 %v13355_v61, %v5047_v55 }
0x1a59   : > { %13343 = vst [vmem:[#allocation40_spill] sm:$0xff] %v12355_v2  ;;  %5520 = vperm.xlu1 %8433, %v12353_v45   ;;  %5640 = vperm.xlu0 %8434, %v12355_v2   ;;  %v12366_v53 = vpop.eup %9148  ;;  %v5414_v2 = vmul.f32 1.442695, %v5293_v24 }
0x1a5a   : > { %13347 = vst [vmem:[#allocation37_spill] sm:$0xff] %v12366_v53  ;;  %v12375_v20 = vpop.eup %9150  ;;  %v5364_v55 = vmul.f32 1.442695, %v5268_v36  ;;  %v13362_v36 = vld [vmem:[#allocation44_spill] sm:$0xff] }
0x1a5b   : > { %9160 = vpow2.f32 %v5414_v2  ;;  %v12384_v24 = vpop.eup %9152 }
0x1a5c   : > { %9162 = vpow2.f32 %v5404_v32  ;;  %v5297_v32 = vsub.f32 %v13353_v9, %v5163_v56  ;;  %v5055_v56 = vrot.slane %v12336_v12, %v12134_v63  ;;  %v5059_v9 = vrot.slane %v12336_v12, %v12137_v19 }
0x1a5d   : > { %5523 = vperm.xlu1 %8433, %v12366_v53   ;;  %v5290_v53 = vsub.f32 %v13350_v39, %v5135_v33  ;;  %9164 = vpow2.f32 %v5416_v22  ;;  %v12393_v2 = vpop.eup %9154  ;;  %v5167_v33 = vrot.slane %v12340_v42, %v12155_v10 }
0x1a5e   : > { %v12395_v52 = vpop.eup %9156  ;;  %9166 = vpow2.f32 %v5406_v57  ;;  %v5422_v57 = vmul.f32 1.442695, %v5297_v32  ;;  %v13358_v32 = vld [vmem:[#allocation45_spill] sm:$0xff] }
0x1a5f   : > { %13352 = vst [vmem:[#allocation47_spill] sm:$0xff] %v12395_v52  ;;  %v5408_v28 = vmul.f32 1.442695, %v5290_v53  ;;  %5592 = vperm.xlu0 %8434, %v12395_v52   ;;  %9168 = vpow2.f32 %v5418_v51  ;;  %v12405_v22 = vpop.eup %9158  ;;  %v5171_v53 = vrot.slane %v12340_v42, %v12164_v21  ;;  %v5298_v18 = vsub.f32 %v12012_v17, %v5167_v33 }
0x1a61   : > { %5526 = vperm.xlu1 %8433, %v12375_v20   ;;  %9170 = vpow2.f32 %v5408_v28  ;;  %v12419_v28 = vpop.xlane.xlu1 %4900  ;;  %v5299_v17 = vsub.f32 %v12093_v3, %v5171_v53  ;;  %v5424_v33 = vmul.f32 1.442695, %v5298_v18  ;;  %v5063_v53 = vrot.slane %v12336_v12, %v12143_v13  ;;  %v13361_v18 = vld [vmem:[#allocation51_spill] sm:$0xff] }
0x1a62   : > { %9172 = vpow2.f32 %v5420_v49  ;;  %v5270_v49 = vsub.f32 %v13358_v32, %v5055_v56  ;;  %v5083_v61 = vrot.slane %v12419_v28, %v12131_v34  ;;  %v5087_v56 = vrot.slane %v12419_v28, %v12134_v63 }
0x1a63   : > { %9174 = vpow2.f32 %v5410_v14  ;;  %v5426_v3 = vmul.f32 1.442695, %v5299_v17  ;;  %v5067_v17 = vrot.slane %v12336_v12, %v12150_v29 }
0x1a64   : > { %9176 = vpow2.f32 %v5422_v57  ;;  %v5368_v57 = vmul.f32 1.442695, %v5270_v49  ;;  %v5277_v32 = vsub.f32 %v13362_v36, %v5083_v61  ;;  %v5091_v49 = vrot.slane %v12419_v28, %v12137_v19 }
0x1a65   : > { %5637 = vperm.xlu1 %8433, %v12384_v24   ;;  %v12407_v39 = vpop.eup %9160  ;;  %9178 = vpow2.f32 %v5424_v33 }
0x1a66   : > { %13354 = vst [vmem:[#allocation39_spill] sm:$0xff] %v12407_v39  ;;  %5664 = vperm.xlu0 %8434, %v12407_v39   ;;  %v12417_v51 = vpop.eup %9162  ;;  %9180 = vpow2.f32 %v5364_v55  ;;  %v13365_v55 = vld [vmem:[#allocation46_spill] sm:$0xff]  ;;  %v5382_v36 = vmul.f32 1.442695, %v5277_v32 }
0x1a67   : > { %13356 = vst [vmem:[#allocation41_spill] sm:$0xff] %v12417_v51  ;;  %v12421_v62 = vpop.eup %9164  ;;  %9182 = vpow2.f32 %v5426_v3  ;;  %v5278_v61 = vsub.f32 %v13365_v55, %v5087_v56 }
0x1a68   : > { %13357 = vst [vmem:[#allocation48_spill] sm:$0xff] %v12421_v62  ;;  %v12431_v39 = vpop.eup %9166  ;;  %9184 = vpow2.f32 %v5368_v57  ;;  %v5279_v57 = vsub.f32 %v12020_v37, %v5091_v49  ;;  %v5099_v37 = vrot.slane %v12419_v28, %v12150_v29 }
0x1a69   : > { %5643 = vperm.xlu1 %8433, %v12393_v2   ;;  %13359 = vst [vmem:[#allocation50_spill] sm:$0xff] %v12431_v39  ;;  %v12433_v14 = vpop.eup %9168  ;;  %v5384_v56 = vmul.f32 1.442695, %v5278_v61 }
0x1a6a   : > { %5667 = vperm.xlu0 %8434, %v12421_v62   ;;  %13360 = vst [vmem:[#allocation42_spill] sm:$0xff] %v12433_v14  ;;  %v5271_v62 = vsub.f32 %v13361_v18, %v5059_v9  ;;  %v5272_v9 = vsub.f32 %v11998_v54, %v5063_v53  ;;  %v5273_v54 = vsub.f32 %v12034_v48, %v5067_v17  ;;  %v5386_v49 = vmul.f32 1.442695, %v5279_v57 }
0x1a6b   : > { %v12443_v52 = vpop.eup %9170  ;;  %v5095_v53 = vrot.slane %v12419_v28, %v12143_v13  ;;  %v5075_v48 = vrot.slane %v12336_v12, %v12164_v21 }
0x1a6c   : > { %13363 = vst [vmem:[#allocation49_spill] sm:$0xff] %v12443_v52  ;;  %v12445_v33 = vpop.eup %9172  ;;  %v5370_v18 = vmul.f32 1.442695, %v5271_v62  ;;  %v5372_v62 = vmul.f32 1.442695, %v5272_v9 }
0x1a6d   : > { %5646 = vperm.xlu1 %8433, %v12405_v22   ;;  %13364 = vst [vmem:[#allocation36_spill] sm:$0xff] %v12445_v33  ;;  %v5374_v9 = vmul.f32 1.442695, %v5273_v54  ;;  %v5281_v54 = vsub.f32 %v12039_v38, %v5099_v37  ;;  %v5107_v38 = vrot.slane %v12419_v28, %v12164_v21 }
0x1a6e   : > { %5670 = vperm.xlu0 %8434, %v12433_v14   ;;  %v5071_v14 = vrot.slane %v12336_v12, %v12155_v10  ;;  %9186 = vpow2.f32 %v5370_v18  ;;  %v5280_v18 = vsub.f32 %v12000_v23, %v5095_v53  ;;  %v5275_v12 = vsub.f32 %v12109_v15, %v5075_v48 }
0x1a6f   : > { %9188 = vpow2.f32 %v5382_v36  ;;  %v5103_v23 = vrot.slane %v12419_v28, %v12155_v10  ;;  %v5079_v48 = vrot.slane %v12419_v28, %v11288_v46  ;;  %v5390_v37 = vmul.f32 1.442695, %v5281_v54 }
0x1a70   : > { %v5274_v17 = vsub.f32 %v12060_v26, %v5071_v14  ;;  %9190 = vpow2.f32 %v5372_v62  ;;  %v5143_v26 = vrot.slane %v12340_v42, %v11288_v46  ;;  %v5388_v62 = vmul.f32 1.442695, %v5280_v18  ;;  %v13374_v42 = vld [vmem:[#allocation38_spill] sm:$0xff] }
0x1a71   : > { %5649 = vperm.xlu1 %8433, %v12417_v51   ;;  %9192 = vpow2.f32 %v5384_v56  ;;  %v5378_v15 = vmul.f32 1.442695, %v5275_v12  ;;  %v13378_v12 = vld [vmem:[#allocation43_spill] sm:$0xff] }
0x1a72   : > { %5673 = vperm.xlu0 %8434, %v12445_v33   ;;  %9194 = vpow2.f32 %v5374_v9  ;;  %v5376_v14 = vmul.f32 1.442695, %v5274_v17  ;;  %v5292_v56 = vsub.f32 %v13374_v42, %v5143_v26  ;;  %v13375_v17 = vld [vmem:[#allocation52_spill] sm:$0xff]  ;;  %v5283_v42 = vsub.f32 %v12116_v59, %v5107_v38 }
0x1a73   : > { %9196 = vpow2.f32 %v5386_v49  ;;  %v5282_v9 = vsub.f32 %v13375_v17, %v5103_v23 }
0x1a74   : > { %9198 = vpow2.f32 %v5376_v14  ;;  %v5412_v26 = vmul.f32 1.442695, %v5292_v56  ;;  %v5276_v14 = vsub.f32 %v13378_v12, %v5079_v48 }
0x1a75   : > { %5652 = vperm.xlu1 %8433, %v12431_v39   ;;  %v12455_v39 = vpop.eup %9174  ;;  %9200 = vpow2.f32 %v5388_v62  ;;  %v5392_v28 = vmul.f32 1.442695, %v5282_v9  ;;  %v5394_v62 = vmul.f32 1.442695, %v5283_v42 }
0x1a76   : > { %13366 = vst [vmem:[#allocation45_spill] sm:$0xff] %v12455_v39  ;;  %v12457_v3 = vpop.eup %9176  ;;  %9202 = vpow2.f32 %v5378_v15  ;;  %v5380_v54 = vmul.f32 1.442695, %v5276_v14 }
0x1a77   : > { %13367 = vst [vmem:[#allocation51_spill] sm:$0xff] %v12457_v3  ;;  %5676 = vperm.xlu0 %8434, %v12457_v3   ;;  %v12467_v32 = vpop.eup %9178  ;;  %9204 = vpow2.f32 %v5390_v37 }
0x1a78   : > { %13368 = vst [vmem:[#allocation44_spill] sm:$0xff] %v12467_v32  ;;  %v12469_v55 = vpop.eup %9180  ;;  %9206 = vpow2.f32 %v5412_v26 }
0x1a79   : > { %5655 = vperm.xlu1 %8433, %v12443_v52   ;;  %13369 = vst [vmem:[#allocation46_spill] sm:$0xff] %v12469_v55  ;;  %v12479_v61 = vpop.eup %9182  ;;  %9208 = vpow2.f32 %v5392_v28 }
0x1a7a   : > { %13370 = vst [vmem:[#allocation55_spill] sm:$0xff] %v12479_v61  ;;  %v12481_v36 = vpop.eup %9184  ;;  %9210 = vpow2.f32 %v5380_v54 }
0x1a7b   : > { %5679 = vperm.xlu0 %8434, %v12467_v32   ;;  %13371 = vst [vmem:[#allocation56_spill] sm:$0xff] %v12481_v36  ;;  %v12491_v53 = vpop.eup %9186  ;;  %9212 = vpow2.f32 %v5394_v62 }
0x1a7c   : > { %13372 = vst [vmem:[#allocation57_spill] sm:$0xff] %v12491_v53  ;;  %v12493_v57 = vpop.eup %9188 }
0x1a7d   : > { %5658 = vperm.xlu1 %8433, %v12455_v39   ;;  %13373 = vst [vmem:[#allocation58_spill] sm:$0xff] %v12493_v57  ;;  %v12503_v18 = vpop.eup %9190 }
0x1a7e   : > { %13376 = vst [vmem:[#allocation38_spill] sm:$0xff] %v12503_v18  ;;  %v12505_v49 = vpop.eup %9192 }
0x1a7f   : > { %5682 = vperm.xlu0 %8434, %v12479_v61   ;;  %13377 = vst [vmem:[#allocation52_spill] sm:$0xff] %v12505_v49  ;;  %v12511_v61 = vpop.eup %9194 }
0x1a80   : > { %13379 = vst [vmem:[#allocation43_spill] sm:$0xff] %v12511_v61  ;;  %v12513_v23 = vpop.eup %9196 }
0x1a81   : > { %5589 = vperm.xlu1 %8433, %v12469_v55   ;;  %13380 = vst [vmem:[#allocation59_spill] sm:$0xff] %v12513_v23  ;;  %v12517_v56 = vpop.eup %9198 }
0x1a82   : > { %13381 = vst [vmem:[#allocation60_spill] sm:$0xff] %v12517_v56  ;;  %v12519_v15 = vpop.eup %9200 }
0x1a83   : > { %5616 = vperm.xlu0 %8434, %v12493_v57   ;;  %13382 = vst [vmem:[#allocation61_spill] sm:$0xff] %v12519_v15  ;;  %v12523_v59 = vpop.eup %9202 }
0x1a84   : > { %13383 = vst [vmem:[#allocation62_spill] sm:$0xff] %v12523_v59  ;;  %v12525_v38 = vpop.eup %9204 }
0x1a85   : > { %5595 = vperm.xlu1 %8433, %v12481_v36   ;;  %13384 = vst [vmem:[#allocation63_spill] sm:$0xff] %v12525_v38  ;;  %v12529_v17 = vpop.eup %9206 }
0x1a86   : > { %13385 = vst [vmem:[#allocation64_spill] sm:$0xff] %v12529_v17  ;;  %v12531_v37 = vpop.eup %9208 }
0x1a87   : > { %5619 = vperm.xlu0 %8434, %v12505_v49   ;;  %13386 = vst [vmem:[#allocation65_spill] sm:$0xff] %v12531_v37  ;;  %v12535_v26 = vpop.eup %9210 }
0x1a88   : > { %13387 = vst [vmem:[#allocation66_spill] sm:$0xff] %v12535_v26  ;;  %v12537_v14 = vpop.eup %9212 }
0x1a89   : > { %5598 = vperm.xlu1 %8433, %v12491_v53   ;;  %13388 = vst [vmem:[#allocation67_spill] sm:$0xff] %v12537_v14 }
0x1a8b   : > { %5622 = vperm.xlu0 %8434, %v12513_v23  }
0x1a8d   : > { %5601 = vperm.xlu1 %8433, %v12503_v18  }
0x1a8f   : > { %5625 = vperm.xlu0 %8434, %v12519_v15  }
0x1a91   : > { %5604 = vperm.xlu1 %8433, %v12511_v61  }
0x1a93   : > { %5628 = vperm.xlu0 %8434, %v12525_v38  }
0x1a95   : > { %5607 = vperm.xlu1 %8433, %v12517_v56  }
0x1a97   : > { %5631 = vperm.xlu0 %8434, %v12531_v37  }
0x1a98   : > { %v5542_v48 = vpop.permute.xlu1 %5541 }
0x1a99   : > { %5610 = vperm.xlu1 %8433, %v12523_v59   ;;  %v5545_v42 = vpop.permute.xlu0 %5544  ;;  %v5751_v37 = vrot.slane %v5542_v48, %v11852_v6 }
0x1a9a   : > { %v5755_v23 = vrot.slane %v5545_v42, %v11852_v6 }
0x1a9b   : > { %5634 = vperm.xlu0 %8434, %v12537_v14  }
0x1a9c   : > { %v5548_v9 = vpop.permute.xlu1 %5547 }
0x1a9d   : > { %5661 = vperm.xlu1 %8433, %v12529_v17   ;;  %v5759_v49 = vrot.slane %v5548_v9, %v11852_v6 }
0x1a9e   : > { %v5494_v54 = vpop.permute.xlu0 %5493 }
0x1aa0   : > { %v5551_v12 = vpop.permute.xlu1 %5550 }
0x1aa1   : > { %5613 = vperm.xlu1 %8433, %v12535_v26   ;;  %v5763_v57 = vrot.slane %v5551_v12, %v11852_v6  ;;  %v5954_v26 = vsel %vm924_vm2, %v5755_v23, %v5751_v37 }
0x1aa2   : > { %v5569_v39 = vpop.permute.xlu0 %5568  ;;  %v5955_v3 = vsel %vm927_vm3, %v5759_v49, %v5954_v26 }
0x1aa3   : > { %v5956_v48 = vsel %vm930_vm4, %v5763_v57, %v5955_v3 }
0x1aa4   : > { %v5554_v28 = vpop.permute.xlu1 %5553 }
0x1aa5   : > { %v5767_v14 = vrot.slane %v5554_v28, %v11852_v6 }
0x1aa6   : > { %v5572_v15 = vpop.permute.xlu0 %5571 }
0x1aa7   : > { %v5957_v9 = vsel %vm933_vm5, %v5767_v14, %v5956_v48  ;;  %v5687_v48 = vrot.slane %v5494_v54, %v11852_v6 }
0x1aa8   : > { %v5557_v62 = vpop.permute.xlu1 %5556 }
0x1aa9   : > { %v5771_v59 = vrot.slane %v5557_v62, %v11852_v6 }
0x1aaa   : > { %v5575_v17 = vpop.permute.xlu0 %5574 }
0x1aab   : > { %v5958_v28 = vsel %vm936_vm6, %v5771_v59, %v5957_v9 }
0x1aac   : > { %v5560_v38 = vpop.permute.xlu1 %5559 }
0x1aad   : > { %v5775_v56 = vrot.slane %v5560_v38, %v11852_v6 }
0x1aae   : > { %v5578_v33 = vpop.permute.xlu0 %5577 }
0x1aaf   : > { %v5959_v61 = vsel %vm939_vm7, %v5775_v56, %v5958_v28 }
0x1ab0   : > { %v5563_v52 = vpop.permute.xlu1 %5562 }
0x1ab1   : > { %v5779_v42 = vrot.slane %v5563_v52, %v11852_v6 }
0x1ab2   : > { %v5581_v37 = vpop.permute.xlu0 %5580 }
0x1ab3   : > { %v5960_v23 = vsel %vm942_vm8, %v5779_v42, %v5959_v61 }
0x1ab4   : > { %v5497_v32 = vpop.permute.xlu1 %5496  ;;  %v6010_v49 = vsel %vm4883_vm10, %v5960_v23, 0.0 }
0x1ab5   : > { %v5691_v52 = vrot.slane %v5497_v32, %v11852_v6 }
0x1ab6   : > { %v5584_v38 = vpop.permute.xlu0 %5583 }
0x1ab7   : > { %v5940_v42 = vsel %vm924_vm2, %v5691_v52, %v5687_v48 }
0x1ab8   : > { %v5500_v12 = vpop.permute.xlu1 %5499 }
0x1ab9   : > { %v5695_v57 = vrot.slane %v5500_v12, %v11852_v6 }
0x1aba   : > { %6011 = vadd.xlane.f32.xlu0 %v6010_v49  ;;  %v5587_v14 = vpop.permute.xlu0 %5586 }
0x1abb   : > { %v5941_v28 = vsel %vm927_vm3, %v5695_v57, %v5940_v42  ;;  %v5787_v57 = vrot.slane %v5569_v39, %v11852_v6  ;;  %v5795_v42 = vrot.slane %v5575_v17, %v11852_v6  ;;  %v5807_v39 = vrot.slane %v5584_v38, %v11852_v6 }
0x1abc   : > { %v5503_v62 = vpop.permute.xlu1 %5502 }
0x1abd   : > { %v5699_v59 = vrot.slane %v5503_v62, %v11852_v6 }
0x1abe   : > { %v5530_v49 = vpop.permute.xlu0 %5529 }
0x1abf   : > { %v5942_v32 = vsel %vm930_vm4, %v5699_v59, %v5941_v28  ;;  %v5791_v59 = vrot.slane %v5572_v15, %v11852_v6  ;;  %v5811_v15 = vrot.slane %v5587_v14, %v11852_v6 }
0x1ac0   : > { %v5506_v26 = vpop.permute.xlu1 %5505 }
0x1ac1   : > { %v5703_v56 = vrot.slane %v5506_v26, %v11852_v6 }
0x1ac3   : > { %v5943_v12 = vsel %vm933_vm5, %v5703_v56, %v5942_v32  ;;  %v5533_v56 = vpop.permute.xlu0 %5532  ;;  %v5803_v32 = vrot.slane %v5581_v37, %v11852_v6 }
0x1ac4   : > { %v5509_v3 = vpop.permute.xlu1 %5508 }
0x1ac5   : > { %v5707_v9 = vrot.slane %v5509_v3, %v11852_v6 }
0x1ac7   : > { %v5944_v54 = vsel %vm936_vm6, %v5707_v9, %v5943_v12  ;;  %v5536_v17 = vpop.permute.xlu0 %5535 }
0x1ac8   : > { %v5512_v61 = vpop.permute.xlu1 %5511 }
0x1ac9   : > { %v5711_v23 = vrot.slane %v5512_v61, %v11852_v6 }
0x1acb   : > { %v5945_v26 = vsel %vm939_vm7, %v5711_v23, %v5944_v54 }
0x1acc   : > { %v5515_v18 = vpop.permute.xlu1 %5514 }
0x1acd   : > { %v5715_v62 = vrot.slane %v5515_v18, %v11852_v6  ;;  %v5799_v18 = vrot.slane %v5578_v33, %v11852_v6 }
0x1acf   : > { %v5946_v52 = vsel %vm942_vm8, %v5715_v62, %v5945_v26 }
0x1ad0   : > { %v5566_v48 = vpop.permute.xlu1 %5565  ;;  %v6004_v3 = vsel %vm4883_vm10, %v5946_v52, 0.0 }
0x1ad1   : > { %v5783_v61 = vrot.slane %v5566_v48, %v11852_v6  ;;  %6005 = vadd.xlane.f32.xlu1 %v6004_v3 }
0x1ad3   : > { %v5961_v9 = vsel %vm924_vm2, %v5787_v57, %v5783_v61  ;;  %v5539_v57 = vpop.permute.xlu0 %5538 }
0x1ad4   : > { %v5962_v28 = vsel %vm927_vm3, %v5791_v59, %v5961_v9  ;;  %v5518_v23 = vpop.permute.xlu1 %5517  ;;  %v5735_v9 = vrot.slane %v5530_v49, %v11852_v6 }
0x1ad5   : > { %v5963_v12 = vsel %vm930_vm4, %v5795_v42, %v5962_v28  ;;  %v5719_v61 = vrot.slane %v5518_v23, %v11852_v6  ;;  %v5747_v23 = vrot.slane %v5539_v57, %v11852_v6 }
0x1ad6   : > { %v5964_v54 = vsel %vm933_vm5, %v5799_v18, %v5963_v12 }
0x1ad7   : > { %v5965_v62 = vsel %vm936_vm6, %v5803_v32, %v5964_v54  ;;  %v5739_v32 = vrot.slane %v5533_v56, %v11852_v6 }
0x1ad8   : > { %v5521_v26 = vpop.permute.xlu1 %5520  ;;  %v5966_v52 = vsel %vm939_vm7, %v5807_v39, %v5965_v62  ;;  %v5641_v18 = vpop.permute.xlu0 %5640  ;;  %v5743_v39 = vrot.slane %v5536_v17, %v11852_v6 }
0x1ad9   : > { %v5967_v33 = vsel %vm942_vm8, %v5811_v15, %v5966_v52  ;;  %v5723_v3 = vrot.slane %v5521_v26, %v11852_v6 }
0x1ada   : > { %v6013_v48 = vsel %vm4883_vm10, %v5967_v33, 0.0 }
0x1adb   : > { %6014 = vadd.xlane.f32.xlu1 %v6013_v48  ;;  %v5947_v59 = vsel %vm924_vm2, %v5723_v3, %v5719_v61 }
0x1adc   : > { %v5524_v37 = vpop.permute.xlu1 %5523 }
0x1add   : > { %v5727_v38 = vrot.slane %v5524_v37, %v11852_v6 }
0x1ade   : > { %v5593_v52 = vpop.permute.xlu0 %5592 }
0x1adf   : > { %v5948_v28 = vsel %vm927_vm3, %v5727_v38, %v5947_v59  ;;  %v5883_v59 = vrot.slane %v5641_v18, %v11852_v6 }
0x1ae0   : > { %v5527_v14 = vpop.permute.xlu1 %5526 }
0x1ae1   : > { %v5731_v42 = vrot.slane %v5527_v14, %v11852_v6 }
0x1ae3   : > { %v5949_v12 = vsel %vm930_vm4, %v5731_v42, %v5948_v28 }
0x1ae4   : > { %v5950_v54 = vsel %vm933_vm5, %v5735_v9, %v5949_v12  ;;  %v5638_v15 = vpop.permute.xlu1 %5637 }
0x1ae5   : > { %v5951_v62 = vsel %vm936_vm6, %v5739_v32, %v5950_v54  ;;  %v12605_v56 = vpop.permute.xlu0 %5664  ;;  %v5879_v61 = vrot.slane %v5638_v15, %v11852_v6 }
0x1ae6   : > { %v5952_v26 = vsel %vm939_vm7, %v5743_v39, %v5951_v62 }
0x1ae7   : > { %v5953_v49 = vsel %vm942_vm8, %v5747_v23, %v5952_v26  ;;  %v5982_v12 = vsel %vm924_vm2, %v5883_v59, %v5879_v61 }
0x1ae8   : > { %v5644_v33 = vpop.permute.xlu1 %5643  ;;  %v6007_v48 = vsel %vm4883_vm10, %v5953_v49, 0.0 }
0x1ae9   : > { %6008 = vadd.xlane.f32.xlu0 %v6007_v48  ;;  %v12607_v17 = vpop.permute.xlu0 %5667  ;;  %v5887_v14 = vrot.slane %v5644_v33, %v11852_v6 }
0x1aeb   : > { %v5983_v54 = vsel %vm927_vm3, %v5887_v14, %v5982_v12 }
0x1aec   : > { %v5647_v37 = vpop.permute.xlu1 %5646 }
0x1aed   : > { %v12609_v38 = vpop.permute.xlu0 %5670  ;;  %v5891_v42 = vrot.slane %v5647_v37, %v11852_v6 }
0x1aef   : > { %v5984_v15 = vsel %vm930_vm4, %v5891_v42, %v5983_v54 }
0x1af0   : > { %v5650_v3 = vpop.permute.xlu1 %5649 }
0x1af1   : > { %v12615_v9 = vpop.permute.xlu0 %5673  ;;  %v5895_v28 = vrot.slane %v5650_v3, %v11852_v6 }
0x1af3   : > { %v5985_v62 = vsel %vm933_vm5, %v5895_v28, %v5984_v15 }
0x1af4   : > { %v5653_v57 = vpop.permute.xlu1 %5652 }
0x1af5   : > { %v5899_v39 = vrot.slane %v5653_v57, %v11852_v6 }
0x1af6   : > { %v5677_v18 = vpop.permute.xlu0 %5676 }
0x1af7   : > { %v5986_v49 = vsel %vm936_vm6, %v5899_v39, %v5985_v62 }
0x1af8   : > { %v5656_v32 = vpop.permute.xlu1 %5655 }
0x1af9   : > { %v5903_v23 = vrot.slane %v5656_v32, %v11852_v6 }
0x1afa   : > { %v5680_v3 = vpop.permute.xlu0 %5679 }
0x1afb   : > { %v5987_v48 = vsel %vm939_vm7, %v5903_v23, %v5986_v49  ;;  %v5819_v23 = vrot.slane %v5593_v52, %v11852_v6 }
0x1afc   : > { %v5659_v26 = vpop.permute.xlu1 %5658 }
0x1afd   : > { %v5907_v33 = vrot.slane %v5659_v26, %v11852_v6 }
0x1afe   : > { %v5683_v14 = vpop.permute.xlu0 %5682 }
0x1aff   : > { %v5988_v37 = vsel %vm942_vm8, %v5907_v33, %v5987_v48 }
0x1b00   : > { %v5590_v57 = vpop.permute.xlu1 %5589  ;;  %v6022_v61 = vsel %vm4883_vm10, %v5988_v37, 0.0 }
0x1b01   : > { %6023 = vadd.xlane.f32.xlu0 %v6022_v61  ;;  %v5815_v39 = vrot.slane %v5590_v57, %v11852_v6 }
0x1b02   : > { %v5617_v42 = vpop.permute.xlu0 %5616 }
0x1b03   : > { %v5968_v37 = vsel %vm924_vm2, %v5819_v23, %v5815_v39 }
0x1b04   : > { %v5596_v59 = vpop.permute.xlu1 %5595 }
0x1b05   : > { %v5823_v62 = vrot.slane %v5596_v59, %v11852_v6 }
0x1b06   : > { %v5620_v28 = vpop.permute.xlu0 %5619 }
0x1b07   : > { %v5969_v53 = vsel %vm927_vm3, %v5823_v62, %v5968_v37  ;;  %v5915_v62 = vrot.slane %v12605_v56, %v11852_v6  ;;  %v5931_v56 = vrot.slane %v5677_v18, %v11852_v6 }
0x1b08   : > { %v5599_v32 = vpop.permute.xlu1 %5598 }
0x1b09   : > { %v5827_v26 = vrot.slane %v5599_v32, %v11852_v6 }
0x1b0a   : > { %v5623_v54 = vpop.permute.xlu0 %5622 }
0x1b0b   : > { %v5970_v57 = vsel %vm930_vm4, %v5827_v26, %v5969_v53  ;;  %v5919_v26 = vrot.slane %v12607_v17, %v11852_v6 }
0x1b0c   : > { %v5602_v12 = vpop.permute.xlu1 %5601 }
0x1b0d   : > { %v5831_v33 = vrot.slane %v5602_v12, %v11852_v6 }
0x1b0e   : > { %v5626_v49 = vpop.permute.xlu0 %5625 }
0x1b0f   : > { %v5971_v59 = vsel %vm933_vm5, %v5831_v33, %v5970_v57  ;;  %v5851_v57 = vrot.slane %v5617_v42, %v11852_v6  ;;  %v5863_v42 = vrot.slane %v5626_v49, %v11852_v6 }
0x1b10   : > { %v5605_v15 = vpop.permute.xlu1 %5604 }
0x1b11   : > { %v5835_v61 = vrot.slane %v5605_v15, %v11852_v6 }
0x1b12   : > { %v5629_v55 = vpop.permute.xlu0 %5628 }
0x1b13   : > { %v5972_v32 = vsel %vm936_vm6, %v5835_v61, %v5971_v59 }
0x1b14   : > { %v5608_v48 = vpop.permute.xlu1 %5607 }
0x1b15   : > { %v5839_v36 = vrot.slane %v5608_v48, %v11852_v6  ;;  %v5923_v48 = vrot.slane %v12609_v38, %v11852_v6  ;;  %v5855_v38 = vrot.slane %v5620_v28, %v11852_v6 }
0x1b16   : > { %v5632_v33 = vpop.permute.xlu0 %5631 }
0x1b17   : > { %v5973_v12 = vsel %vm939_vm7, %v5839_v36, %v5972_v32 }
0x1b18   : > { %v5611_v52 = vpop.permute.xlu1 %5610 }
0x1b19   : > { %v5843_v51 = vrot.slane %v5611_v52, %v11852_v6  ;;  %v5935_v52 = vrot.slane %v5680_v3, %v11852_v6  ;;  %v5867_v3 = vrot.slane %v5629_v55, %v11852_v6 }
0x1b1b   : > { %v5974_v39 = vsel %vm942_vm8, %v5843_v51, %v5973_v12  ;;  %v5927_v51 = vrot.slane %v12615_v9, %v11852_v6  ;;  %v5939_v12 = vrot.slane %v5683_v14, %v11852_v6  ;;  %v5859_v9 = vrot.slane %v5623_v54, %v11852_v6 }
0x1b1c   : > { %v5662_v23 = vpop.permute.xlu1 %5661  ;;  %v6016_v15 = vsel %vm4883_vm10, %v5974_v39, 0.0  ;;  %v5871_v14 = vrot.slane %v5632_v33, %v11852_v6 }
0x1b1d   : > { %v5911_v53 = vrot.slane %v5662_v23, %v11852_v6  ;;  %6017 = vadd.xlane.f32.xlu0 %v6016_v15  ;;  %v5635_v23 = vpop.permute.xlu0 %5634 }
0x1b1f   : > { %v5989_v36 = vsel %vm924_vm2, %v5915_v62, %v5911_v53 }
0x1b20   : > { %v5990_v37 = vsel %vm927_vm3, %v5919_v26, %v5989_v36  ;;  %v5614_v61 = vpop.permute.xlu1 %5613 }
0x1b21   : > { %v5991_v59 = vsel %vm930_vm4, %v5923_v48, %v5990_v37  ;;  %v5847_v17 = vrot.slane %v5614_v61, %v11852_v6  ;;  %v5875_v48 = vrot.slane %v5635_v23, %v11852_v6 }
0x1b22   : > { %v5992_v32 = vsel %vm933_vm5, %v5927_v51, %v5991_v59 }
0x1b23   : > { %v5975_v39 = vsel %vm924_vm2, %v5851_v57, %v5847_v17  ;;  %v5993_v18 = vsel %vm936_vm6, %v5931_v56, %v5992_v32 }
0x1b24   : > { %v5976_v15 = vsel %vm927_vm3, %v5855_v38, %v5975_v39  ;;  %v5994_v62 = vsel %vm939_vm7, %v5935_v52, %v5993_v18 }
0x1b25   : > { %v5977_v28 = vsel %vm930_vm4, %v5859_v9, %v5976_v15  ;;  %v5995_v53 = vsel %vm942_vm8, %v5939_v12, %v5994_v62 }
0x1b26   : > { %v6025_v54 = vsel %vm4883_vm10, %v5995_v53, 0.0  ;;  %v5978_v26 = vsel %vm933_vm5, %v5863_v42, %v5977_v28 }
0x1b27   : > { %6026 = vadd.xlane.f32.xlu1 %v6025_v54  ;;  %v5979_v49 = vsel %vm936_vm6, %v5867_v3, %v5978_v26 }
0x1b28   : > { %v5980_v36 = vsel %vm939_vm7, %v5871_v14, %v5979_v49 }
0x1b29   : > { %v5981_v51 = vsel %vm942_vm8, %v5875_v48, %v5980_v36 }
0x1b2a   : > { %v6019_v55 = vsel %vm4883_vm10, %v5981_v51, 0.0 }
0x1b2b   : > { %6020 = vadd.xlane.f32.xlu1 %v6019_v55 }
0x1b47   : > { %v6012_v37 = vpop.xlane.xlu0 %6011 }
0x1b48   : > { %v6103_v61 = vrot.slane %v6012_v37, %v11288_v46  ;;  %v6107_v33 = vrot.slane %v6012_v37, %v12131_v34  ;;  %v6111_v56 = vrot.slane %v6012_v37, %v12134_v63  ;;  %v6115_v57 = vrot.slane %v6012_v37, %v12137_v19 }
0x1b49   : > { %v6119_v59 = vrot.slane %v6012_v37, %v12143_v13  ;;  %v6123_v17 = vrot.slane %v6012_v37, %v12150_v29  ;;  %v6127_v32 = vrot.slane %v6012_v37, %v12155_v10  ;;  %v6131_v15 = vrot.slane %v6012_v37, %v12164_v21 }
0x1b4a   : > { %9214 = vrcp.f32 %v6107_v33 }
0x1b4b   : > { %9216 = vrcp.f32 %v6103_v61 }
0x1b4c   : > { %9218 = vrcp.f32 %v6111_v56 }
0x1b4d   : > { %9220 = vrcp.f32 %v6115_v57 }
0x1b4e   : > { %9222 = vrcp.f32 %v6119_v59 }
0x1b4f   : > { %9224 = vrcp.f32 %v6123_v17 }
0x1b50   : > { %9226 = vrcp.f32 %v6127_v32 }
0x1b51   : > { %9228 = vrcp.f32 %v6131_v15 }
0x1b54   : > { %v9215_v52 = vpop.eup %9214 }
0x1b55   : > { %v9217_v38 = vpop.eup %9216  ;;  %v6391_v12 = vmul.f32 %v9215_v52, %v12175_v50 }
0x1b56   : > { %v9219_v9 = vpop.eup %9218  ;;  %v6389_v39 = vmul.f32 %v9217_v38, %v12172_v5 }
0x1b57   : > { %v9221_v18 = vpop.eup %9220  ;;  %v6501_v42 = vpack.c.bf16 %v6391_v12, %v6391_v12  ;;  %v6393_v23 = vmul.f32 %v9219_v9, %v12184_v43 }
0x1b58   : > { %v6500_v62 = vpack.c.bf16 %v6389_v39, %v6389_v39  ;;  %v6395_v54 = vmul.f32 %v9221_v18, %v12193_v0  ;;  %v9223_v26 = vpop.eup %9222 }
0x1b59   : > { %v6823_v28 = vunpack.c.l.b16 %v6501_v42  ;;  %v6502_v50 = vpack.c.bf16 %v6393_v23, %v6393_v23  ;;  %v6397_v49 = vmul.f32 %v9223_v26, %v12202_v40  ;;  %v9225_v36 = vpop.eup %9224 }
0x1b5a   : > { %v6822_v14 = vunpack.c.l.b16 %v6500_v62  ;;  %v6503_v48 = vpack.c.bf16 %v6395_v54, %v6395_v54  ;;  %v6399_v37 = vmul.f32 %v9225_v36, %v12211_v30  ;;  %v9227_v33 = vpop.eup %9226 }
0x1b5b   : > { %6834 = vperm.xlu0 %8434, %v6823_v28   ;;  %v6824_v43 = vunpack.c.l.b16 %v6502_v50  ;;  %v6504_v0 = vpack.c.bf16 %v6397_v49, %v6397_v49  ;;  %v9229_v17 = vpop.eup %9228  ;;  %v6401_v38 = vmul.f32 %v9227_v33, %v12223_v35 }
0x1b5c   : > { %6831 = vperm.xlu1 %8433, %v6822_v14   ;;  %v6825_v55 = vunpack.c.l.b16 %v6503_v48  ;;  %v6505_v52 = vpack.c.bf16 %v6399_v37, %v6399_v37  ;;  %v6403_v15 = vmul.f32 %v9229_v17, %v12235_v16 }
0x1b5d   : > { %v6826_v30 = vunpack.c.l.b16 %v6504_v0  ;;  %v6506_v23 = vpack.c.bf16 %v6401_v38, %v6401_v38 }
0x1b5e   : > { %v12692_v3 = vpop.xlane.xlu1 %6005  ;;  %v6827_v42 = vunpack.c.l.b16 %v6505_v52  ;;  %v6507_v54 = vpack.c.bf16 %v6403_v15, %v6403_v15 }
0x1b5f   : > { %v6039_v53 = vrot.slane %v12692_v3, %v11288_v46  ;;  %v6043_v5 = vrot.slane %v12692_v3, %v12131_v34  ;;  %v6047_v51 = vrot.slane %v12692_v3, %v12134_v63  ;;  %v6051_v59 = vrot.slane %v12692_v3, %v12137_v19 }
0x1b60   : > { %6837 = vperm.xlu1 %8433, %v6824_v43   ;;  %v6055_v18 = vrot.slane %v12692_v3, %v12143_v13  ;;  %v6828_v50 = vunpack.c.l.b16 %v6506_v23  ;;  %v6829_v36 = vunpack.c.l.b16 %v6507_v54 }
0x1b61   : > { %9230 = vrcp.f32 %v6039_v53 }
0x1b62   : > { %9232 = vrcp.f32 %v6043_v5 }
0x1b63   : > { %9234 = vrcp.f32 %v6047_v51 }
0x1b64   : > { %6840 = vperm.xlu1 %8433, %v6825_v55  }
0x1b68   : > { %v12703_v61 = vpop.xlane.xlu1 %6014  ;;  %6843 = vperm.xlu1 %8433, %v6826_v30  }
0x1b69   : > { %v6139_v56 = vrot.slane %v12703_v61, %v12131_v34  ;;  %v6143_v57 = vrot.slane %v12703_v61, %v12134_v63  ;;  %v6147_v40 = vrot.slane %v12703_v61, %v12137_v19  ;;  %v6151_v12 = vrot.slane %v12703_v61, %v12143_v13 }
0x1b6a   : > { %v6155_v35 = vrot.slane %v12703_v61, %v12150_v29  ;;  %v6159_v16 = vrot.slane %v12703_v61, %v12155_v10  ;;  %v6163_v0 = vrot.slane %v12703_v61, %v12164_v21 }
0x1b6b   : > { %9236 = vrcp.f32 %v6139_v56  ;;  %v9231_v32 = vpop.eup %9230 }
0x1b6c   : > { %9238 = vrcp.f32 %v6143_v57  ;;  %v6357_v9 = vmul.f32 %v9231_v32, %v12213_v31  ;;  %v9233_v39 = vpop.eup %9232  ;;  %6846 = vperm.xlu1 %8433, %v6827_v42   ;;  %v6059_v31 = vrot.slane %v12692_v3, %v12150_v29 }
0x1b6d   : > { %9240 = vrcp.f32 %v6147_v40  ;;  %v6359_v53 = vmul.f32 %v9233_v39, %v12251_v4  ;;  %v9235_v14 = vpop.eup %9234  ;;  %v6063_v4 = vrot.slane %v12692_v3, %v12155_v10 }
0x1b6e   : > { %9242 = vrcp.f32 %v6051_v59  ;;  %v6484_v62 = vpack.c.bf16 %v6357_v9, %v6357_v9  ;;  %v6361_v51 = vmul.f32 %v9235_v14, %v12263_v8 }
0x1b6f   : > { %9244 = vrcp.f32 %v6151_v12  ;;  %v6485_v43 = vpack.c.bf16 %v6359_v53, %v6359_v53 }
0x1b70   : > { %v6564_v28 = vunpack.c.l.b16 %v6484_v62  ;;  %9246 = vrcp.f32 %v6055_v18  ;;  %6849 = vperm.xlu1 %8433, %v6828_v50   ;;  %v6486_v30 = vpack.c.bf16 %v6361_v51, %v6361_v51 }
0x1b71   : > { %9248 = vrcp.f32 %v6155_v35  ;;  %v6565_v56 = vunpack.c.l.b16 %v6485_v43 }
0x1b72   : > { %6573 = vperm.xlu0 %8434, %v6564_v28   ;;  %9250 = vrcp.f32 %v6059_v31  ;;  %v6566_v39 = vunpack.c.l.b16 %v6486_v30 }
0x1b73   : > { %9252 = vrcp.f32 %v6159_v16 }
0x1b74   : > { %6852 = vperm.xlu1 %8433, %v6829_v36   ;;  %9254 = vrcp.f32 %v6063_v4 }
0x1b75   : > { %v9237_v26 = vpop.eup %9236  ;;  %9256 = vrcp.f32 %v6163_v0 }
0x1b76   : > { %v9239_v5 = vpop.eup %9238  ;;  %v6407_v48 = vmul.f32 %v9237_v26, %v12225_v1  ;;  %v6067_v1 = vrot.slane %v12692_v3, %v12164_v21  ;;  %v12736_v57 = vpop.xlane.xlu0 %6008 }
0x1b77   : > { %v9241_v49 = vpop.eup %9240  ;;  %v6409_v33 = vmul.f32 %v9239_v5, %v12239_v60  ;;  %v6135_v60 = vrot.slane %v12703_v61, %v11288_v46  ;;  %v6075_v3 = vrot.slane %v12736_v57, %v12131_v34  ;;  %v6079_v61 = vrot.slane %v12736_v57, %v12134_v63 }
0x1b78   : > { %v9243_v55 = vpop.eup %9242  ;;  %v6509_v37 = vpack.c.bf16 %v6407_v48, %v6407_v48  ;;  %v6411_v17 = vmul.f32 %v9241_v49, %v12247_v25  ;;  %6576 = vperm.xlu1 %8433, %v6565_v56   ;;  %9258 = vrcp.f32 %v6067_v1  ;;  %v6071_v15 = vrot.slane %v12736_v57, %v11288_v46  ;;  %v13389_v49 = vld [vmem:[#allocation53_spill] sm:$0xff]  ;;  %v13390_v1 = vld [vmem:[#allocation35_spill] sm:$0xff] }
0x1b79   : > { %v6510_v59 = vpack.c.bf16 %v6409_v33, %v6409_v33  ;;  %v9245_v8 = vpop.eup %9244  ;;  %v6363_v52 = vmul.f32 %v9243_v55, %v12275_v58  ;;  %9260 = vrcp.f32 %v6135_v60  ;;  %v6083_v14 = vrot.slane %v12736_v57, %v12137_v19 }
0x1b7a   : > { %v6952_v40 = vunpack.c.l.b16 %v6509_v37  ;;  %v9247_v38 = vpop.eup %9246  ;;  %v6511_v12 = vpack.c.bf16 %v6411_v17, %v6411_v17  ;;  %v6413_v9 = vmul.f32 %v9245_v8, %v12258_v7  ;;  %9262 = vrcp.f32 %v6075_v3 }
0x1b7b   : > { %v6953_v32 = vunpack.c.l.b16 %v6510_v59  ;;  %v9249_v25 = vpop.eup %9248  ;;  %v6487_v18 = vpack.c.bf16 %v6363_v52, %v6363_v52  ;;  %v6365_v58 = vmul.f32 %v9247_v38, %v12287_v47  ;;  %9264 = vrcp.f32 %v6079_v61 }
0x1b7c   : > { %6963 = vperm.xlu0 %8434, %v6952_v40   ;;  %v9251_v42 = vpop.eup %9250  ;;  %6579 = vperm.xlu1 %8433, %v6566_v39   ;;  %v6954_v62 = vunpack.c.l.b16 %v6511_v12  ;;  %v6512_v7 = vpack.c.bf16 %v6413_v9, %v6413_v9  ;;  %v6415_v35 = vmul.f32 %v9249_v25, %v12270_v27  ;;  %9266 = vrcp.f32 %v6071_v15 }
0x1b7d   : > { %v9253_v23 = vpop.eup %9252  ;;  %v6567_v28 = vunpack.c.l.b16 %v6487_v18  ;;  %v6488_v53 = vpack.c.bf16 %v6365_v58, %v6365_v58  ;;  %v6367_v47 = vmul.f32 %v9251_v42, %v12297_v44  ;;  %v6087_v44 = vrot.slane %v12736_v57, %v12143_v13 }
0x1b7e   : > { %v9255_v31 = vpop.eup %9254  ;;  %v6417_v50 = vmul.f32 %v9253_v23, %v12282_v11  ;;  %v6955_v26 = vunpack.c.l.b16 %v6512_v7  ;;  %v6513_v16 = vpack.c.bf16 %v6415_v35, %v6415_v35  ;;  %9268 = vrcp.f32 %v6083_v14 }
0x1b7f   : > { %v9257_v54 = vpop.eup %9256  ;;  %v6568_v5 = vunpack.c.l.b16 %v6488_v53  ;;  %v6489_v43 = vpack.c.bf16 %v6367_v47, %v6367_v47  ;;  %v6369_v27 = vmul.f32 %v9255_v31, %v12310_v41  ;;  %v6091_v0 = vrot.slane %v12736_v57, %v12150_v29 }
0x1b80   : > { %6966 = vperm.xlu0 %8434, %v6953_v32   ;;  %6582 = vperm.xlu1 %8433, %v6567_v28   ;;  %v6514_v4 = vpack.c.bf16 %v6417_v50, %v6417_v50  ;;  %v6419_v36 = vmul.f32 %v9257_v54, %v13389_v49  ;;  %v6956_v51 = vunpack.c.l.b16 %v6513_v16  ;;  %9270 = vrcp.f32 %v6087_v44  ;;  %v13391_v32 = vld [vmem:[#allocation28_spill] sm:$0xff] }
0x1b81   : > { %v6569_v37 = vunpack.c.l.b16 %v6489_v43  ;;  %v6490_v33 = vpack.c.bf16 %v6369_v27, %v6369_v27  ;;  %9272 = vrcp.f32 %v6091_v0  ;;  %v6095_v25 = vrot.slane %v12736_v57, %v12155_v10  ;;  %v13394_v43 = vld [vmem:[#allocation31_spill] sm:$0xff]  ;;  %v13395_v0 = vld [vmem:[#allocation32_spill] sm:$0xff] }
0x1b82   : > { %v9259_v48 = vpop.eup %9258  ;;  %v6957_v40 = vunpack.c.l.b16 %v6514_v4  ;;  %v6515_v59 = vpack.c.bf16 %v6419_v36, %v6419_v36  ;;  %v6099_v35 = vrot.slane %v12736_v57, %v12164_v21 }
0x1b83   : > { %v9261_v11 = vpop.eup %9260  ;;  %v6371_v41 = vmul.f32 %v9259_v48, %v13390_v1  ;;  %v6570_v60 = vunpack.c.l.b16 %v6490_v33 }
0x1b84   : > { %6969 = vperm.xlu0 %8434, %v6954_v62   ;;  %6585 = vperm.xlu1 %8433, %v6568_v5   ;;  %v9263_v55 = vpop.eup %9262  ;;  %v6405_v12 = vmul.f32 %v9261_v11, %v13391_v32  ;;  %v6958_v39 = vunpack.c.l.b16 %v6515_v59  ;;  %v13393_v62 = vld [vmem:[#allocation54_spill] sm:$0xff] }
0x1b85   : > { %v6375_v52 = vmul.f32 %v9263_v55, %v12353_v45  ;;  %v9265_v38 = vpop.eup %9264  ;;  %v6491_v3 = vpack.c.bf16 %v6371_v41, %v6371_v41  ;;  %v13392_v45 = vld [vmem:[#allocation37_spill] sm:$0xff]  ;;  %v13398_v32 = vld [vmem:[#allocation34_spill] sm:$0xff] }
0x1b86   : > { %v9267_v9 = vpop.eup %9266  ;;  %v6377_v42 = vmul.f32 %v9265_v38, %v13392_v45  ;;  %v6508_v15 = vpack.c.bf16 %v6405_v12, %v6405_v12  ;;  %v13397_v38 = vld [vmem:[#allocation41_spill] sm:$0xff] }
0x1b87   : > { %v6493_v58 = vpack.c.bf16 %v6375_v52, %v6375_v52  ;;  %v6571_v23 = vunpack.c.l.b16 %v6491_v3  ;;  %v6373_v7 = vmul.f32 %v9267_v9, %v13393_v62 }
0x1b88   : > { %6972 = vperm.xlu0 %8434, %v6955_v26   ;;  %6588 = vperm.xlu1 %8433, %v6569_v37   ;;  %v9269_v61 = vpop.eup %9268  ;;  %v6494_v53 = vpack.c.bf16 %v6377_v42, %v6377_v42  ;;  %v6951_v14 = vunpack.c.l.b16 %v6508_v15  ;;  %v13399_v15 = vld [vmem:[#allocation40_spill] sm:$0xff] }
0x1b89   : > { %v6694_v28 = vunpack.c.l.b16 %v6493_v58  ;;  %v6379_v47 = vmul.f32 %v9269_v61, %v12375_v20  ;;  %v6492_v50 = vpack.c.bf16 %v6373_v7, %v6373_v7 }
0x1b8a   : > { %v9271_v31 = vpop.eup %9270  ;;  %v6695_v57 = vunpack.c.l.b16 %v6494_v53 }
0x1b8b   : > { %v9273_v54 = vpop.eup %9272  ;;  %v6495_v5 = vpack.c.bf16 %v6379_v47, %v6379_v47  ;;  %v6381_v27 = vmul.f32 %v9271_v31, %v13394_v43  ;;  %v6693_v44 = vunpack.c.l.b16 %v6492_v50  ;;  %v13400_v43 = vld [vmem:[#allocation47_spill] sm:$0xff] }
0x1b8c   : > { %6975 = vperm.xlu0 %8434, %v6956_v51   ;;  %6591 = vperm.xlu1 %8433, %v6570_v60   ;;  %v6383_v37 = vmul.f32 %v9273_v54, %v13395_v0 }
0x1b8d   : > { %v6696_v51 = vunpack.c.l.b16 %v6495_v5  ;;  %v6496_v55 = vpack.c.bf16 %v6381_v27, %v6381_v27 }
0x1b8e   : > { %v12762_v56 = vpop.xlane.xlu0 %6023 }
0x1b8f   : > { %v6231_v17 = vrot.slane %v12762_v56, %v11288_v46  ;;  %v6239_v8 = vrot.slane %v12762_v56, %v12134_v63  ;;  %v6243_v30 = vrot.slane %v12762_v56, %v12137_v19  ;;  %v6247_v18 = vrot.slane %v12762_v56, %v12143_v13 }
0x1b90   : > { %6978 = vperm.xlu0 %8434, %v6957_v40   ;;  %6594 = vperm.xlu1 %8433, %v6571_v23   ;;  %v6235_v26 = vrot.slane %v12762_v56, %v12131_v34 }
0x1b91   : > { %9274 = vrcp.f32 %v6231_v17 }
0x1b92   : > { %9276 = vrcp.f32 %v6239_v8  ;;  %v6697_v8 = vunpack.c.l.b16 %v6496_v55 }
0x1b93   : > { %9278 = vrcp.f32 %v6243_v30 }
0x1b94   : > { %6981 = vperm.xlu0 %8434, %v6958_v39   ;;  %9280 = vrcp.f32 %v6095_v25  ;;  %6960 = vperm.xlu1 %8433, %v6951_v14  }
0x1b95   : > { %9282 = vrcp.f32 %v6247_v18 }
0x1b96   : > { %9284 = vrcp.f32 %v6099_v35 }
0x1b97   : > { %9286 = vrcp.f32 %v6235_v26 }
0x1b98   : > { %6705 = vperm.xlu0 %8434, %v6694_v28   ;;  %6702 = vperm.xlu1 %8433, %v6693_v44  }
0x1b9b   : > { %v9275_v16 = vpop.eup %9274 }
0x1b9c   : > { %v9277_v48 = vpop.eup %9276  ;;  %v6453_v20 = vmul.f32 %v9275_v16, %v12384_v24  ;;  %6708 = vperm.xlu0 %8434, %v6695_v57   ;;  %v13396_v24 = vld [vmem:[#allocation33_spill] sm:$0xff] }
0x1b9d   : > { %v9279_v4 = vpop.eup %9278  ;;  %v6457_v49 = vmul.f32 %v9277_v48, %v12393_v2  ;;  %v6497_v2 = vpack.c.bf16 %v6383_v37, %v6383_v37 }
0x1b9e   : > { %v6532_v36 = vpack.c.bf16 %v6453_v20, %v6453_v20  ;;  %v9281_v11 = vpop.eup %9280  ;;  %v6459_v41 = vmul.f32 %v9279_v4, %v12405_v22 }
0x1b9f   : > { %v6534_v1 = vpack.c.bf16 %v6457_v49, %v6457_v49  ;;  %v9283_v40 = vpop.eup %9282  ;;  %v6385_v59 = vmul.f32 %v9281_v11, %v13396_v24  ;;  %v6698_v9 = vunpack.c.l.b16 %v6497_v2  ;;  %v13401_v49 = vld [vmem:[#allocation46_spill] sm:$0xff]  ;;  %v13402_v11 = vld [vmem:[#allocation56_spill] sm:$0xff]  ;;  %v13403_v24 = vld [vmem:[#allocation57_spill] sm:$0xff] }
0x1ba0   : > { %v7338_v33 = vunpack.c.l.b16 %v6532_v36  ;;  %6711 = vperm.xlu0 %8434, %v6696_v51   ;;  %v9285_v17 = vpop.eup %9284  ;;  %v6535_v52 = vpack.c.bf16 %v6459_v41, %v6459_v41  ;;  %v6461_v60 = vmul.f32 %v9283_v40, %v13397_v38 }
0x1ba1   : > { %v7340_v30 = vunpack.c.l.b16 %v6534_v1  ;;  %v6498_v3 = vpack.c.bf16 %v6385_v59, %v6385_v59  ;;  %v6387_v12 = vmul.f32 %v9285_v17, %v13398_v32  ;;  %v9287_v25 = vpop.eup %9286 }
0x1ba2   : > { %7347 = vperm.xlu1 %8433, %v7338_v33   ;;  %v7341_v22 = vunpack.c.l.b16 %v6535_v52  ;;  %v6536_v39 = vpack.c.bf16 %v6461_v60, %v6461_v60  ;;  %v6455_v62 = vmul.f32 %v9287_v25, %v13399_v15  ;;  %v13404_v60 = vld [vmem:[#allocation39_spill] sm:$0xff] }
0x1ba3   : > { %v6699_v58 = vunpack.c.l.b16 %v6498_v3  ;;  %v6499_v45 = vpack.c.bf16 %v6387_v12, %v6387_v12 }
0x1ba4   : > { %6714 = vperm.xlu0 %8434, %v6697_v8   ;;  %v7342_v7 = vunpack.c.l.b16 %v6536_v39  ;;  %v6533_v53 = vpack.c.bf16 %v6455_v62, %v6455_v62 }
0x1ba5   : > { %v6700_v28 = vunpack.c.l.b16 %v6499_v45 }
0x1ba6   : > { %7353 = vperm.xlu1 %8433, %v7340_v30   ;;  %v7339_v31 = vunpack.c.l.b16 %v6533_v53 }
0x1ba8   : > { %6717 = vperm.xlu0 %8434, %v6698_v9   ;;  %v13405_v9 = vld [vmem:[#allocation38_spill] sm:$0xff] }
0x1baa   : > { %7356 = vperm.xlu1 %8433, %v7341_v22   ;;  %v6018_v18 = vpop.xlane.xlu0 %6017  ;;  %v13406_v22 = vld [vmem:[#allocation48_spill] sm:$0xff] }
0x1bab   : > { %v6167_v42 = vrot.slane %v6018_v18, %v11288_v46  ;;  %v6171_v61 = vrot.slane %v6018_v18, %v12131_v34  ;;  %v6175_v23 = vrot.slane %v6018_v18, %v12134_v63  ;;  %v6179_v35 = vrot.slane %v6018_v18, %v12137_v19 }
0x1bac   : > { %6720 = vperm.xlu0 %8434, %v6699_v58   ;;  %v6183_v47 = vrot.slane %v6018_v18, %v12143_v13  ;;  %v6187_v26 = vrot.slane %v6018_v18, %v12150_v29  ;;  %v6191_v44 = vrot.slane %v6018_v18, %v12155_v10  ;;  %v6195_v1 = vrot.slane %v6018_v18, %v12164_v21 }
0x1bad   : > { %9288 = vrcp.f32 %v6171_v61 }
0x1bae   : > { %7359 = vperm.xlu1 %8433, %v7342_v7   ;;  %9290 = vrcp.f32 %v6167_v42 }
0x1baf   : > { %9292 = vrcp.f32 %v6175_v23 }
0x1bb0   : > { %6723 = vperm.xlu0 %8434, %v6700_v28   ;;  %9294 = vrcp.f32 %v6179_v35  ;;  %v13407_v28 = vld [vmem:[#allocation43_spill] sm:$0xff] }
0x1bb1   : > { %9296 = vrcp.f32 %v6183_v47  ;;  %v13408_v47 = vld [vmem:[#allocation42_spill] sm:$0xff] }
0x1bb4   : > { %v12797_v14 = vpop.xlane.xlu1 %6026  ;;  %7350 = vperm.xlu0 %8434, %v7339_v31  }
0x1bb5   : > { %v6267_v50 = vrot.slane %v12797_v14, %v12131_v34  ;;  %v6271_v54 = vrot.slane %v12797_v14, %v12134_v63  ;;  %v6275_v5 = vrot.slane %v12797_v14, %v12137_v19  ;;  %v6279_v20 = vrot.slane %v12797_v14, %v12143_v13 }
0x1bb6   : > { %v6283_v0 = vrot.slane %v12797_v14, %v12150_v29  ;;  %v6287_v2 = vrot.slane %v12797_v14, %v12155_v10  ;;  %v6263_v52 = vrot.slane %v12797_v14, %v11288_v46 }
0x1bb7   : > { %v9289_v16 = vpop.eup %9288  ;;  %9298 = vrcp.f32 %v6267_v50 }
0x1bb8   : > { %v9291_v57 = vpop.eup %9290  ;;  %v6423_v27 = vmul.f32 %v9289_v16, %v13400_v43  ;;  %9300 = vrcp.f32 %v6271_v54  ;;  %v12820_v38 = vpop.xlane.xlu1 %6020  ;;  %v13409_v16 = vld [vmem:[#allocation36_spill] sm:$0xff] }
0x1bb9   : > { %v9293_v48 = vpop.eup %9292  ;;  %9302 = vrcp.f32 %v6187_v26  ;;  %v6421_v36 = vmul.f32 %v9291_v57, %v13401_v49  ;;  %v6203_v45 = vrot.slane %v12820_v38, %v12131_v34  ;;  %v6199_v61 = vrot.slane %v12820_v38, %v11288_v46 }
0x1bba   : > { %v6517_v4 = vpack.c.bf16 %v6423_v27, %v6423_v27  ;;  %v6425_v51 = vmul.f32 %v9293_v48, %v13402_v11  ;;  %v9295_v55 = vpop.eup %9294  ;;  %9304 = vrcp.f32 %v6275_v5  ;;  %v6251_v34 = vrot.slane %v12762_v56, %v12150_v29  ;;  %v13410_v48 = vld [vmem:[#allocation60_spill] sm:$0xff]  ;;  %v13411_v11 = vld [vmem:[#allocation51_spill] sm:$0xff] }
0x1bbb   : > { %v6516_v33 = vpack.c.bf16 %v6421_v36, %v6421_v36  ;;  %9306 = vrcp.f32 %v6191_v44  ;;  %v6427_v59 = vmul.f32 %v9295_v55, %v13403_v24  ;;  %v9297_v17 = vpop.eup %9296  ;;  %v6207_v54 = vrot.slane %v12820_v38, %v12134_v63 }
0x1bbc   : > { %v7081_v37 = vunpack.c.l.b16 %v6517_v4  ;;  %9308 = vrcp.f32 %v6279_v20  ;;  %v6518_v40 = vpack.c.bf16 %v6425_v51, %v6425_v51  ;;  %v6429_v25 = vmul.f32 %v9297_v17, %v13405_v9 }
0x1bbd   : > { %v7080_v41 = vunpack.c.l.b16 %v6516_v33  ;;  %9310 = vrcp.f32 %v6283_v0  ;;  %v6519_v12 = vpack.c.bf16 %v6427_v59, %v6427_v59  ;;  %v6255_v4 = vrot.slane %v12762_v56, %v12155_v10  ;;  %v13412_v33 = vld [vmem:[#allocation62_spill] sm:$0xff]  ;;  %v13413_v59 = vld [vmem:[#allocation44_spill] sm:$0xff] }
0x1bbe   : > { %7092 = vperm.xlu0 %8434, %v7081_v37   ;;  %9312 = vrcp.f32 %v6195_v1  ;;  %v7082_v32 = vunpack.c.l.b16 %v6518_v40  ;;  %v6520_v35 = vpack.c.bf16 %v6429_v25, %v6429_v25  ;;  %v6211_v63 = vrot.slane %v12820_v38, %v12137_v19  ;;  %v13415_v25 = vld [vmem:[#allocation58_spill] sm:$0xff] }
0x1bbf   : > { %7089 = vperm.xlu1 %8433, %v7080_v41   ;;  %9314 = vrcp.f32 %v6287_v2  ;;  %v7083_v7 = vunpack.c.l.b16 %v6519_v12  ;;  %v6215_v40 = vrot.slane %v12820_v38, %v12143_v13  ;;  %v6259_v13 = vrot.slane %v12762_v56, %v12164_v21 }
0x1bc0   : > { %9316 = vrcp.f32 %v6263_v52  ;;  %v7084_v43 = vunpack.c.l.b16 %v6520_v35  ;;  %v13414_v52 = vld [vmem:[#allocation64_spill] sm:$0xff] }
0x1bc1   : > { %v9299_v8 = vpop.eup %9298  ;;  %9318 = vrcp.f32 %v6203_v45  ;;  %v13416_v45 = vld [vmem:[#allocation66_spill] sm:$0xff] }
0x1bc2   : > { %v9301_v30 = vpop.eup %9300  ;;  %v6471_v3 = vmul.f32 %v9299_v8, %v13404_v60  ;;  %9320 = vrcp.f32 %v6199_v61 }
0x1bc3   : > { %v6473_v39 = vmul.f32 %v9301_v30, %v13406_v22  ;;  %v9303_v18 = vpop.eup %9302  ;;  %7095 = vperm.xlu1 %8433, %v7082_v32   ;;  %9322 = vrcp.f32 %v6207_v54  ;;  %v6219_v32 = vrot.slane %v12820_v38, %v12150_v29  ;;  %v13419_v54 = vld [vmem:[#allocation59_spill] sm:$0xff] }
0x1bc4   : > { %v6541_v58 = vpack.c.bf16 %v6471_v3, %v6471_v3  ;;  %v9305_v42 = vpop.eup %9304  ;;  %v6431_v53 = vmul.f32 %v9303_v18, %v13407_v28  ;;  %9324 = vrcp.f32 %v6251_v34 }
0x1bc5   : > { %v6542_v15 = vpack.c.bf16 %v6473_v39, %v6473_v39  ;;  %v9307_v62 = vpop.eup %9306  ;;  %v6475_v31 = vmul.f32 %v9305_v42, %v13408_v47  ;;  %9326 = vrcp.f32 %v6211_v63 }
0x1bc6   : > { %v7468_v23 = vunpack.c.l.b16 %v6541_v58  ;;  %v9309_v50 = vpop.eup %9308  ;;  %v6521_v27 = vpack.c.bf16 %v6431_v53, %v6431_v53  ;;  %v6433_v44 = vmul.f32 %v9307_v62, %v13410_v48  ;;  %9328 = vrcp.f32 %v6255_v4  ;;  %v13417_v62 = vld [vmem:[#allocation52_spill] sm:$0xff]  ;;  %v13418_v53 = vld [vmem:[#allocation50_spill] sm:$0xff] }
0x1bc7   : > { %7098 = vperm.xlu1 %8433, %v7083_v7   ;;  %v7469_v46 = vunpack.c.l.b16 %v6542_v15  ;;  %v6543_v26 = vpack.c.bf16 %v6475_v31, %v6475_v31  ;;  %v6477_v57 = vmul.f32 %v9309_v50, %v13409_v16  ;;  %v9311_v5 = vpop.eup %9310  ;;  %9330 = vrcp.f32 %v6215_v40  ;;  %v13423_v40 = vld [vmem:[#allocation45_spill] sm:$0xff] }
0x1bc8   : > { %7479 = vperm.xlu0 %8434, %v7468_v23   ;;  %v9313_v20 = vpop.eup %9312  ;;  %v6479_v51 = vmul.f32 %v9311_v5, %v13411_v11  ;;  %v7085_v0 = vunpack.c.l.b16 %v6521_v27  ;;  %v6522_v37 = vpack.c.bf16 %v6433_v44, %v6433_v44  ;;  %v6223_v23 = vrot.slane %v12820_v38, %v12155_v10  ;;  %v13420_v5 = vld [vmem:[#allocation49_spill] sm:$0xff] }
0x1bc9   : > { %v7470_v49 = vunpack.c.l.b16 %v6543_v26  ;;  %v6544_v36 = vpack.c.bf16 %v6477_v57, %v6477_v57  ;;  %v9315_v55 = vpop.eup %9314  ;;  %v6435_v1 = vmul.f32 %v9313_v20, %v13412_v33  ;;  %9332 = vrcp.f32 %v6219_v32  ;;  %v13421_v20 = vld [vmem:[#allocation61_spill] sm:$0xff] }
0x1bca   : > { %v9317_v41 = vpop.eup %9316  ;;  %v6545_v24 = vpack.c.bf16 %v6479_v51, %v6479_v51  ;;  %v6481_v17 = vmul.f32 %v9315_v55, %v13413_v59  ;;  %v7086_v2 = vunpack.c.l.b16 %v6522_v37  ;;  %9334 = vrcp.f32 %v6259_v13  ;;  %v13422_v37 = vld [vmem:[#allocation63_spill] sm:$0xff] }
0x1bcb   : > { %7101 = vperm.xlu1 %8433, %v7084_v43   ;;  %v7471_v19 = vunpack.c.l.b16 %v6544_v36  ;;  %v9319_v8 = vpop.eup %9318  ;;  %v6523_v30 = vpack.c.bf16 %v6435_v1, %v6435_v1  ;;  %v6469_v60 = vmul.f32 %v9317_v41, %v13414_v52  ;;  %v6227_v50 = vrot.slane %v12820_v38, %v12164_v21  ;;  %v13426_v13 = vld [vmem:[#allocation67_spill] sm:$0xff] }
0x1bcc   : > { %7482 = vperm.xlu0 %8434, %v7469_v46   ;;  %v9321_v3 = vpop.eup %9320  ;;  %v7472_v12 = vunpack.c.l.b16 %v6545_v24  ;;  %v6546_v9 = vpack.c.bf16 %v6481_v17, %v6481_v17  ;;  %v6439_v22 = vmul.f32 %v9319_v8, %v13415_v25  ;;  %9336 = vrcp.f32 %v6223_v23  ;;  %v13424_v8 = vld [vmem:[#allocation65_spill] sm:$0xff] }
0x1bcd   : > { %v9323_v39 = vpop.eup %9322  ;;  %v7087_v18 = vunpack.c.l.b16 %v6523_v30  ;;  %v6540_v58 = vpack.c.bf16 %v6469_v60, %v6469_v60  ;;  %v6437_v42 = vmul.f32 %v9321_v3, %v13416_v45  ;;  %9338 = vrcp.f32 %v6227_v50 }
0x1bce   : > { %v9325_v61 = vpop.eup %9324  ;;  %v7473_v29 = vunpack.c.l.b16 %v6546_v9  ;;  %v6525_v15 = vpack.c.bf16 %v6439_v22, %v6439_v22  ;;  %v6441_v56 = vmul.f32 %v9323_v39, %v13417_v62  ;;  %v6291_v11 = vrot.slane %v12797_v14, %v12164_v21 }
0x1bcf   : > { %7104 = vperm.xlu1 %8433, %v7085_v0   ;;  %v9327_v7 = vpop.eup %9326  ;;  %v7467_v35 = vunpack.c.l.b16 %v6540_v58  ;;  %v6524_v28 = vpack.c.bf16 %v6437_v42, %v6437_v42  ;;  %v6463_v47 = vmul.f32 %v9325_v61, %v13418_v53  ;;  %v13427_v58 = vld [vmem:[#allocation22_spill] sm:$0xff] }
0x1bd0   : > { %7485 = vperm.xlu0 %8434, %v7470_v49   ;;  %v9329_v31 = vpop.eup %9328  ;;  %v7210_v10 = vunpack.c.l.b16 %v6525_v15  ;;  %v6526_v34 = vpack.c.bf16 %v6441_v56, %v6441_v56  ;;  %v6443_v46 = vmul.f32 %v9327_v7, %v13419_v54  ;;  %9340 = vrcp.f32 %v6291_v11  ;;  %v13429_v7 = vld [vmem:[#allocation21_spill] sm:$0xff] }
0x1bd1   : > { %v9331_v26 = vpop.eup %9330  ;;  %v7209_v16 = vunpack.c.l.b16 %v6524_v28  ;;  %v6537_v57 = vpack.c.bf16 %v6463_v47, %v6463_v47  ;;  %v6465_v43 = vmul.f32 %v9329_v31, %v13420_v5  ;;  %v6554_v45 = vpack.c.bf16 %v13427_v58, %v13427_v58 }
0x1bd2   : > { %v7211_v48 = vunpack.c.l.b16 %v6526_v34  ;;  %v6527_v44 = vpack.c.bf16 %v6443_v46, %v6443_v46  ;;  %v6445_v38 = vmul.f32 %v9331_v26, %v13421_v20  ;;  %v13430_v34 = vld [vmem:[#allocation23_spill] sm:$0xff] }
0x1bd3   : > { %7107 = vperm.xlu1 %8433, %v7086_v2   ;;  %v9333_v4 = vpop.eup %9332  ;;  %v7343_v63 = vunpack.c.l.b16 %v6537_v57  ;;  %v6538_v49 = vpack.c.bf16 %v6465_v43, %v6465_v43  ;;  %v13425_v2 = vld [vmem:[#allocation20_spill] sm:$0xff]  ;;  %v6555_v54 = vpack.c.bf16 %v13430_v34, %v13430_v34 }
0x1bd4   : > { %7488 = vperm.xlu0 %8434, %v7471_v19   ;;  %v9335_v36 = vpop.eup %9334  ;;  %v7212_v55 = vunpack.c.l.b16 %v6527_v44  ;;  %v6528_v0 = vpack.c.bf16 %v6445_v38, %v6445_v38  ;;  %v6447_v33 = vmul.f32 %v9333_v4, %v13422_v37  ;;  %v6552_v30 = vpack.c.bf16 %v13425_v2, %v13425_v2 }
0x1bd5   : > { %v7344_v41 = vunpack.c.l.b16 %v6538_v49  ;;  %v6467_v19 = vmul.f32 %v9335_v36, %v13423_v40 }
0x1bd6   : > { %v9337_v1 = vpop.eup %9336  ;;  %v7213_v59 = vunpack.c.l.b16 %v6528_v0  ;;  %v6529_v17 = vpack.c.bf16 %v6447_v33, %v6447_v33 }
0x1bd7   : > { %7110 = vperm.xlu1 %8433, %v7087_v18   ;;  %v6449_v21 = vmul.f32 %v9337_v1, %v13424_v8  ;;  %v9339_v14 = vpop.eup %9338  ;;  %v6539_v52 = vpack.c.bf16 %v6467_v19, %v6467_v19 }
0x1bd8   : > { %7491 = vperm.xlu0 %8434, %v7472_v12   ;;  %v7214_v3 = vunpack.c.l.b16 %v6529_v17  ;;  %v6451_v12 = vmul.f32 %v9339_v14, %v13426_v13 }
0x1bd9   : > { %v6530_v32 = vpack.c.bf16 %v6449_v21, %v6449_v21  ;;  %v7345_v9 = vunpack.c.l.b16 %v6539_v52 }
0x1bda   : > { %v6531_v39 = vpack.c.bf16 %v6451_v12, %v6451_v12  ;;  %v9341_v18 = vpop.eup %9340  ;;  %v6835_v42 = vpop.permute.xlu0 %6834  ;;  %v13431_v12 = vld [vmem:[#allocation30_spill] sm:$0xff] }
0x1bdb   : > { %7476 = vperm.xlu1 %8433, %v7467_v35   ;;  %v12861_v27 = vpop.permute.xlu1 %6831  ;;  %v7215_v22 = vunpack.c.l.b16 %v6530_v32  ;;  %v6553_v35 = vpack.c.bf16 %v13429_v7, %v13429_v7  ;;  %v6861_v33 = vrot.slane %v6835_v42, %v11852_v6 }
0x1bdc   : > { %7494 = vperm.xlu0 %8434, %v7473_v29   ;;  %v7216_v23 = vunpack.c.l.b16 %v6531_v39  ;;  %v13428_v29 = vld [vmem:[#allocation55_spill] sm:$0xff]  ;;  %v6857_v37 = vrot.slane %v12861_v27, %v11852_v6  ;;  %v13432_v39 = vmov 0.0  }
0x1bdd   : > { %v6483_v15 = vmul.f32 %v9341_v18, %v13428_v29 }
0x1bde   : > { %v6886_v2 = vsel %vm924_vm2, %v6861_v33, %v6857_v37 }
0x1bdf   : > { %7218 = vperm.xlu1 %8433, %v7209_v16   ;;  %v12866_v51 = vpop.permute.xlu1 %6837  ;;  %v6547_v28 = vpack.c.bf16 %v6483_v15, %v6483_v15 }
0x1be0   : > { %7221 = vperm.xlu0 %8434, %v7210_v10   ;;  %v6865_v40 = vrot.slane %v12866_v51, %v11852_v6 }
0x1be1   : > { %v7474_v31 = vunpack.c.l.b16 %v6547_v28 }
0x1be3   : > { %7362 = vperm.xlu1 %8433, %v7343_v63   ;;  %v12870_v24 = vpop.permute.xlu1 %6840 }
0x1be4   : > { %7224 = vperm.xlu0 %8434, %v7211_v48   ;;  %v6869_v17 = vrot.slane %v12870_v24, %v11852_v6 }
0x1be7   : > { %7365 = vperm.xlu1 %8433, %v7344_v41   ;;  %v12875_v60 = vpop.permute.xlu1 %6843 }
0x1be8   : > { %7227 = vperm.xlu0 %8434, %v7212_v55   ;;  %v6873_v27 = vrot.slane %v12875_v60, %v11852_v6 }
0x1beb   : > { %7153 = vrot.lane.b32.xlu1 %v6552_v30, %s9638_s13  ;;  %v12879_v25 = vpop.permute.xlu1 %6846 }
0x1bec   : > { %7230 = vperm.xlu0 %8434, %v7213_v59   ;;  %v6877_v51 = vrot.slane %v12879_v25, %v11852_v6 }
0x1bef   : > { %7368 = vperm.xlu1 %8433, %v7345_v9   ;;  %v12883_v61 = vpop.permute.xlu1 %6849  ;;  %v6901_v9 = vsel %vm3201_vm13, %v13431_v12, 0 }
0x1bf0   : > { %7233 = vperm.xlu0 %8434, %v7214_v3   ;;  %v6887_v3 = vsel %vm927_vm3, %v6865_v40, %v6886_v2  ;;  %v6881_v24 = vrot.slane %v12883_v61, %v11852_v6 }
0x1bf1   : > { %v6574_v62 = vpop.permute.xlu0 %6573  ;;  %v6888_v13 = vsel %vm930_vm4, %v6869_v17, %v6887_v3 }
0x1bf2   : > { %v6599_v44 = vrot.slane %v6574_v62, %v11852_v6 }
0x1bf3   : > { %7411 = vrot.lane.b32.xlu1 %v6554_v45, %s9638_s13  ;;  %v6853_v56 = vpop.permute.xlu1 %6852 }
0x1bf4   : > { %7236 = vperm.xlu0 %8434, %v7215_v22   ;;  %v6885_v60 = vrot.slane %v6853_v56, %v11852_v6  ;;  %v6889_v22 = vsel %vm933_vm5, %v6873_v27, %v6888_v13 }
0x1bf5   : > { %v6890_v25 = vsel %vm936_vm6, %v6877_v51, %v6889_v22 }
0x1bf6   : > { %v6891_v58 = vsel %vm939_vm7, %v6881_v24, %v6890_v25 }
0x1bf7   : > { %v6577_v47 = vpop.permute.xlu1 %6576  ;;  %v6892_v45 = vsel %vm942_vm8, %v6885_v60, %v6891_v58 }
0x1bf8   : > { %7239 = vperm.xlu0 %8434, %v7216_v23   ;;  %v6603_v48 = vrot.slane %v6577_v47, %v11852_v6  ;;  %v6893_v23 = vpack.c.b16 %v6892_v45, %v6892_v45 }
0x1bfa   : > { %v6628_v36 = vsel %vm924_vm2, %v6603_v48, %v6599_v44 }
0x1bfb   : > { %v12889_v53 = vpop.permute.xlu0 %6963  ;;  %v6580_v10 = vpop.permute.xlu1 %6579 }
0x1bfc   : > { %7282 = vrot.lane.b32.xlu0 %v6553_v35, %s9638_s13  ;;  %v6607_v20 = vrot.slane %v6580_v10, %v11852_v6  ;;  %v6990_v62 = vrot.slane %v12889_v53, %v11852_v6 }
0x1bfe   : > { %v6629_v55 = vsel %vm927_vm3, %v6607_v20, %v6628_v36 }
0x1bff   : > { %v12892_v50 = vpop.permute.xlu0 %6966  ;;  %v6583_v26 = vpop.permute.xlu1 %6582 }
0x1c00   : > { %7497 = vperm.xlu0 %8434, %v7474_v31   ;;  %v6611_v38 = vrot.slane %v6583_v26, %v11852_v6  ;;  %v6994_v35 = vrot.slane %v12892_v50, %v11852_v6 }
0x1c02   : > { %v6630_v1 = vsel %vm930_vm4, %v6611_v38, %v6629_v55 }
0x1c03   : > { %v12896_v46 = vpop.permute.xlu0 %6969  ;;  %v6586_v57 = vpop.permute.xlu1 %6585 }
0x1c04   : > { %7540 = vrot.lane.b32.xlu0 %v6555_v54, %s9638_s13  ;;  %v6615_v63 = vrot.slane %v6586_v57, %v11852_v6  ;;  %v6998_v54 = vrot.slane %v12896_v46, %v11852_v6  ;;  %s13125_s13 = scalar_lea.hbm %s13440_s18, %s8066_s15 }
0x1c06   : > { %v6631_v19 = vsel %vm933_vm5, %v6615_v63, %v6630_v1 }
0x1c07   : > { %v12899_v16 = vpop.permute.xlu0 %6972  ;;  %v6589_v43 = vpop.permute.xlu1 %6588 }
0x1c08   : > { %v6619_v11 = vrot.slane %v6589_v43, %v11852_v6  ;;  %v7002_v20 = vrot.slane %v12899_v16, %v11852_v6 }
0x1c0a   : > { %v6632_v8 = vsel %vm936_vm6, %v6619_v11, %v6631_v19 }
0x1c0b   : > { %v12901_v5 = vpop.permute.xlu0 %6975  ;;  %v6592_v49 = vpop.permute.xlu1 %6591 }
0x1c0c   : > { %v6623_v0 = vrot.slane %v6592_v49, %v11852_v6 }
0x1c0e   : > { %v6633_v14 = vsel %vm939_vm7, %v6623_v0, %v6632_v8  ;;  %v7006_v0 = vrot.slane %v12901_v5, %v11852_v6  ;;  %v13433_v8 = vld [vmem:[#allocation29_spill] sm:$0xff] }
0x1c0f   : > { %v12907_v4 = vpop.permute.xlu0 %6978  ;;  %v6595_v59 = vpop.permute.xlu1 %6594  ;;  %v7030_v5 = vsel %vm3201_vm13, %v13433_v8, 0 }
0x1c10   : > { %v6627_v21 = vrot.slane %v6595_v59, %v11852_v6  ;;  %v7010_v19 = vrot.slane %v12907_v4, %v11852_v6 }
0x1c12   : > { %v6634_v30 = vsel %vm942_vm8, %v6627_v21, %v6633_v14 }
0x1c13   : > { %v12918_v41 = vpop.permute.xlu0 %6981  ;;  %v6635_v32 = vpack.c.b16 %v6634_v30, %v6634_v30  ;;  %v6961_v42 = vpop.permute.xlu1 %6960 }
0x1c14   : > { %v6986_v29 = vrot.slane %v6961_v42, %v11852_v6  ;;  %v7014_v17 = vrot.slane %v12918_v41, %v11852_v6 }
0x1c15   : > { %8237 = vmatmul.mubr.msk.bf16.vlgmr.msra.gmra.mrb[20].mxu0 %vm4883_vm10, %v6635_v32 }
0x1c16   : > { %8247 = vmatpush3.bf16.msra.mxu0 %v6901_v9  ;;  %8248 = vmatprep.mubr.msk.bf16.mxu0 %vm9635_vm0, %v13432_v39  ;;  %v7015_v7 = vsel %vm924_vm2, %v6990_v62, %v6986_v29 }
0x1c17   : > { %v6706_v52 = vpop.permute.xlu0 %6705  ;;  %8258 = vmatprep.subr.bf16.mxu0 %v13432_v39  ;;  %v6703_v56 = vpop.permute.xlu1 %6702  ;;  %v7016_v31 = vsel %vm927_vm3, %v6994_v35, %v7015_v7 }
0x1c18   : > { %v6732_v47 = vrot.slane %v6706_v52, %v11852_v6  ;;  %v6728_v53 = vrot.slane %v6703_v56, %v11852_v6  ;;  %v7017_v50 = vsel %vm930_vm4, %v6998_v54, %v7016_v31 }
0x1c19   : > { %v7018_v49 = vsel %vm933_vm5, %v7002_v20, %v7017_v50 }
0x1c1a   : > { %v6757_v48 = vsel %vm924_vm2, %v6732_v47, %v6728_v53  ;;  %v7019_v1 = vsel %vm936_vm6, %v7006_v0, %v7018_v49 }
0x1c1b   : > { %v6709_v18 = vpop.permute.xlu0 %6708  ;;  %v7020_v21 = vsel %vm939_vm7, %v7010_v19, %v7019_v1 }
0x1c1c   : > { %v6736_v10 = vrot.slane %v6709_v18, %v11852_v6  ;;  %v7021_v4 = vsel %vm942_vm8, %v7014_v17, %v7020_v21 }
0x1c1d   : > { %8249 = vmatmul.mubr.msk.bf16.vlgmr.msra.gmra.mrb[24].mxu0 %vm4883_vm10, %v6893_v23  ;;  %v7022_v14 = vpack.c.b16 %v7021_v4, %v7021_v4 }
0x1c1e   : > { %8260 = vmatprep.mubr.msk.bf16.mxu0 %vm9635_vm0, %v13432_v39  ;;  %v6758_v38 = vsel %vm927_vm3, %v6736_v10, %v6757_v48 }
0x1c1f   : > { %v6712_v61 = vpop.permute.xlu0 %6711 }
0x1c20   : > { %v6740_v26 = vrot.slane %v6712_v61, %v11852_v6 }
0x1c21   : > { %v12961_v34 = vpop.permute.xlu1 %7347 }
0x1c22   : > { %v6759_v63 = vsel %vm930_vm4, %v6740_v26, %v6758_v38  ;;  %v7373_v47 = vrot.slane %v12961_v34, %v11852_v6 }
0x1c23   : > { %v6715_v15 = vpop.permute.xlu0 %6714 }
0x1c24   : > { %v6744_v57 = vrot.slane %v6715_v15, %v11852_v6 }
0x1c25   : > { %v12978_v11 = vpop.permute.xlu1 %7353 }
0x1c26   : > { %v6760_v36 = vsel %vm933_vm5, %v6744_v57, %v6759_v63 }
0x1c27   : > { %v6718_v28 = vpop.permute.xlu0 %6717 }
0x1c28   : > { %v6748_v44 = vrot.slane %v6718_v28, %v11852_v6 }
0x1c29   : > { %v7357_v27 = vpop.permute.xlu1 %7356 }
0x1c2a   : > { %v6761_v37 = vsel %vm936_vm6, %v6748_v44, %v6760_v36  ;;  %v7381_v44 = vrot.slane %v12978_v11, %v11852_v6  ;;  %v7385_v49 = vrot.slane %v7357_v27, %v11852_v6 }
0x1c2b   : > { %v6721_v43 = vpop.permute.xlu0 %6720 }
0x1c2c   : > { %v6752_v46 = vrot.slane %v6721_v43, %v11852_v6 }
0x1c2d   : > { %v12999_v2 = vpop.permute.xlu1 %7359 }
0x1c2e   : > { %v6762_v33 = vsel %vm939_vm7, %v6752_v46, %v6761_v37 }
0x1c2f   : > { %v6724_v55 = vpop.permute.xlu0 %6723 }
0x1c30   : > { %v6756_v16 = vrot.slane %v6724_v55, %v11852_v6 }
0x1c32   : > { %v6763_v40 = vsel %vm942_vm8, %v6756_v16, %v6762_v33  ;;  %v7389_v16 = vrot.slane %v12999_v2, %v11852_v6 }
0x1c33   : > { %v6764_v59 = vpack.c.b16 %v6763_v40, %v6763_v40  ;;  %v7351_v41 = vpop.permute.xlu0 %7350 }
0x1c34   : > { %v7377_v56 = vrot.slane %v7351_v41, %v11852_v6 }
0x1c35   : > { %8243 = vmatmul.mubr.msk.bf16.vlgmr.msra.gmra.mrb[36].mxu1 %vm4883_vm10, %v6764_v59 }
0x1c36   : > { %8253 = vmatpush3.bf16.msra.mxu1 %v7030_v5  ;;  %8254 = vmatprep.mubr.msk.bf16.mxu1 %vm9635_vm0, %v13432_v39  ;;  %v7402_v57 = vsel %vm924_vm2, %v7377_v56, %v7373_v47 }
0x1c37   : > { %8264 = vmatprep.subr.bf16.mxu1 %v13432_v39  ;;  %v7403_v38 = vsel %vm927_vm3, %v7381_v44, %v7402_v57 }
0x1c38   : > { %v7404_v11 = vsel %vm930_vm4, %v7385_v49, %v7403_v38  ;;  %v8442_v38 = vld [vmem:[#allocation13] sm:$0xff]  }
0x1c39   : > { %v7405_v5 = vsel %vm933_vm5, %v7389_v16, %v7404_v11 }
0x1c3d   : > { %8255 = vmatmul.mubr.msk.bf16.vlgmr.msra.gmra.mrb[40].mxu1 %vm4883_vm10, %v7022_v14  ;;  %v7093_v30 = vpop.permute.xlu0 %7092 }
0x1c3e   : > { %8266 = vmatprep.mubr.msk.bf16.mxu1 %vm9635_vm0, %v13432_v39  ;;  %v7090_v51 = vpop.permute.xlu1 %7089  ;;  %v7119_v29 = vrot.slane %v7093_v30, %v11852_v6 }
0x1c3f   : > { %v7115_v23 = vrot.slane %v7090_v51, %v11852_v6 }
0x1c41   : > { %v7144_v31 = vsel %vm924_vm2, %v7119_v29, %v7115_v23 }
0x1c42   : > { %v7096_v52 = vpop.permute.xlu1 %7095 }
0x1c43   : > { %v7123_v15 = vrot.slane %v7096_v52, %v11852_v6 }
0x1c45   : > { %v7145_v54 = vsel %vm927_vm3, %v7123_v15, %v7144_v31 }
0x1c46   : > { %v7099_v24 = vpop.permute.xlu1 %7098 }
0x1c47   : > { %v7480_v3 = vpop.permute.xlu0 %7479  ;;  %v7127_v7 = vrot.slane %v7099_v24, %v11852_v6 }
0x1c48   : > { %v7506_v17 = vrot.slane %v7480_v3, %v11852_v6 }
0x1c49   : > { %v7146_v43 = vsel %vm930_vm4, %v7127_v7, %v7145_v54 }
0x1c4a   : > { %v7102_v13 = vpop.permute.xlu1 %7101 }
0x1c4b   : > { %v13004_v32 = vpop.permute.xlu0 %7482  ;;  %v7131_v28 = vrot.slane %v7102_v13, %v11852_v6 }
0x1c4c   : > { %v7510_v52 = vrot.slane %v13004_v32, %v11852_v6 }
0x1c4d   : > { %v7147_v34 = vsel %vm933_vm5, %v7131_v28, %v7146_v43 }
0x1c4e   : > { %v7105_v12 = vpop.permute.xlu1 %7104 }
0x1c4f   : > { %v13006_v60 = vpop.permute.xlu0 %7485  ;;  %v7135_v10 = vrot.slane %v7105_v12, %v11852_v6 }
0x1c50   : > { %v7514_v32 = vrot.slane %v13006_v60, %v11852_v6 }
0x1c51   : > { %v7148_v20 = vsel %vm936_vm6, %v7135_v10, %v7147_v34 }
0x1c52   : > { %v7108_v22 = vpop.permute.xlu1 %7107 }
0x1c53   : > { %v13008_v9 = vpop.permute.xlu0 %7488  ;;  %v7139_v53 = vrot.slane %v7108_v22, %v11852_v6 }
0x1c54   : > { %v7518_v28 = vrot.slane %v13008_v9, %v11852_v6 }
0x1c55   : > { %v7149_v46 = vsel %vm939_vm7, %v7139_v53, %v7148_v20 }
0x1c56   : > { %v7111_v18 = vpop.permute.xlu1 %7110 }
0x1c57   : > { %v13010_v25 = vpop.permute.xlu0 %7491  ;;  %v7143_v50 = vrot.slane %v7111_v18, %v11852_v6 }
0x1c58   : > { %v7522_v53 = vrot.slane %v13010_v25, %v11852_v6 }
0x1c59   : > { %v7150_v36 = vsel %vm942_vm8, %v7143_v50, %v7149_v46 }
0x1c5a   : > { %v7477_v45 = vpop.permute.xlu1 %7476  ;;  %v7151_v33 = vpack.c.b16 %v7150_v36, %v7150_v36 }
0x1c5b   : > { %v13012_v58 = vpop.permute.xlu0 %7494  ;;  %v7502_v1 = vrot.slane %v7477_v45, %v11852_v6 }
0x1c5c   : > { %v7526_v9 = vrot.slane %v13012_v58, %v11852_v6  ;;  %v8443_v58 = vld [vmem:[#allocation13 + $0x8] sm:$0xff]  }
0x1c5d   : > { %v7531_v14 = vsel %vm924_vm2, %v7506_v17, %v7502_v1 }
0x1c5e   : > { %v7219_v61 = vpop.permute.xlu1 %7218  ;;  %v7532_v45 = vsel %vm927_vm3, %v7510_v52, %v7531_v14 }
0x1c5f   : > { %v7222_v42 = vpop.permute.xlu0 %7221  ;;  %v7244_v2 = vrot.slane %v7219_v61, %v11852_v6  ;;  %v7533_v7 = vsel %vm930_vm4, %v7514_v32, %v7532_v45 }
0x1c60   : > { %v7248_v8 = vrot.slane %v7222_v42, %v11852_v6  ;;  %v7534_v10 = vsel %vm933_vm5, %v7518_v28, %v7533_v7 }
0x1c61   : > { %v7535_v57 = vsel %vm936_vm6, %v7522_v53, %v7534_v10 }
0x1c62   : > { %v7363_v35 = vpop.permute.xlu1 %7362  ;;  %v7273_v12 = vsel %vm924_vm2, %v7248_v8, %v7244_v2  ;;  %v8445_v8 = vld [vmem:[%s13434_s17 + $0x8] sm:$0xff]  }
0x1c63   : > { %v7225_v62 = vpop.permute.xlu0 %7224  ;;  %v7393_v37 = vrot.slane %v7363_v35, %v11852_v6 }
0x1c64   : > { %v7252_v4 = vrot.slane %v7225_v62, %v11852_v6 }
0x1c65   : > { %v7406_v27 = vsel %vm936_vm6, %v7393_v37, %v7405_v5 }
0x1c66   : > { %v7366_v48 = vpop.permute.xlu1 %7365  ;;  %v7274_v42 = vsel %vm927_vm3, %v7252_v4, %v7273_v12 }
0x1c67   : > { %v7228_v26 = vpop.permute.xlu0 %7227  ;;  %v7397_v40 = vrot.slane %v7366_v48, %v11852_v6  ;;  %v7536_v48 = vsel %vm939_vm7, %v7526_v9, %v7535_v57 }
0x1c68   : > { %v7256_v51 = vrot.slane %v7228_v26, %v11852_v6 }
0x1c69   : > { %v7407_v41 = vsel %vm939_vm7, %v7397_v40, %v7406_v27 }
0x1c6a   : > { %v7154_v55 = vpop.permute.xlu1 %7153  ;;  %v7275_v23 = vsel %vm930_vm4, %v7256_v51, %v7274_v42 }
0x1c6b   : > { %v7231_v63 = vpop.permute.xlu0 %7230  ;;  %v7159_v0 = vsel %vm3201_vm13, %v7154_v55, 0 }
0x1c6c   : > { %8259 = vmatpush3.bf16.msra.mxu0 %v7159_v0  ;;  %v7260_v3 = vrot.slane %v7231_v63, %v11852_v6 }
0x1c6d   : > { %8270 = vmatprep.subr.bf16.mxu0 %v13432_v39 }
0x1c6e   : > { %v7369_v59 = vpop.permute.xlu1 %7368  ;;  %v7276_v62 = vsel %vm933_vm5, %v7260_v3, %v7275_v23  ;;  %v13435_v23 = vld [vmem:[#allocation24_spill] sm:$0xff] }
0x1c6f   : > { %v7234_v19 = vpop.permute.xlu0 %7233  ;;  %v7401_v21 = vrot.slane %v7369_v59, %v11852_v6  ;;  %8261 = vmatmul.mubr.msk.bf16.vlgmr.msra.gmra.mrb[28].mxu0 %vm4883_vm10, %v7151_v33 }
0x1c70   : > { %8272 = vmatprep.mubr.msk.bf16.mxu0 %vm9635_vm0, %v13432_v39  ;;  %v7264_v22 = vrot.slane %v7234_v19, %v11852_v6 }
0x1c71   : > { %v7408_v24 = vsel %vm942_vm8, %v7401_v21, %v7407_v41 }
0x1c72   : > { %v7412_v13 = vpop.permute.xlu1 %7411  ;;  %v7409_v29 = vpack.c.b16 %v7408_v24, %v7408_v24  ;;  %v7277_v35 = vsel %vm936_vm6, %v7264_v22, %v7276_v62  ;;  %v13438_v62 = vld [vmem:[#allocation27_spill] sm:$0xff] }
0x1c73   : > { %v7237_v30 = vpop.permute.xlu0 %7236  ;;  %v7417_v18 = vsel %vm3201_vm13, %v7412_v13, 0 }
0x1c74   : > { %8271 = vmatpush3.bf16.msra.mxu0 %v7417_v18  ;;  %v7268_v61 = vrot.slane %v7237_v30, %v11852_v6 }
0x1c75   : > { %8282 = vmatprep.subr.bf16.mxu0 %v8442_v38 }
0x1c76   : > { %v7278_v47 = vsel %vm939_vm7, %v7268_v61, %v7277_v35 }
0x1c77   : > { %v7240_v15 = vpop.permute.xlu0 %7239  ;;  %8273 = vmatmul.mubr.msk.bf16.vlgmr.msra.gmra.mrb[32].mxu0 %vm4883_vm10, %v7409_v29  ;;  %v13436_v29 = vld [vmem:[#allocation25_spill] sm:$0xff] }
0x1c78   : > { %v7272_v56 = vrot.slane %v7240_v15, %v11852_v6  ;;  %8283 = vmatpush3.bf16.msra.mxu0 %v8442_v38  ;;  %v13437_v15 = vld [vmem:[#allocation26_spill] sm:$0xff] }
0x1c79   : > { %8284 = vmatprep.subr.bf16.mxu0 %v8443_v58 }
0x1c7a   : > { %v7279_v60 = vsel %vm942_vm8, %v7272_v56, %v7278_v47  ;;  %v8059_v56 = vld [vmem:[%s13439_s12] ss:$0 sm:$0xff]  ;;  %s9549_s12 = scalar_lea.vmem %s9548_s20, 2048 }
0x1c7b   : > { %v7283_v31 = vpop.permute.xlu0 %7282  ;;  %v7280_v26 = vpack.c.b16 %v7279_v60, %v7279_v60  ;;  %p9551_p0 = scmp.lt.s32.totalorder %s9549_s12, %s9543_s19 }
0x1c7c   : > { %v7288_v54 = vsel %vm3201_vm13, %v7283_v31, 0  ;;  %8285 = vmatpush3.bf16.msra.mxu0 %v8443_v58 }
0x1c7d   : > { %8265 = vmatpush3.bf16.msra.mxu1 %v7288_v54  ;;  %p9552_p2 = por %p9551_p0, %p9550_p13 }
0x1c7e   : > { %8276 = vmatprep.subr.bf16.mxu1 %v13432_v39 }
0x1c7f   : > { %v7498_v43 = vpop.permute.xlu0 %7497  ;;  %p9553_p8 = pnand %p9552_p2, %p9546_p1 }
0x1c80   : > { %v7530_v50 = vrot.slane %v7498_v43, %v11852_v6  ;;  %8267 = vmatmul.mubr.msk.bf16.vlgmr.msra.gmra.mrb[44].mxu1 %vm4883_vm10, %v7280_v26  ;;  %v8444_v6 = vld [vmem:[%s13434_s17] sm:$0xff]  }
0x1c81   : > { %8278 = vmatprep.mubr.msk.bf16.mxu1 %vm9635_vm0, %v13432_v39  ;;  %8294 = vmatprep.subr.bf16.mxu0 %v8444_v6 }
0x1c82   : > { %v7537_v25 = vsel %vm942_vm8, %v7530_v50, %v7536_v48 }
0x1c83   : > { %v7541_v44 = vpop.permute.xlu0 %7540  ;;  %v7538_v20 = vpack.c.b16 %v7537_v25, %v7537_v25 }
0x1c84   : > { %v7546_v34 = vsel %vm3201_vm13, %v7541_v44, 0 }
0x1c85   : > { %8277 = vmatpush3.bf16.msra.mxu1 %v7546_v34 }
0x1c88   : > { %8279 = vmatmul.mubr.msk.bf16.vlgmr.msra.gmra.mrb[48].mxu1 %vm4883_vm10, %v7538_v20 }
0x1ce8   : > { %v6679_v39 = vpop.f32.mrb[20].mxu0 }
0x1ce9   : > { %v8238_v46 = vpop.f32.mrb[21].mxu0 }
0x1cea   : > { %v6682_v63 = vpop.f32.mrb[22].mxu0 }
0x1ceb   : > { %v8239_v49 = vpop.f32.mrb[23].mxu0 }
0x1cf0   : > { %v6937_v36 = vpop.f32.mrb[24].mxu0 }
0x1cf1   : > { %v8250_v55 = vpop.f32.mrb[25].mxu0 }
0x1cf2   : > { %v6940_v0 = vpop.f32.mrb[26].mxu0 }
0x1cf3   : > { %v8251_v37 = vpop.f32.mrb[27].mxu0 }
0x1d08   : > { %v6808_v11 = vpop.f32.mrb[36].mxu1 }
0x1d09   : > { %v7588_v16 = vpack.c.bf16 %v6808_v11, %v6679_v39  ;;  %v8244_v33 = vpop.f32.mrb[37].mxu1 }
0x1d0a   : > { %v6811_v1 = vpop.f32.mrb[38].mxu1 }
0x1d0b   : > { %v8245_v40 = vpop.f32.mrb[39].mxu1  ;;  %8286 = vmatprep.mubr.msk.bf16.mxu0 %vm639_vm9, %v7588_v16 }
0x1d10   : > { %v7066_v19 = vpop.f32.mrb[40].mxu1 }
0x1d11   : > { %v7589_v59 = vpack.c.bf16 %v7066_v19, %v6937_v36  ;;  %v8256_v17 = vpop.f32.mrb[41].mxu1 }
0x1d12   : > { %v7069_v5 = vpop.f32.mrb[42].mxu1 }
0x1d13   : > { %v8257_v21 = vpop.f32.mrb[43].mxu1  ;;  %8287 = vmatmul.mubr.msk.bf16.vlgmr.msra.gmra.mrb[36].mxu0 %vm639_vm9, %v7589_v59 }
0x1d14   : > { %8295 = vmatpush3.bf16.msra.mxu0 %v8444_v6 }
0x1d15   : > { %8296 = vmatprep.subr.bf16.mxu0 %v8445_v8 }
0x1d18   : > { %8297 = vmatpush3.bf16.msra.mxu0 %v8445_v8 }
0x1d42   : > { %v7195_v27 = vpop.f32.mrb[28].mxu0 }
0x1d43   : > { %v8262_v4 = vpop.f32.mrb[29].mxu0 }
0x1d44   : > { %v7198_v14 = vpop.f32.mrb[30].mxu0 }
0x1d45   : > { %v8263_v2 = vpop.f32.mrb[31].mxu0 }
0x1d4a   : > { %v7453_v41 = vpop.f32.mrb[32].mxu0 }
0x1d4b   : > { %v8274_v51 = vpop.f32.mrb[33].mxu0 }
0x1d4c   : > { %v7456_v30 = vpop.f32.mrb[34].mxu0 }
0x1d4d   : > { %v8275_v52 = vpop.f32.mrb[35].mxu0 }
0x1d53   : > { %v7324_v3 = vpop.f32.mrb[44].mxu1 }
0x1d54   : > { %v7590_v24 = vpack.c.bf16 %v7324_v3, %v7195_v27  ;;  %v8268_v13 = vpop.f32.mrb[45].mxu1 }
0x1d55   : > { %v7327_v12 = vpop.f32.mrb[46].mxu1 }
0x1d56   : > { %v8269_v22 = vpop.f32.mrb[47].mxu1  ;;  %8290 = vmatprep.mubr.msk.bf16.mxu0 %vm639_vm9, %v7590_v24 }
0x1d5b   : > { %v7582_v18 = vpop.f32.mrb[48].mxu1 }
0x1d5c   : > { %v7591_v45 = vpack.c.bf16 %v7582_v18, %v7453_v41  ;;  %v8280_v42 = vpop.f32.mrb[49].mxu1 }
0x1d5d   : > { %v7585_v61 = vpop.f32.mrb[50].mxu1 }
0x1d5e   : > { %v8281_v32 = vpop.f32.mrb[51].mxu1  ;;  %8291 = vmatmul.mubr.msk.bf16.gmra.mrb[40].mxu0 %vm639_vm9, %v7591_v45 }
0x1d5f   : > { %8298 = vmatprep.mubr.msk.bf16.mxu0 %vm639_vm9, %v13435_v23 }
0x1d66   : > { %8299 = vmatmul.mubr.msk.bf16.vlgmr.msra.gmra.mrb[36].mxu0 %vm639_vm9, %v13436_v29 }
0x1d67   : > { %8302 = vmatprep.mubr.msk.bf16.mxu0 %vm639_vm9, %v13437_v15 }
0x1d6e   : > { %8303 = vmatmul.mubr.msk.bf16.gmra.mrb[40].mxu0 %vm639_vm9, %v13438_v62 }
0x1e39   : > { %v8300_v7 = vpop.f32.mrb[36].mxu0 }
0x1e3a   : > { %v7766_v35 = vadd.f32 %v8300_v7, %v8059_v56  ;;  %v7727_v28 = vpop.f32.mrb[37].mxu0 }
0x1e3b   : > { %v7764_v47 = vadd.f32 %v8059_v56, %v7727_v28  ;;  %v8301_v60 = vpop.f32.mrb[38].mxu0 }
0x1e3c   : > { %7774 = vst [vmem:[%s514_s30 + $0x10] sm:$0xff] %v7766_v35  ;;  %v7767_v31 = vadd.f32 %v8301_v60, %v8059_v56  ;;  %v7730_v10 = vpop.f32.mrb[39].mxu0 }
0x1e3d   : > { %7772 = vst [vmem:[%s514_s30] sm:$0xff] %v7764_v47  ;;  %v7765_v54 = vadd.f32 %v8059_v56, %v7730_v10 }
0x1e3e   : > { %7775 = vst [vmem:[%s514_s30 + $0x18] sm:$0xff] %v7767_v31 }
0x1e3f   : > { %7773 = vst [vmem:[%s514_s30 + $0x8] sm:$0xff] %v7765_v54 }
0x1e41   : > { %v8304_v53 = vpop.f32.mrb[40].mxu0 }
0x1e42   : > { %v7770_v26 = vadd.f32 %v8304_v53, %v8059_v56  ;;  %v7743_v57 = vpop.f32.mrb[41].mxu0 }
0x1e43   : > { %v7768_v43 = vadd.f32 %v8059_v56, %v7743_v57  ;;  %v8305_v9 = vpop.f32.mrb[42].mxu0 }
0x1e44   : > { %7778 = vst [vmem:[%s514_s30 + $0x30] sm:$0xff] %v7770_v26  ;;  %v7771_v50 = vadd.f32 %v8305_v9, %v8059_v56  ;;  %v7746_v48 = vpop.f32.mrb[43].mxu0 }
0x1e45   : > { %7776 = vst [vmem:[%s514_s30 + $0x20] sm:$0xff] %v7768_v43  ;;  %v7769_v25 = vadd.f32 %v8059_v56, %v7746_v48 }
0x1e46   : > { %7779 = vst [vmem:[%s514_s30 + $0x38] sm:$0xff] %v7771_v50 }
0x1e47   : > { %7777 = vst [vmem:[%s514_s30 + $0x28] sm:$0xff] %v7769_v25 }
0x1e48   : > { %9556 = shalt.err (!%p9553_p8)
}
0x1e49   : > { %s9557_s30 = scalar_lea.hbm %s13125_s13, 1024  ;;  %s9561_s28 = scalar_lea.hbm %s13440_s18, 2048 }
0x1e4a   : > { %p9558_p4 = scmp.ne.s32.totalorder %s13125_s13, %s9557_s30  ;;  %p9562_p3 = scmp.lt.u32.totalorder %s13125_s13, %s13440_s18 }
0x1e4b   : > { %p9563_p5 = scmp.lt.u32.totalorder %s9561_s28, %s9557_s30  ;;  %p9565_p6 = scmp.lt.u32.totalorder %s9557_s30, %s13125_s13 }
0x1e4c   : > { %p9559_p10 = pnand %p9558_p4, %p13441_p9 }
0x1e4d   : > { %p9564_p7 = por %p9563_p5, %p9562_p3 }
0x1e4e   : > { %p9560_p11 = pneg %p9559_p10 }
0x1e4f   : > { %p9566_p12 = por %p9565_p6, %p9564_p7 }
0x1e51   : > { %p9567_p1 = pnand %p9566_p12, %p9560_p11 }
0x1e53   : > { %9570 = shalt.err (!%p9567_p1)
}
0x1e54   : > { %s9641_s19 = smov 128   ;;  %s9642_s12 = smov 8  }
0x1e55   : > { %8340 = dma.vmem_to_hbm [thread:$0]  (%p13441_p9), %s13120_s5, 1024, %s13125_s13, %s7781_s27, %s9641_s19, %s9641_s19, %s9642_s12  }
0x1e56 PF: > { %s7809_s15 = sand.u32 1, %s9609_s21   ;;  %p13442_p13 = scmp.ne.s32.totalorder %s13275_s26, 0 }
0x1e57   : > { %p13443_p0 = scmp.ge.s32.totalorder %s9621_s24, 2  ;;  %s7810_s30 = scalar_lea.sflag [#allocation4], %s7809_s15 }
0x1e59   : > { %p8366_p2 = pnand %p13443_p0, %p13442_p13 }
0x1e5b   : > { %9604 = dma.done.wait (!%p8366_p2), %s7810_s30, 1024  }
0x1e5c   : > { %9606 = vsyncadd (!%p8366_p2), %s7810_s30, 4294966272  ;;  %p28_p8 = scmp.ge.s32.totalorder %s9897_s25, 4   ;;  %s13444_s21 = smov %s9613_s22 }
0x1e5d   : > { %s13445_s22 = smov %s9617_s23  ;;  %s13446_s23 = smov %s9908_s16 }
0x1e5e   : > { %s13447_s24 = smov %s9897_s25  ;;  %30 = sbr.rel (!%p28_p8) target bundleno = 13 (0xd), region = 137 }
0x1e65   :  { %7815 = vsyncpa [#allocation3], 1 }
0x1e66   :  { %7817 = vsyncpa [#allocation3 + $0x1], 1 }
0x1e67   :  { %7818 = vsyncpa [#allocation6], 1 }
0x1e68   :  { %7819 = vsyncpa [#allocation9], 1 }
0x1e69   :  { %7820 = vsyncpa [#allocation12], 1 }
0x1e6a   :  { %7821 = vsyncpa [#allocation4], 1 }
0x1e6b   :  { %7823 = vsyncpa [#allocation4 + $0x1], 1 }

</bundles_post_ra>
